<compile_context>
chip_gen: v5e
topology: v5e:2x2
jax: 0.10.0
libtpu: 0.0.40
codegen_flags: <defaults>
</compile_context>

<pallas_src>
import math

import jax
import jax.numpy as jnp
from jax import lax
from jax.experimental import pallas as pl
from jax.experimental.pallas import tpu as pltpu

# ---- small, module-consistent shapes ----------------------------------------
B = 2              # batch
S = 32             # pad_size (shrunk from 256)
H = 64             # bert hidden_size (shrunk from 768)
KH = 10            # conv1 kernel height -> Conv2d(1, 1, (10, H))
T = S - KH + 1     # conv1 output length (valid conv) = 23
RH = 20            # rnn_hidden (true width)
RHP = 32           # rnn_hidden padded to a 32-lane aligned block
NL = 2             # num_layers
ND = 2             # directions (bidirectional)
D2 = ND * RHP      # fused hidden width [fwd | bwd] = 64
G2 = 4 * ND * RHP  # fused gate width, blocks [i | f | o | g] of 64 each = 256
NC = 2             # num_classes
VOCAB = 50
SB = S * B         # time-major, batch-interleaved encoder rows = 64
TB = T * B         # time-major, batch-interleaved conv/LSTM rows = 46


def _fused_kernel(enc_ref, wconv_ref, wih0_ref, wih1_ref, whh_ref, bias_ref,
                  wfc_ref, bfc_ref, out_ref, proj_scr, gsum_scr, ys_scr):
    f32 = jnp.float32

    # ---- conv1: one full-width projection + shifted one-hot column adds -----
    # enc rows 0:SB    : row u*B+b = enc[b, u, :]           (forward time)
    # enc rows SB:2*SB : row u*B+b = enc[b, S-1-u, :]       (reversed time)
    proj_scr[...] = jnp.dot(enc_ref[...], wconv_ref[...],
                            preferred_element_type=f32)          # (2*SB, KH)
    lane = lax.broadcasted_iota(jnp.int32, (1, KH), 1)
    conv_f = jnp.zeros((TB, KH), f32)
    conv_b = jnp.zeros((TB, KH), f32)
    for kh in range(KH):
        conv_f = conv_f + jnp.where(lane == kh,
                                    proj_scr[kh * B:kh * B + TB, :], 0.0)
        conv_b = conv_b + jnp.where(lane == (KH - 1 - kh),
                                    proj_scr[SB + kh * B:SB + kh * B + TB, :],
                                    0.0)
    conv = jnp.sum(conv_f, axis=1, keepdims=True)        # (TB,1) conv @ time t
    conv_rev = jnp.sum(conv_b, axis=1, keepdims=True)    # (TB,1) conv @ T-1-t

    # layer-0 fused gate inputs: row t*B+b holds gx_fwd(t) + gx_bwd(T-1-t).
    # All biases (incl. the folded conv bias) live in bias_ref[0].
    gsum_scr[...] = (conv * wih0_ref[0:1, :] + conv_rev * wih0_ref[1:2, :]
                     + bias_ref[0:1, :])

    # per-lane constants for the tanh-form sigmoid (lanes 0:192 = i,f,o)
    gl = lax.broadcasted_iota(jnp.int32, (B, G2), 1)
    is_sig = gl < 3 * D2
    post_scale = jnp.where(is_sig, 0.5, 1.0).astype(f32)
    post_off = jnp.where(is_sig, 0.5, 0.0).astype(f32)

    # ---- 2-layer bidirectional LSTM, directions + batch fused per step ------
    for layer in range(NL):
        if layer == 1:
            # single fused dot: [A | B] layout of ys_scr matches wih1 row order
            gsum_scr[...] = (jnp.dot(ys_scr[...], wih1_ref[...],
                                     preferred_element_type=f32)
                             + bias_ref[1:2, :])

        whh_l = whh_ref[layer]                           # (D2, G2) block-diag
        h = jnp.zeros((B, D2), f32)                      # [fwd(32) | bwd(32)]
        c = jnp.zeros((B, D2), f32)

        # fully unrolled fused recurrence: fwd consumes time s, bwd time T-1-s
        for s in range(T):
            tb = T - 1 - s
            g = gsum_scr[s * B:(s + 1) * B, :]
            if s > 0:
                g = g + jnp.dot(h, whh_l, preferred_element_type=f32)
            t_act = jnp.tanh(g)                          # one EUP pass, all gates
            act = t_act * post_scale + post_off          # sigmoid = 0.5*(1+tanh)
            i_g = act[:, 0 * D2:1 * D2]
            f_g = act[:, 1 * D2:2 * D2]
            o_g = act[:, 2 * D2:3 * D2]
            g_g = act[:, 3 * D2:4 * D2]
            c = f_g * c + i_g * g_g
            h = o_g * jnp.tanh(c)
            ys_scr[s * B:(s + 1) * B, 0:D2] = h          # "A": step order
            ys_scr[tb * B:(tb + 1) * B, D2:2 * D2] = h   # "B": reversed order

    # ---- attention_net: per-batch softmax(y y^T / sqrt(d_k)) y, summed over t
    ysv = ys_scr[...]                                            # (TB, 2*D2)
    # y1(t) = [h1_fwd(t) | h1_bwd(t)]  (A cols 0:32, B cols 96:128)
    y = jnp.concatenate([ysv[:, 0:RHP], ysv[:, D2 + RHP:2 * D2]], axis=1)
    scale = 1.0 / math.sqrt(2 * RH)                      # d_k = true width 40
    yq = y * scale                                       # fold scale into query
    scores = lax.dot_general(yq, y, (((1,), (1,)), ((), ())),
                             preferred_element_type=f32)         # (TB, TB)
    r = lax.broadcasted_iota(jnp.int32, (TB, TB), 0)
    col = lax.broadcasted_iota(jnp.int32, (TB, TB), 1)
    scores = jnp.where((r % B) == (col % B), scores, -1e30)
    m = jnp.max(scores, axis=-1, keepdims=True)
    e = jnp.exp(scores - m)
    denom = jnp.sum(e, axis=-1, keepdims=True)
    alpha = e * pl.reciprocal(denom, approx=True)

    # sum over time per batch element: fold the selection into alpha first
    rb = lax.broadcasted_iota(jnp.int32, (B, TB), 0)
    cb = lax.broadcasted_iota(jnp.int32, (B, TB), 1)
    sel = ((cb % B) == rb).astype(f32)                           # (B, TB)
    alpha_b = jnp.dot(sel, alpha, preferred_element_type=f32)    # (B, TB)
    ctx = jnp.dot(alpha_b, y, preferred_element_type=f32)        # (B, D2)

    # ---- fc_cnn --------------------------------------------------------------
    out_ref[...] = jnp.dot(ctx, wfc_ref[...],
                           preferred_element_type=f32) + bfc_ref[...]


def model_forward(x_tuple, params):
    """x_tuple = (token_ids, seq_len, mask) mirroring the torch forward."""
    token_ids, _seq_len, _mask = x_tuple
    # TODO(synk): frozen pretrained BertModel stood in by an embedding lookup.
    enc = params["emb"][token_ids]                               # (B, S, H) f32
    # time-major, batch-interleaved rows (forward and time-reversed copies)
    enc_f = jnp.transpose(enc, (1, 0, 2)).reshape(SB, H)
    enc_r = jnp.transpose(enc[:, ::-1, :], (1, 0, 2)).reshape(SB, H)
    enc_both = jnp.concatenate([enc_f, enc_r], axis=0)           # (2*SB, H)

    kernel = pl.pallas_call(
        _fused_kernel,
        out_shape=jax.ShapeDtypeStruct((B, NC), jnp.float32),
        grid_spec=pltpu.PrefetchScalarGridSpec(
            num_scalar_prefetch=0,
            grid=(1,),
            in_specs=[
                pl.BlockSpec((2 * SB, H), lambda i: (0, 0)),      # enc fwd+rev
                pl.BlockSpec((H, KH), lambda i: (0, 0)),          # conv weight^T
                pl.BlockSpec((ND, G2), lambda i: (0, 0)),         # w_ih layer 0
                pl.BlockSpec((2 * D2, G2), lambda i: (0, 0)),     # w_ih layer 1 (stacked)
                pl.BlockSpec((NL, D2, G2), lambda i: (0, 0, 0)),  # w_hh block-diag
                pl.BlockSpec((NL, G2), lambda i: (0, 0)),         # lstm biases
                pl.BlockSpec((D2, NC), lambda i: (0, 0)),         # fc weight
                pl.BlockSpec((1, NC), lambda i: (0, 0)),          # fc bias
            ],
            out_specs=pl.BlockSpec((B, NC), lambda i: (0, 0)),
            scratch_shapes=[
                pltpu.VMEM((2 * SB, KH), jnp.float32),   # conv projection
                pltpu.VMEM((TB, G2), jnp.float32),       # fused fwd+bwd gate inputs
                pltpu.VMEM((TB, 2 * D2), jnp.float32),   # hidden seq [step | rev] order
            ],
        ),
        compiler_params=pltpu.CompilerParams(
            dimension_semantics=("arbitrary",)),
    )
    return kernel(enc_both, params["w_convT"], params["wih0"], params["wih1"],
                  params["whh"], params["b_lstm"], params["w_fc"],
                  params["b_fc"])


def init_params(key):
    ks = jax.random.split(key, 24)
    p = {}
    p["emb"] = (jax.random.normal(ks[0], (VOCAB, H)) * 0.02).astype(jnp.float32)
    w_conv = (jax.random.normal(ks[1], (KH, H)) *
              (1.0 / math.sqrt(KH * H))).astype(jnp.float32)
    p["w_convT"] = w_conv.T                                      # (H, KH)
    b_conv = 0.01

    # LSTM params generated in PyTorch layout (i, f, g, o gate order) and
    # re-packed into the fused/padded layout used by the kernel:
    #   gate blocks (new order): [i | f | o | g], each = [fwd RHP | bwd RHP]
    #   column index = blk*D2 + dir*RHP + unit   (unit < RH used, rest MUST be 0)
    std = 1.0 / math.sqrt(RH)
    gate_perm = (0, 1, 3, 2)          # torch gate idx (i,f,g,o) -> block idx

    def pack_cols(w_t, d):
        in_dim = w_t.shape[0]
        w = w_t.reshape(in_dim, 4, RH)
        out = jnp.zeros((in_dim, 4, ND, RHP), jnp.float32)
        for gpt, blk in enumerate(gate_perm):
            out = out.at[:, blk, d, :RH].set(w[:, gpt].astype(jnp.float32))
        return out.reshape(in_dim, G2)

    wih0 = jnp.zeros((ND, G2), jnp.float32)
    wih1_f = jnp.zeros((D2, G2), jnp.float32)
    wih1_b = jnp.zeros((D2, G2), jnp.float32)
    whh = jnp.zeros((NL, D2, G2), jnp.float32)
    blstm = jnp.zeros((NL, G2), jnp.float32)

    idx = 2
    for layer in range(NL):
        in_dim = 1 if layer == 0 else 2 * RH
        for d in range(ND):
            wih_pt = jax.random.normal(ks[idx], (4 * RH, in_dim)) * std; idx += 1
            whh_pt = jax.random.normal(ks[idx], (4 * RH, RH)) * std;     idx += 1
            bih = jax.random.normal(ks[idx], (4 * RH,)) * std;           idx += 1
            bhh = jax.random.normal(ks[idx], (4 * RH,)) * std;           idx += 1

            whh = whh.at[layer, d * RHP:d * RHP + RH, :].set(
                pack_cols(whh_pt.T, d))
            blstm = blstm.at[layer, :].add(
                pack_cols((bih + bhh).reshape(1, 4 * RH), d)[0])
            if layer == 0:
                wih0 = wih0.at[d, :].set(pack_cols(wih_pt.T, d)[0])
            else:
                cols = pack_cols(wih_pt.T, d)            # (2*RH, G2)
                tgt = wih1_f if d == 0 else wih1_b
                tgt = tgt.at[0:RH, :].set(cols[0:RH])
                tgt = tgt.at[RHP:RHP + RH, :].set(cols[RH:2 * RH])
                if d == 0:
                    wih1_f = tgt
                else:
                    wih1_b = tgt

    # fold the conv bias into the layer-0 LSTM bias: (conv+b)*w = conv*w + b*w
    blstm = blstm.at[0, :].add(b_conv * (wih0[0] + wih0[1]))

    # stack layer-1 input weights to match ys_scr columns [A(0:64) | B(64:128)]:
    #   A = [h_fwd(t) | h_bwd(T-1-t)],  B = [h_fwd(T-1-t) | h_bwd(t)]
    wih1_stack = jnp.concatenate(
        [wih1_f[0:RHP], wih1_b[RHP:D2], wih1_b[0:RHP], wih1_f[RHP:D2]], axis=0)

    # fold sigmoid(x) = 0.5*(1+tanh(x/2)) pre-scale into all i/f/o gate columns
    sig_scale = jnp.where(jnp.arange(G2) < 3 * D2, 0.5, 1.0).astype(jnp.float32)
    wih0 = wih0 * sig_scale[None, :]
    wih1_stack = wih1_stack * sig_scale[None, :]
    whh = whh * sig_scale[None, None, :]
    blstm = blstm * sig_scale[None, :]

    # guard the zero-padding invariant (padded h/c lanes must stay exactly 0)
    def _pad_cols(a):
        return a.reshape(a.shape[:-1] + (4, ND, RHP))[..., RH:]
    assert float(jnp.max(jnp.abs(_pad_cols(whh)))) == 0.0
    assert float(jnp.max(jnp.abs(_pad_cols(blstm)))) == 0.0
    assert float(jnp.max(jnp.abs(_pad_cols(wih0)))) == 0.0
    assert float(jnp.max(jnp.abs(_pad_cols(wih1_stack)))) == 0.0

    p["wih0"], p["wih1"], p["whh"], p["b_lstm"] = wih0, wih1_stack, whh, blstm

    wfc_pt = jax.random.normal(ks[idx], (NC, 2 * RH)) * (1.0 / math.sqrt(2 * RH))
    bfc_pt = jax.random.normal(ks[idx + 1], (NC,)) * (1.0 / math.sqrt(2 * RH))
    wfc = jnp.zeros((D2, NC), jnp.float32)
    wfc = wfc.at[0:RH, :].set(wfc_pt.T[0:RH].astype(jnp.float32))
    wfc = wfc.at[RHP:RHP + RH, :].set(wfc_pt.T[RH:2 * RH].astype(jnp.float32))
    p["w_fc"] = wfc
    p["b_fc"] = bfc_pt.reshape(1, NC).astype(jnp.float32)
    return p


if __name__ == "__main__":
    root = jax.random.PRNGKey(0)
    pkey, dkey = jax.random.split(root)
    params = init_params(pkey)

    # inputs mirroring the torch forward signature x = (context, seq_len, mask)
    token_ids = jax.random.randint(dkey, (B, S), 0, VOCAB)
    seq_len = jnp.full((B,), S, jnp.int32)               # unused after BERT
    mask = jnp.ones((B, S), jnp.int32)                   # only feeds BERT stand-in

    out = model_forward((token_ids, seq_len, mask), params)
    out = jax.block_until_ready(out)
    assert out.shape == (B, NC) and out.dtype == jnp.float32
    assert bool(jnp.all(jnp.isfinite(out)))
    print("KERNEL_OK")
</pallas_src>

<mosaic_0001>
module attributes {stable_mosaic.version = 11 : i64} {
  func.func @_fused_kernel(%arg0: i32, %arg1: memref<128x64xf32, #tpu.memory_space<vmem>>, %arg2: memref<64x10xf32, #tpu.memory_space<vmem>>, %arg3: memref<2x256xf32, #tpu.memory_space<vmem>>, %arg4: memref<128x256xf32, #tpu.memory_space<vmem>>, %arg5: memref<2x64x256xf32, #tpu.memory_space<vmem>>, %arg6: memref<2x256xf32, #tpu.memory_space<vmem>>, %arg7: memref<64x2xf32, #tpu.memory_space<vmem>>, %arg8: memref<1x2xf32, #tpu.memory_space<vmem>>, %arg9: memref<2x2xf32, #tpu.memory_space<vmem>>, %arg10: memref<128x10xf32, #tpu.memory_space<vmem>>, %arg11: memref<46x256xf32, #tpu.memory_space<vmem>>, %arg12: memref<46x128xf32, #tpu.memory_space<vmem>>) attributes {dimension_semantics = [#tpu.dimension_semantics<arbitrary>], iteration_bounds = array<i64: 1>, scalar_prefetch = 0 : i64, scratch_operands = 3 : i64, tpu.core_type = #tpu.core_type<tc>, window_params = [{pipeline_mode = #tpu.pipeline_mode<synchronous>, transform_indices = @transform_0, window_bounds = array<i64: 128, 64>}, {pipeline_mode = #tpu.pipeline_mode<synchronous>, transform_indices = @transform_1, window_bounds = array<i64: 64, 10>}, {pipeline_mode = #tpu.pipeline_mode<synchronous>, transform_indices = @transform_2, window_bounds = array<i64: 2, 256>}, {pipeline_mode = #tpu.pipeline_mode<synchronous>, transform_indices = @transform_3, window_bounds = array<i64: 128, 256>}, {pipeline_mode = #tpu.pipeline_mode<synchronous>, transform_indices = @transform_4, window_bounds = array<i64: 2, 64, 256>}, {pipeline_mode = #tpu.pipeline_mode<synchronous>, transform_indices = @transform_5, window_bounds = array<i64: 2, 256>}, {pipeline_mode = #tpu.pipeline_mode<synchronous>, transform_indices = @transform_6, window_bounds = array<i64: 64, 2>}, {pipeline_mode = #tpu.pipeline_mode<synchronous>, transform_indices = @transform_7, window_bounds = array<i64: 1, 2>}, {pipeline_mode = #tpu.pipeline_mode<synchronous>, transform_indices = @transform_8, window_bounds = array<i64: 2, 2>}]} {
    %c0 = arith.constant 0 : index
    %c0_0 = arith.constant 0 : index
    %0 = vector.load %arg1[%c0, %c0_0] : memref<128x64xf32, #tpu.memory_space<vmem>>, vector<128x64xf32>
    %c0_1 = arith.constant 0 : index
    %c0_2 = arith.constant 0 : index
    %1 = vector.load %arg2[%c0_1, %c0_2] : memref<64x10xf32, #tpu.memory_space<vmem>>, vector<64x10xf32>
    %cst = arith.constant dense<0.000000e+00> : vector<128x10xf32>
    %2 = tpu.matmul %0, %1, %cst {dimension_numbers = #tpu.dot_dimension_numbers<[1], [0], [0], [1], [0, 0, 1, 1], [], []>} : vector<128x64xf32>, vector<64x10xf32>, vector<128x10xf32> -> vector<128x10xf32>
    %c0_3 = arith.constant 0 : index
    %c0_4 = arith.constant 0 : index
    %3 = vector.load %arg10[%c0_3, %c0_4] : memref<128x10xf32, #tpu.memory_space<vmem>>, vector<128x10xf32>
    tpu.vector_store %arg10[%c0_3, %c0_4], %2 {strides = array<i32>} : memref<128x10xf32, #tpu.memory_space<vmem>>, vector<128x10xf32>,
    %4 = tpu.iota {dimensions = array<i32: 1>} : vector<1x10xi32>
    %cst_5 = arith.constant 0.000000e+00 : f32
    %5 = vector.broadcast %cst_5 : f32 to vector<46x10xf32>
    %cst_6 = arith.constant 0.000000e+00 : f32
    %6 = vector.broadcast %cst_6 : f32 to vector<46x10xf32>
    %c0_i32 = arith.constant 0 : i32
    %7 = vector.broadcast %c0_i32 : i32 to vector<1x10xi32>
    %8 = arith.cmpi eq, %4, %7 : vector<1x10xi32>
    %c0_7 = arith.constant 0 : index
    %c0_8 = arith.constant 0 : index
    %9 = vector.load %arg10[%c0_7, %c0_8] : memref<128x10xf32, #tpu.memory_space<vmem>>, vector<46x10xf32>
    %cst_9 = arith.constant 0.000000e+00 : f32
    %10 = vector.shape_cast %8 : vector<1x10xi1> to vector<1x10xi1>
    %11 = vector.broadcast %10 : vector<1x10xi1> to vector<46x10xi1>
    %12 = vector.broadcast %cst_9 : f32 to vector<46x10xf32>
    %13 = arith.select %11, %9, %12 : vector<46x10xi1>, vector<46x10xf32>
    %14 = arith.addf %5, %13 : vector<46x10xf32>
    %c9_i32 = arith.constant 9 : i32
    %15 = vector.broadcast %c9_i32 : i32 to vector<1x10xi32>
    %16 = arith.cmpi eq, %4, %15 : vector<1x10xi32>
    %c64 = arith.constant 64 : index
    %c0_10 = arith.constant 0 : index
    %17 = vector.load %arg10[%c64, %c0_10] : memref<128x10xf32, #tpu.memory_space<vmem>>, vector<46x10xf32>
    %cst_11 = arith.constant 0.000000e+00 : f32
    %18 = vector.shape_cast %16 : vector<1x10xi1> to vector<1x10xi1>
    %19 = vector.broadcast %18 : vector<1x10xi1> to vector<46x10xi1>
    %20 = vector.broadcast %cst_11 : f32 to vector<46x10xf32>
    %21 = arith.select %19, %17, %20 : vector<46x10xi1>, vector<46x10xf32>
    %22 = arith.addf %6, %21 : vector<46x10xf32>
    %c1_i32 = arith.constant 1 : i32
    %23 = vector.broadcast %c1_i32 : i32 to vector<1x10xi32>
    %24 = arith.cmpi eq, %4, %23 : vector<1x10xi32>
    %c2 = arith.constant 2 : index
    %c0_12 = arith.constant 0 : index
    %25 = vector.load %arg10[%c2, %c0_12] : memref<128x10xf32, #tpu.memory_space<vmem>>, vector<46x10xf32>
    %cst_13 = arith.constant 0.000000e+00 : f32
    %26 = vector.shape_cast %24 : vector<1x10xi1> to vector<1x10xi1>
    %27 = vector.broadcast %26 : vector<1x10xi1> to vector<46x10xi1>
    %28 = vector.broadcast %cst_13 : f32 to vector<46x10xf32>
    %29 = arith.select %27, %25, %28 : vector<46x10xi1>, vector<46x10xf32>
    %30 = arith.addf %14, %29 : vector<46x10xf32>
    %c8_i32 = arith.constant 8 : i32
    %31 = vector.broadcast %c8_i32 : i32 to vector<1x10xi32>
    %32 = arith.cmpi eq, %4, %31 : vector<1x10xi32>
    %c66 = arith.constant 66 : index
    %c0_14 = arith.constant 0 : index
    %33 = vector.load %arg10[%c66, %c0_14] : memref<128x10xf32, #tpu.memory_space<vmem>>, vector<46x10xf32>
    %cst_15 = arith.constant 0.000000e+00 : f32
    %34 = vector.shape_cast %32 : vector<1x10xi1> to vector<1x10xi1>
    %35 = vector.broadcast %34 : vector<1x10xi1> to vector<46x10xi1>
    %36 = vector.broadcast %cst_15 : f32 to vector<46x10xf32>
    %37 = arith.select %35, %33, %36 : vector<46x10xi1>, vector<46x10xf32>
    %38 = arith.addf %22, %37 : vector<46x10xf32>
    %c2_i32 = arith.constant 2 : i32
    %39 = vector.broadcast %c2_i32 : i32 to vector<1x10xi32>
    %40 = arith.cmpi eq, %4, %39 : vector<1x10xi32>
    %c4 = arith.constant 4 : index
    %c0_16 = arith.constant 0 : index
    %41 = vector.load %arg10[%c4, %c0_16] : memref<128x10xf32, #tpu.memory_space<vmem>>, vector<46x10xf32>
    %cst_17 = arith.constant 0.000000e+00 : f32
    %42 = vector.shape_cast %40 : vector<1x10xi1> to vector<1x10xi1>
    %43 = vector.broadcast %42 : vector<1x10xi1> to vector<46x10xi1>
    %44 = vector.broadcast %cst_17 : f32 to vector<46x10xf32>
    %45 = arith.select %43, %41, %44 : vector<46x10xi1>, vector<46x10xf32>
    %46 = arith.addf %30, %45 : vector<46x10xf32>
    %c7_i32 = arith.constant 7 : i32
    %47 = vector.broadcast %c7_i32 : i32 to vector<1x10xi32>
    %48 = arith.cmpi eq, %4, %47 : vector<1x10xi32>
    %c68 = arith.constant 68 : index
    %c0_18 = arith.constant 0 : index
    %49 = vector.load %arg10[%c68, %c0_18] : memref<128x10xf32, #tpu.memory_space<vmem>>, vector<46x10xf32>
    %cst_19 = arith.constant 0.000000e+00 : f32
    %50 = vector.shape_cast %48 : vector<1x10xi1> to vector<1x10xi1>
    %51 = vector.broadcast %50 : vector<1x10xi1> to vector<46x10xi1>
    %52 = vector.broadcast %cst_19 : f32 to vector<46x10xf32>
    %53 = arith.select %51, %49, %52 : vector<46x10xi1>, vector<46x10xf32>
    %54 = arith.addf %38, %53 : vector<46x10xf32>
    %c3_i32 = arith.constant 3 : i32
    %55 = vector.broadcast %c3_i32 : i32 to vector<1x10xi32>
    %56 = arith.cmpi eq, %4, %55 : vector<1x10xi32>
    %c6 = arith.constant 6 : index
    %c0_20 = arith.constant 0 : index
    %57 = vector.load %arg10[%c6, %c0_20] : memref<128x10xf32, #tpu.memory_space<vmem>>, vector<46x10xf32>
    %cst_21 = arith.constant 0.000000e+00 : f32
    %58 = vector.shape_cast %56 : vector<1x10xi1> to vector<1x10xi1>
    %59 = vector.broadcast %58 : vector<1x10xi1> to vector<46x10xi1>
    %60 = vector.broadcast %cst_21 : f32 to vector<46x10xf32>
    %61 = arith.select %59, %57, %60 : vector<46x10xi1>, vector<46x10xf32>
    %62 = arith.addf %46, %61 : vector<46x10xf32>
    %c6_i32 = arith.constant 6 : i32
    %63 = vector.broadcast %c6_i32 : i32 to vector<1x10xi32>
    %64 = arith.cmpi eq, %4, %63 : vector<1x10xi32>
    %c70 = arith.constant 70 : index
    %c0_22 = arith.constant 0 : index
    %65 = vector.load %arg10[%c70, %c0_22] : memref<128x10xf32, #tpu.memory_space<vmem>>, vector<46x10xf32>
    %cst_23 = arith.constant 0.000000e+00 : f32
    %66 = vector.shape_cast %64 : vector<1x10xi1> to vector<1x10xi1>
    %67 = vector.broadcast %66 : vector<1x10xi1> to vector<46x10xi1>
    %68 = vector.broadcast %cst_23 : f32 to vector<46x10xf32>
    %69 = arith.select %67, %65, %68 : vector<46x10xi1>, vector<46x10xf32>
    %70 = arith.addf %54, %69 : vector<46x10xf32>
    %c4_i32 = arith.constant 4 : i32
    %71 = vector.broadcast %c4_i32 : i32 to vector<1x10xi32>
    %72 = arith.cmpi eq, %4, %71 : vector<1x10xi32>
    %c8 = arith.constant 8 : index
    %c0_24 = arith.constant 0 : index
    %73 = vector.load %arg10[%c8, %c0_24] : memref<128x10xf32, #tpu.memory_space<vmem>>, vector<46x10xf32>
    %cst_25 = arith.constant 0.000000e+00 : f32
    %74 = vector.shape_cast %72 : vector<1x10xi1> to vector<1x10xi1>
    %75 = vector.broadcast %74 : vector<1x10xi1> to vector<46x10xi1>
    %76 = vector.broadcast %cst_25 : f32 to vector<46x10xf32>
    %77 = arith.select %75, %73, %76 : vector<46x10xi1>, vector<46x10xf32>
    %78 = arith.addf %62, %77 : vector<46x10xf32>
    %c5_i32 = arith.constant 5 : i32
    %79 = vector.broadcast %c5_i32 : i32 to vector<1x10xi32>
    %80 = arith.cmpi eq, %4, %79 : vector<1x10xi32>
    %c72 = arith.constant 72 : index
    %c0_26 = arith.constant 0 : index
    %81 = vector.load %arg10[%c72, %c0_26] : memref<128x10xf32, #tpu.memory_space<vmem>>, vector<46x10xf32>
    %cst_27 = arith.constant 0.000000e+00 : f32
    %82 = vector.shape_cast %80 : vector<1x10xi1> to vector<1x10xi1>
    %83 = vector.broadcast %82 : vector<1x10xi1> to vector<46x10xi1>
    %84 = vector.broadcast %cst_27 : f32 to vector<46x10xf32>
    %85 = arith.select %83, %81, %84 : vector<46x10xi1>, vector<46x10xf32>
    %86 = arith.addf %70, %85 : vector<46x10xf32>
    %c5_i32_28 = arith.constant 5 : i32
    %87 = vector.broadcast %c5_i32_28 : i32 to vector<1x10xi32>
    %88 = arith.cmpi eq, %4, %87 : vector<1x10xi32>
    %c10 = arith.constant 10 : index
    %c0_29 = arith.constant 0 : index
    %89 = vector.load %arg10[%c10, %c0_29] : memref<128x10xf32, #tpu.memory_space<vmem>>, vector<46x10xf32>
    %cst_30 = arith.constant 0.000000e+00 : f32
    %90 = vector.shape_cast %88 : vector<1x10xi1> to vector<1x10xi1>
    %91 = vector.broadcast %90 : vector<1x10xi1> to vector<46x10xi1>
    %92 = vector.broadcast %cst_30 : f32 to vector<46x10xf32>
    %93 = arith.select %91, %89, %92 : vector<46x10xi1>, vector<46x10xf32>
    %94 = arith.addf %78, %93 : vector<46x10xf32>
    %c4_i32_31 = arith.constant 4 : i32
    %95 = vector.broadcast %c4_i32_31 : i32 to vector<1x10xi32>
    %96 = arith.cmpi eq, %4, %95 : vector<1x10xi32>
    %c74 = arith.constant 74 : index
    %c0_32 = arith.constant 0 : index
    %97 = vector.load %arg10[%c74, %c0_32] : memref<128x10xf32, #tpu.memory_space<vmem>>, vector<46x10xf32>
    %cst_33 = arith.constant 0.000000e+00 : f32
    %98 = vector.shape_cast %96 : vector<1x10xi1> to vector<1x10xi1>
    %99 = vector.broadcast %98 : vector<1x10xi1> to vector<46x10xi1>
    %100 = vector.broadcast %cst_33 : f32 to vector<46x10xf32>
    %101 = arith.select %99, %97, %100 : vector<46x10xi1>, vector<46x10xf32>
    %102 = arith.addf %86, %101 : vector<46x10xf32>
    %c6_i32_34 = arith.constant 6 : i32
    %103 = vector.broadcast %c6_i32_34 : i32 to vector<1x10xi32>
    %104 = arith.cmpi eq, %4, %103 : vector<1x10xi32>
    %c12 = arith.constant 12 : index
    %c0_35 = arith.constant 0 : index
    %105 = vector.load %arg10[%c12, %c0_35] : memref<128x10xf32, #tpu.memory_space<vmem>>, vector<46x10xf32>
    %cst_36 = arith.constant 0.000000e+00 : f32
    %106 = vector.shape_cast %104 : vector<1x10xi1> to vector<1x10xi1>
    %107 = vector.broadcast %106 : vector<1x10xi1> to vector<46x10xi1>
    %108 = vector.broadcast %cst_36 : f32 to vector<46x10xf32>
    %109 = arith.select %107, %105, %108 : vector<46x10xi1>, vector<46x10xf32>
    %110 = arith.addf %94, %109 : vector<46x10xf32>
    %c3_i32_37 = arith.constant 3 : i32
    %111 = vector.broadcast %c3_i32_37 : i32 to vector<1x10xi32>
    %112 = arith.cmpi eq, %4, %111 : vector<1x10xi32>
    %c76 = arith.constant 76 : index
    %c0_38 = arith.constant 0 : index
    %113 = vector.load %arg10[%c76, %c0_38] : memref<128x10xf32, #tpu.memory_space<vmem>>, vector<46x10xf32>
    %cst_39 = arith.constant 0.000000e+00 : f32
    %114 = vector.shape_cast %112 : vector<1x10xi1> to vector<1x10xi1>
    %115 = vector.broadcast %114 : vector<1x10xi1> to vector<46x10xi1>
    %116 = vector.broadcast %cst_39 : f32 to vector<46x10xf32>
    %117 = arith.select %115, %113, %116 : vector<46x10xi1>, vector<46x10xf32>
    %118 = arith.addf %102, %117 : vector<46x10xf32>
    %c7_i32_40 = arith.constant 7 : i32
    %119 = vector.broadcast %c7_i32_40 : i32 to vector<1x10xi32>
    %120 = arith.cmpi eq, %4, %119 : vector<1x10xi32>
    %c14 = arith.constant 14 : index
    %c0_41 = arith.constant 0 : index
    %121 = vector.load %arg10[%c14, %c0_41] : memref<128x10xf32, #tpu.memory_space<vmem>>, vector<46x10xf32>
    %cst_42 = arith.constant 0.000000e+00 : f32
    %122 = vector.shape_cast %120 : vector<1x10xi1> to vector<1x10xi1>
    %123 = vector.broadcast %122 : vector<1x10xi1> to vector<46x10xi1>
    %124 = vector.broadcast %cst_42 : f32 to vector<46x10xf32>
    %125 = arith.select %123, %121, %124 : vector<46x10xi1>, vector<46x10xf32>
    %126 = arith.addf %110, %125 : vector<46x10xf32>
    %c2_i32_43 = arith.constant 2 : i32
    %127 = vector.broadcast %c2_i32_43 : i32 to vector<1x10xi32>
    %128 = arith.cmpi eq, %4, %127 : vector<1x10xi32>
    %c78 = arith.constant 78 : index
    %c0_44 = arith.constant 0 : index
    %129 = vector.load %arg10[%c78, %c0_44] : memref<128x10xf32, #tpu.memory_space<vmem>>, vector<46x10xf32>
    %cst_45 = arith.constant 0.000000e+00 : f32
    %130 = vector.shape_cast %128 : vector<1x10xi1> to vector<1x10xi1>
    %131 = vector.broadcast %130 : vector<1x10xi1> to vector<46x10xi1>
    %132 = vector.broadcast %cst_45 : f32 to vector<46x10xf32>
    %133 = arith.select %131, %129, %132 : vector<46x10xi1>, vector<46x10xf32>
    %134 = arith.addf %118, %133 : vector<46x10xf32>
    %c8_i32_46 = arith.constant 8 : i32
    %135 = vector.broadcast %c8_i32_46 : i32 to vector<1x10xi32>
    %136 = arith.cmpi eq, %4, %135 : vector<1x10xi32>
    %c16 = arith.constant 16 : index
    %c0_47 = arith.constant 0 : index
    %137 = vector.load %arg10[%c16, %c0_47] : memref<128x10xf32, #tpu.memory_space<vmem>>, vector<46x10xf32>
    %cst_48 = arith.constant 0.000000e+00 : f32
    %138 = vector.shape_cast %136 : vector<1x10xi1> to vector<1x10xi1>
    %139 = vector.broadcast %138 : vector<1x10xi1> to vector<46x10xi1>
    %140 = vector.broadcast %cst_48 : f32 to vector<46x10xf32>
    %141 = arith.select %139, %137, %140 : vector<46x10xi1>, vector<46x10xf32>
    %142 = arith.addf %126, %141 : vector<46x10xf32>
    %c1_i32_49 = arith.constant 1 : i32
    %143 = vector.broadcast %c1_i32_49 : i32 to vector<1x10xi32>
    %144 = arith.cmpi eq, %4, %143 : vector<1x10xi32>
    %c80 = arith.constant 80 : index
    %c0_50 = arith.constant 0 : index
    %145 = vector.load %arg10[%c80, %c0_50] : memref<128x10xf32, #tpu.memory_space<vmem>>, vector<46x10xf32>
    %cst_51 = arith.constant 0.000000e+00 : f32
    %146 = vector.shape_cast %144 : vector<1x10xi1> to vector<1x10xi1>
    %147 = vector.broadcast %146 : vector<1x10xi1> to vector<46x10xi1>
    %148 = vector.broadcast %cst_51 : f32 to vector<46x10xf32>
    %149 = arith.select %147, %145, %148 : vector<46x10xi1>, vector<46x10xf32>
    %150 = arith.addf %134, %149 : vector<46x10xf32>
    %c9_i32_52 = arith.constant 9 : i32
    %151 = vector.broadcast %c9_i32_52 : i32 to vector<1x10xi32>
    %152 = arith.cmpi eq, %4, %151 : vector<1x10xi32>
    %c18 = arith.constant 18 : index
    %c0_53 = arith.constant 0 : index
    %153 = vector.load %arg10[%c18, %c0_53] : memref<128x10xf32, #tpu.memory_space<vmem>>, vector<46x10xf32>
    %cst_54 = arith.constant 0.000000e+00 : f32
    %154 = vector.shape_cast %152 : vector<1x10xi1> to vector<1x10xi1>
    %155 = vector.broadcast %154 : vector<1x10xi1> to vector<46x10xi1>
    %156 = vector.broadcast %cst_54 : f32 to vector<46x10xf32>
    %157 = arith.select %155, %153, %156 : vector<46x10xi1>, vector<46x10xf32>
    %158 = arith.addf %142, %157 : vector<46x10xf32>
    %c0_i32_55 = arith.constant 0 : i32
    %159 = vector.broadcast %c0_i32_55 : i32 to vector<1x10xi32>
    %160 = arith.cmpi eq, %4, %159 : vector<1x10xi32>
    %c82 = arith.constant 82 : index
    %c0_56 = arith.constant 0 : index
    %161 = vector.load %arg10[%c82, %c0_56] : memref<128x10xf32, #tpu.memory_space<vmem>>, vector<46x10xf32>
    %cst_57 = arith.constant 0.000000e+00 : f32
    %162 = vector.shape_cast %160 : vector<1x10xi1> to vector<1x10xi1>
    %163 = vector.broadcast %162 : vector<1x10xi1> to vector<46x10xi1>
    %164 = vector.broadcast %cst_57 : f32 to vector<46x10xf32>
    %165 = arith.select %163, %161, %164 : vector<46x10xi1>, vector<46x10xf32>
    %166 = arith.addf %150, %165 : vector<46x10xf32>
    %cst_58 = arith.constant dense<0.000000e+00> : vector<46xf32>
    %167 = vector.multi_reduction <add>, %158, %cst_58 [1] : vector<46x10xf32> to vector<46xf32>
    %168 = vector.shape_cast %167 : vector<46xf32> to vector<46x1xf32>
    %cst_59 = arith.constant dense<0.000000e+00> : vector<46xf32>
    %169 = vector.multi_reduction <add>, %166, %cst_59 [1] : vector<46x10xf32> to vector<46xf32>
    %170 = vector.shape_cast %169 : vector<46xf32> to vector<46x1xf32>
    %c0_60 = arith.constant 0 : index
    %c0_61 = arith.constant 0 : index
    %171 = vector.load %arg3[%c0_60, %c0_61] : memref<2x256xf32, #tpu.memory_space<vmem>>, vector<1x256xf32>
    %172 = vector.broadcast %168 : vector<46x1xf32> to vector<46x256xf32>
    %173 = vector.broadcast %171 : vector<1x256xf32> to vector<46x256xf32>
    %174 = arith.mulf %172, %173 : vector<46x256xf32>
    %c1 = arith.constant 1 : index
    %c0_62 = arith.constant 0 : index
    %175 = vector.load %arg3[%c1, %c0_62] : memref<2x256xf32, #tpu.memory_space<vmem>>, vector<1x256xf32>
    %176 = vector.broadcast %170 : vector<46x1xf32> to vector<46x256xf32>
    %177 = vector.broadcast %175 : vector<1x256xf32> to vector<46x256xf32>
    %178 = arith.mulf %176, %177 : vector<46x256xf32>
    %179 = arith.addf %174, %178 : vector<46x256xf32>
    %c0_63 = arith.constant 0 : index
    %c0_64 = arith.constant 0 : index
    %180 = vector.load %arg6[%c0_63, %c0_64] : memref<2x256xf32, #tpu.memory_space<vmem>>, vector<1x256xf32>
    %181 = vector.broadcast %180 : vector<1x256xf32> to vector<46x256xf32>
    %182 = arith.addf %179, %181 : vector<46x256xf32>
    %c0_65 = arith.constant 0 : index
    %c0_66 = arith.constant 0 : index
    %183 = vector.load %arg11[%c0_65, %c0_66] : memref<46x256xf32, #tpu.memory_space<vmem>>, vector<46x256xf32>
    tpu.vector_store %arg11[%c0_65, %c0_66], %182 {strides = array<i32>} : memref<46x256xf32, #tpu.memory_space<vmem>>, vector<46x256xf32>,
    %184 = tpu.iota {dimensions = array<i32: 1>} : vector<2x256xi32>
    %c192_i32 = arith.constant 192 : i32
    %185 = vector.broadcast %c192_i32 : i32 to vector<2x256xi32>
    %186 = arith.cmpi slt, %184, %185 : vector<2x256xi32>
    %cst_67 = arith.constant 5.000000e-01 : f32
    %cst_68 = arith.constant 1.000000e+00 : f32
    %187 = vector.broadcast %cst_67 : f32 to vector<2x256xf32>
    %188 = vector.broadcast %cst_68 : f32 to vector<2x256xf32>
    %189 = arith.select %186, %187, %188 : vector<2x256xi1>, vector<2x256xf32>
    %cst_69 = arith.constant 5.000000e-01 : f32
    %cst_70 = arith.constant 0.000000e+00 : f32
    %190 = vector.broadcast %cst_69 : f32 to vector<2x256xf32>
    %191 = vector.broadcast %cst_70 : f32 to vector<2x256xf32>
    %192 = arith.select %186, %190, %191 : vector<2x256xi1>, vector<2x256xf32>
    %c0_71 = arith.constant 0 : index
    %c0_72 = arith.constant 0 : index
    %c0_73 = arith.constant 0 : index
    %193 = vector.load %arg5[%c0_71, %c0_72, %c0_73] : memref<2x64x256xf32, #tpu.memory_space<vmem>>, vector<1x64x256xf32>
    %194 = vector.shape_cast %193 : vector<1x64x256xf32> to vector<64x256xf32>
    %cst_74 = arith.constant 0.000000e+00 : f32
    %195 = vector.broadcast %cst_74 : f32 to vector<2x64xf32>
    %c0_75 = arith.constant 0 : index
    %c0_76 = arith.constant 0 : index
    %196 = vector.load %arg11[%c0_75, %c0_76] : memref<46x256xf32, #tpu.memory_space<vmem>>, vector<2x256xf32>
    %197 = math.tanh %196 : vector<2x256xf32>
    %198 = arith.mulf %197, %189 : vector<2x256xf32>
    %199 = arith.addf %198, %192 : vector<2x256xf32>
    %200 = vector.extract_strided_slice %199 {offsets = [0, 0], sizes = [2, 64], strides = [1, 1]} : vector<2x256xf32> to vector<2x64xf32>
    %201 = vector.extract_strided_slice %199 {offsets = [0, 64], sizes = [2, 64], strides = [1, 1]} : vector<2x256xf32> to vector<2x64xf32>
    %202 = vector.extract_strided_slice %199 {offsets = [0, 128], sizes = [2, 64], strides = [1, 1]} : vector<2x256xf32> to vector<2x64xf32>
    %203 = vector.extract_strided_slice %199 {offsets = [0, 192], sizes = [2, 64], strides = [1, 1]} : vector<2x256xf32> to vector<2x64xf32>
    %204 = arith.mulf %201, %195 : vector<2x64xf32>
    %205 = arith.mulf %200, %203 : vector<2x64xf32>
    %206 = arith.addf %204, %205 : vector<2x64xf32>
    %207 = math.tanh %206 : vector<2x64xf32>
    %208 = arith.mulf %202, %207 : vector<2x64xf32>
    %c0_77 = arith.constant 0 : index
    %c0_78 = arith.constant 0 : index
    %209 = vector.load %arg12[%c0_77, %c0_78] : memref<46x128xf32, #tpu.memory_space<vmem>>, vector<2x64xf32>
    tpu.vector_store %arg12[%c0_77, %c0_78], %208 {strides = array<i32>} : memref<46x128xf32, #tpu.memory_space<vmem>>, vector<2x64xf32>,
    %c44 = arith.constant 44 : index
    %c64_79 = arith.constant 64 : index
    %210 = vector.load %arg12[%c44, %c64_79] : memref<46x128xf32, #tpu.memory_space<vmem>>, vector<2x64xf32>
    tpu.vector_store %arg12[%c44, %c64_79], %208 {strides = array<i32>} : memref<46x128xf32, #tpu.memory_space<vmem>>, vector<2x64xf32>,
    %c2_80 = arith.constant 2 : index
    %c0_81 = arith.constant 0 : index
    %211 = vector.load %arg11[%c2_80, %c0_81] : memref<46x256xf32, #tpu.memory_space<vmem>>, vector<2x256xf32>
    %cst_82 = arith.constant dense<0.000000e+00> : vector<2x256xf32>
    %212 = tpu.matmul %208, %194, %cst_82 {dimension_numbers = #tpu.dot_dimension_numbers<[1], [0], [0], [1], [0, 0, 1, 1], [], []>} : vector<2x64xf32>, vector<64x256xf32>, vector<2x256xf32> -> vector<2x256xf32>
    %213 = arith.addf %211, %212 : vector<2x256xf32>
    %214 = math.tanh %213 : vector<2x256xf32>
    %215 = arith.mulf %214, %189 : vector<2x256xf32>
    %216 = arith.addf %215, %192 : vector<2x256xf32>
    %217 = vector.extract_strided_slice %216 {offsets = [0, 0], sizes = [2, 64], strides = [1, 1]} : vector<2x256xf32> to vector<2x64xf32>
    %218 = vector.extract_strided_slice %216 {offsets = [0, 64], sizes = [2, 64], strides = [1, 1]} : vector<2x256xf32> to vector<2x64xf32>
    %219 = vector.extract_strided_slice %216 {offsets = [0, 128], sizes = [2, 64], strides = [1, 1]} : vector<2x256xf32> to vector<2x64xf32>
    %220 = vector.extract_strided_slice %216 {offsets = [0, 192], sizes = [2, 64], strides = [1, 1]} : vector<2x256xf32> to vector<2x64xf32>
    %221 = arith.mulf %218, %206 : vector<2x64xf32>
    %222 = arith.mulf %217, %220 : vector<2x64xf32>
    %223 = arith.addf %221, %222 : vector<2x64xf32>
    %224 = math.tanh %223 : vector<2x64xf32>
    %225 = arith.mulf %219, %224 : vector<2x64xf32>
    %c2_83 = arith.constant 2 : index
    %c0_84 = arith.constant 0 : index
    %226 = vector.load %arg12[%c2_83, %c0_84] : memref<46x128xf32, #tpu.memory_space<vmem>>, vector<2x64xf32>
    tpu.vector_store %arg12[%c2_83, %c0_84], %225 {strides = array<i32>} : memref<46x128xf32, #tpu.memory_space<vmem>>, vector<2x64xf32>,
    %c42 = arith.constant 42 : index
    %c64_85 = arith.constant 64 : index
    %227 = vector.load %arg12[%c42, %c64_85] : memref<46x128xf32, #tpu.memory_space<vmem>>, vector<2x64xf32>
    tpu.vector_store %arg12[%c42, %c64_85], %225 {strides = array<i32>} : memref<46x128xf32, #tpu.memory_space<vmem>>, vector<2x64xf32>,
    %c4_86 = arith.constant 4 : index
    %c0_87 = arith.constant 0 : index
    %228 = vector.load %arg11[%c4_86, %c0_87] : memref<46x256xf32, #tpu.memory_space<vmem>>, vector<2x256xf32>
    %cst_88 = arith.constant dense<0.000000e+00> : vector<2x256xf32>
    %229 = tpu.matmul %225, %194, %cst_88 {dimension_numbers = #tpu.dot_dimension_numbers<[1], [0], [0], [1], [0, 0, 1, 1], [], []>} : vector<2x64xf32>, vector<64x256xf32>, vector<2x256xf32> -> vector<2x256xf32>
    %230 = arith.addf %228, %229 : vector<2x256xf32>
    %231 = math.tanh %230 : vector<2x256xf32>
    %232 = arith.mulf %231, %189 : vector<2x256xf32>
    %233 = arith.addf %232, %192 : vector<2x256xf32>
    %234 = vector.extract_strided_slice %233 {offsets = [0, 0], sizes = [2, 64], strides = [1, 1]} : vector<2x256xf32> to vector<2x64xf32>
    %235 = vector.extract_strided_slice %233 {offsets = [0, 64], sizes = [2, 64], strides = [1, 1]} : vector<2x256xf32> to vector<2x64xf32>
    %236 = vector.extract_strided_slice %233 {offsets = [0, 128], sizes = [2, 64], strides = [1, 1]} : vector<2x256xf32> to vector<2x64xf32>
    %237 = vector.extract_strided_slice %233 {offsets = [0, 192], sizes = [2, 64], strides = [1, 1]} : vector<2x256xf32> to vector<2x64xf32>
    %238 = arith.mulf %235, %223 : vector<2x64xf32>
    %239 = arith.mulf %234, %237 : vector<2x64xf32>
    %240 = arith.addf %238, %239 : vector<2x64xf32>
    %241 = math.tanh %240 : vector<2x64xf32>
    %242 = arith.mulf %236, %241 : vector<2x64xf32>
    %c4_89 = arith.constant 4 : index
    %c0_90 = arith.constant 0 : index
    %243 = vector.load %arg12[%c4_89, %c0_90] : memref<46x128xf32, #tpu.memory_space<vmem>>, vector<2x64xf32>
    tpu.vector_store %arg12[%c4_89, %c0_90], %242 {strides = array<i32>} : memref<46x128xf32, #tpu.memory_space<vmem>>, vector<2x64xf32>,
    %c40 = arith.constant 40 : index
    %c64_91 = arith.constant 64 : index
    %244 = vector.load %arg12[%c40, %c64_91] : memref<46x128xf32, #tpu.memory_space<vmem>>, vector<2x64xf32>
    tpu.vector_store %arg12[%c40, %c64_91], %242 {strides = array<i32>} : memref<46x128xf32, #tpu.memory_space<vmem>>, vector<2x64xf32>,
    %c6_92 = arith.constant 6 : index
    %c0_93 = arith.constant 0 : index
    %245 = vector.load %arg11[%c6_92, %c0_93] : memref<46x256xf32, #tpu.memory_space<vmem>>, vector<2x256xf32>
    %cst_94 = arith.constant dense<0.000000e+00> : vector<2x256xf32>
    %246 = tpu.matmul %242, %194, %cst_94 {dimension_numbers = #tpu.dot_dimension_numbers<[1], [0], [0], [1], [0, 0, 1, 1], [], []>} : vector<2x64xf32>, vector<64x256xf32>, vector<2x256xf32> -> vector<2x256xf32>
    %247 = arith.addf %245, %246 : vector<2x256xf32>
    %248 = math.tanh %247 : vector<2x256xf32>
    %249 = arith.mulf %248, %189 : vector<2x256xf32>
    %250 = arith.addf %249, %192 : vector<2x256xf32>
    %251 = vector.extract_strided_slice %250 {offsets = [0, 0], sizes = [2, 64], strides = [1, 1]} : vector<2x256xf32> to vector<2x64xf32>
    %252 = vector.extract_strided_slice %250 {offsets = [0, 64], sizes = [2, 64], strides = [1, 1]} : vector<2x256xf32> to vector<2x64xf32>
    %253 = vector.extract_strided_slice %250 {offsets = [0, 128], sizes = [2, 64], strides = [1, 1]} : vector<2x256xf32> to vector<2x64xf32>
    %254 = vector.extract_strided_slice %250 {offsets = [0, 192], sizes = [2, 64], strides = [1, 1]} : vector<2x256xf32> to vector<2x64xf32>
    %255 = arith.mulf %252, %240 : vector<2x64xf32>
    %256 = arith.mulf %251, %254 : vector<2x64xf32>
    %257 = arith.addf %255, %256 : vector<2x64xf32>
    %258 = math.tanh %257 : vector<2x64xf32>
    %259 = arith.mulf %253, %258 : vector<2x64xf32>
    %c6_95 = arith.constant 6 : index
    %c0_96 = arith.constant 0 : index
    %260 = vector.load %arg12[%c6_95, %c0_96] : memref<46x128xf32, #tpu.memory_space<vmem>>, vector<2x64xf32>
    tpu.vector_store %arg12[%c6_95, %c0_96], %259 {strides = array<i32>} : memref<46x128xf32, #tpu.memory_space<vmem>>, vector<2x64xf32>,
    %c38 = arith.constant 38 : index
    %c64_97 = arith.constant 64 : index
    %261 = vector.load %arg12[%c38, %c64_97] : memref<46x128xf32, #tpu.memory_space<vmem>>, vector<2x64xf32>
    tpu.vector_store %arg12[%c38, %c64_97], %259 {strides = array<i32>} : memref<46x128xf32, #tpu.memory_space<vmem>>, vector<2x64xf32>,
    %c8_98 = arith.constant 8 : index
    %c0_99 = arith.constant 0 : index
    %262 = vector.load %arg11[%c8_98, %c0_99] : memref<46x256xf32, #tpu.memory_space<vmem>>, vector<2x256xf32>
    %cst_100 = arith.constant dense<0.000000e+00> : vector<2x256xf32>
    %263 = tpu.matmul %259, %194, %cst_100 {dimension_numbers = #tpu.dot_dimension_numbers<[1], [0], [0], [1], [0, 0, 1, 1], [], []>} : vector<2x64xf32>, vector<64x256xf32>, vector<2x256xf32> -> vector<2x256xf32>
    %264 = arith.addf %262, %263 : vector<2x256xf32>
    %265 = math.tanh %264 : vector<2x256xf32>
    %266 = arith.mulf %265, %189 : vector<2x256xf32>
    %267 = arith.addf %266, %192 : vector<2x256xf32>
    %268 = vector.extract_strided_slice %267 {offsets = [0, 0], sizes = [2, 64], strides = [1, 1]} : vector<2x256xf32> to vector<2x64xf32>
    %269 = vector.extract_strided_slice %267 {offsets = [0, 64], sizes = [2, 64], strides = [1, 1]} : vector<2x256xf32> to vector<2x64xf32>
    %270 = vector.extract_strided_slice %267 {offsets = [0, 128], sizes = [2, 64], strides = [1, 1]} : vector<2x256xf32> to vector<2x64xf32>
    %271 = vector.extract_strided_slice %267 {offsets = [0, 192], sizes = [2, 64], strides = [1, 1]} : vector<2x256xf32> to vector<2x64xf32>
    %272 = arith.mulf %269, %257 : vector<2x64xf32>
    %273 = arith.mulf %268, %271 : vector<2x64xf32>
    %274 = arith.addf %272, %273 : vector<2x64xf32>
    %275 = math.tanh %274 : vector<2x64xf32>
    %276 = arith.mulf %270, %275 : vector<2x64xf32>
    %c8_101 = arith.constant 8 : index
    %c0_102 = arith.constant 0 : index
    %277 = vector.load %arg12[%c8_101, %c0_102] : memref<46x128xf32, #tpu.memory_space<vmem>>, vector<2x64xf32>
    tpu.vector_store %arg12[%c8_101, %c0_102], %276 {strides = array<i32>} : memref<46x128xf32, #tpu.memory_space<vmem>>, vector<2x64xf32>,
    %c36 = arith.constant 36 : index
    %c64_103 = arith.constant 64 : index
    %278 = vector.load %arg12[%c36, %c64_103] : memref<46x128xf32, #tpu.memory_space<vmem>>, vector<2x64xf32>
    tpu.vector_store %arg12[%c36, %c64_103], %276 {strides = array<i32>} : memref<46x128xf32, #tpu.memory_space<vmem>>, vector<2x64xf32>,
    %c10_104 = arith.constant 10 : index
    %c0_105 = arith.constant 0 : index
    %279 = vector.load %arg11[%c10_104, %c0_105] : memref<46x256xf32, #tpu.memory_space<vmem>>, vector<2x256xf32>
    %cst_106 = arith.constant dense<0.000000e+00> : vector<2x256xf32>
    %280 = tpu.matmul %276, %194, %cst_106 {dimension_numbers = #tpu.dot_dimension_numbers<[1], [0], [0], [1], [0, 0, 1, 1], [], []>} : vector<2x64xf32>, vector<64x256xf32>, vector<2x256xf32> -> vector<2x256xf32>
    %281 = arith.addf %279, %280 : vector<2x256xf32>
    %282 = math.tanh %281 : vector<2x256xf32>
    %283 = arith.mulf %282, %189 : vector<2x256xf32>
    %284 = arith.addf %283, %192 : vector<2x256xf32>
    %285 = vector.extract_strided_slice %284 {offsets = [0, 0], sizes = [2, 64], strides = [1, 1]} : vector<2x256xf32> to vector<2x64xf32>
    %286 = vector.extract_strided_slice %284 {offsets = [0, 64], sizes = [2, 64], strides = [1, 1]} : vector<2x256xf32> to vector<2x64xf32>
    %287 = vector.extract_strided_slice %284 {offsets = [0, 128], sizes = [2, 64], strides = [1, 1]} : vector<2x256xf32> to vector<2x64xf32>
    %288 = vector.extract_strided_slice %284 {offsets = [0, 192], sizes = [2, 64], strides = [1, 1]} : vector<2x256xf32> to vector<2x64xf32>
    %289 = arith.mulf %286, %274 : vector<2x64xf32>
    %290 = arith.mulf %285, %288 : vector<2x64xf32>
    %291 = arith.addf %289, %290 : vector<2x64xf32>
    %292 = math.tanh %291 : vector<2x64xf32>
    %293 = arith.mulf %287, %292 : vector<2x64xf32>
    %c10_107 = arith.constant 10 : index
    %c0_108 = arith.constant 0 : index
    %294 = vector.load %arg12[%c10_107, %c0_108] : memref<46x128xf32, #tpu.memory_space<vmem>>, vector<2x64xf32>
    tpu.vector_store %arg12[%c10_107, %c0_108], %293 {strides = array<i32>} : memref<46x128xf32, #tpu.memory_space<vmem>>, vector<2x64xf32>,
    %c34 = arith.constant 34 : index
    %c64_109 = arith.constant 64 : index
    %295 = vector.load %arg12[%c34, %c64_109] : memref<46x128xf32, #tpu.memory_space<vmem>>, vector<2x64xf32>
    tpu.vector_store %arg12[%c34, %c64_109], %293 {strides = array<i32>} : memref<46x128xf32, #tpu.memory_space<vmem>>, vector<2x64xf32>,
    %c12_110 = arith.constant 12 : index
    %c0_111 = arith.constant 0 : index
    %296 = vector.load %arg11[%c12_110, %c0_111] : memref<46x256xf32, #tpu.memory_space<vmem>>, vector<2x256xf32>
    %cst_112 = arith.constant dense<0.000000e+00> : vector<2x256xf32>
    %297 = tpu.matmul %293, %194, %cst_112 {dimension_numbers = #tpu.dot_dimension_numbers<[1], [0], [0], [1], [0, 0, 1, 1], [], []>} : vector<2x64xf32>, vector<64x256xf32>, vector<2x256xf32> -> vector<2x256xf32>
    %298 = arith.addf %296, %297 : vector<2x256xf32>
    %299 = math.tanh %298 : vector<2x256xf32>
    %300 = arith.mulf %299, %189 : vector<2x256xf32>
    %301 = arith.addf %300, %192 : vector<2x256xf32>
    %302 = vector.extract_strided_slice %301 {offsets = [0, 0], sizes = [2, 64], strides = [1, 1]} : vector<2x256xf32> to vector<2x64xf32>
    %303 = vector.extract_strided_slice %301 {offsets = [0, 64], sizes = [2, 64], strides = [1, 1]} : vector<2x256xf32> to vector<2x64xf32>
    %304 = vector.extract_strided_slice %301 {offsets = [0, 128], sizes = [2, 64], strides = [1, 1]} : vector<2x256xf32> to vector<2x64xf32>
    %305 = vector.extract_strided_slice %301 {offsets = [0, 192], sizes = [2, 64], strides = [1, 1]} : vector<2x256xf32> to vector<2x64xf32>
    %306 = arith.mulf %303, %291 : vector<2x64xf32>
    %307 = arith.mulf %302, %305 : vector<2x64xf32>
    %308 = arith.addf %306, %307 : vector<2x64xf32>
    %309 = math.tanh %308 : vector<2x64xf32>
    %310 = arith.mulf %304, %309 : vector<2x64xf32>
    %c12_113 = arith.constant 12 : index
    %c0_114 = arith.constant 0 : index
    %311 = vector.load %arg12[%c12_113, %c0_114] : memref<46x128xf32, #tpu.memory_space<vmem>>, vector<2x64xf32>
    tpu.vector_store %arg12[%c12_113, %c0_114], %310 {strides = array<i32>} : memref<46x128xf32, #tpu.memory_space<vmem>>, vector<2x64xf32>,
    %c32 = arith.constant 32 : index
    %c64_115 = arith.constant 64 : index
    %312 = vector.load %arg12[%c32, %c64_115] : memref<46x128xf32, #tpu.memory_space<vmem>>, vector<2x64xf32>
    tpu.vector_store %arg12[%c32, %c64_115], %310 {strides = array<i32>} : memref<46x128xf32, #tpu.memory_space<vmem>>, vector<2x64xf32>,
    %c14_116 = arith.constant 14 : index
    %c0_117 = arith.constant 0 : index
    %313 = vector.load %arg11[%c14_116, %c0_117] : memref<46x256xf32, #tpu.memory_space<vmem>>, vector<2x256xf32>
    %cst_118 = arith.constant dense<0.000000e+00> : vector<2x256xf32>
    %314 = tpu.matmul %310, %194, %cst_118 {dimension_numbers = #tpu.dot_dimension_numbers<[1], [0], [0], [1], [0, 0, 1, 1], [], []>} : vector<2x64xf32>, vector<64x256xf32>, vector<2x256xf32> -> vector<2x256xf32>
    %315 = arith.addf %313, %314 : vector<2x256xf32>
    %316 = math.tanh %315 : vector<2x256xf32>
    %317 = arith.mulf %316, %189 : vector<2x256xf32>
    %318 = arith.addf %317, %192 : vector<2x256xf32>
    %319 = vector.extract_strided_slice %318 {offsets = [0, 0], sizes = [2, 64], strides = [1, 1]} : vector<2x256xf32> to vector<2x64xf32>
    %320 = vector.extract_strided_slice %318 {offsets = [0, 64], sizes = [2, 64], strides = [1, 1]} : vector<2x256xf32> to vector<2x64xf32>
    %321 = vector.extract_strided_slice %318 {offsets = [0, 128], sizes = [2, 64], strides = [1, 1]} : vector<2x256xf32> to vector<2x64xf32>
    %322 = vector.extract_strided_slice %318 {offsets = [0, 192], sizes = [2, 64], strides = [1, 1]} : vector<2x256xf32> to vector<2x64xf32>
    %323 = arith.mulf %320, %308 : vector<2x64xf32>
    %324 = arith.mulf %319, %322 : vector<2x64xf32>
    %325 = arith.addf %323, %324 : vector<2x64xf32>
    %326 = math.tanh %325 : vector<2x64xf32>
    %327 = arith.mulf %321, %326 : vector<2x64xf32>
    %c14_119 = arith.constant 14 : index
    %c0_120 = arith.constant 0 : index
    %328 = vector.load %arg12[%c14_119, %c0_120] : memref<46x128xf32, #tpu.memory_space<vmem>>, vector<2x64xf32>
    tpu.vector_store %arg12[%c14_119, %c0_120], %327 {strides = array<i32>} : memref<46x128xf32, #tpu.memory_space<vmem>>, vector<2x64xf32>,
    %c30 = arith.constant 30 : index
    %c64_121 = arith.constant 64 : index
    %329 = vector.load %arg12[%c30, %c64_121] : memref<46x128xf32, #tpu.memory_space<vmem>>, vector<2x64xf32>
    tpu.vector_store %arg12[%c30, %c64_121], %327 {strides = array<i32>} : memref<46x128xf32, #tpu.memory_space<vmem>>, vector<2x64xf32>,
    %c16_122 = arith.constant 16 : index
    %c0_123 = arith.constant 0 : index
    %330 = vector.load %arg11[%c16_122, %c0_123] : memref<46x256xf32, #tpu.memory_space<vmem>>, vector<2x256xf32>
    %cst_124 = arith.constant dense<0.000000e+00> : vector<2x256xf32>
    %331 = tpu.matmul %327, %194, %cst_124 {dimension_numbers = #tpu.dot_dimension_numbers<[1], [0], [0], [1], [0, 0, 1, 1], [], []>} : vector<2x64xf32>, vector<64x256xf32>, vector<2x256xf32> -> vector<2x256xf32>
    %332 = arith.addf %330, %331 : vector<2x256xf32>
    %333 = math.tanh %332 : vector<2x256xf32>
    %334 = arith.mulf %333, %189 : vector<2x256xf32>
    %335 = arith.addf %334, %192 : vector<2x256xf32>
    %336 = vector.extract_strided_slice %335 {offsets = [0, 0], sizes = [2, 64], strides = [1, 1]} : vector<2x256xf32> to vector<2x64xf32>
    %337 = vector.extract_strided_slice %335 {offsets = [0, 64], sizes = [2, 64], strides = [1, 1]} : vector<2x256xf32> to vector<2x64xf32>
    %338 = vector.extract_strided_slice %335 {offsets = [0, 128], sizes = [2, 64], strides = [1, 1]} : vector<2x256xf32> to vector<2x64xf32>
    %339 = vector.extract_strided_slice %335 {offsets = [0, 192], sizes = [2, 64], strides = [1, 1]} : vector<2x256xf32> to vector<2x64xf32>
    %340 = arith.mulf %337, %325 : vector<2x64xf32>
    %341 = arith.mulf %336, %339 : vector<2x64xf32>
    %342 = arith.addf %340, %341 : vector<2x64xf32>
    %343 = math.tanh %342 : vector<2x64xf32>
    %344 = arith.mulf %338, %343 : vector<2x64xf32>
    %c16_125 = arith.constant 16 : index
    %c0_126 = arith.constant 0 : index
    %345 = vector.load %arg12[%c16_125, %c0_126] : memref<46x128xf32, #tpu.memory_space<vmem>>, vector<2x64xf32>
    tpu.vector_store %arg12[%c16_125, %c0_126], %344 {strides = array<i32>} : memref<46x128xf32, #tpu.memory_space<vmem>>, vector<2x64xf32>,
    %c28 = arith.constant 28 : index
    %c64_127 = arith.constant 64 : index
    %346 = vector.load %arg12[%c28, %c64_127] : memref<46x128xf32, #tpu.memory_space<vmem>>, vector<2x64xf32>
    tpu.vector_store %arg12[%c28, %c64_127], %344 {strides = array<i32>} : memref<46x128xf32, #tpu.memory_space<vmem>>, vector<2x64xf32>,
    %c18_128 = arith.constant 18 : index
    %c0_129 = arith.constant 0 : index
    %347 = vector.load %arg11[%c18_128, %c0_129] : memref<46x256xf32, #tpu.memory_space<vmem>>, vector<2x256xf32>
    %cst_130 = arith.constant dense<0.000000e+00> : vector<2x256xf32>
    %348 = tpu.matmul %344, %194, %cst_130 {dimension_numbers = #tpu.dot_dimension_numbers<[1], [0], [0], [1], [0, 0, 1, 1], [], []>} : vector<2x64xf32>, vector<64x256xf32>, vector<2x256xf32> -> vector<2x256xf32>
    %349 = arith.addf %347, %348 : vector<2x256xf32>
    %350 = math.tanh %349 : vector<2x256xf32>
    %351 = arith.mulf %350, %189 : vector<2x256xf32>
    %352 = arith.addf %351, %192 : vector<2x256xf32>
    %353 = vector.extract_strided_slice %352 {offsets = [0, 0], sizes = [2, 64], strides = [1, 1]} : vector<2x256xf32> to vector<2x64xf32>
    %354 = vector.extract_strided_slice %352 {offsets = [0, 64], sizes = [2, 64], strides = [1, 1]} : vector<2x256xf32> to vector<2x64xf32>
    %355 = vector.extract_strided_slice %352 {offsets = [0, 128], sizes = [2, 64], strides = [1, 1]} : vector<2x256xf32> to vector<2x64xf32>
    %356 = vector.extract_strided_slice %352 {offsets = [0, 192], sizes = [2, 64], strides = [1, 1]} : vector<2x256xf32> to vector<2x64xf32>
    %357 = arith.mulf %354, %342 : vector<2x64xf32>
    %358 = arith.mulf %353, %356 : vector<2x64xf32>
    %359 = arith.addf %357, %358 : vector<2x64xf32>
    %360 = math.tanh %359 : vector<2x64xf32>
    %361 = arith.mulf %355, %360 : vector<2x64xf32>
    %c18_131 = arith.constant 18 : index
    %c0_132 = arith.constant 0 : index
    %362 = vector.load %arg12[%c18_131, %c0_132] : memref<46x128xf32, #tpu.memory_space<vmem>>, vector<2x64xf32>
    tpu.vector_store %arg12[%c18_131, %c0_132], %361 {strides = array<i32>} : memref<46x128xf32, #tpu.memory_space<vmem>>, vector<2x64xf32>,
    %c26 = arith.constant 26 : index
    %c64_133 = arith.constant 64 : index
    %363 = vector.load %arg12[%c26, %c64_133] : memref<46x128xf32, #tpu.memory_space<vmem>>, vector<2x64xf32>
    tpu.vector_store %arg12[%c26, %c64_133], %361 {strides = array<i32>} : memref<46x128xf32, #tpu.memory_space<vmem>>, vector<2x64xf32>,
    %c20 = arith.constant 20 : index
    %c0_134 = arith.constant 0 : index
    %364 = vector.load %arg11[%c20, %c0_134] : memref<46x256xf32, #tpu.memory_space<vmem>>, vector<2x256xf32>
    %cst_135 = arith.constant dense<0.000000e+00> : vector<2x256xf32>
    %365 = tpu.matmul %361, %194, %cst_135 {dimension_numbers = #tpu.dot_dimension_numbers<[1], [0], [0], [1], [0, 0, 1, 1], [], []>} : vector<2x64xf32>, vector<64x256xf32>, vector<2x256xf32> -> vector<2x256xf32>
    %366 = arith.addf %364, %365 : vector<2x256xf32>
    %367 = math.tanh %366 : vector<2x256xf32>
    %368 = arith.mulf %367, %189 : vector<2x256xf32>
    %369 = arith.addf %368, %192 : vector<2x256xf32>
    %370 = vector.extract_strided_slice %369 {offsets = [0, 0], sizes = [2, 64], strides = [1, 1]} : vector<2x256xf32> to vector<2x64xf32>
    %371 = vector.extract_strided_slice %369 {offsets = [0, 64], sizes = [2, 64], strides = [1, 1]} : vector<2x256xf32> to vector<2x64xf32>
    %372 = vector.extract_strided_slice %369 {offsets = [0, 128], sizes = [2, 64], strides = [1, 1]} : vector<2x256xf32> to vector<2x64xf32>
    %373 = vector.extract_strided_slice %369 {offsets = [0, 192], sizes = [2, 64], strides = [1, 1]} : vector<2x256xf32> to vector<2x64xf32>
    %374 = arith.mulf %371, %359 : vector<2x64xf32>
    %375 = arith.mulf %370, %373 : vector<2x64xf32>
    %376 = arith.addf %374, %375 : vector<2x64xf32>
    %377 = math.tanh %376 : vector<2x64xf32>
    %378 = arith.mulf %372, %377 : vector<2x64xf32>
    %c20_136 = arith.constant 20 : index
    %c0_137 = arith.constant 0 : index
    %379 = vector.load %arg12[%c20_136, %c0_137] : memref<46x128xf32, #tpu.memory_space<vmem>>, vector<2x64xf32>
    tpu.vector_store %arg12[%c20_136, %c0_137], %378 {strides = array<i32>} : memref<46x128xf32, #tpu.memory_space<vmem>>, vector<2x64xf32>,
    %c24 = arith.constant 24 : index
    %c64_138 = arith.constant 64 : index
    %380 = vector.load %arg12[%c24, %c64_138] : memref<46x128xf32, #tpu.memory_space<vmem>>, vector<2x64xf32>
    tpu.vector_store %arg12[%c24, %c64_138], %378 {strides = array<i32>} : memref<46x128xf32, #tpu.memory_space<vmem>>, vector<2x64xf32>,
    %c22 = arith.constant 22 : index
    %c0_139 = arith.constant 0 : index
    %381 = vector.load %arg11[%c22, %c0_139] : memref<46x256xf32, #tpu.memory_space<vmem>>, vector<2x256xf32>
    %cst_140 = arith.constant dense<0.000000e+00> : vector<2x256xf32>
    %382 = tpu.matmul %378, %194, %cst_140 {dimension_numbers = #tpu.dot_dimension_numbers<[1], [0], [0], [1], [0, 0, 1, 1], [], []>} : vector<2x64xf32>, vector<64x256xf32>, vector<2x256xf32> -> vector<2x256xf32>
    %383 = arith.addf %381, %382 : vector<2x256xf32>
    %384 = math.tanh %383 : vector<2x256xf32>
    %385 = arith.mulf %384, %189 : vector<2x256xf32>
    %386 = arith.addf %385, %192 : vector<2x256xf32>
    %387 = vector.extract_strided_slice %386 {offsets = [0, 0], sizes = [2, 64], strides = [1, 1]} : vector<2x256xf32> to vector<2x64xf32>
    %388 = vector.extract_strided_slice %386 {offsets = [0, 64], sizes = [2, 64], strides = [1, 1]} : vector<2x256xf32> to vector<2x64xf32>
    %389 = vector.extract_strided_slice %386 {offsets = [0, 128], sizes = [2, 64], strides = [1, 1]} : vector<2x256xf32> to vector<2x64xf32>
    %390 = vector.extract_strided_slice %386 {offsets = [0, 192], sizes = [2, 64], strides = [1, 1]} : vector<2x256xf32> to vector<2x64xf32>
    %391 = arith.mulf %388, %376 : vector<2x64xf32>
    %392 = arith.mulf %387, %390 : vector<2x64xf32>
    %393 = arith.addf %391, %392 : vector<2x64xf32>
    %394 = math.tanh %393 : vector<2x64xf32>
    %395 = arith.mulf %389, %394 : vector<2x64xf32>
    %c22_141 = arith.constant 22 : index
    %c0_142 = arith.constant 0 : index
    %396 = vector.load %arg12[%c22_141, %c0_142] : memref<46x128xf32, #tpu.memory_space<vmem>>, vector<2x64xf32>
    tpu.vector_store %arg12[%c22_141, %c0_142], %395 {strides = array<i32>} : memref<46x128xf32, #tpu.memory_space<vmem>>, vector<2x64xf32>,
    %c22_143 = arith.constant 22 : index
    %c64_144 = arith.constant 64 : index
    %397 = vector.load %arg12[%c22_143, %c64_144] : memref<46x128xf32, #tpu.memory_space<vmem>>, vector<2x64xf32>
    tpu.vector_store %arg12[%c22_143, %c64_144], %395 {strides = array<i32>} : memref<46x128xf32, #tpu.memory_space<vmem>>, vector<2x64xf32>,
    %c24_145 = arith.constant 24 : index
    %c0_146 = arith.constant 0 : index
    %398 = vector.load %arg11[%c24_145, %c0_146] : memref<46x256xf32, #tpu.memory_space<vmem>>, vector<2x256xf32>
    %cst_147 = arith.constant dense<0.000000e+00> : vector<2x256xf32>
    %399 = tpu.matmul %395, %194, %cst_147 {dimension_numbers = #tpu.dot_dimension_numbers<[1], [0], [0], [1], [0, 0, 1, 1], [], []>} : vector<2x64xf32>, vector<64x256xf32>, vector<2x256xf32> -> vector<2x256xf32>
    %400 = arith.addf %398, %399 : vector<2x256xf32>
    %401 = math.tanh %400 : vector<2x256xf32>
    %402 = arith.mulf %401, %189 : vector<2x256xf32>
    %403 = arith.addf %402, %192 : vector<2x256xf32>
    %404 = vector.extract_strided_slice %403 {offsets = [0, 0], sizes = [2, 64], strides = [1, 1]} : vector<2x256xf32> to vector<2x64xf32>
    %405 = vector.extract_strided_slice %403 {offsets = [0, 64], sizes = [2, 64], strides = [1, 1]} : vector<2x256xf32> to vector<2x64xf32>
    %406 = vector.extract_strided_slice %403 {offsets = [0, 128], sizes = [2, 64], strides = [1, 1]} : vector<2x256xf32> to vector<2x64xf32>
    %407 = vector.extract_strided_slice %403 {offsets = [0, 192], sizes = [2, 64], strides = [1, 1]} : vector<2x256xf32> to vector<2x64xf32>
    %408 = arith.mulf %405, %393 : vector<2x64xf32>
    %409 = arith.mulf %404, %407 : vector<2x64xf32>
    %410 = arith.addf %408, %409 : vector<2x64xf32>
    %411 = math.tanh %410 : vector<2x64xf32>
    %412 = arith.mulf %406, %411 : vector<2x64xf32>
    %c24_148 = arith.constant 24 : index
    %c0_149 = arith.constant 0 : index
    %413 = vector.load %arg12[%c24_148, %c0_149] : memref<46x128xf32, #tpu.memory_space<vmem>>, vector<2x64xf32>
    tpu.vector_store %arg12[%c24_148, %c0_149], %412 {strides = array<i32>} : memref<46x128xf32, #tpu.memory_space<vmem>>, vector<2x64xf32>,
    %c20_150 = arith.constant 20 : index
    %c64_151 = arith.constant 64 : index
    %414 = vector.load %arg12[%c20_150, %c64_151] : memref<46x128xf32, #tpu.memory_space<vmem>>, vector<2x64xf32>
    tpu.vector_store %arg12[%c20_150, %c64_151], %412 {strides = array<i32>} : memref<46x128xf32, #tpu.memory_space<vmem>>, vector<2x64xf32>,
    %c26_152 = arith.constant 26 : index
    %c0_153 = arith.constant 0 : index
    %415 = vector.load %arg11[%c26_152, %c0_153] : memref<46x256xf32, #tpu.memory_space<vmem>>, vector<2x256xf32>
    %cst_154 = arith.constant dense<0.000000e+00> : vector<2x256xf32>
    %416 = tpu.matmul %412, %194, %cst_154 {dimension_numbers = #tpu.dot_dimension_numbers<[1], [0], [0], [1], [0, 0, 1, 1], [], []>} : vector<2x64xf32>, vector<64x256xf32>, vector<2x256xf32> -> vector<2x256xf32>
    %417 = arith.addf %415, %416 : vector<2x256xf32>
    %418 = math.tanh %417 : vector<2x256xf32>
    %419 = arith.mulf %418, %189 : vector<2x256xf32>
    %420 = arith.addf %419, %192 : vector<2x256xf32>
    %421 = vector.extract_strided_slice %420 {offsets = [0, 0], sizes = [2, 64], strides = [1, 1]} : vector<2x256xf32> to vector<2x64xf32>
    %422 = vector.extract_strided_slice %420 {offsets = [0, 64], sizes = [2, 64], strides = [1, 1]} : vector<2x256xf32> to vector<2x64xf32>
    %423 = vector.extract_strided_slice %420 {offsets = [0, 128], sizes = [2, 64], strides = [1, 1]} : vector<2x256xf32> to vector<2x64xf32>
    %424 = vector.extract_strided_slice %420 {offsets = [0, 192], sizes = [2, 64], strides = [1, 1]} : vector<2x256xf32> to vector<2x64xf32>
    %425 = arith.mulf %422, %410 : vector<2x64xf32>
    %426 = arith.mulf %421, %424 : vector<2x64xf32>
    %427 = arith.addf %425, %426 : vector<2x64xf32>
    %428 = math.tanh %427 : vector<2x64xf32>
    %429 = arith.mulf %423, %428 : vector<2x64xf32>
    %c26_155 = arith.constant 26 : index
    %c0_156 = arith.constant 0 : index
    %430 = vector.load %arg12[%c26_155, %c0_156] : memref<46x128xf32, #tpu.memory_space<vmem>>, vector<2x64xf32>
    tpu.vector_store %arg12[%c26_155, %c0_156], %429 {strides = array<i32>} : memref<46x128xf32, #tpu.memory_space<vmem>>, vector<2x64xf32>,
    %c18_157 = arith.constant 18 : index
    %c64_158 = arith.constant 64 : index
    %431 = vector.load %arg12[%c18_157, %c64_158] : memref<46x128xf32, #tpu.memory_space<vmem>>, vector<2x64xf32>
    tpu.vector_store %arg12[%c18_157, %c64_158], %429 {strides = array<i32>} : memref<46x128xf32, #tpu.memory_space<vmem>>, vector<2x64xf32>,
    %c28_159 = arith.constant 28 : index
    %c0_160 = arith.constant 0 : index
    %432 = vector.load %arg11[%c28_159, %c0_160] : memref<46x256xf32, #tpu.memory_space<vmem>>, vector<2x256xf32>
    %cst_161 = arith.constant dense<0.000000e+00> : vector<2x256xf32>
    %433 = tpu.matmul %429, %194, %cst_161 {dimension_numbers = #tpu.dot_dimension_numbers<[1], [0], [0], [1], [0, 0, 1, 1], [], []>} : vector<2x64xf32>, vector<64x256xf32>, vector<2x256xf32> -> vector<2x256xf32>
    %434 = arith.addf %432, %433 : vector<2x256xf32>
    %435 = math.tanh %434 : vector<2x256xf32>
    %436 = arith.mulf %435, %189 : vector<2x256xf32>
    %437 = arith.addf %436, %192 : vector<2x256xf32>
    %438 = vector.extract_strided_slice %437 {offsets = [0, 0], sizes = [2, 64], strides = [1, 1]} : vector<2x256xf32> to vector<2x64xf32>
    %439 = vector.extract_strided_slice %437 {offsets = [0, 64], sizes = [2, 64], strides = [1, 1]} : vector<2x256xf32> to vector<2x64xf32>
    %440 = vector.extract_strided_slice %437 {offsets = [0, 128], sizes = [2, 64], strides = [1, 1]} : vector<2x256xf32> to vector<2x64xf32>
    %441 = vector.extract_strided_slice %437 {offsets = [0, 192], sizes = [2, 64], strides = [1, 1]} : vector<2x256xf32> to vector<2x64xf32>
    %442 = arith.mulf %439, %427 : vector<2x64xf32>
    %443 = arith.mulf %438, %441 : vector<2x64xf32>
    %444 = arith.addf %442, %443 : vector<2x64xf32>
    %445 = math.tanh %444 : vector<2x64xf32>
    %446 = arith.mulf %440, %445 : vector<2x64xf32>
    %c28_162 = arith.constant 28 : index
    %c0_163 = arith.constant 0 : index
    %447 = vector.load %arg12[%c28_162, %c0_163] : memref<46x128xf32, #tpu.memory_space<vmem>>, vector<2x64xf32>
    tpu.vector_store %arg12[%c28_162, %c0_163], %446 {strides = array<i32>} : memref<46x128xf32, #tpu.memory_space<vmem>>, vector<2x64xf32>,
    %c16_164 = arith.constant 16 : index
    %c64_165 = arith.constant 64 : index
    %448 = vector.load %arg12[%c16_164, %c64_165] : memref<46x128xf32, #tpu.memory_space<vmem>>, vector<2x64xf32>
    tpu.vector_store %arg12[%c16_164, %c64_165], %446 {strides = array<i32>} : memref<46x128xf32, #tpu.memory_space<vmem>>, vector<2x64xf32>,
    %c30_166 = arith.constant 30 : index
    %c0_167 = arith.constant 0 : index
    %449 = vector.load %arg11[%c30_166, %c0_167] : memref<46x256xf32, #tpu.memory_space<vmem>>, vector<2x256xf32>
    %cst_168 = arith.constant dense<0.000000e+00> : vector<2x256xf32>
    %450 = tpu.matmul %446, %194, %cst_168 {dimension_numbers = #tpu.dot_dimension_numbers<[1], [0], [0], [1], [0, 0, 1, 1], [], []>} : vector<2x64xf32>, vector<64x256xf32>, vector<2x256xf32> -> vector<2x256xf32>
    %451 = arith.addf %449, %450 : vector<2x256xf32>
    %452 = math.tanh %451 : vector<2x256xf32>
    %453 = arith.mulf %452, %189 : vector<2x256xf32>
    %454 = arith.addf %453, %192 : vector<2x256xf32>
    %455 = vector.extract_strided_slice %454 {offsets = [0, 0], sizes = [2, 64], strides = [1, 1]} : vector<2x256xf32> to vector<2x64xf32>
    %456 = vector.extract_strided_slice %454 {offsets = [0, 64], sizes = [2, 64], strides = [1, 1]} : vector<2x256xf32> to vector<2x64xf32>
    %457 = vector.extract_strided_slice %454 {offsets = [0, 128], sizes = [2, 64], strides = [1, 1]} : vector<2x256xf32> to vector<2x64xf32>
    %458 = vector.extract_strided_slice %454 {offsets = [0, 192], sizes = [2, 64], strides = [1, 1]} : vector<2x256xf32> to vector<2x64xf32>
    %459 = arith.mulf %456, %444 : vector<2x64xf32>
    %460 = arith.mulf %455, %458 : vector<2x64xf32>
    %461 = arith.addf %459, %460 : vector<2x64xf32>
    %462 = math.tanh %461 : vector<2x64xf32>
    %463 = arith.mulf %457, %462 : vector<2x64xf32>
    %c30_169 = arith.constant 30 : index
    %c0_170 = arith.constant 0 : index
    %464 = vector.load %arg12[%c30_169, %c0_170] : memref<46x128xf32, #tpu.memory_space<vmem>>, vector<2x64xf32>
    tpu.vector_store %arg12[%c30_169, %c0_170], %463 {strides = array<i32>} : memref<46x128xf32, #tpu.memory_space<vmem>>, vector<2x64xf32>,
    %c14_171 = arith.constant 14 : index
    %c64_172 = arith.constant 64 : index
    %465 = vector.load %arg12[%c14_171, %c64_172] : memref<46x128xf32, #tpu.memory_space<vmem>>, vector<2x64xf32>
    tpu.vector_store %arg12[%c14_171, %c64_172], %463 {strides = array<i32>} : memref<46x128xf32, #tpu.memory_space<vmem>>, vector<2x64xf32>,
    %c32_173 = arith.constant 32 : index
    %c0_174 = arith.constant 0 : index
    %466 = vector.load %arg11[%c32_173, %c0_174] : memref<46x256xf32, #tpu.memory_space<vmem>>, vector<2x256xf32>
    %cst_175 = arith.constant dense<0.000000e+00> : vector<2x256xf32>
    %467 = tpu.matmul %463, %194, %cst_175 {dimension_numbers = #tpu.dot_dimension_numbers<[1], [0], [0], [1], [0, 0, 1, 1], [], []>} : vector<2x64xf32>, vector<64x256xf32>, vector<2x256xf32> -> vector<2x256xf32>
    %468 = arith.addf %466, %467 : vector<2x256xf32>
    %469 = math.tanh %468 : vector<2x256xf32>
    %470 = arith.mulf %469, %189 : vector<2x256xf32>
    %471 = arith.addf %470, %192 : vector<2x256xf32>
    %472 = vector.extract_strided_slice %471 {offsets = [0, 0], sizes = [2, 64], strides = [1, 1]} : vector<2x256xf32> to vector<2x64xf32>
    %473 = vector.extract_strided_slice %471 {offsets = [0, 64], sizes = [2, 64], strides = [1, 1]} : vector<2x256xf32> to vector<2x64xf32>
    %474 = vector.extract_strided_slice %471 {offsets = [0, 128], sizes = [2, 64], strides = [1, 1]} : vector<2x256xf32> to vector<2x64xf32>
    %475 = vector.extract_strided_slice %471 {offsets = [0, 192], sizes = [2, 64], strides = [1, 1]} : vector<2x256xf32> to vector<2x64xf32>
    %476 = arith.mulf %473, %461 : vector<2x64xf32>
    %477 = arith.mulf %472, %475 : vector<2x64xf32>
    %478 = arith.addf %476, %477 : vector<2x64xf32>
    %479 = math.tanh %478 : vector<2x64xf32>
    %480 = arith.mulf %474, %479 : vector<2x64xf32>
    %c32_176 = arith.constant 32 : index
    %c0_177 = arith.constant 0 : index
    %481 = vector.load %arg12[%c32_176, %c0_177] : memref<46x128xf32, #tpu.memory_space<vmem>>, vector<2x64xf32>
    tpu.vector_store %arg12[%c32_176, %c0_177], %480 {strides = array<i32>} : memref<46x128xf32, #tpu.memory_space<vmem>>, vector<2x64xf32>,
    %c12_178 = arith.constant 12 : index
    %c64_179 = arith.constant 64 : index
    %482 = vector.load %arg12[%c12_178, %c64_179] : memref<46x128xf32, #tpu.memory_space<vmem>>, vector<2x64xf32>
    tpu.vector_store %arg12[%c12_178, %c64_179], %480 {strides = array<i32>} : memref<46x128xf32, #tpu.memory_space<vmem>>, vector<2x64xf32>,
    %c34_180 = arith.constant 34 : index
    %c0_181 = arith.constant 0 : index
    %483 = vector.load %arg11[%c34_180, %c0_181] : memref<46x256xf32, #tpu.memory_space<vmem>>, vector<2x256xf32>
    %cst_182 = arith.constant dense<0.000000e+00> : vector<2x256xf32>
    %484 = tpu.matmul %480, %194, %cst_182 {dimension_numbers = #tpu.dot_dimension_numbers<[1], [0], [0], [1], [0, 0, 1, 1], [], []>} : vector<2x64xf32>, vector<64x256xf32>, vector<2x256xf32> -> vector<2x256xf32>
    %485 = arith.addf %483, %484 : vector<2x256xf32>
    %486 = math.tanh %485 : vector<2x256xf32>
    %487 = arith.mulf %486, %189 : vector<2x256xf32>
    %488 = arith.addf %487, %192 : vector<2x256xf32>
    %489 = vector.extract_strided_slice %488 {offsets = [0, 0], sizes = [2, 64], strides = [1, 1]} : vector<2x256xf32> to vector<2x64xf32>
    %490 = vector.extract_strided_slice %488 {offsets = [0, 64], sizes = [2, 64], strides = [1, 1]} : vector<2x256xf32> to vector<2x64xf32>
    %491 = vector.extract_strided_slice %488 {offsets = [0, 128], sizes = [2, 64], strides = [1, 1]} : vector<2x256xf32> to vector<2x64xf32>
    %492 = vector.extract_strided_slice %488 {offsets = [0, 192], sizes = [2, 64], strides = [1, 1]} : vector<2x256xf32> to vector<2x64xf32>
    %493 = arith.mulf %490, %478 : vector<2x64xf32>
    %494 = arith.mulf %489, %492 : vector<2x64xf32>
    %495 = arith.addf %493, %494 : vector<2x64xf32>
    %496 = math.tanh %495 : vector<2x64xf32>
    %497 = arith.mulf %491, %496 : vector<2x64xf32>
    %c34_183 = arith.constant 34 : index
    %c0_184 = arith.constant 0 : index
    %498 = vector.load %arg12[%c34_183, %c0_184] : memref<46x128xf32, #tpu.memory_space<vmem>>, vector<2x64xf32>
    tpu.vector_store %arg12[%c34_183, %c0_184], %497 {strides = array<i32>} : memref<46x128xf32, #tpu.memory_space<vmem>>, vector<2x64xf32>,
    %c10_185 = arith.constant 10 : index
    %c64_186 = arith.constant 64 : index
    %499 = vector.load %arg12[%c10_185, %c64_186] : memref<46x128xf32, #tpu.memory_space<vmem>>, vector<2x64xf32>
    tpu.vector_store %arg12[%c10_185, %c64_186], %497 {strides = array<i32>} : memref<46x128xf32, #tpu.memory_space<vmem>>, vector<2x64xf32>,
    %c36_187 = arith.constant 36 : index
    %c0_188 = arith.constant 0 : index
    %500 = vector.load %arg11[%c36_187, %c0_188] : memref<46x256xf32, #tpu.memory_space<vmem>>, vector<2x256xf32>
    %cst_189 = arith.constant dense<0.000000e+00> : vector<2x256xf32>
    %501 = tpu.matmul %497, %194, %cst_189 {dimension_numbers = #tpu.dot_dimension_numbers<[1], [0], [0], [1], [0, 0, 1, 1], [], []>} : vector<2x64xf32>, vector<64x256xf32>, vector<2x256xf32> -> vector<2x256xf32>
    %502 = arith.addf %500, %501 : vector<2x256xf32>
    %503 = math.tanh %502 : vector<2x256xf32>
    %504 = arith.mulf %503, %189 : vector<2x256xf32>
    %505 = arith.addf %504, %192 : vector<2x256xf32>
    %506 = vector.extract_strided_slice %505 {offsets = [0, 0], sizes = [2, 64], strides = [1, 1]} : vector<2x256xf32> to vector<2x64xf32>
    %507 = vector.extract_strided_slice %505 {offsets = [0, 64], sizes = [2, 64], strides = [1, 1]} : vector<2x256xf32> to vector<2x64xf32>
    %508 = vector.extract_strided_slice %505 {offsets = [0, 128], sizes = [2, 64], strides = [1, 1]} : vector<2x256xf32> to vector<2x64xf32>
    %509 = vector.extract_strided_slice %505 {offsets = [0, 192], sizes = [2, 64], strides = [1, 1]} : vector<2x256xf32> to vector<2x64xf32>
    %510 = arith.mulf %507, %495 : vector<2x64xf32>
    %511 = arith.mulf %506, %509 : vector<2x64xf32>
    %512 = arith.addf %510, %511 : vector<2x64xf32>
    %513 = math.tanh %512 : vector<2x64xf32>
    %514 = arith.mulf %508, %513 : vector<2x64xf32>
    %c36_190 = arith.constant 36 : index
    %c0_191 = arith.constant 0 : index
    %515 = vector.load %arg12[%c36_190, %c0_191] : memref<46x128xf32, #tpu.memory_space<vmem>>, vector<2x64xf32>
    tpu.vector_store %arg12[%c36_190, %c0_191], %514 {strides = array<i32>} : memref<46x128xf32, #tpu.memory_space<vmem>>, vector<2x64xf32>,
    %c8_192 = arith.constant 8 : index
    %c64_193 = arith.constant 64 : index
    %516 = vector.load %arg12[%c8_192, %c64_193] : memref<46x128xf32, #tpu.memory_space<vmem>>, vector<2x64xf32>
    tpu.vector_store %arg12[%c8_192, %c64_193], %514 {strides = array<i32>} : memref<46x128xf32, #tpu.memory_space<vmem>>, vector<2x64xf32>,
    %c38_194 = arith.constant 38 : index
    %c0_195 = arith.constant 0 : index
    %517 = vector.load %arg11[%c38_194, %c0_195] : memref<46x256xf32, #tpu.memory_space<vmem>>, vector<2x256xf32>
    %cst_196 = arith.constant dense<0.000000e+00> : vector<2x256xf32>
    %518 = tpu.matmul %514, %194, %cst_196 {dimension_numbers = #tpu.dot_dimension_numbers<[1], [0], [0], [1], [0, 0, 1, 1], [], []>} : vector<2x64xf32>, vector<64x256xf32>, vector<2x256xf32> -> vector<2x256xf32>
    %519 = arith.addf %517, %518 : vector<2x256xf32>
    %520 = math.tanh %519 : vector<2x256xf32>
    %521 = arith.mulf %520, %189 : vector<2x256xf32>
    %522 = arith.addf %521, %192 : vector<2x256xf32>
    %523 = vector.extract_strided_slice %522 {offsets = [0, 0], sizes = [2, 64], strides = [1, 1]} : vector<2x256xf32> to vector<2x64xf32>
    %524 = vector.extract_strided_slice %522 {offsets = [0, 64], sizes = [2, 64], strides = [1, 1]} : vector<2x256xf32> to vector<2x64xf32>
    %525 = vector.extract_strided_slice %522 {offsets = [0, 128], sizes = [2, 64], strides = [1, 1]} : vector<2x256xf32> to vector<2x64xf32>
    %526 = vector.extract_strided_slice %522 {offsets = [0, 192], sizes = [2, 64], strides = [1, 1]} : vector<2x256xf32> to vector<2x64xf32>
    %527 = arith.mulf %524, %512 : vector<2x64xf32>
    %528 = arith.mulf %523, %526 : vector<2x64xf32>
    %529 = arith.addf %527, %528 : vector<2x64xf32>
    %530 = math.tanh %529 : vector<2x64xf32>
    %531 = arith.mulf %525, %530 : vector<2x64xf32>
    %c38_197 = arith.constant 38 : index
    %c0_198 = arith.constant 0 : index
    %532 = vector.load %arg12[%c38_197, %c0_198] : memref<46x128xf32, #tpu.memory_space<vmem>>, vector<2x64xf32>
    tpu.vector_store %arg12[%c38_197, %c0_198], %531 {strides = array<i32>} : memref<46x128xf32, #tpu.memory_space<vmem>>, vector<2x64xf32>,
    %c6_199 = arith.constant 6 : index
    %c64_200 = arith.constant 64 : index
    %533 = vector.load %arg12[%c6_199, %c64_200] : memref<46x128xf32, #tpu.memory_space<vmem>>, vector<2x64xf32>
    tpu.vector_store %arg12[%c6_199, %c64_200], %531 {strides = array<i32>} : memref<46x128xf32, #tpu.memory_space<vmem>>, vector<2x64xf32>,
    %c40_201 = arith.constant 40 : index
    %c0_202 = arith.constant 0 : index
    %534 = vector.load %arg11[%c40_201, %c0_202] : memref<46x256xf32, #tpu.memory_space<vmem>>, vector<2x256xf32>
    %cst_203 = arith.constant dense<0.000000e+00> : vector<2x256xf32>
    %535 = tpu.matmul %531, %194, %cst_203 {dimension_numbers = #tpu.dot_dimension_numbers<[1], [0], [0], [1], [0, 0, 1, 1], [], []>} : vector<2x64xf32>, vector<64x256xf32>, vector<2x256xf32> -> vector<2x256xf32>
    %536 = arith.addf %534, %535 : vector<2x256xf32>
    %537 = math.tanh %536 : vector<2x256xf32>
    %538 = arith.mulf %537, %189 : vector<2x256xf32>
    %539 = arith.addf %538, %192 : vector<2x256xf32>
    %540 = vector.extract_strided_slice %539 {offsets = [0, 0], sizes = [2, 64], strides = [1, 1]} : vector<2x256xf32> to vector<2x64xf32>
    %541 = vector.extract_strided_slice %539 {offsets = [0, 64], sizes = [2, 64], strides = [1, 1]} : vector<2x256xf32> to vector<2x64xf32>
    %542 = vector.extract_strided_slice %539 {offsets = [0, 128], sizes = [2, 64], strides = [1, 1]} : vector<2x256xf32> to vector<2x64xf32>
    %543 = vector.extract_strided_slice %539 {offsets = [0, 192], sizes = [2, 64], strides = [1, 1]} : vector<2x256xf32> to vector<2x64xf32>
    %544 = arith.mulf %541, %529 : vector<2x64xf32>
    %545 = arith.mulf %540, %543 : vector<2x64xf32>
    %546 = arith.addf %544, %545 : vector<2x64xf32>
    %547 = math.tanh %546 : vector<2x64xf32>
    %548 = arith.mulf %542, %547 : vector<2x64xf32>
    %c40_204 = arith.constant 40 : index
    %c0_205 = arith.constant 0 : index
    %549 = vector.load %arg12[%c40_204, %c0_205] : memref<46x128xf32, #tpu.memory_space<vmem>>, vector<2x64xf32>
    tpu.vector_store %arg12[%c40_204, %c0_205], %548 {strides = array<i32>} : memref<46x128xf32, #tpu.memory_space<vmem>>, vector<2x64xf32>,
    %c4_206 = arith.constant 4 : index
    %c64_207 = arith.constant 64 : index
    %550 = vector.load %arg12[%c4_206, %c64_207] : memref<46x128xf32, #tpu.memory_space<vmem>>, vector<2x64xf32>
    tpu.vector_store %arg12[%c4_206, %c64_207], %548 {strides = array<i32>} : memref<46x128xf32, #tpu.memory_space<vmem>>, vector<2x64xf32>,
    %c42_208 = arith.constant 42 : index
    %c0_209 = arith.constant 0 : index
    %551 = vector.load %arg11[%c42_208, %c0_209] : memref<46x256xf32, #tpu.memory_space<vmem>>, vector<2x256xf32>
    %cst_210 = arith.constant dense<0.000000e+00> : vector<2x256xf32>
    %552 = tpu.matmul %548, %194, %cst_210 {dimension_numbers = #tpu.dot_dimension_numbers<[1], [0], [0], [1], [0, 0, 1, 1], [], []>} : vector<2x64xf32>, vector<64x256xf32>, vector<2x256xf32> -> vector<2x256xf32>
    %553 = arith.addf %551, %552 : vector<2x256xf32>
    %554 = math.tanh %553 : vector<2x256xf32>
    %555 = arith.mulf %554, %189 : vector<2x256xf32>
    %556 = arith.addf %555, %192 : vector<2x256xf32>
    %557 = vector.extract_strided_slice %556 {offsets = [0, 0], sizes = [2, 64], strides = [1, 1]} : vector<2x256xf32> to vector<2x64xf32>
    %558 = vector.extract_strided_slice %556 {offsets = [0, 64], sizes = [2, 64], strides = [1, 1]} : vector<2x256xf32> to vector<2x64xf32>
    %559 = vector.extract_strided_slice %556 {offsets = [0, 128], sizes = [2, 64], strides = [1, 1]} : vector<2x256xf32> to vector<2x64xf32>
    %560 = vector.extract_strided_slice %556 {offsets = [0, 192], sizes = [2, 64], strides = [1, 1]} : vector<2x256xf32> to vector<2x64xf32>
    %561 = arith.mulf %558, %546 : vector<2x64xf32>
    %562 = arith.mulf %557, %560 : vector<2x64xf32>
    %563 = arith.addf %561, %562 : vector<2x64xf32>
    %564 = math.tanh %563 : vector<2x64xf32>
    %565 = arith.mulf %559, %564 : vector<2x64xf32>
    %c42_211 = arith.constant 42 : index
    %c0_212 = arith.constant 0 : index
    %566 = vector.load %arg12[%c42_211, %c0_212] : memref<46x128xf32, #tpu.memory_space<vmem>>, vector<2x64xf32>
    tpu.vector_store %arg12[%c42_211, %c0_212], %565 {strides = array<i32>} : memref<46x128xf32, #tpu.memory_space<vmem>>, vector<2x64xf32>,
    %c2_213 = arith.constant 2 : index
    %c64_214 = arith.constant 64 : index
    %567 = vector.load %arg12[%c2_213, %c64_214] : memref<46x128xf32, #tpu.memory_space<vmem>>, vector<2x64xf32>
    tpu.vector_store %arg12[%c2_213, %c64_214], %565 {strides = array<i32>} : memref<46x128xf32, #tpu.memory_space<vmem>>, vector<2x64xf32>,
    %c44_215 = arith.constant 44 : index
    %c0_216 = arith.constant 0 : index
    %568 = vector.load %arg11[%c44_215, %c0_216] : memref<46x256xf32, #tpu.memory_space<vmem>>, vector<2x256xf32>
    %cst_217 = arith.constant dense<0.000000e+00> : vector<2x256xf32>
    %569 = tpu.matmul %565, %194, %cst_217 {dimension_numbers = #tpu.dot_dimension_numbers<[1], [0], [0], [1], [0, 0, 1, 1], [], []>} : vector<2x64xf32>, vector<64x256xf32>, vector<2x256xf32> -> vector<2x256xf32>
    %570 = arith.addf %568, %569 : vector<2x256xf32>
    %571 = math.tanh %570 : vector<2x256xf32>
    %572 = arith.mulf %571, %189 : vector<2x256xf32>
    %573 = arith.addf %572, %192 : vector<2x256xf32>
    %574 = vector.extract_strided_slice %573 {offsets = [0, 0], sizes = [2, 64], strides = [1, 1]} : vector<2x256xf32> to vector<2x64xf32>
    %575 = vector.extract_strided_slice %573 {offsets = [0, 64], sizes = [2, 64], strides = [1, 1]} : vector<2x256xf32> to vector<2x64xf32>
    %576 = vector.extract_strided_slice %573 {offsets = [0, 128], sizes = [2, 64], strides = [1, 1]} : vector<2x256xf32> to vector<2x64xf32>
    %577 = vector.extract_strided_slice %573 {offsets = [0, 192], sizes = [2, 64], strides = [1, 1]} : vector<2x256xf32> to vector<2x64xf32>
    %578 = arith.mulf %575, %563 : vector<2x64xf32>
    %579 = arith.mulf %574, %577 : vector<2x64xf32>
    %580 = arith.addf %578, %579 : vector<2x64xf32>
    %581 = math.tanh %580 : vector<2x64xf32>
    %582 = arith.mulf %576, %581 : vector<2x64xf32>
    %c44_218 = arith.constant 44 : index
    %c0_219 = arith.constant 0 : index
    %583 = vector.load %arg12[%c44_218, %c0_219] : memref<46x128xf32, #tpu.memory_space<vmem>>, vector<2x64xf32>
    tpu.vector_store %arg12[%c44_218, %c0_219], %582 {strides = array<i32>} : memref<46x128xf32, #tpu.memory_space<vmem>>, vector<2x64xf32>,
    %c0_220 = arith.constant 0 : index
    %c64_221 = arith.constant 64 : index
    %584 = vector.load %arg12[%c0_220, %c64_221] : memref<46x128xf32, #tpu.memory_space<vmem>>, vector<2x64xf32>
    tpu.vector_store %arg12[%c0_220, %c64_221], %582 {strides = array<i32>} : memref<46x128xf32, #tpu.memory_space<vmem>>, vector<2x64xf32>,
    %c0_222 = arith.constant 0 : index
    %c0_223 = arith.constant 0 : index
    %585 = vector.load %arg12[%c0_222, %c0_223] : memref<46x128xf32, #tpu.memory_space<vmem>>, vector<46x128xf32>
    %c0_224 = arith.constant 0 : index
    %c0_225 = arith.constant 0 : index
    %586 = vector.load %arg4[%c0_224, %c0_225] : memref<128x256xf32, #tpu.memory_space<vmem>>, vector<128x256xf32>
    %cst_226 = arith.constant dense<0.000000e+00> : vector<46x256xf32>
    %587 = tpu.matmul %585, %586, %cst_226 {dimension_numbers = #tpu.dot_dimension_numbers<[1], [0], [0], [1], [0, 0, 1, 1], [], []>} : vector<46x128xf32>, vector<128x256xf32>, vector<46x256xf32> -> vector<46x256xf32>
    %c1_227 = arith.constant 1 : index
    %c0_228 = arith.constant 0 : index
    %588 = vector.load %arg6[%c1_227, %c0_228] : memref<2x256xf32, #tpu.memory_space<vmem>>, vector<1x256xf32>
    %589 = vector.broadcast %588 : vector<1x256xf32> to vector<46x256xf32>
    %590 = arith.addf %587, %589 : vector<46x256xf32>
    %c0_229 = arith.constant 0 : index
    %c0_230 = arith.constant 0 : index
    %591 = vector.load %arg11[%c0_229, %c0_230] : memref<46x256xf32, #tpu.memory_space<vmem>>, vector<46x256xf32>
    tpu.vector_store %arg11[%c0_229, %c0_230], %590 {strides = array<i32>} : memref<46x256xf32, #tpu.memory_space<vmem>>, vector<46x256xf32>,
    %c1_231 = arith.constant 1 : index
    %c0_232 = arith.constant 0 : index
    %c0_233 = arith.constant 0 : index
    %592 = vector.load %arg5[%c1_231, %c0_232, %c0_233] : memref<2x64x256xf32, #tpu.memory_space<vmem>>, vector<1x64x256xf32>
    %593 = vector.shape_cast %592 : vector<1x64x256xf32> to vector<64x256xf32>
    %cst_234 = arith.constant 0.000000e+00 : f32
    %594 = vector.broadcast %cst_234 : f32 to vector<2x64xf32>
    %c0_235 = arith.constant 0 : index
    %c0_236 = arith.constant 0 : index
    %595 = vector.load %arg11[%c0_235, %c0_236] : memref<46x256xf32, #tpu.memory_space<vmem>>, vector<2x256xf32>
    %596 = math.tanh %595 : vector<2x256xf32>
    %597 = arith.mulf %596, %189 : vector<2x256xf32>
    %598 = arith.addf %597, %192 : vector<2x256xf32>
    %599 = vector.extract_strided_slice %598 {offsets = [0, 0], sizes = [2, 64], strides = [1, 1]} : vector<2x256xf32> to vector<2x64xf32>
    %600 = vector.extract_strided_slice %598 {offsets = [0, 64], sizes = [2, 64], strides = [1, 1]} : vector<2x256xf32> to vector<2x64xf32>
    %601 = vector.extract_strided_slice %598 {offsets = [0, 128], sizes = [2, 64], strides = [1, 1]} : vector<2x256xf32> to vector<2x64xf32>
    %602 = vector.extract_strided_slice %598 {offsets = [0, 192], sizes = [2, 64], strides = [1, 1]} : vector<2x256xf32> to vector<2x64xf32>
    %603 = arith.mulf %600, %594 : vector<2x64xf32>
    %604 = arith.mulf %599, %602 : vector<2x64xf32>
    %605 = arith.addf %603, %604 : vector<2x64xf32>
    %606 = math.tanh %605 : vector<2x64xf32>
    %607 = arith.mulf %601, %606 : vector<2x64xf32>
    %c0_237 = arith.constant 0 : index
    %c0_238 = arith.constant 0 : index
    %608 = vector.load %arg12[%c0_237, %c0_238] : memref<46x128xf32, #tpu.memory_space<vmem>>, vector<2x64xf32>
    tpu.vector_store %arg12[%c0_237, %c0_238], %607 {strides = array<i32>} : memref<46x128xf32, #tpu.memory_space<vmem>>, vector<2x64xf32>,
    %c44_239 = arith.constant 44 : index
    %c64_240 = arith.constant 64 : index
    %609 = vector.load %arg12[%c44_239, %c64_240] : memref<46x128xf32, #tpu.memory_space<vmem>>, vector<2x64xf32>
    tpu.vector_store %arg12[%c44_239, %c64_240], %607 {strides = array<i32>} : memref<46x128xf32, #tpu.memory_space<vmem>>, vector<2x64xf32>,
    %c2_241 = arith.constant 2 : index
    %c0_242 = arith.constant 0 : index
    %610 = vector.load %arg11[%c2_241, %c0_242] : memref<46x256xf32, #tpu.memory_space<vmem>>, vector<2x256xf32>
    %cst_243 = arith.constant dense<0.000000e+00> : vector<2x256xf32>
    %611 = tpu.matmul %607, %593, %cst_243 {dimension_numbers = #tpu.dot_dimension_numbers<[1], [0], [0], [1], [0, 0, 1, 1], [], []>} : vector<2x64xf32>, vector<64x256xf32>, vector<2x256xf32> -> vector<2x256xf32>
    %612 = arith.addf %610, %611 : vector<2x256xf32>
    %613 = math.tanh %612 : vector<2x256xf32>
    %614 = arith.mulf %613, %189 : vector<2x256xf32>
    %615 = arith.addf %614, %192 : vector<2x256xf32>
    %616 = vector.extract_strided_slice %615 {offsets = [0, 0], sizes = [2, 64], strides = [1, 1]} : vector<2x256xf32> to vector<2x64xf32>
    %617 = vector.extract_strided_slice %615 {offsets = [0, 64], sizes = [2, 64], strides = [1, 1]} : vector<2x256xf32> to vector<2x64xf32>
    %618 = vector.extract_strided_slice %615 {offsets = [0, 128], sizes = [2, 64], strides = [1, 1]} : vector<2x256xf32> to vector<2x64xf32>
    %619 = vector.extract_strided_slice %615 {offsets = [0, 192], sizes = [2, 64], strides = [1, 1]} : vector<2x256xf32> to vector<2x64xf32>
    %620 = arith.mulf %617, %605 : vector<2x64xf32>
    %621 = arith.mulf %616, %619 : vector<2x64xf32>
    %622 = arith.addf %620, %621 : vector<2x64xf32>
    %623 = math.tanh %622 : vector<2x64xf32>
    %624 = arith.mulf %618, %623 : vector<2x64xf32>
    %c2_244 = arith.constant 2 : index
    %c0_245 = arith.constant 0 : index
    %625 = vector.load %arg12[%c2_244, %c0_245] : memref<46x128xf32, #tpu.memory_space<vmem>>, vector<2x64xf32>
    tpu.vector_store %arg12[%c2_244, %c0_245], %624 {strides = array<i32>} : memref<46x128xf32, #tpu.memory_space<vmem>>, vector<2x64xf32>,
    %c42_246 = arith.constant 42 : index
    %c64_247 = arith.constant 64 : index
    %626 = vector.load %arg12[%c42_246, %c64_247] : memref<46x128xf32, #tpu.memory_space<vmem>>, vector<2x64xf32>
    tpu.vector_store %arg12[%c42_246, %c64_247], %624 {strides = array<i32>} : memref<46x128xf32, #tpu.memory_space<vmem>>, vector<2x64xf32>,
    %c4_248 = arith.constant 4 : index
    %c0_249 = arith.constant 0 : index
    %627 = vector.load %arg11[%c4_248, %c0_249] : memref<46x256xf32, #tpu.memory_space<vmem>>, vector<2x256xf32>
    %cst_250 = arith.constant dense<0.000000e+00> : vector<2x256xf32>
    %628 = tpu.matmul %624, %593, %cst_250 {dimension_numbers = #tpu.dot_dimension_numbers<[1], [0], [0], [1], [0, 0, 1, 1], [], []>} : vector<2x64xf32>, vector<64x256xf32>, vector<2x256xf32> -> vector<2x256xf32>
    %629 = arith.addf %627, %628 : vector<2x256xf32>
    %630 = math.tanh %629 : vector<2x256xf32>
    %631 = arith.mulf %630, %189 : vector<2x256xf32>
    %632 = arith.addf %631, %192 : vector<2x256xf32>
    %633 = vector.extract_strided_slice %632 {offsets = [0, 0], sizes = [2, 64], strides = [1, 1]} : vector<2x256xf32> to vector<2x64xf32>
    %634 = vector.extract_strided_slice %632 {offsets = [0, 64], sizes = [2, 64], strides = [1, 1]} : vector<2x256xf32> to vector<2x64xf32>
    %635 = vector.extract_strided_slice %632 {offsets = [0, 128], sizes = [2, 64], strides = [1, 1]} : vector<2x256xf32> to vector<2x64xf32>
    %636 = vector.extract_strided_slice %632 {offsets = [0, 192], sizes = [2, 64], strides = [1, 1]} : vector<2x256xf32> to vector<2x64xf32>
    %637 = arith.mulf %634, %622 : vector<2x64xf32>
    %638 = arith.mulf %633, %636 : vector<2x64xf32>
    %639 = arith.addf %637, %638 : vector<2x64xf32>
    %640 = math.tanh %639 : vector<2x64xf32>
    %641 = arith.mulf %635, %640 : vector<2x64xf32>
    %c4_251 = arith.constant 4 : index
    %c0_252 = arith.constant 0 : index
    %642 = vector.load %arg12[%c4_251, %c0_252] : memref<46x128xf32, #tpu.memory_space<vmem>>, vector<2x64xf32>
    tpu.vector_store %arg12[%c4_251, %c0_252], %641 {strides = array<i32>} : memref<46x128xf32, #tpu.memory_space<vmem>>, vector<2x64xf32>,
    %c40_253 = arith.constant 40 : index
    %c64_254 = arith.constant 64 : index
    %643 = vector.load %arg12[%c40_253, %c64_254] : memref<46x128xf32, #tpu.memory_space<vmem>>, vector<2x64xf32>
    tpu.vector_store %arg12[%c40_253, %c64_254], %641 {strides = array<i32>} : memref<46x128xf32, #tpu.memory_space<vmem>>, vector<2x64xf32>,
    %c6_255 = arith.constant 6 : index
    %c0_256 = arith.constant 0 : index
    %644 = vector.load %arg11[%c6_255, %c0_256] : memref<46x256xf32, #tpu.memory_space<vmem>>, vector<2x256xf32>
    %cst_257 = arith.constant dense<0.000000e+00> : vector<2x256xf32>
    %645 = tpu.matmul %641, %593, %cst_257 {dimension_numbers = #tpu.dot_dimension_numbers<[1], [0], [0], [1], [0, 0, 1, 1], [], []>} : vector<2x64xf32>, vector<64x256xf32>, vector<2x256xf32> -> vector<2x256xf32>
    %646 = arith.addf %644, %645 : vector<2x256xf32>
    %647 = math.tanh %646 : vector<2x256xf32>
    %648 = arith.mulf %647, %189 : vector<2x256xf32>
    %649 = arith.addf %648, %192 : vector<2x256xf32>
    %650 = vector.extract_strided_slice %649 {offsets = [0, 0], sizes = [2, 64], strides = [1, 1]} : vector<2x256xf32> to vector<2x64xf32>
    %651 = vector.extract_strided_slice %649 {offsets = [0, 64], sizes = [2, 64], strides = [1, 1]} : vector<2x256xf32> to vector<2x64xf32>
    %652 = vector.extract_strided_slice %649 {offsets = [0, 128], sizes = [2, 64], strides = [1, 1]} : vector<2x256xf32> to vector<2x64xf32>
    %653 = vector.extract_strided_slice %649 {offsets = [0, 192], sizes = [2, 64], strides = [1, 1]} : vector<2x256xf32> to vector<2x64xf32>
    %654 = arith.mulf %651, %639 : vector<2x64xf32>
    %655 = arith.mulf %650, %653 : vector<2x64xf32>
    %656 = arith.addf %654, %655 : vector<2x64xf32>
    %657 = math.tanh %656 : vector<2x64xf32>
    %658 = arith.mulf %652, %657 : vector<2x64xf32>
    %c6_258 = arith.constant 6 : index
    %c0_259 = arith.constant 0 : index
    %659 = vector.load %arg12[%c6_258, %c0_259] : memref<46x128xf32, #tpu.memory_space<vmem>>, vector<2x64xf32>
    tpu.vector_store %arg12[%c6_258, %c0_259], %658 {strides = array<i32>} : memref<46x128xf32, #tpu.memory_space<vmem>>, vector<2x64xf32>,
    %c38_260 = arith.constant 38 : index
    %c64_261 = arith.constant 64 : index
    %660 = vector.load %arg12[%c38_260, %c64_261] : memref<46x128xf32, #tpu.memory_space<vmem>>, vector<2x64xf32>
    tpu.vector_store %arg12[%c38_260, %c64_261], %658 {strides = array<i32>} : memref<46x128xf32, #tpu.memory_space<vmem>>, vector<2x64xf32>,
    %c8_262 = arith.constant 8 : index
    %c0_263 = arith.constant 0 : index
    %661 = vector.load %arg11[%c8_262, %c0_263] : memref<46x256xf32, #tpu.memory_space<vmem>>, vector<2x256xf32>
    %cst_264 = arith.constant dense<0.000000e+00> : vector<2x256xf32>
    %662 = tpu.matmul %658, %593, %cst_264 {dimension_numbers = #tpu.dot_dimension_numbers<[1], [0], [0], [1], [0, 0, 1, 1], [], []>} : vector<2x64xf32>, vector<64x256xf32>, vector<2x256xf32> -> vector<2x256xf32>
    %663 = arith.addf %661, %662 : vector<2x256xf32>
    %664 = math.tanh %663 : vector<2x256xf32>
    %665 = arith.mulf %664, %189 : vector<2x256xf32>
    %666 = arith.addf %665, %192 : vector<2x256xf32>
    %667 = vector.extract_strided_slice %666 {offsets = [0, 0], sizes = [2, 64], strides = [1, 1]} : vector<2x256xf32> to vector<2x64xf32>
    %668 = vector.extract_strided_slice %666 {offsets = [0, 64], sizes = [2, 64], strides = [1, 1]} : vector<2x256xf32> to vector<2x64xf32>
    %669 = vector.extract_strided_slice %666 {offsets = [0, 128], sizes = [2, 64], strides = [1, 1]} : vector<2x256xf32> to vector<2x64xf32>
    %670 = vector.extract_strided_slice %666 {offsets = [0, 192], sizes = [2, 64], strides = [1, 1]} : vector<2x256xf32> to vector<2x64xf32>
    %671 = arith.mulf %668, %656 : vector<2x64xf32>
    %672 = arith.mulf %667, %670 : vector<2x64xf32>
    %673 = arith.addf %671, %672 : vector<2x64xf32>
    %674 = math.tanh %673 : vector<2x64xf32>
    %675 = arith.mulf %669, %674 : vector<2x64xf32>
    %c8_265 = arith.constant 8 : index
    %c0_266 = arith.constant 0 : index
    %676 = vector.load %arg12[%c8_265, %c0_266] : memref<46x128xf32, #tpu.memory_space<vmem>>, vector<2x64xf32>
    tpu.vector_store %arg12[%c8_265, %c0_266], %675 {strides = array<i32>} : memref<46x128xf32, #tpu.memory_space<vmem>>, vector<2x64xf32>,
    %c36_267 = arith.constant 36 : index
    %c64_268 = arith.constant 64 : index
    %677 = vector.load %arg12[%c36_267, %c64_268] : memref<46x128xf32, #tpu.memory_space<vmem>>, vector<2x64xf32>
    tpu.vector_store %arg12[%c36_267, %c64_268], %675 {strides = array<i32>} : memref<46x128xf32, #tpu.memory_space<vmem>>, vector<2x64xf32>,
    %c10_269 = arith.constant 10 : index
    %c0_270 = arith.constant 0 : index
    %678 = vector.load %arg11[%c10_269, %c0_270] : memref<46x256xf32, #tpu.memory_space<vmem>>, vector<2x256xf32>
    %cst_271 = arith.constant dense<0.000000e+00> : vector<2x256xf32>
    %679 = tpu.matmul %675, %593, %cst_271 {dimension_numbers = #tpu.dot_dimension_numbers<[1], [0], [0], [1], [0, 0, 1, 1], [], []>} : vector<2x64xf32>, vector<64x256xf32>, vector<2x256xf32> -> vector<2x256xf32>
    %680 = arith.addf %678, %679 : vector<2x256xf32>
    %681 = math.tanh %680 : vector<2x256xf32>
    %682 = arith.mulf %681, %189 : vector<2x256xf32>
    %683 = arith.addf %682, %192 : vector<2x256xf32>
    %684 = vector.extract_strided_slice %683 {offsets = [0, 0], sizes = [2, 64], strides = [1, 1]} : vector<2x256xf32> to vector<2x64xf32>
    %685 = vector.extract_strided_slice %683 {offsets = [0, 64], sizes = [2, 64], strides = [1, 1]} : vector<2x256xf32> to vector<2x64xf32>
    %686 = vector.extract_strided_slice %683 {offsets = [0, 128], sizes = [2, 64], strides = [1, 1]} : vector<2x256xf32> to vector<2x64xf32>
    %687 = vector.extract_strided_slice %683 {offsets = [0, 192], sizes = [2, 64], strides = [1, 1]} : vector<2x256xf32> to vector<2x64xf32>
    %688 = arith.mulf %685, %673 : vector<2x64xf32>
    %689 = arith.mulf %684, %687 : vector<2x64xf32>
    %690 = arith.addf %688, %689 : vector<2x64xf32>
    %691 = math.tanh %690 : vector<2x64xf32>
    %692 = arith.mulf %686, %691 : vector<2x64xf32>
    %c10_272 = arith.constant 10 : index
    %c0_273 = arith.constant 0 : index
    %693 = vector.load %arg12[%c10_272, %c0_273] : memref<46x128xf32, #tpu.memory_space<vmem>>, vector<2x64xf32>
    tpu.vector_store %arg12[%c10_272, %c0_273], %692 {strides = array<i32>} : memref<46x128xf32, #tpu.memory_space<vmem>>, vector<2x64xf32>,
    %c34_274 = arith.constant 34 : index
    %c64_275 = arith.constant 64 : index
    %694 = vector.load %arg12[%c34_274, %c64_275] : memref<46x128xf32, #tpu.memory_space<vmem>>, vector<2x64xf32>
    tpu.vector_store %arg12[%c34_274, %c64_275], %692 {strides = array<i32>} : memref<46x128xf32, #tpu.memory_space<vmem>>, vector<2x64xf32>,
    %c12_276 = arith.constant 12 : index
    %c0_277 = arith.constant 0 : index
    %695 = vector.load %arg11[%c12_276, %c0_277] : memref<46x256xf32, #tpu.memory_space<vmem>>, vector<2x256xf32>
    %cst_278 = arith.constant dense<0.000000e+00> : vector<2x256xf32>
    %696 = tpu.matmul %692, %593, %cst_278 {dimension_numbers = #tpu.dot_dimension_numbers<[1], [0], [0], [1], [0, 0, 1, 1], [], []>} : vector<2x64xf32>, vector<64x256xf32>, vector<2x256xf32> -> vector<2x256xf32>
    %697 = arith.addf %695, %696 : vector<2x256xf32>
    %698 = math.tanh %697 : vector<2x256xf32>
    %699 = arith.mulf %698, %189 : vector<2x256xf32>
    %700 = arith.addf %699, %192 : vector<2x256xf32>
    %701 = vector.extract_strided_slice %700 {offsets = [0, 0], sizes = [2, 64], strides = [1, 1]} : vector<2x256xf32> to vector<2x64xf32>
    %702 = vector.extract_strided_slice %700 {offsets = [0, 64], sizes = [2, 64], strides = [1, 1]} : vector<2x256xf32> to vector<2x64xf32>
    %703 = vector.extract_strided_slice %700 {offsets = [0, 128], sizes = [2, 64], strides = [1, 1]} : vector<2x256xf32> to vector<2x64xf32>
    %704 = vector.extract_strided_slice %700 {offsets = [0, 192], sizes = [2, 64], strides = [1, 1]} : vector<2x256xf32> to vector<2x64xf32>
    %705 = arith.mulf %702, %690 : vector<2x64xf32>
    %706 = arith.mulf %701, %704 : vector<2x64xf32>
    %707 = arith.addf %705, %706 : vector<2x64xf32>
    %708 = math.tanh %707 : vector<2x64xf32>
    %709 = arith.mulf %703, %708 : vector<2x64xf32>
    %c12_279 = arith.constant 12 : index
    %c0_280 = arith.constant 0 : index
    %710 = vector.load %arg12[%c12_279, %c0_280] : memref<46x128xf32, #tpu.memory_space<vmem>>, vector<2x64xf32>
    tpu.vector_store %arg12[%c12_279, %c0_280], %709 {strides = array<i32>} : memref<46x128xf32, #tpu.memory_space<vmem>>, vector<2x64xf32>,
    %c32_281 = arith.constant 32 : index
    %c64_282 = arith.constant 64 : index
    %711 = vector.load %arg12[%c32_281, %c64_282] : memref<46x128xf32, #tpu.memory_space<vmem>>, vector<2x64xf32>
    tpu.vector_store %arg12[%c32_281, %c64_282], %709 {strides = array<i32>} : memref<46x128xf32, #tpu.memory_space<vmem>>, vector<2x64xf32>,
    %c14_283 = arith.constant 14 : index
    %c0_284 = arith.constant 0 : index
    %712 = vector.load %arg11[%c14_283, %c0_284] : memref<46x256xf32, #tpu.memory_space<vmem>>, vector<2x256xf32>
    %cst_285 = arith.constant dense<0.000000e+00> : vector<2x256xf32>
    %713 = tpu.matmul %709, %593, %cst_285 {dimension_numbers = #tpu.dot_dimension_numbers<[1], [0], [0], [1], [0, 0, 1, 1], [], []>} : vector<2x64xf32>, vector<64x256xf32>, vector<2x256xf32> -> vector<2x256xf32>
    %714 = arith.addf %712, %713 : vector<2x256xf32>
    %715 = math.tanh %714 : vector<2x256xf32>
    %716 = arith.mulf %715, %189 : vector<2x256xf32>
    %717 = arith.addf %716, %192 : vector<2x256xf32>
    %718 = vector.extract_strided_slice %717 {offsets = [0, 0], sizes = [2, 64], strides = [1, 1]} : vector<2x256xf32> to vector<2x64xf32>
    %719 = vector.extract_strided_slice %717 {offsets = [0, 64], sizes = [2, 64], strides = [1, 1]} : vector<2x256xf32> to vector<2x64xf32>
    %720 = vector.extract_strided_slice %717 {offsets = [0, 128], sizes = [2, 64], strides = [1, 1]} : vector<2x256xf32> to vector<2x64xf32>
    %721 = vector.extract_strided_slice %717 {offsets = [0, 192], sizes = [2, 64], strides = [1, 1]} : vector<2x256xf32> to vector<2x64xf32>
    %722 = arith.mulf %719, %707 : vector<2x64xf32>
    %723 = arith.mulf %718, %721 : vector<2x64xf32>
    %724 = arith.addf %722, %723 : vector<2x64xf32>
    %725 = math.tanh %724 : vector<2x64xf32>
    %726 = arith.mulf %720, %725 : vector<2x64xf32>
    %c14_286 = arith.constant 14 : index
    %c0_287 = arith.constant 0 : index
    %727 = vector.load %arg12[%c14_286, %c0_287] : memref<46x128xf32, #tpu.memory_space<vmem>>, vector<2x64xf32>
    tpu.vector_store %arg12[%c14_286, %c0_287], %726 {strides = array<i32>} : memref<46x128xf32, #tpu.memory_space<vmem>>, vector<2x64xf32>,
    %c30_288 = arith.constant 30 : index
    %c64_289 = arith.constant 64 : index
    %728 = vector.load %arg12[%c30_288, %c64_289] : memref<46x128xf32, #tpu.memory_space<vmem>>, vector<2x64xf32>
    tpu.vector_store %arg12[%c30_288, %c64_289], %726 {strides = array<i32>} : memref<46x128xf32, #tpu.memory_space<vmem>>, vector<2x64xf32>,
    %c16_290 = arith.constant 16 : index
    %c0_291 = arith.constant 0 : index
    %729 = vector.load %arg11[%c16_290, %c0_291] : memref<46x256xf32, #tpu.memory_space<vmem>>, vector<2x256xf32>
    %cst_292 = arith.constant dense<0.000000e+00> : vector<2x256xf32>
    %730 = tpu.matmul %726, %593, %cst_292 {dimension_numbers = #tpu.dot_dimension_numbers<[1], [0], [0], [1], [0, 0, 1, 1], [], []>} : vector<2x64xf32>, vector<64x256xf32>, vector<2x256xf32> -> vector<2x256xf32>
    %731 = arith.addf %729, %730 : vector<2x256xf32>
    %732 = math.tanh %731 : vector<2x256xf32>
    %733 = arith.mulf %732, %189 : vector<2x256xf32>
    %734 = arith.addf %733, %192 : vector<2x256xf32>
    %735 = vector.extract_strided_slice %734 {offsets = [0, 0], sizes = [2, 64], strides = [1, 1]} : vector<2x256xf32> to vector<2x64xf32>
    %736 = vector.extract_strided_slice %734 {offsets = [0, 64], sizes = [2, 64], strides = [1, 1]} : vector<2x256xf32> to vector<2x64xf32>
    %737 = vector.extract_strided_slice %734 {offsets = [0, 128], sizes = [2, 64], strides = [1, 1]} : vector<2x256xf32> to vector<2x64xf32>
    %738 = vector.extract_strided_slice %734 {offsets = [0, 192], sizes = [2, 64], strides = [1, 1]} : vector<2x256xf32> to vector<2x64xf32>
    %739 = arith.mulf %736, %724 : vector<2x64xf32>
    %740 = arith.mulf %735, %738 : vector<2x64xf32>
    %741 = arith.addf %739, %740 : vector<2x64xf32>
    %742 = math.tanh %741 : vector<2x64xf32>
    %743 = arith.mulf %737, %742 : vector<2x64xf32>
    %c16_293 = arith.constant 16 : index
    %c0_294 = arith.constant 0 : index
    %744 = vector.load %arg12[%c16_293, %c0_294] : memref<46x128xf32, #tpu.memory_space<vmem>>, vector<2x64xf32>
    tpu.vector_store %arg12[%c16_293, %c0_294], %743 {strides = array<i32>} : memref<46x128xf32, #tpu.memory_space<vmem>>, vector<2x64xf32>,
    %c28_295 = arith.constant 28 : index
    %c64_296 = arith.constant 64 : index
    %745 = vector.load %arg12[%c28_295, %c64_296] : memref<46x128xf32, #tpu.memory_space<vmem>>, vector<2x64xf32>
    tpu.vector_store %arg12[%c28_295, %c64_296], %743 {strides = array<i32>} : memref<46x128xf32, #tpu.memory_space<vmem>>, vector<2x64xf32>,
    %c18_297 = arith.constant 18 : index
    %c0_298 = arith.constant 0 : index
    %746 = vector.load %arg11[%c18_297, %c0_298] : memref<46x256xf32, #tpu.memory_space<vmem>>, vector<2x256xf32>
    %cst_299 = arith.constant dense<0.000000e+00> : vector<2x256xf32>
    %747 = tpu.matmul %743, %593, %cst_299 {dimension_numbers = #tpu.dot_dimension_numbers<[1], [0], [0], [1], [0, 0, 1, 1], [], []>} : vector<2x64xf32>, vector<64x256xf32>, vector<2x256xf32> -> vector<2x256xf32>
    %748 = arith.addf %746, %747 : vector<2x256xf32>
    %749 = math.tanh %748 : vector<2x256xf32>
    %750 = arith.mulf %749, %189 : vector<2x256xf32>
    %751 = arith.addf %750, %192 : vector<2x256xf32>
    %752 = vector.extract_strided_slice %751 {offsets = [0, 0], sizes = [2, 64], strides = [1, 1]} : vector<2x256xf32> to vector<2x64xf32>
    %753 = vector.extract_strided_slice %751 {offsets = [0, 64], sizes = [2, 64], strides = [1, 1]} : vector<2x256xf32> to vector<2x64xf32>
    %754 = vector.extract_strided_slice %751 {offsets = [0, 128], sizes = [2, 64], strides = [1, 1]} : vector<2x256xf32> to vector<2x64xf32>
    %755 = vector.extract_strided_slice %751 {offsets = [0, 192], sizes = [2, 64], strides = [1, 1]} : vector<2x256xf32> to vector<2x64xf32>
    %756 = arith.mulf %753, %741 : vector<2x64xf32>
    %757 = arith.mulf %752, %755 : vector<2x64xf32>
    %758 = arith.addf %756, %757 : vector<2x64xf32>
    %759 = math.tanh %758 : vector<2x64xf32>
    %760 = arith.mulf %754, %759 : vector<2x64xf32>
    %c18_300 = arith.constant 18 : index
    %c0_301 = arith.constant 0 : index
    %761 = vector.load %arg12[%c18_300, %c0_301] : memref<46x128xf32, #tpu.memory_space<vmem>>, vector<2x64xf32>
    tpu.vector_store %arg12[%c18_300, %c0_301], %760 {strides = array<i32>} : memref<46x128xf32, #tpu.memory_space<vmem>>, vector<2x64xf32>,
    %c26_302 = arith.constant 26 : index
    %c64_303 = arith.constant 64 : index
    %762 = vector.load %arg12[%c26_302, %c64_303] : memref<46x128xf32, #tpu.memory_space<vmem>>, vector<2x64xf32>
    tpu.vector_store %arg12[%c26_302, %c64_303], %760 {strides = array<i32>} : memref<46x128xf32, #tpu.memory_space<vmem>>, vector<2x64xf32>,
    %c20_304 = arith.constant 20 : index
    %c0_305 = arith.constant 0 : index
    %763 = vector.load %arg11[%c20_304, %c0_305] : memref<46x256xf32, #tpu.memory_space<vmem>>, vector<2x256xf32>
    %cst_306 = arith.constant dense<0.000000e+00> : vector<2x256xf32>
    %764 = tpu.matmul %760, %593, %cst_306 {dimension_numbers = #tpu.dot_dimension_numbers<[1], [0], [0], [1], [0, 0, 1, 1], [], []>} : vector<2x64xf32>, vector<64x256xf32>, vector<2x256xf32> -> vector<2x256xf32>
    %765 = arith.addf %763, %764 : vector<2x256xf32>
    %766 = math.tanh %765 : vector<2x256xf32>
    %767 = arith.mulf %766, %189 : vector<2x256xf32>
    %768 = arith.addf %767, %192 : vector<2x256xf32>
    %769 = vector.extract_strided_slice %768 {offsets = [0, 0], sizes = [2, 64], strides = [1, 1]} : vector<2x256xf32> to vector<2x64xf32>
    %770 = vector.extract_strided_slice %768 {offsets = [0, 64], sizes = [2, 64], strides = [1, 1]} : vector<2x256xf32> to vector<2x64xf32>
    %771 = vector.extract_strided_slice %768 {offsets = [0, 128], sizes = [2, 64], strides = [1, 1]} : vector<2x256xf32> to vector<2x64xf32>
    %772 = vector.extract_strided_slice %768 {offsets = [0, 192], sizes = [2, 64], strides = [1, 1]} : vector<2x256xf32> to vector<2x64xf32>
    %773 = arith.mulf %770, %758 : vector<2x64xf32>
    %774 = arith.mulf %769, %772 : vector<2x64xf32>
    %775 = arith.addf %773, %774 : vector<2x64xf32>
    %776 = math.tanh %775 : vector<2x64xf32>
    %777 = arith.mulf %771, %776 : vector<2x64xf32>
    %c20_307 = arith.constant 20 : index
    %c0_308 = arith.constant 0 : index
    %778 = vector.load %arg12[%c20_307, %c0_308] : memref<46x128xf32, #tpu.memory_space<vmem>>, vector<2x64xf32>
    tpu.vector_store %arg12[%c20_307, %c0_308], %777 {strides = array<i32>} : memref<46x128xf32, #tpu.memory_space<vmem>>, vector<2x64xf32>,
    %c24_309 = arith.constant 24 : index
    %c64_310 = arith.constant 64 : index
    %779 = vector.load %arg12[%c24_309, %c64_310] : memref<46x128xf32, #tpu.memory_space<vmem>>, vector<2x64xf32>
    tpu.vector_store %arg12[%c24_309, %c64_310], %777 {strides = array<i32>} : memref<46x128xf32, #tpu.memory_space<vmem>>, vector<2x64xf32>,
    %c22_311 = arith.constant 22 : index
    %c0_312 = arith.constant 0 : index
    %780 = vector.load %arg11[%c22_311, %c0_312] : memref<46x256xf32, #tpu.memory_space<vmem>>, vector<2x256xf32>
    %cst_313 = arith.constant dense<0.000000e+00> : vector<2x256xf32>
    %781 = tpu.matmul %777, %593, %cst_313 {dimension_numbers = #tpu.dot_dimension_numbers<[1], [0], [0], [1], [0, 0, 1, 1], [], []>} : vector<2x64xf32>, vector<64x256xf32>, vector<2x256xf32> -> vector<2x256xf32>
    %782 = arith.addf %780, %781 : vector<2x256xf32>
    %783 = math.tanh %782 : vector<2x256xf32>
    %784 = arith.mulf %783, %189 : vector<2x256xf32>
    %785 = arith.addf %784, %192 : vector<2x256xf32>
    %786 = vector.extract_strided_slice %785 {offsets = [0, 0], sizes = [2, 64], strides = [1, 1]} : vector<2x256xf32> to vector<2x64xf32>
    %787 = vector.extract_strided_slice %785 {offsets = [0, 64], sizes = [2, 64], strides = [1, 1]} : vector<2x256xf32> to vector<2x64xf32>
    %788 = vector.extract_strided_slice %785 {offsets = [0, 128], sizes = [2, 64], strides = [1, 1]} : vector<2x256xf32> to vector<2x64xf32>
    %789 = vector.extract_strided_slice %785 {offsets = [0, 192], sizes = [2, 64], strides = [1, 1]} : vector<2x256xf32> to vector<2x64xf32>
    %790 = arith.mulf %787, %775 : vector<2x64xf32>
    %791 = arith.mulf %786, %789 : vector<2x64xf32>
    %792 = arith.addf %790, %791 : vector<2x64xf32>
    %793 = math.tanh %792 : vector<2x64xf32>
    %794 = arith.mulf %788, %793 : vector<2x64xf32>
    %c22_314 = arith.constant 22 : index
    %c0_315 = arith.constant 0 : index
    %795 = vector.load %arg12[%c22_314, %c0_315] : memref<46x128xf32, #tpu.memory_space<vmem>>, vector<2x64xf32>
    tpu.vector_store %arg12[%c22_314, %c0_315], %794 {strides = array<i32>} : memref<46x128xf32, #tpu.memory_space<vmem>>, vector<2x64xf32>,
    %c22_316 = arith.constant 22 : index
    %c64_317 = arith.constant 64 : index
    %796 = vector.load %arg12[%c22_316, %c64_317] : memref<46x128xf32, #tpu.memory_space<vmem>>, vector<2x64xf32>
    tpu.vector_store %arg12[%c22_316, %c64_317], %794 {strides = array<i32>} : memref<46x128xf32, #tpu.memory_space<vmem>>, vector<2x64xf32>,
    %c24_318 = arith.constant 24 : index
    %c0_319 = arith.constant 0 : index
    %797 = vector.load %arg11[%c24_318, %c0_319] : memref<46x256xf32, #tpu.memory_space<vmem>>, vector<2x256xf32>
    %cst_320 = arith.constant dense<0.000000e+00> : vector<2x256xf32>
    %798 = tpu.matmul %794, %593, %cst_320 {dimension_numbers = #tpu.dot_dimension_numbers<[1], [0], [0], [1], [0, 0, 1, 1], [], []>} : vector<2x64xf32>, vector<64x256xf32>, vector<2x256xf32> -> vector<2x256xf32>
    %799 = arith.addf %797, %798 : vector<2x256xf32>
    %800 = math.tanh %799 : vector<2x256xf32>
    %801 = arith.mulf %800, %189 : vector<2x256xf32>
    %802 = arith.addf %801, %192 : vector<2x256xf32>
    %803 = vector.extract_strided_slice %802 {offsets = [0, 0], sizes = [2, 64], strides = [1, 1]} : vector<2x256xf32> to vector<2x64xf32>
    %804 = vector.extract_strided_slice %802 {offsets = [0, 64], sizes = [2, 64], strides = [1, 1]} : vector<2x256xf32> to vector<2x64xf32>
    %805 = vector.extract_strided_slice %802 {offsets = [0, 128], sizes = [2, 64], strides = [1, 1]} : vector<2x256xf32> to vector<2x64xf32>
    %806 = vector.extract_strided_slice %802 {offsets = [0, 192], sizes = [2, 64], strides = [1, 1]} : vector<2x256xf32> to vector<2x64xf32>
    %807 = arith.mulf %804, %792 : vector<2x64xf32>
    %808 = arith.mulf %803, %806 : vector<2x64xf32>
    %809 = arith.addf %807, %808 : vector<2x64xf32>
    %810 = math.tanh %809 : vector<2x64xf32>
    %811 = arith.mulf %805, %810 : vector<2x64xf32>
    %c24_321 = arith.constant 24 : index
    %c0_322 = arith.constant 0 : index
    %812 = vector.load %arg12[%c24_321, %c0_322] : memref<46x128xf32, #tpu.memory_space<vmem>>, vector<2x64xf32>
    tpu.vector_store %arg12[%c24_321, %c0_322], %811 {strides = array<i32>} : memref<46x128xf32, #tpu.memory_space<vmem>>, vector<2x64xf32>,
    %c20_323 = arith.constant 20 : index
    %c64_324 = arith.constant 64 : index
    %813 = vector.load %arg12[%c20_323, %c64_324] : memref<46x128xf32, #tpu.memory_space<vmem>>, vector<2x64xf32>
    tpu.vector_store %arg12[%c20_323, %c64_324], %811 {strides = array<i32>} : memref<46x128xf32, #tpu.memory_space<vmem>>, vector<2x64xf32>,
    %c26_325 = arith.constant 26 : index
    %c0_326 = arith.constant 0 : index
    %814 = vector.load %arg11[%c26_325, %c0_326] : memref<46x256xf32, #tpu.memory_space<vmem>>, vector<2x256xf32>
    %cst_327 = arith.constant dense<0.000000e+00> : vector<2x256xf32>
    %815 = tpu.matmul %811, %593, %cst_327 {dimension_numbers = #tpu.dot_dimension_numbers<[1], [0], [0], [1], [0, 0, 1, 1], [], []>} : vector<2x64xf32>, vector<64x256xf32>, vector<2x256xf32> -> vector<2x256xf32>
    %816 = arith.addf %814, %815 : vector<2x256xf32>
    %817 = math.tanh %816 : vector<2x256xf32>
    %818 = arith.mulf %817, %189 : vector<2x256xf32>
    %819 = arith.addf %818, %192 : vector<2x256xf32>
    %820 = vector.extract_strided_slice %819 {offsets = [0, 0], sizes = [2, 64], strides = [1, 1]} : vector<2x256xf32> to vector<2x64xf32>
    %821 = vector.extract_strided_slice %819 {offsets = [0, 64], sizes = [2, 64], strides = [1, 1]} : vector<2x256xf32> to vector<2x64xf32>
    %822 = vector.extract_strided_slice %819 {offsets = [0, 128], sizes = [2, 64], strides = [1, 1]} : vector<2x256xf32> to vector<2x64xf32>
    %823 = vector.extract_strided_slice %819 {offsets = [0, 192], sizes = [2, 64], strides = [1, 1]} : vector<2x256xf32> to vector<2x64xf32>
    %824 = arith.mulf %821, %809 : vector<2x64xf32>
    %825 = arith.mulf %820, %823 : vector<2x64xf32>
    %826 = arith.addf %824, %825 : vector<2x64xf32>
    %827 = math.tanh %826 : vector<2x64xf32>
    %828 = arith.mulf %822, %827 : vector<2x64xf32>
    %c26_328 = arith.constant 26 : index
    %c0_329 = arith.constant 0 : index
    %829 = vector.load %arg12[%c26_328, %c0_329] : memref<46x128xf32, #tpu.memory_space<vmem>>, vector<2x64xf32>
    tpu.vector_store %arg12[%c26_328, %c0_329], %828 {strides = array<i32>} : memref<46x128xf32, #tpu.memory_space<vmem>>, vector<2x64xf32>,
    %c18_330 = arith.constant 18 : index
    %c64_331 = arith.constant 64 : index
    %830 = vector.load %arg12[%c18_330, %c64_331] : memref<46x128xf32, #tpu.memory_space<vmem>>, vector<2x64xf32>
    tpu.vector_store %arg12[%c18_330, %c64_331], %828 {strides = array<i32>} : memref<46x128xf32, #tpu.memory_space<vmem>>, vector<2x64xf32>,
    %c28_332 = arith.constant 28 : index
    %c0_333 = arith.constant 0 : index
    %831 = vector.load %arg11[%c28_332, %c0_333] : memref<46x256xf32, #tpu.memory_space<vmem>>, vector<2x256xf32>
    %cst_334 = arith.constant dense<0.000000e+00> : vector<2x256xf32>
    %832 = tpu.matmul %828, %593, %cst_334 {dimension_numbers = #tpu.dot_dimension_numbers<[1], [0], [0], [1], [0, 0, 1, 1], [], []>} : vector<2x64xf32>, vector<64x256xf32>, vector<2x256xf32> -> vector<2x256xf32>
    %833 = arith.addf %831, %832 : vector<2x256xf32>
    %834 = math.tanh %833 : vector<2x256xf32>
    %835 = arith.mulf %834, %189 : vector<2x256xf32>
    %836 = arith.addf %835, %192 : vector<2x256xf32>
    %837 = vector.extract_strided_slice %836 {offsets = [0, 0], sizes = [2, 64], strides = [1, 1]} : vector<2x256xf32> to vector<2x64xf32>
    %838 = vector.extract_strided_slice %836 {offsets = [0, 64], sizes = [2, 64], strides = [1, 1]} : vector<2x256xf32> to vector<2x64xf32>
    %839 = vector.extract_strided_slice %836 {offsets = [0, 128], sizes = [2, 64], strides = [1, 1]} : vector<2x256xf32> to vector<2x64xf32>
    %840 = vector.extract_strided_slice %836 {offsets = [0, 192], sizes = [2, 64], strides = [1, 1]} : vector<2x256xf32> to vector<2x64xf32>
    %841 = arith.mulf %838, %826 : vector<2x64xf32>
    %842 = arith.mulf %837, %840 : vector<2x64xf32>
    %843 = arith.addf %841, %842 : vector<2x64xf32>
    %844 = math.tanh %843 : vector<2x64xf32>
    %845 = arith.mulf %839, %844 : vector<2x64xf32>
    %c28_335 = arith.constant 28 : index
    %c0_336 = arith.constant 0 : index
    %846 = vector.load %arg12[%c28_335, %c0_336] : memref<46x128xf32, #tpu.memory_space<vmem>>, vector<2x64xf32>
    tpu.vector_store %arg12[%c28_335, %c0_336], %845 {strides = array<i32>} : memref<46x128xf32, #tpu.memory_space<vmem>>, vector<2x64xf32>,
    %c16_337 = arith.constant 16 : index
    %c64_338 = arith.constant 64 : index
    %847 = vector.load %arg12[%c16_337, %c64_338] : memref<46x128xf32, #tpu.memory_space<vmem>>, vector<2x64xf32>
    tpu.vector_store %arg12[%c16_337, %c64_338], %845 {strides = array<i32>} : memref<46x128xf32, #tpu.memory_space<vmem>>, vector<2x64xf32>,
    %c30_339 = arith.constant 30 : index
    %c0_340 = arith.constant 0 : index
    %848 = vector.load %arg11[%c30_339, %c0_340] : memref<46x256xf32, #tpu.memory_space<vmem>>, vector<2x256xf32>
    %cst_341 = arith.constant dense<0.000000e+00> : vector<2x256xf32>
    %849 = tpu.matmul %845, %593, %cst_341 {dimension_numbers = #tpu.dot_dimension_numbers<[1], [0], [0], [1], [0, 0, 1, 1], [], []>} : vector<2x64xf32>, vector<64x256xf32>, vector<2x256xf32> -> vector<2x256xf32>
    %850 = arith.addf %848, %849 : vector<2x256xf32>
    %851 = math.tanh %850 : vector<2x256xf32>
    %852 = arith.mulf %851, %189 : vector<2x256xf32>
    %853 = arith.addf %852, %192 : vector<2x256xf32>
    %854 = vector.extract_strided_slice %853 {offsets = [0, 0], sizes = [2, 64], strides = [1, 1]} : vector<2x256xf32> to vector<2x64xf32>
    %855 = vector.extract_strided_slice %853 {offsets = [0, 64], sizes = [2, 64], strides = [1, 1]} : vector<2x256xf32> to vector<2x64xf32>
    %856 = vector.extract_strided_slice %853 {offsets = [0, 128], sizes = [2, 64], strides = [1, 1]} : vector<2x256xf32> to vector<2x64xf32>
    %857 = vector.extract_strided_slice %853 {offsets = [0, 192], sizes = [2, 64], strides = [1, 1]} : vector<2x256xf32> to vector<2x64xf32>
    %858 = arith.mulf %855, %843 : vector<2x64xf32>
    %859 = arith.mulf %854, %857 : vector<2x64xf32>
    %860 = arith.addf %858, %859 : vector<2x64xf32>
    %861 = math.tanh %860 : vector<2x64xf32>
    %862 = arith.mulf %856, %861 : vector<2x64xf32>
    %c30_342 = arith.constant 30 : index
    %c0_343 = arith.constant 0 : index
    %863 = vector.load %arg12[%c30_342, %c0_343] : memref<46x128xf32, #tpu.memory_space<vmem>>, vector<2x64xf32>
    tpu.vector_store %arg12[%c30_342, %c0_343], %862 {strides = array<i32>} : memref<46x128xf32, #tpu.memory_space<vmem>>, vector<2x64xf32>,
    %c14_344 = arith.constant 14 : index
    %c64_345 = arith.constant 64 : index
    %864 = vector.load %arg12[%c14_344, %c64_345] : memref<46x128xf32, #tpu.memory_space<vmem>>, vector<2x64xf32>
    tpu.vector_store %arg12[%c14_344, %c64_345], %862 {strides = array<i32>} : memref<46x128xf32, #tpu.memory_space<vmem>>, vector<2x64xf32>,
    %c32_346 = arith.constant 32 : index
    %c0_347 = arith.constant 0 : index
    %865 = vector.load %arg11[%c32_346, %c0_347] : memref<46x256xf32, #tpu.memory_space<vmem>>, vector<2x256xf32>
    %cst_348 = arith.constant dense<0.000000e+00> : vector<2x256xf32>
    %866 = tpu.matmul %862, %593, %cst_348 {dimension_numbers = #tpu.dot_dimension_numbers<[1], [0], [0], [1], [0, 0, 1, 1], [], []>} : vector<2x64xf32>, vector<64x256xf32>, vector<2x256xf32> -> vector<2x256xf32>
    %867 = arith.addf %865, %866 : vector<2x256xf32>
    %868 = math.tanh %867 : vector<2x256xf32>
    %869 = arith.mulf %868, %189 : vector<2x256xf32>
    %870 = arith.addf %869, %192 : vector<2x256xf32>
    %871 = vector.extract_strided_slice %870 {offsets = [0, 0], sizes = [2, 64], strides = [1, 1]} : vector<2x256xf32> to vector<2x64xf32>
    %872 = vector.extract_strided_slice %870 {offsets = [0, 64], sizes = [2, 64], strides = [1, 1]} : vector<2x256xf32> to vector<2x64xf32>
    %873 = vector.extract_strided_slice %870 {offsets = [0, 128], sizes = [2, 64], strides = [1, 1]} : vector<2x256xf32> to vector<2x64xf32>
    %874 = vector.extract_strided_slice %870 {offsets = [0, 192], sizes = [2, 64], strides = [1, 1]} : vector<2x256xf32> to vector<2x64xf32>
    %875 = arith.mulf %872, %860 : vector<2x64xf32>
    %876 = arith.mulf %871, %874 : vector<2x64xf32>
    %877 = arith.addf %875, %876 : vector<2x64xf32>
    %878 = math.tanh %877 : vector<2x64xf32>
    %879 = arith.mulf %873, %878 : vector<2x64xf32>
    %c32_349 = arith.constant 32 : index
    %c0_350 = arith.constant 0 : index
    %880 = vector.load %arg12[%c32_349, %c0_350] : memref<46x128xf32, #tpu.memory_space<vmem>>, vector<2x64xf32>
    tpu.vector_store %arg12[%c32_349, %c0_350], %879 {strides = array<i32>} : memref<46x128xf32, #tpu.memory_space<vmem>>, vector<2x64xf32>,
    %c12_351 = arith.constant 12 : index
    %c64_352 = arith.constant 64 : index
    %881 = vector.load %arg12[%c12_351, %c64_352] : memref<46x128xf32, #tpu.memory_space<vmem>>, vector<2x64xf32>
    tpu.vector_store %arg12[%c12_351, %c64_352], %879 {strides = array<i32>} : memref<46x128xf32, #tpu.memory_space<vmem>>, vector<2x64xf32>,
    %c34_353 = arith.constant 34 : index
    %c0_354 = arith.constant 0 : index
    %882 = vector.load %arg11[%c34_353, %c0_354] : memref<46x256xf32, #tpu.memory_space<vmem>>, vector<2x256xf32>
    %cst_355 = arith.constant dense<0.000000e+00> : vector<2x256xf32>
    %883 = tpu.matmul %879, %593, %cst_355 {dimension_numbers = #tpu.dot_dimension_numbers<[1], [0], [0], [1], [0, 0, 1, 1], [], []>} : vector<2x64xf32>, vector<64x256xf32>, vector<2x256xf32> -> vector<2x256xf32>
    %884 = arith.addf %882, %883 : vector<2x256xf32>
    %885 = math.tanh %884 : vector<2x256xf32>
    %886 = arith.mulf %885, %189 : vector<2x256xf32>
    %887 = arith.addf %886, %192 : vector<2x256xf32>
    %888 = vector.extract_strided_slice %887 {offsets = [0, 0], sizes = [2, 64], strides = [1, 1]} : vector<2x256xf32> to vector<2x64xf32>
    %889 = vector.extract_strided_slice %887 {offsets = [0, 64], sizes = [2, 64], strides = [1, 1]} : vector<2x256xf32> to vector<2x64xf32>
    %890 = vector.extract_strided_slice %887 {offsets = [0, 128], sizes = [2, 64], strides = [1, 1]} : vector<2x256xf32> to vector<2x64xf32>
    %891 = vector.extract_strided_slice %887 {offsets = [0, 192], sizes = [2, 64], strides = [1, 1]} : vector<2x256xf32> to vector<2x64xf32>
    %892 = arith.mulf %889, %877 : vector<2x64xf32>
    %893 = arith.mulf %888, %891 : vector<2x64xf32>
    %894 = arith.addf %892, %893 : vector<2x64xf32>
    %895 = math.tanh %894 : vector<2x64xf32>
    %896 = arith.mulf %890, %895 : vector<2x64xf32>
    %c34_356 = arith.constant 34 : index
    %c0_357 = arith.constant 0 : index
    %897 = vector.load %arg12[%c34_356, %c0_357] : memref<46x128xf32, #tpu.memory_space<vmem>>, vector<2x64xf32>
    tpu.vector_store %arg12[%c34_356, %c0_357], %896 {strides = array<i32>} : memref<46x128xf32, #tpu.memory_space<vmem>>, vector<2x64xf32>,
    %c10_358 = arith.constant 10 : index
    %c64_359 = arith.constant 64 : index
    %898 = vector.load %arg12[%c10_358, %c64_359] : memref<46x128xf32, #tpu.memory_space<vmem>>, vector<2x64xf32>
    tpu.vector_store %arg12[%c10_358, %c64_359], %896 {strides = array<i32>} : memref<46x128xf32, #tpu.memory_space<vmem>>, vector<2x64xf32>,
    %c36_360 = arith.constant 36 : index
    %c0_361 = arith.constant 0 : index
    %899 = vector.load %arg11[%c36_360, %c0_361] : memref<46x256xf32, #tpu.memory_space<vmem>>, vector<2x256xf32>
    %cst_362 = arith.constant dense<0.000000e+00> : vector<2x256xf32>
    %900 = tpu.matmul %896, %593, %cst_362 {dimension_numbers = #tpu.dot_dimension_numbers<[1], [0], [0], [1], [0, 0, 1, 1], [], []>} : vector<2x64xf32>, vector<64x256xf32>, vector<2x256xf32> -> vector<2x256xf32>
    %901 = arith.addf %899, %900 : vector<2x256xf32>
    %902 = math.tanh %901 : vector<2x256xf32>
    %903 = arith.mulf %902, %189 : vector<2x256xf32>
    %904 = arith.addf %903, %192 : vector<2x256xf32>
    %905 = vector.extract_strided_slice %904 {offsets = [0, 0], sizes = [2, 64], strides = [1, 1]} : vector<2x256xf32> to vector<2x64xf32>
    %906 = vector.extract_strided_slice %904 {offsets = [0, 64], sizes = [2, 64], strides = [1, 1]} : vector<2x256xf32> to vector<2x64xf32>
    %907 = vector.extract_strided_slice %904 {offsets = [0, 128], sizes = [2, 64], strides = [1, 1]} : vector<2x256xf32> to vector<2x64xf32>
    %908 = vector.extract_strided_slice %904 {offsets = [0, 192], sizes = [2, 64], strides = [1, 1]} : vector<2x256xf32> to vector<2x64xf32>
    %909 = arith.mulf %906, %894 : vector<2x64xf32>
    %910 = arith.mulf %905, %908 : vector<2x64xf32>
    %911 = arith.addf %909, %910 : vector<2x64xf32>
    %912 = math.tanh %911 : vector<2x64xf32>
    %913 = arith.mulf %907, %912 : vector<2x64xf32>
    %c36_363 = arith.constant 36 : index
    %c0_364 = arith.constant 0 : index
    %914 = vector.load %arg12[%c36_363, %c0_364] : memref<46x128xf32, #tpu.memory_space<vmem>>, vector<2x64xf32>
    tpu.vector_store %arg12[%c36_363, %c0_364], %913 {strides = array<i32>} : memref<46x128xf32, #tpu.memory_space<vmem>>, vector<2x64xf32>,
    %c8_365 = arith.constant 8 : index
    %c64_366 = arith.constant 64 : index
    %915 = vector.load %arg12[%c8_365, %c64_366] : memref<46x128xf32, #tpu.memory_space<vmem>>, vector<2x64xf32>
    tpu.vector_store %arg12[%c8_365, %c64_366], %913 {strides = array<i32>} : memref<46x128xf32, #tpu.memory_space<vmem>>, vector<2x64xf32>,
    %c38_367 = arith.constant 38 : index
    %c0_368 = arith.constant 0 : index
    %916 = vector.load %arg11[%c38_367, %c0_368] : memref<46x256xf32, #tpu.memory_space<vmem>>, vector<2x256xf32>
    %cst_369 = arith.constant dense<0.000000e+00> : vector<2x256xf32>
    %917 = tpu.matmul %913, %593, %cst_369 {dimension_numbers = #tpu.dot_dimension_numbers<[1], [0], [0], [1], [0, 0, 1, 1], [], []>} : vector<2x64xf32>, vector<64x256xf32>, vector<2x256xf32> -> vector<2x256xf32>
    %918 = arith.addf %916, %917 : vector<2x256xf32>
    %919 = math.tanh %918 : vector<2x256xf32>
    %920 = arith.mulf %919, %189 : vector<2x256xf32>
    %921 = arith.addf %920, %192 : vector<2x256xf32>
    %922 = vector.extract_strided_slice %921 {offsets = [0, 0], sizes = [2, 64], strides = [1, 1]} : vector<2x256xf32> to vector<2x64xf32>
    %923 = vector.extract_strided_slice %921 {offsets = [0, 64], sizes = [2, 64], strides = [1, 1]} : vector<2x256xf32> to vector<2x64xf32>
    %924 = vector.extract_strided_slice %921 {offsets = [0, 128], sizes = [2, 64], strides = [1, 1]} : vector<2x256xf32> to vector<2x64xf32>
    %925 = vector.extract_strided_slice %921 {offsets = [0, 192], sizes = [2, 64], strides = [1, 1]} : vector<2x256xf32> to vector<2x64xf32>
    %926 = arith.mulf %923, %911 : vector<2x64xf32>
    %927 = arith.mulf %922, %925 : vector<2x64xf32>
    %928 = arith.addf %926, %927 : vector<2x64xf32>
    %929 = math.tanh %928 : vector<2x64xf32>
    %930 = arith.mulf %924, %929 : vector<2x64xf32>
    %c38_370 = arith.constant 38 : index
    %c0_371 = arith.constant 0 : index
    %931 = vector.load %arg12[%c38_370, %c0_371] : memref<46x128xf32, #tpu.memory_space<vmem>>, vector<2x64xf32>
    tpu.vector_store %arg12[%c38_370, %c0_371], %930 {strides = array<i32>} : memref<46x128xf32, #tpu.memory_space<vmem>>, vector<2x64xf32>,
    %c6_372 = arith.constant 6 : index
    %c64_373 = arith.constant 64 : index
    %932 = vector.load %arg12[%c6_372, %c64_373] : memref<46x128xf32, #tpu.memory_space<vmem>>, vector<2x64xf32>
    tpu.vector_store %arg12[%c6_372, %c64_373], %930 {strides = array<i32>} : memref<46x128xf32, #tpu.memory_space<vmem>>, vector<2x64xf32>,
    %c40_374 = arith.constant 40 : index
    %c0_375 = arith.constant 0 : index
    %933 = vector.load %arg11[%c40_374, %c0_375] : memref<46x256xf32, #tpu.memory_space<vmem>>, vector<2x256xf32>
    %cst_376 = arith.constant dense<0.000000e+00> : vector<2x256xf32>
    %934 = tpu.matmul %930, %593, %cst_376 {dimension_numbers = #tpu.dot_dimension_numbers<[1], [0], [0], [1], [0, 0, 1, 1], [], []>} : vector<2x64xf32>, vector<64x256xf32>, vector<2x256xf32> -> vector<2x256xf32>
    %935 = arith.addf %933, %934 : vector<2x256xf32>
    %936 = math.tanh %935 : vector<2x256xf32>
    %937 = arith.mulf %936, %189 : vector<2x256xf32>
    %938 = arith.addf %937, %192 : vector<2x256xf32>
    %939 = vector.extract_strided_slice %938 {offsets = [0, 0], sizes = [2, 64], strides = [1, 1]} : vector<2x256xf32> to vector<2x64xf32>
    %940 = vector.extract_strided_slice %938 {offsets = [0, 64], sizes = [2, 64], strides = [1, 1]} : vector<2x256xf32> to vector<2x64xf32>
    %941 = vector.extract_strided_slice %938 {offsets = [0, 128], sizes = [2, 64], strides = [1, 1]} : vector<2x256xf32> to vector<2x64xf32>
    %942 = vector.extract_strided_slice %938 {offsets = [0, 192], sizes = [2, 64], strides = [1, 1]} : vector<2x256xf32> to vector<2x64xf32>
    %943 = arith.mulf %940, %928 : vector<2x64xf32>
    %944 = arith.mulf %939, %942 : vector<2x64xf32>
    %945 = arith.addf %943, %944 : vector<2x64xf32>
    %946 = math.tanh %945 : vector<2x64xf32>
    %947 = arith.mulf %941, %946 : vector<2x64xf32>
    %c40_377 = arith.constant 40 : index
    %c0_378 = arith.constant 0 : index
    %948 = vector.load %arg12[%c40_377, %c0_378] : memref<46x128xf32, #tpu.memory_space<vmem>>, vector<2x64xf32>
    tpu.vector_store %arg12[%c40_377, %c0_378], %947 {strides = array<i32>} : memref<46x128xf32, #tpu.memory_space<vmem>>, vector<2x64xf32>,
    %c4_379 = arith.constant 4 : index
    %c64_380 = arith.constant 64 : index
    %949 = vector.load %arg12[%c4_379, %c64_380] : memref<46x128xf32, #tpu.memory_space<vmem>>, vector<2x64xf32>
    tpu.vector_store %arg12[%c4_379, %c64_380], %947 {strides = array<i32>} : memref<46x128xf32, #tpu.memory_space<vmem>>, vector<2x64xf32>,
    %c42_381 = arith.constant 42 : index
    %c0_382 = arith.constant 0 : index
    %950 = vector.load %arg11[%c42_381, %c0_382] : memref<46x256xf32, #tpu.memory_space<vmem>>, vector<2x256xf32>
    %cst_383 = arith.constant dense<0.000000e+00> : vector<2x256xf32>
    %951 = tpu.matmul %947, %593, %cst_383 {dimension_numbers = #tpu.dot_dimension_numbers<[1], [0], [0], [1], [0, 0, 1, 1], [], []>} : vector<2x64xf32>, vector<64x256xf32>, vector<2x256xf32> -> vector<2x256xf32>
    %952 = arith.addf %950, %951 : vector<2x256xf32>
    %953 = math.tanh %952 : vector<2x256xf32>
    %954 = arith.mulf %953, %189 : vector<2x256xf32>
    %955 = arith.addf %954, %192 : vector<2x256xf32>
    %956 = vector.extract_strided_slice %955 {offsets = [0, 0], sizes = [2, 64], strides = [1, 1]} : vector<2x256xf32> to vector<2x64xf32>
    %957 = vector.extract_strided_slice %955 {offsets = [0, 64], sizes = [2, 64], strides = [1, 1]} : vector<2x256xf32> to vector<2x64xf32>
    %958 = vector.extract_strided_slice %955 {offsets = [0, 128], sizes = [2, 64], strides = [1, 1]} : vector<2x256xf32> to vector<2x64xf32>
    %959 = vector.extract_strided_slice %955 {offsets = [0, 192], sizes = [2, 64], strides = [1, 1]} : vector<2x256xf32> to vector<2x64xf32>
    %960 = arith.mulf %957, %945 : vector<2x64xf32>
    %961 = arith.mulf %956, %959 : vector<2x64xf32>
    %962 = arith.addf %960, %961 : vector<2x64xf32>
    %963 = math.tanh %962 : vector<2x64xf32>
    %964 = arith.mulf %958, %963 : vector<2x64xf32>
    %c42_384 = arith.constant 42 : index
    %c0_385 = arith.constant 0 : index
    %965 = vector.load %arg12[%c42_384, %c0_385] : memref<46x128xf32, #tpu.memory_space<vmem>>, vector<2x64xf32>
    tpu.vector_store %arg12[%c42_384, %c0_385], %964 {strides = array<i32>} : memref<46x128xf32, #tpu.memory_space<vmem>>, vector<2x64xf32>,
    %c2_386 = arith.constant 2 : index
    %c64_387 = arith.constant 64 : index
    %966 = vector.load %arg12[%c2_386, %c64_387] : memref<46x128xf32, #tpu.memory_space<vmem>>, vector<2x64xf32>
    tpu.vector_store %arg12[%c2_386, %c64_387], %964 {strides = array<i32>} : memref<46x128xf32, #tpu.memory_space<vmem>>, vector<2x64xf32>,
    %c44_388 = arith.constant 44 : index
    %c0_389 = arith.constant 0 : index
    %967 = vector.load %arg11[%c44_388, %c0_389] : memref<46x256xf32, #tpu.memory_space<vmem>>, vector<2x256xf32>
    %cst_390 = arith.constant dense<0.000000e+00> : vector<2x256xf32>
    %968 = tpu.matmul %964, %593, %cst_390 {dimension_numbers = #tpu.dot_dimension_numbers<[1], [0], [0], [1], [0, 0, 1, 1], [], []>} : vector<2x64xf32>, vector<64x256xf32>, vector<2x256xf32> -> vector<2x256xf32>
    %969 = arith.addf %967, %968 : vector<2x256xf32>
    %970 = math.tanh %969 : vector<2x256xf32>
    %971 = arith.mulf %970, %189 : vector<2x256xf32>
    %972 = arith.addf %971, %192 : vector<2x256xf32>
    %973 = vector.extract_strided_slice %972 {offsets = [0, 0], sizes = [2, 64], strides = [1, 1]} : vector<2x256xf32> to vector<2x64xf32>
    %974 = vector.extract_strided_slice %972 {offsets = [0, 64], sizes = [2, 64], strides = [1, 1]} : vector<2x256xf32> to vector<2x64xf32>
    %975 = vector.extract_strided_slice %972 {offsets = [0, 128], sizes = [2, 64], strides = [1, 1]} : vector<2x256xf32> to vector<2x64xf32>
    %976 = vector.extract_strided_slice %972 {offsets = [0, 192], sizes = [2, 64], strides = [1, 1]} : vector<2x256xf32> to vector<2x64xf32>
    %977 = arith.mulf %974, %962 : vector<2x64xf32>
    %978 = arith.mulf %973, %976 : vector<2x64xf32>
    %979 = arith.addf %977, %978 : vector<2x64xf32>
    %980 = math.tanh %979 : vector<2x64xf32>
    %981 = arith.mulf %975, %980 : vector<2x64xf32>
    %c44_391 = arith.constant 44 : index
    %c0_392 = arith.constant 0 : index
    %982 = vector.load %arg12[%c44_391, %c0_392] : memref<46x128xf32, #tpu.memory_space<vmem>>, vector<2x64xf32>
    tpu.vector_store %arg12[%c44_391, %c0_392], %981 {strides = array<i32>} : memref<46x128xf32, #tpu.memory_space<vmem>>, vector<2x64xf32>,
    %c0_393 = arith.constant 0 : index
    %c64_394 = arith.constant 64 : index
    %983 = vector.load %arg12[%c0_393, %c64_394] : memref<46x128xf32, #tpu.memory_space<vmem>>, vector<2x64xf32>
    tpu.vector_store %arg12[%c0_393, %c64_394], %981 {strides = array<i32>} : memref<46x128xf32, #tpu.memory_space<vmem>>, vector<2x64xf32>,
    %c0_395 = arith.constant 0 : index
    %c0_396 = arith.constant 0 : index
    %984 = vector.load %arg12[%c0_395, %c0_396] : memref<46x128xf32, #tpu.memory_space<vmem>>, vector<46x128xf32>
    %985 = vector.extract_strided_slice %984 {offsets = [0, 0], sizes = [46, 32], strides = [1, 1]} : vector<46x128xf32> to vector<46x32xf32>
    %986 = vector.extract_strided_slice %984 {offsets = [0, 96], sizes = [46, 32], strides = [1, 1]} : vector<46x128xf32> to vector<46x32xf32>
    %987 = tpu.concatenate %985, %986 in 1 : vector<46x32xf32>, vector<46x32xf32> -> vector<46x64xf32>
    %cst_397 = arith.constant 0.158113882 : f32
    %988 = vector.broadcast %cst_397 : f32 to vector<46x64xf32>
    %989 = arith.mulf %987, %988 : vector<46x64xf32>
    %cst_398 = arith.constant dense<0.000000e+00> : vector<46x46xf32>
    %990 = tpu.matmul %989, %987, %cst_398 {dimension_numbers = #tpu.dot_dimension_numbers<[1], [1], [0], [0], [0, 0, 1, 0], [], []>} : vector<46x64xf32>, vector<46x64xf32>, vector<46x46xf32> -> vector<46x46xf32>
    %991 = tpu.iota {dimensions = array<i32: 0>} : vector<46x46xi32>
    %992 = tpu.iota {dimensions = array<i32: 1>} : vector<46x46xi32>
    %c2_i32_399 = arith.constant 2 : i32
    %c0_i32_400 = arith.constant 0 : i32
    %993 = arith.cmpi eq, %c2_i32_399, %c0_i32_400 : i32
    %c1_i32_401 = arith.constant 1 : i32
    %994 = arith.select %993, %c1_i32_401, %c2_i32_399 : i32
    %995 = vector.broadcast %994 : i32 to vector<46x46xi32>
    %996 = arith.remsi %991, %995 : vector<46x46xi32>
    %c0_i32_402 = arith.constant 0 : i32
    %997 = vector.broadcast %c0_i32_402 : i32 to vector<46x46xi32>
    %998 = arith.cmpi ne, %996, %997 : vector<46x46xi32>
    %c0_i32_403 = arith.constant 0 : i32
    %999 = vector.broadcast %c0_i32_403 : i32 to vector<46x46xi32>
    %1000 = arith.cmpi slt, %996, %999 : vector<46x46xi32>
    %c0_i32_404 = arith.constant 0 : i32
    %1001 = arith.cmpi slt, %994, %c0_i32_404 : i32
    %1002 = vector.broadcast %1001 : i1 to vector<46x46xi1>
    %1003 = vector.broadcast %1002 : vector<46x46xi1> to vector<46x46xi1>
    %1004 = arith.xori %1000, %1003 : vector<46x46xi1>
    %1005 = arith.andi %1004, %998 : vector<46x46xi1>
    %1006 = vector.broadcast %994 : i32 to vector<46x46xi32>
    %1007 = arith.addi %996, %1006 : vector<46x46xi32>
    %1008 = arith.select %1005, %1007, %996 : vector<46x46xi1>, vector<46x46xi32>
    %c2_i32_405 = arith.constant 2 : i32
    %c0_i32_406 = arith.constant 0 : i32
    %1009 = arith.cmpi eq, %c2_i32_405, %c0_i32_406 : i32
    %c1_i32_407 = arith.constant 1 : i32
    %1010 = arith.select %1009, %c1_i32_407, %c2_i32_405 : i32
    %1011 = vector.broadcast %1010 : i32 to vector<46x46xi32>
    %1012 = arith.remsi %992, %1011 : vector<46x46xi32>
    %c0_i32_408 = arith.constant 0 : i32
    %1013 = vector.broadcast %c0_i32_408 : i32 to vector<46x46xi32>
    %1014 = arith.cmpi ne, %1012, %1013 : vector<46x46xi32>
    %c0_i32_409 = arith.constant 0 : i32
    %1015 = vector.broadcast %c0_i32_409 : i32 to vector<46x46xi32>
    %1016 = arith.cmpi slt, %1012, %1015 : vector<46x46xi32>
    %c0_i32_410 = arith.constant 0 : i32
    %1017 = arith.cmpi slt, %1010, %c0_i32_410 : i32
    %1018 = vector.broadcast %1017 : i1 to vector<46x46xi1>
    %1019 = vector.broadcast %1018 : vector<46x46xi1> to vector<46x46xi1>
    %1020 = arith.xori %1016, %1019 : vector<46x46xi1>
    %1021 = arith.andi %1020, %1014 : vector<46x46xi1>
    %1022 = vector.broadcast %1010 : i32 to vector<46x46xi32>
    %1023 = arith.addi %1012, %1022 : vector<46x46xi32>
    %1024 = arith.select %1021, %1023, %1012 : vector<46x46xi1>, vector<46x46xi32>
    %1025 = arith.cmpi eq, %1008, %1024 : vector<46x46xi32>
    %cst_411 = arith.constant -1.000000e+30 : f32
    %1026 = vector.broadcast %cst_411 : f32 to vector<46x46xf32>
    %1027 = arith.select %1025, %990, %1026 : vector<46x46xi1>, vector<46x46xf32>
    %cst_412 = arith.constant dense<0xFF800000> : vector<46xf32>
    %1028 = vector.multi_reduction <maximumf>, %1027, %cst_412 [1] : vector<46x46xf32> to vector<46xf32>
    %1029 = vector.shape_cast %1028 : vector<46xf32> to vector<46x1xf32>
    %1030 = vector.broadcast %1029 : vector<46x1xf32> to vector<46x46xf32>
    %1031 = arith.subf %1027, %1030 : vector<46x46xf32>
    %1032 = math.exp %1031 : vector<46x46xf32>
    %cst_413 = arith.constant dense<0.000000e+00> : vector<46xf32>
    %1033 = vector.multi_reduction <add>, %1032, %cst_413 [1] : vector<46x46xf32> to vector<46xf32>
    %1034 = vector.shape_cast %1033 : vector<46xf32> to vector<46x1xf32>
    %1035 = tpu.reciprocal %1034 {approx = true} : vector<46x1xf32> -> vector<46x1xf32>
    %1036 = vector.broadcast %1035 : vector<46x1xf32> to vector<46x46xf32>
    %1037 = arith.mulf %1032, %1036 : vector<46x46xf32>
    %1038 = tpu.iota {dimensions = array<i32: 0>} : vector<2x46xi32>
    %1039 = tpu.iota {dimensions = array<i32: 1>} : vector<2x46xi32>
    %c2_i32_414 = arith.constant 2 : i32
    %c0_i32_415 = arith.constant 0 : i32
    %1040 = arith.cmpi eq, %c2_i32_414, %c0_i32_415 : i32
    %c1_i32_416 = arith.constant 1 : i32
    %1041 = arith.select %1040, %c1_i32_416, %c2_i32_414 : i32
    %1042 = vector.broadcast %1041 : i32 to vector<2x46xi32>
    %1043 = arith.remsi %1039, %1042 : vector<2x46xi32>
    %c0_i32_417 = arith.constant 0 : i32
    %1044 = vector.broadcast %c0_i32_417 : i32 to vector<2x46xi32>
    %1045 = arith.cmpi ne, %1043, %1044 : vector<2x46xi32>
    %c0_i32_418 = arith.constant 0 : i32
    %1046 = vector.broadcast %c0_i32_418 : i32 to vector<2x46xi32>
    %1047 = arith.cmpi slt, %1043, %1046 : vector<2x46xi32>
    %c0_i32_419 = arith.constant 0 : i32
    %1048 = arith.cmpi slt, %1041, %c0_i32_419 : i32
    %1049 = vector.broadcast %1048 : i1 to vector<2x46xi1>
    %1050 = vector.broadcast %1049 : vector<2x46xi1> to vector<2x46xi1>
    %1051 = arith.xori %1047, %1050 : vector<2x46xi1>
    %1052 = arith.andi %1051, %1045 : vector<2x46xi1>
    %1053 = vector.broadcast %1041 : i32 to vector<2x46xi32>
    %1054 = arith.addi %1043, %1053 : vector<2x46xi32>
    %1055 = arith.select %1052, %1054, %1043 : vector<2x46xi1>, vector<2x46xi32>
    %1056 = arith.cmpi eq, %1055, %1038 : vector<2x46xi32>
    %1057 = arith.extui %1056 : vector<2x46xi1> to vector<2x46xi32>
    %1058 = arith.sitofp %1057 : vector<2x46xi32> to vector<2x46xf32>
    %cst_420 = arith.constant dense<0.000000e+00> : vector<2x46xf32>
    %1059 = tpu.matmul %1058, %1037, %cst_420 {dimension_numbers = #tpu.dot_dimension_numbers<[1], [0], [0], [1], [0, 0, 1, 1], [], []>} : vector<2x46xf32>, vector<46x46xf32>, vector<2x46xf32> -> vector<2x46xf32>
    %cst_421 = arith.constant dense<0.000000e+00> : vector<2x64xf32>
    %1060 = tpu.matmul %1059, %987, %cst_421 {dimension_numbers = #tpu.dot_dimension_numbers<[1], [0], [0], [1], [0, 0, 1, 1], [], []>} : vector<2x46xf32>, vector<46x64xf32>, vector<2x64xf32> -> vector<2x64xf32>
    %c0_422 = arith.constant 0 : index
    %c0_423 = arith.constant 0 : index
    %1061 = vector.load %arg7[%c0_422, %c0_423] : memref<64x2xf32, #tpu.memory_space<vmem>>, vector<64x2xf32>
    %cst_424 = arith.constant dense<0.000000e+00> : vector<2x2xf32>
    %1062 = tpu.matmul %1060, %1061, %cst_424 {dimension_numbers = #tpu.dot_dimension_numbers<[1], [0], [0], [1], [0, 0, 1, 1], [], []>} : vector<2x64xf32>, vector<64x2xf32>, vector<2x2xf32> -> vector<2x2xf32>
    %c0_425 = arith.constant 0 : index
    %c0_426 = arith.constant 0 : index
    %1063 = vector.load %arg8[%c0_425, %c0_426] : memref<1x2xf32, #tpu.memory_space<vmem>>, vector<1x2xf32>
    %1064 = vector.broadcast %1063 : vector<1x2xf32> to vector<2x2xf32>
    %1065 = arith.addf %1062, %1064 : vector<2x2xf32>
    %c0_427 = arith.constant 0 : index
    %c0_428 = arith.constant 0 : index
    %1066 = vector.load %arg9[%c0_427, %c0_428] : memref<2x2xf32, #tpu.memory_space<vmem>>, vector<2x2xf32>
    tpu.vector_store %arg9[%c0_427, %c0_428], %1065 {strides = array<i32>} : memref<2x2xf32, #tpu.memory_space<vmem>>, vector<2x2xf32>,
    return
  }
  func.func @transform_0(%arg0: i32) -> (i32, i32) {
    %c0_i32 = arith.constant 0 : i32
    %c0_i32_0 = arith.constant 0 : i32
    %c0_i32_1 = arith.constant 0 : i32
    return %c0_i32, %c0_i32_0 : i32, i32
  }
  func.func @transform_1(%arg0: i32) -> (i32, i32) {
    %c0_i32 = arith.constant 0 : i32
    %c0_i32_0 = arith.constant 0 : i32
    %c0_i32_1 = arith.constant 0 : i32
    return %c0_i32, %c0_i32_0 : i32, i32
  }
  func.func @transform_2(%arg0: i32) -> (i32, i32) {
    %c0_i32 = arith.constant 0 : i32
    %c0_i32_0 = arith.constant 0 : i32
    %c0_i32_1 = arith.constant 0 : i32
    return %c0_i32, %c0_i32_0 : i32, i32
  }
  func.func @transform_3(%arg0: i32) -> (i32, i32) {
    %c0_i32 = arith.constant 0 : i32
    %c0_i32_0 = arith.constant 0 : i32
    %c0_i32_1 = arith.constant 0 : i32
    return %c0_i32, %c0_i32_0 : i32, i32
  }
  func.func @transform_4(%arg0: i32) -> (i32, i32, i32) {
    %c0_i32 = arith.constant 0 : i32
    %c0_i32_0 = arith.constant 0 : i32
    %c0_i32_1 = arith.constant 0 : i32
    %c0_i32_2 = arith.constant 0 : i32
    return %c0_i32, %c0_i32_0, %c0_i32_1 : i32, i32, i32
  }
  func.func @transform_5(%arg0: i32) -> (i32, i32) {
    %c0_i32 = arith.constant 0 : i32
    %c0_i32_0 = arith.constant 0 : i32
    %c0_i32_1 = arith.constant 0 : i32
    return %c0_i32, %c0_i32_0 : i32, i32
  }
  func.func @transform_6(%arg0: i32) -> (i32, i32) {
    %c0_i32 = arith.constant 0 : i32
    %c0_i32_0 = arith.constant 0 : i32
    %c0_i32_1 = arith.constant 0 : i32
    return %c0_i32, %c0_i32_0 : i32, i32
  }
  func.func @transform_7(%arg0: i32) -> (i32, i32) {
    %c0_i32 = arith.constant 0 : i32
    %c0_i32_0 = arith.constant 0 : i32
    %c0_i32_1 = arith.constant 0 : i32
    return %c0_i32, %c0_i32_0 : i32, i32
  }
  func.func @transform_8(%arg0: i32) -> (i32, i32) {
    %c0_i32 = arith.constant 0 : i32
    %c0_i32_0 = arith.constant 0 : i32
    %c0_i32_1 = arith.constant 0 : i32
    return %c0_i32, %c0_i32_0 : i32, i32
  }
}

</mosaic_0001>

<bundles_post_ra>
// kernel: tpu_custom_call.1
= control target key start
LH: loop header
LB: loop body
LE: loop exit
PB: predicated region body
PF: predicated region fallthrough
CT: control target
= control target key end

     0   :  { %13 = vsyncpa [#allocation6], 0  ;;  %s7879_s0 = inlined_call_operand.vmem [shape: f32[128,64], index: 0, kind: input, shape index: {}]   ;;  %s7880_s1 = inlined_call_operand.vmem [shape: f32[64,10], index: 1, kind: input, shape index: {}]   ;;  %s7881_s2 = inlined_call_operand.vmem [shape: f32[2,256], index: 2, kind: input, shape index: {}]   ;;  %s7882_s3 = inlined_call_operand.vmem [shape: f32[128,256], index: 3, kind: input, shape index: {}]   ;;  %s7883_s4 = inlined_call_operand.hbm [shape: f32[2,64,256], index: 4, kind: input, shape index: {}]   ;;  %s7884_s5 = inlined_call_operand.vmem [shape: f32[2,256], index: 5, kind: input, shape index: {}]   ;;  %s7885_s6 = inlined_call_operand.vmem [shape: f32[64,2], index: 6, kind: input, shape index: {}]   ;;  %s7886_s7 = inlined_call_operand.vmem [shape: f32[1,2], index: 7, kind: input, shape index: {}]   ;;  %s7887_s8 = inlined_call_operand.hbm [shape: f32[2,2], index: 8, kind: output, shape index: {}]  }
   0x1   :  { %14 = vsyncpa [#allocation7], 0  ;;  %s27_s29 = sshll.u32 %s7883_s4, 4  ;;  %s5518_s30 = smov [#allocation5]   ;;  %s28_s29 = int_to_ptr.hbm [resolvable:$true] %s27_s29 }
   0x2   :  { %s29_s9 = sshll.u32 %s5518_s30, 4  ;;  %s5519_s10 = smov 256   ;;  %s30_s9 = int_to_ptr.vmem [resolvable:$true] %s29_s9 }
   0x3   :  { %s5520_s11 = smov 16  }
   0x4   :  { %35 = dma.hbm_to_vmem [thread:$0]  %s28_s29, 4096, %s30_s9, [#allocation6], %s5519_s10, %s5519_s10, %s5520_s11  }
   0x5   :  { %5514 = dma.done.wait [#allocation6], 4096  }
   0x6   :  { %5515 = vsyncadd [#allocation6], 4294963200  ;;  %v69_v0 = vld [vmem:[%s7880_s1 + $0x38] sm:$0xff]  ;;  %v68_v1 = vld [vmem:[%s7880_s1 + $0x30] sm:$0xff]  ;;  %vm70_vm0 = vcmask 523264   ;;  %vm184_vm1 = vcmask 80896   ;;  %v7889_v24 = vlaneseq }
   0x7   :  { %127 = vmatpush.msra.mxu0 %v69_v0  ;;  %5084 = vmatpush.msra.mxu1 %v69_v0  ;;  %v67_v2 = vld [vmem:[%s7880_s1 + $0x28] sm:$0xff]  ;;  %v66_v3 = vld [vmem:[%s7880_s1 + $0x20] sm:$0xff]  ;;  %v65_v4 = vld [vmem:[%s7880_s1 + $0x18] sm:$0xff]  ;;  %vm709_vm13 = vcmask 517120   ;;  %vm795_vm14 = vcmask 519170   ;;  %vm882_vm15 = vcmask 521220  }
   0x8   :  { %5085 = vmatpush.msra.mxu2 %v69_v0  ;;  %v64_v5 = vld [vmem:[%s7880_s1 + $0x10] sm:$0xff]  ;;  %v63_v6 = vld [vmem:[%s7880_s1 + $0x8] sm:$0xff]  ;;  %v62_v7 = vld [vmem:[%s7880_s1] sm:$0xff]  ;;  %v5660_v26 = vand.u32 127, %v7889_v24  ;;  %s5524_s22 = smov [#allocation8]   ;;  %s4950_s26 = sshll.u32 %s7887_s8, 4  ;;  %s4951_s26 = int_to_ptr.hbm [resolvable:$true] %s4950_s26 }
   0x9   :  { %128 = vmatpush.msra.mxu0 %v68_v1  ;;  %5086 = vmatpush.msra.mxu1 %v68_v1  ;;  %v46_v8 = vld [vmem:[%s7879_s0] sm:$0xff]  ;;  %v47_v9 = vld [vmem:[%s7879_s0 + $0x8] sm:$0xff]  ;;  %v48_v10 = vld [vmem:[%s7879_s0 + $0x10] sm:$0xff]  ;;  %s4948_s23 = sshll.u32 %s5524_s22, 4  ;;  %s4949_s23 = int_to_ptr.vmem [resolvable:$true] %s4948_s23 }
   0xa   :  { %5087 = vmatpush.msra.mxu2 %v68_v1  ;;  %v49_v11 = vld [vmem:[%s7879_s0 + $0x18] sm:$0xff]  ;;  %v50_v12 = vld [vmem:[%s7879_s0 + $0x20] sm:$0xff]  ;;  %v51_v13 = vld [vmem:[%s7879_s0 + $0x28] sm:$0xff]  ;;  %vm203_vm2 = vcmp.eq.s32.totalorder %v5660_v26, 0  ;;  %vm245_vm3 = vcmp.eq.s32.totalorder %v5660_v26, 1  ;;  %vm287_vm4 = vcmp.eq.s32.totalorder %v5660_v26, 2 }
   0xb   :  { %129 = vmatpush.msra.mxu0 %v67_v2  ;;  %5088 = vmatpush.msra.mxu1 %v67_v2  ;;  %v52_v14 = vld [vmem:[%s7879_s0 + $0x30] sm:$0xff]  ;;  %v53_v15 = vld [vmem:[%s7879_s0 + $0x38] sm:$0xff]  ;;  %v58_v16 = vld [vmem:[%s7879_s0 + $0x60] sm:$0xff]  ;;  %vm329_vm5 = vcmp.eq.s32.totalorder %v5660_v26, 3  ;;  %vm371_vm6 = vcmp.eq.s32.totalorder %v5660_v26, 4  ;;  %vm388_vm7 = vcmp.eq.s32.totalorder %v5660_v26, 5 }
   0xc   :  { %5089 = vmatpush.msra.mxu2 %v67_v2  ;;  %v60_v17 = vld [vmem:[%s7879_s0 + $0x70] sm:$0xff]  ;;  %v54_v18 = vld [vmem:[%s7879_s0 + $0x40] sm:$0xff]  ;;  %v59_v19 = vld [vmem:[%s7879_s0 + $0x68] sm:$0xff]  ;;  %vm350_vm8 = vcmp.eq.s32.totalorder %v5660_v26, 6  ;;  %vm308_vm9 = vcmp.eq.s32.totalorder %v5660_v26, 7  ;;  %vm266_vm10 = vcmp.eq.s32.totalorder %v5660_v26, 8 }
   0xd   :  { %130 = vmatpush.msra.mxu0 %v66_v3  ;;  %5090 = vmatpush.msra.mxu1 %v66_v3  ;;  %v55_v20 = vld [vmem:[%s7879_s0 + $0x48] sm:$0xff]  ;;  %v56_v21 = vld [vmem:[%s7879_s0 + $0x50] sm:$0xff]  ;;  %v57_v22 = vld [vmem:[%s7879_s0 + $0x58] sm:$0xff]  ;;  %vm224_vm11 = vcmp.eq.s32.totalorder %v5660_v26, 9 }
   0xe   :  { %5091 = vmatpush.msra.mxu2 %v66_v3 }
   0xf   :  { %131 = vmatpush.msra.mxu0 %v65_v4  ;;  %5092 = vmatpush.msra.mxu1 %v65_v4 }
  0x10   :  { %5093 = vmatpush.msra.mxu2 %v65_v4 }
  0x11   :  { %132 = vmatpush.msra.mxu0 %v64_v5  ;;  %5094 = vmatpush.msra.mxu1 %v64_v5 }
  0x12   :  { %5095 = vmatpush.msra.mxu2 %v64_v5 }
  0x13   :  { %133 = vmatpush.msra.mxu0 %v63_v6  ;;  %5096 = vmatpush.msra.mxu1 %v63_v6 }
  0x14   :  { %5097 = vmatpush.msra.mxu2 %v63_v6 }
  0x15   :  { %134 = vmatpush.msra.mxu0 %v62_v7  ;;  %5098 = vmatpush.msra.mxu1 %v62_v7 }
  0x16   :  { %4960 = vmatmul.msk.f32.vlgmr.msra.gmra.mxu0 %vm70_vm0, %v46_v8  ;;  %5099 = vmatpush.msra.mxu2 %v62_v7 }
  0x17   :  { %4972 = vmatmul.msk.f32.vlgmr.msra.gmra.mxu1 %vm70_vm0, %v58_v16  ;;  %4974 = vmatmul.msk.f32.vlgmr.msra.gmra.mxu2 %vm70_vm0, %v60_v17 }
  0x1e   :  { %4961 = vmatmul.msk.f32.gmra.mxu0 %vm70_vm0, %v47_v9 }
  0x1f   :  { %4973 = vmatmul.msk.f32.gmra.mxu1 %vm70_vm0, %v59_v19 }
  0x26   :  { %4962 = vmatmul.msk.f32.gmra.mxu0 %vm70_vm0, %v48_v10 }
  0x2e   :  { %4963 = vmatmul.msk.f32.gmra.mxu0 %vm70_vm0, %v49_v11 }
  0x36   :  { %4964 = vmatmul.msk.f32.gmra.mxu0 %vm70_vm0, %v50_v12 }
  0x3e   :  { %4965 = vmatmul.msk.f32.gmra.mxu0 %vm70_vm0, %v51_v13 }
  0x46   :  { %4966 = vmatmul.msk.f32.gmra.mxu0 %vm70_vm0, %v52_v14 }
  0x4e   :  { %4967 = vmatmul.msk.f32.gmra.mxu0 %vm70_vm0, %v53_v15 }
  0x56   :  { %4968 = vmatmul.msk.f32.gmra.mxu0 %vm70_vm0, %v54_v18 }
  0x5e   :  { %4969 = vmatmul.msk.f32.gmra.mxu0 %vm70_vm0, %v55_v20 }
  0x66   :  { %4970 = vmatmul.msk.f32.gmra.mxu0 %vm70_vm0, %v56_v21 }
  0x6e   :  { %4971 = vmatmul.msk.f32.gmra.mxu0 %vm70_vm0, %v57_v22 }
  0x93   :  { %v136_v23 = vpop.f32.mrf.mxu0 }
  0x94   :  { %185 = vst.msk [vmem:[#allocation2] sm:$0xff] %vm184_vm1, %v136_v23 }
  0x9b   :  { %v139_v25 = vpop.f32.mrf.mxu0  ;;  %v204_v27 = vld [vmem:[#allocation2] sm:$0xff] }
  0x9c   :  { %186 = vst.msk [vmem:[#allocation2 + $0x8] sm:$0xff] %vm184_vm1, %v139_v25  ;;  %v212_v31 = vsel %vm203_vm2, %v204_v27, 0.0 }
  0xa3   :  { %v142_v28 = vpop.f32.mrf.mxu0  ;;  %v246_v29 = vld [vmem:[#allocation2 + $0x2] sm:$0xff] }
  0xa4   :  { %v288_v30 = vld [vmem:[#allocation2 + $0x4] sm:$0xff]  ;;  %187 = vst.msk [vmem:[#allocation2 + $0x10] sm:$0xff] %vm184_vm1, %v142_v28  ;;  %v254_v32 = vsel %vm245_vm3, %v246_v29, 0.0 }
  0xa5   :  { %v260_v33 = vadd.f32 %v254_v32, %v212_v31  ;;  %v330_v34 = vld [vmem:[#allocation2 + $0x6] sm:$0xff]  ;;  %v296_v35 = vsel %vm287_vm4, %v288_v30, 0.0 }
  0xa6   :  { %v205_v36 = vld [vmem:[#allocation2 + $0x8] sm:$0xff]  ;;  %v338_v38 = vsel %vm329_vm5, %v330_v34, 0.0 }
  0xa7   :  { %v302_v37 = vadd.f32 %v296_v35, %v260_v33  ;;  %v376_v40 = vsel %vm371_vm6, %v205_v36, 0.0  ;;  %v213_v45 = vsel %vm203_vm2, %v205_v36, 0.0 }
  0xa9   :  { %v344_v39 = vadd.f32 %v338_v38, %v302_v37 }
  0xab   :  { %v145_v41 = vpop.f32.mrf.mxu0  ;;  %v247_v42 = vld [vmem:[#allocation2 + $0xa] sm:$0xff]  ;;  %v382_v44 = vadd.f32 %v376_v40, %v344_v39 }
  0xac   :  { %v289_v43 = vld [vmem:[#allocation2 + $0xc] sm:$0xff]  ;;  %188 = vst.msk [vmem:[#allocation2 + $0x18] sm:$0xff] %vm184_vm1, %v145_v41  ;;  %v255_v46 = vsel %vm245_vm3, %v247_v42, 0.0  ;;  %v407_v49 = vsel %vm388_vm7, %v247_v42, 0.0 }
  0xad   :  { %v261_v47 = vadd.f32 %v255_v46, %v213_v45  ;;  %v331_v48 = vld [vmem:[#allocation2 + $0xe] sm:$0xff]  ;;  %v297_v50 = vsel %vm287_vm4, %v289_v43, 0.0  ;;  %v413_v51 = vadd.f32 %v407_v49, %v382_v44  ;;  %v435_v54 = vsel %vm350_vm8, %v289_v43, 0.0 }
  0xae   :  { %v206_v52 = vld [vmem:[#allocation2 + $0x10] sm:$0xff]  ;;  %v339_v55 = vsel %vm329_vm5, %v331_v48, 0.0  ;;  %v463_v58 = vsel %vm308_vm9, %v331_v48, 0.0 }
  0xaf   :  { %v303_v53 = vadd.f32 %v297_v50, %v261_v47  ;;  %v441_v56 = vadd.f32 %v435_v54, %v413_v51  ;;  %v377_v59 = vsel %vm371_vm6, %v206_v52, 0.0  ;;  %v491_v1 = vsel %vm266_vm10, %v206_v52, 0.0 }
  0xb0   :  { %v214_v2 = vsel %vm203_vm2, %v206_v52, 0.0 }
  0xb1   :  { %v345_v57 = vadd.f32 %v339_v55, %v303_v53  ;;  %v469_v60 = vadd.f32 %v463_v58, %v441_v56  ;;  %v172_v55 = vpop.f32.mrf.mxu1 }
  0xb2   :  { %197 = vst.msk [vmem:[#allocation2 + $0x60] sm:$0xff] %vm184_vm1, %v172_v55 }
  0xb3   :  { %v148_v61 = vpop.f32.mrf.mxu0  ;;  %v248_v62 = vld [vmem:[#allocation2 + $0x12] sm:$0xff]  ;;  %v383_v0 = vadd.f32 %v377_v59, %v345_v57  ;;  %v497_v3 = vadd.f32 %v491_v1, %v469_v60  ;;  %v178_v60 = vpop.f32.mrf.mxu2 }
  0xb4   :  { %v5700_v63 = vld [vmem:[#allocation2 + $0x14] sm:$0xff]  ;;  %189 = vst.msk [vmem:[#allocation2 + $0x20] sm:$0xff] %vm184_vm1, %v148_v61  ;;  %v519_v4 = vsel %vm224_vm11, %v248_v62, 0.0  ;;  %v256_v5 = vsel %vm245_vm3, %v248_v62, 0.0  ;;  %v408_v7 = vsel %vm388_vm7, %v248_v62, 0.0 }
  0xb5   :  { %v262_v6 = vadd.f32 %v256_v5, %v214_v2  ;;  %v5713_v8 = vld [vmem:[#allocation2 + $0x16] sm:$0xff]  ;;  %v298_v9 = vsel %vm287_vm4, %v5700_v63, 0.0  ;;  %v525_v10 = vadd.f32 %v519_v4, %v497_v3  ;;  %v5718_v11 = vadd.f32 %v408_v7, %v383_v0  ;;  %199 = vst.msk [vmem:[#allocation2 + $0x70] sm:$0xff] %vm184_vm1, %v178_v60 }
  0xb6   :  { %v5720_v13 = vld [vmem:[#allocation2 + $0x18] sm:$0xff]  ;;  %v340_v15 = vsel %vm329_vm5, %v5713_v8, 0.0 }
  0xb7   :  { %v304_v12 = vadd.f32 %v298_v9, %v262_v6  ;;  %v545_v14 = vsel %vm184_vm1, %v525_v10, 0.0  ;;  %v378_v17 = vsel %vm371_vm6, %v5720_v13, 0.0  ;;  %v215_v22 = vsel %vm203_vm2, %v5720_v13, 0.0 }
  0xb8   :  { %546 = vadd.xlane.f32.xlu0 %v545_v14 }
  0xb9   :  { %v346_v16 = vadd.f32 %v340_v15, %v304_v12  ;;  %v175_v59 = vpop.f32.mrf.mxu1 }
  0xba   :  { %198 = vst.msk [vmem:[#allocation2 + $0x68] sm:$0xff] %vm184_vm1, %v175_v59 }
  0xbb   :  { %v151_v18 = vpop.f32.mrf.mxu0  ;;  %v5729_v19 = vld [vmem:[#allocation2 + $0x1a] sm:$0xff]  ;;  %v384_v20 = vadd.f32 %v378_v17, %v346_v16 }
  0xbc   :  { %v291_v21 = vld [vmem:[#allocation2 + $0x1c] sm:$0xff]  ;;  %190 = vst.msk [vmem:[#allocation2 + $0x28] sm:$0xff] %vm184_vm1, %v151_v18  ;;  %v257_v23 = vsel %vm245_vm3, %v5729_v19, 0.0  ;;  %v409_v25 = vsel %vm388_vm7, %v5729_v19, 0.0 }
  0xbd   :  { %v263_v27 = vadd.f32 %v257_v23, %v215_v22  ;;  %v5741_v28 = vadd.f32 %v409_v25, %v384_v20  ;;  %v333_v29 = vld [vmem:[#allocation2 + $0x1e] sm:$0xff]  ;;  %v299_v30 = vsel %vm287_vm4, %v291_v21, 0.0 }
  0xbe   :  { %v208_v31 = vld [vmem:[#allocation2 + $0x20] sm:$0xff]  ;;  %v341_v33 = vsel %vm329_vm5, %v333_v29, 0.0 }
  0xbf   :  { %v305_v32 = vadd.f32 %v299_v30, %v263_v27  ;;  %v379_v35 = vsel %vm371_vm6, %v208_v31, 0.0  ;;  %v216_v40 = vsel %vm203_vm2, %v208_v31, 0.0 }
  0xc1   :  { %v347_v34 = vadd.f32 %v341_v33, %v305_v32 }
  0xc3   :  { %v154_v36 = vpop.f32.mrf.mxu0  ;;  %v250_v37 = vld [vmem:[#allocation2 + $0x22] sm:$0xff]  ;;  %v385_v38 = vadd.f32 %v379_v35, %v347_v34 }
  0xc4   :  { %v292_v39 = vld [vmem:[#allocation2 + $0x24] sm:$0xff]  ;;  %191 = vst.msk [vmem:[#allocation2 + $0x30] sm:$0xff] %vm184_vm1, %v154_v36  ;;  %v258_v41 = vsel %vm245_vm3, %v250_v37, 0.0  ;;  %v410_v42 = vsel %vm388_vm7, %v250_v37, 0.0 }
  0xc5   :  { %v264_v43 = vadd.f32 %v258_v41, %v216_v40  ;;  %v5756_v44 = vadd.f32 %v410_v42, %v385_v38  ;;  %v334_v45 = vld [vmem:[#allocation2 + $0x26] sm:$0xff]  ;;  %v300_v46 = vsel %vm287_vm4, %v292_v39, 0.0 }
  0xc6   :  { %v372_v48 = vld [vmem:[#allocation2 + $0x28] sm:$0xff]  ;;  %v342_v49 = vsel %vm329_vm5, %v334_v45, 0.0 }
  0xc7   :  { %v306_v47 = vadd.f32 %v300_v46, %v264_v43  ;;  %v380_v51 = vsel %vm371_vm6, %v372_v48, 0.0 }
  0xc9   :  { %v348_v50 = vadd.f32 %v342_v49, %v306_v47 }
  0xcb   :  { %v157_v52 = vpop.f32.mrf.mxu0  ;;  %v386_v53 = vadd.f32 %v380_v51, %v348_v50  ;;  %v405_v54 = vld [vmem:[#allocation2 + $0x2a] sm:$0xff] }
  0xcc   :  { %192 = vst.msk [vmem:[#allocation2 + $0x38] sm:$0xff] %vm184_vm1, %v157_v52  ;;  %v411_v56 = vsel %vm388_vm7, %v405_v54, 0.0 }
  0xcd   :  { %v5768_v57 = vadd.f32 %v411_v56, %v386_v53 }
  0xd3   :  { %v160_v58 = vpop.f32.mrf.mxu0 }
  0xd4   :  { %193 = vst.msk [vmem:[#allocation2 + $0x40] sm:$0xff] %vm184_vm1, %v160_v58 }
  0xdb   :  { %v163_v61 = vpop.f32.mrf.mxu0  ;;  %v225_v62 = vld [vmem:[#allocation2 + $0x40] sm:$0xff] }
  0xdc   :  { %194 = vst.msk [vmem:[#allocation2 + $0x48] sm:$0xff] %vm184_vm1, %v163_v61  ;;  %v233_v3 = vsel %vm224_vm11, %v225_v62, 0.0 }
  0xe3   :  { %v166_v0 = vpop.f32.mrf.mxu0  ;;  %v267_v1 = vld [vmem:[#allocation2 + $0x42] sm:$0xff] }
  0xe4   :  { %v309_v2 = vld [vmem:[#allocation2 + $0x44] sm:$0xff]  ;;  %195 = vst.msk [vmem:[#allocation2 + $0x50] sm:$0xff] %vm184_vm1, %v166_v0  ;;  %v275_v4 = vsel %vm266_vm10, %v267_v1, 0.0 }
  0xe5   :  { %v281_v5 = vadd.f32 %v275_v4, %v233_v3  ;;  %v351_v6 = vld [vmem:[#allocation2 + $0x46] sm:$0xff]  ;;  %v317_v7 = vsel %vm308_vm9, %v309_v2, 0.0 }
  0xe6   :  { %v226_v9 = vld [vmem:[#allocation2 + $0x48] sm:$0xff]  ;;  %v359_v12 = vsel %vm350_vm8, %v351_v6, 0.0 }
  0xe7   :  { %v323_v10 = vadd.f32 %v317_v7, %v281_v5  ;;  %v393_v15 = vsel %vm388_vm7, %v226_v9, 0.0  ;;  %v234_v21 = vsel %vm224_vm11, %v226_v9, 0.0 }
  0xe9   :  { %v365_v14 = vadd.f32 %v359_v12, %v323_v10 }
  0xeb   :  { %v169_v16 = vpop.f32.mrf.mxu0  ;;  %v268_v17 = vld [vmem:[#allocation2 + $0x4a] sm:$0xff]  ;;  %v399_v20 = vadd.f32 %v393_v15, %v365_v14 }
  0xec   :  { %v310_v18 = vld [vmem:[#allocation2 + $0x4c] sm:$0xff]  ;;  %196 = vst.msk [vmem:[#allocation2 + $0x58] sm:$0xff] %vm184_vm1, %v169_v16  ;;  %v276_v22 = vsel %vm266_vm10, %v268_v17, 0.0  ;;  %v421_v27 = vsel %vm371_vm6, %v268_v17, 0.0 }
  0xed   :  { %v282_v23 = vadd.f32 %v276_v22, %v234_v21  ;;  %v352_v25 = vld [vmem:[#allocation2 + $0x4e] sm:$0xff]  ;;  %v318_v29 = vsel %vm308_vm9, %v310_v18, 0.0  ;;  %v427_v30 = vadd.f32 %v421_v27, %v399_v20  ;;  %v449_v33 = vsel %vm329_vm5, %v310_v18, 0.0  ;;  %v582_v16 = vld [vmem:[%s7881_s2] ss:$2 sm:$0x3] }
  0xee   :  { %v227_v31 = vld [vmem:[#allocation2 + $0x50] sm:$0xff]  ;;  %v360_v34 = vsel %vm350_vm8, %v352_v25, 0.0  ;;  %v477_v37 = vsel %vm287_vm4, %v352_v25, 0.0  ;;  %v4976_v17 = vld [vmem:[%s7881_s2 + $0x1] ss:$2 sm:$0x3] }
  0xef   :  { %v324_v32 = vadd.f32 %v318_v29, %v282_v23  ;;  %v455_v35 = vadd.f32 %v449_v33, %v427_v30  ;;  %v394_v38 = vsel %vm388_vm7, %v227_v31, 0.0  ;;  %v235_v40 = vsel %vm224_vm11, %v227_v31, 0.0  ;;  %v631_v23 = vld [vmem:[%s7884_s5] ss:$2 sm:$0x3]  ;;  %s5523_s2 = smov 64  }
  0xf0   :  { %v505_v43 = vsel %vm245_vm3, %v227_v31, 0.0  ;;  %v5855_v18 = vperm.slane %v582_v16, 0  ;;  %v5857_v20 = vperm.slane %v582_v16, 1  ;;  %v5859_v21 = vperm.slane %v4976_v17, 0  ;;  %v5939_v16 = vld [vmem:[#allocation5 + $0x18] sm:$0xff] }
  0xf1   :  { %v366_v36 = vadd.f32 %v360_v34, %v324_v32  ;;  %v483_v39 = vadd.f32 %v477_v37, %v455_v35  ;;  %v5861_v22 = vperm.slane %v4976_v17, 1  ;;  %v5866_v25 = vperm.slane %v631_v23, 0 }
  0xf2   :  { %v5868_v27 = vperm.slane %v631_v23, 1 }
  0xf3   :  { %v269_v41 = vld [vmem:[#allocation2 + $0x52] sm:$0xff]  ;;  %v400_v42 = vadd.f32 %v394_v38, %v366_v36  ;;  %v5806_v45 = vld [vmem:[#allocation2 + $0x5a] sm:$0xff]  ;;  %v511_v46 = vadd.f32 %v505_v43, %v483_v39  ;;  %v661_v38 = vadd.s32 128, %v5660_v26  ;;  %v7888_v43 = vmov 0.0  }
  0xf4   :  { %v533_v47 = vsel %vm203_vm2, %v269_v41, 0.0  ;;  %v277_v48 = vsel %vm266_vm10, %v269_v41, 0.0  ;;  %v422_v49 = vsel %vm371_vm6, %v269_v41, 0.0  ;;  %v5814_v50 = vld [vmem:[#allocation2 + $0x54] sm:$0xff]  ;;  %v278_v56 = vsel %vm266_vm10, %v5806_v45, 0.0  ;;  %v312_v60 = vld [vmem:[#allocation2 + $0x5c] sm:$0xff] }
  0xf5   :  { %v283_v51 = vadd.f32 %v277_v48, %v235_v40  ;;  %v5816_v52 = vadd.f32 %v422_v49, %v400_v42  ;;  %v5818_v53 = vld [vmem:[#allocation2 + $0x58] sm:$0xff]  ;;  %v539_v55 = vadd.f32 %v533_v47, %v511_v46  ;;  %v319_v58 = vsel %vm308_vm9, %v5814_v50, 0.0 }
  0xf6   :  { %v5820_v54 = vld [vmem:[#allocation2 + $0x56] sm:$0xff]  ;;  %v236_v0 = vsel %vm224_vm11, %v5818_v53, 0.0  ;;  %v354_v3 = vld [vmem:[#allocation2 + $0x5e] sm:$0xff]  ;;  %v395_v4 = vsel %vm388_vm7, %v5818_v53, 0.0  ;;  %v320_v5 = vsel %vm308_vm9, %v312_v60, 0.0  ;;  %v423_v9 = vsel %vm371_vm6, %v5806_v45, 0.0 }
  0xf7   :  { %v325_v59 = vadd.f32 %v319_v58, %v283_v51  ;;  %v564_v61 = vsel %vm184_vm1, %v539_v55, 0.0  ;;  %v361_v62 = vsel %vm350_vm8, %v5820_v54, 0.0  ;;  %v284_v2 = vadd.f32 %v278_v56, %v236_v0  ;;  %v61_v60 = vld [vmem:[%s7879_s0 + $0x78] sm:$0xff] }
  0xf8   :  { %565 = vadd.xlane.f32.xlu0 %v564_v61  ;;  %v362_v10 = vsel %vm350_vm8, %v354_v3, 0.0  ;;  %vm663_vm12 = vcmp.lt.s32.totalorder %v661_v38, 192  ;;  %v5521_v40 = vmov 1.0   ;;  %v5892_v61 = vld [vmem:[#allocation5 + $0x78] sm:$0xff]  ;;  %4975 = vmatmul.msk.f32.gmra.mxu2 %vm70_vm0, %v61_v60  ;;  %v5898_v0 = vld [vmem:[#allocation5 + $0x68] sm:$0xff] }
  0xf9   :  { %v367_v1 = vadd.f32 %v361_v62, %v325_v59  ;;  %v326_v7 = vadd.f32 %v320_v5, %v284_v2  ;;  %v5877_v41 = vsel %vm663_vm12, 0.5, %v5521_v40  ;;  %v5880_v46 = vsel %vm663_vm12, 0.5, %v7888_v43  ;;  %v5894_v62 = vld [vmem:[#allocation5 + $0x70] sm:$0xff]  ;;  %749 = vmatpush.msrb.mxu2 %v5892_v61  ;;  %v5907_v3 = vld [vmem:[#allocation5 + $0x58] sm:$0xff]  ;;  %v5915_v5 = vld [vmem:[#allocation5 + $0x48] sm:$0xff] }
  0xfa   :  { %729 = vmatpush.msrb.mxu1 %v5894_v62  ;;  %v5903_v2 = vld [vmem:[#allocation5 + $0x50] sm:$0xff]  ;;  %816 = vmatpush.msra.mxu3 %v5894_v62  ;;  %vm969_vm12 = vcmask 523270  }
  0xfb   :  { %v401_v6 = vadd.f32 %v395_v4, %v367_v1  ;;  %v5847_v14 = vadd.f32 %v362_v10, %v326_v7  ;;  %v5900_v1 = vld [vmem:[#allocation5 + $0x60] sm:$0xff]  ;;  %1734 = vmatpush.msrb.mxu0 %v5894_v62  ;;  %750 = vmatpush.msrb.mxu2 %v5898_v0  ;;  %v5923_v7 = vld [vmem:[#allocation5 + $0x38] sm:$0xff]  ;;  %v5931_v10 = vld [vmem:[#allocation5 + $0x28] sm:$0xff] }
  0xfc   :  { %730 = vmatpush.msrb.mxu1 %v5900_v1  ;;  %v5911_v4 = vld [vmem:[#allocation5 + $0x40] sm:$0xff]  ;;  %817 = vmatpush.msra.mxu3 %v5900_v1 }
  0xfd   :  { %v5845_v12 = vadd.f32 %v423_v9, %v401_v6  ;;  %1735 = vmatpush.msrb.mxu0 %v5900_v1  ;;  %751 = vmatpush.msrb.mxu2 %v5907_v3  ;;  %v5919_v6 = vld [vmem:[#allocation5 + $0x30] sm:$0xff]  ;;  %v5927_v9 = vld [vmem:[#allocation5 + $0x20] sm:$0xff] }
  0xfe   :  { %731 = vmatpush.msrb.mxu1 %v5903_v2  ;;  %818 = vmatpush.msra.mxu3 %v5903_v2 }
  0xff   :  { %1736 = vmatpush.msrb.mxu0 %v5903_v2  ;;  %752 = vmatpush.msrb.mxu2 %v5915_v5 }
 0x100   :  { %732 = vmatpush.msrb.mxu1 %v5911_v4  ;;  %819 = vmatpush.msra.mxu3 %v5911_v4 }
 0x101   :  { %1737 = vmatpush.msrb.mxu0 %v5911_v4  ;;  %753 = vmatpush.msrb.mxu2 %v5923_v7 }
 0x102   :  { %733 = vmatpush.msrb.mxu1 %v5919_v6  ;;  %820 = vmatpush.msra.mxu3 %v5919_v6 }
 0x103   :  { %1738 = vmatpush.msrb.mxu0 %v5919_v6  ;;  %754 = vmatpush.msrb.mxu2 %v5931_v10 }
 0x104   :  { %734 = vmatpush.msrb.mxu1 %v5927_v9  ;;  %821 = vmatpush.msra.mxu3 %v5927_v9 }
 0x105   :  { %1739 = vmatpush.msrb.mxu0 %v5927_v9  ;;  %755 = vmatpush.msrb.mxu2 %v5939_v16 }
 0x12b   :  { %v547_v15 = vpop.xlane.xlu0 %546 }
 0x12c   :  { %v588_v30 = vmul.f32 %v5855_v18, %v547_v15  ;;  %v589_v31 = vmul.f32 %v5857_v20, %v547_v15  ;;  %v5935_v15 = vld [vmem:[#allocation5 + $0x10] sm:$0xff] }
 0x12d   :  { %735 = vmatpush.msrb.mxu1 %v5935_v15  ;;  %822 = vmatpush.msra.mxu3 %v5935_v15 }
 0x12e   :  { %1740 = vmatpush.msrb.mxu0 %v5935_v15 }
 0x16b   :  { %v566_v29 = vpop.xlane.xlu0 %565 }
 0x16c   :  { %v607_v32 = vmul.f32 %v5859_v21, %v566_v29  ;;  %v608_v33 = vmul.f32 %v5861_v22, %v566_v29 }
 0x16e   :  { %v619_v34 = vadd.f32 %v607_v32, %v588_v30  ;;  %v620_v35 = vadd.f32 %v608_v33, %v589_v31  ;;  %v5953_v31 = vld [vmem:[#allocation5 + $0x8] sm:$0xff]  ;;  %v5955_v32 = vld [vmem:[#allocation5] sm:$0xff] }
 0x16f   :  { %756 = vmatpush.msrb.mxu2 %v5953_v31  ;;  %736 = vmatpush.msrb.mxu1 %v5955_v32 }
 0x170   :  { %v637_v36 = vadd.f32 %v5866_v25, %v619_v34  ;;  %v638_v37 = vadd.f32 %v5868_v27, %v620_v35  ;;  %823 = vmatpush.msra.mxu3 %v5955_v32  ;;  %1741 = vmatpush.msrb.mxu0 %v5955_v32 }
 0x171   :  { %836 = vmatpush.msra.mxu1 %v5892_v61  ;;  %903 = vmatpush.msra.mxu2 %v5894_v62 }
 0x172   :  { %649 = vst [vmem:[#allocation3 + $0x30] sm:$0xff] %v637_v36  ;;  %923 = vmatpush.msrb.mxu3 %v5892_v61  ;;  %1904 = vmatpush.msra.mxu0 %v5894_v62 }
 0x173   :  { %650 = vst [vmem:[#allocation3] sm:$0xff] %v638_v37  ;;  %837 = vmatpush.msra.mxu1 %v5898_v0  ;;  %904 = vmatpush.msra.mxu2 %v5900_v1 }
 0x174   :  { %924 = vmatpush.msrb.mxu3 %v5898_v0  ;;  %1905 = vmatpush.msra.mxu0 %v5900_v1 }
 0x175   :  { %838 = vmatpush.msra.mxu1 %v5907_v3  ;;  %905 = vmatpush.msra.mxu2 %v5903_v2 }
 0x176   :  { %925 = vmatpush.msrb.mxu3 %v5907_v3  ;;  %1906 = vmatpush.msra.mxu0 %v5903_v2 }
 0x177   :  { %839 = vmatpush.msra.mxu1 %v5915_v5  ;;  %906 = vmatpush.msra.mxu2 %v5911_v4 }
 0x178   :  { %926 = vmatpush.msrb.mxu3 %v5915_v5  ;;  %1907 = vmatpush.msra.mxu0 %v5911_v4 }
 0x179   :  { %v684_v49 = vld [vmem:[#allocation3 + $0x30] sm:$0x3]  ;;  %840 = vmatpush.msra.mxu1 %v5923_v7  ;;  %907 = vmatpush.msra.mxu2 %v5919_v6 }
 0x17a   :  { %v685_v39 = vld [vmem:[#allocation3] sm:$0x3]  ;;  %927 = vmatpush.msrb.mxu3 %v5923_v7  ;;  %1908 = vmatpush.msra.mxu0 %v5919_v6  ;;  %v718_v38 = vld [vmem:[#allocation3] sm:$0xc] }
 0x17b   :  { %5108 = vtanh.f32 %v685_v39  ;;  %841 = vmatpush.msra.mxu1 %v5931_v10  ;;  %908 = vmatpush.msra.mxu2 %v5927_v9  ;;  %v181_v35 = vpop.f32.mrf.mxu2 }
 0x17c   :  { %5110 = vtanh.f32 %v684_v49  ;;  %928 = vmatpush.msrb.mxu3 %v5931_v10  ;;  %1909 = vmatpush.msra.mxu0 %v5927_v9  ;;  %200 = vst.msk [vmem:[#allocation2 + $0x78] sm:$0xff] %vm184_vm1, %v181_v35 }
 0x17d   :  { %842 = vmatpush.msra.mxu1 %v5939_v16  ;;  %909 = vmatpush.msra.mxu2 %v5935_v15 }
 0x17e   :  { %929 = vmatpush.msrb.mxu3 %v5939_v16  ;;  %1910 = vmatpush.msra.mxu0 %v5935_v15 }
 0x17f   :  { %843 = vmatpush.msra.mxu1 %v5953_v31  ;;  %910 = vmatpush.msra.mxu2 %v5955_v32 }
 0x180   :  { %930 = vmatpush.msrb.mxu3 %v5953_v31  ;;  %1911 = vmatpush.msra.mxu0 %v5955_v32 }
 0x181   :  { %v5109_v42 = vpop.eup %5108 }
 0x182   :  { %v689_v47 = vmul.f32 %v5109_v42, %v5877_v41  ;;  %v5111_v51 = vpop.eup %5110 }
 0x183   :  { %v688_v55 = vmul.f32 0.5, %v5111_v51  ;;  %v717_v51 = vld [vmem:[#allocation3 + $0x30] sm:$0xc] }
 0x184   :  { %v5884_v48 = vadd.f32 %v689_v47, %v5880_v46 }
 0x185   :  { %v690_v56 = vadd.f32 0.5, %v688_v55 }
 0x186   :  { %694 = vrot.lane.b32.xlu1 %v5884_v48, %s5523_s2 }
 0x187   :  { %v692_v17 = vmul.f32 0.0, %v690_v56 }
 0x1f8   :  { %v695_v58 = vpop.permute.xlu1 %694 }
 0x1f9   :  { %v697_v59 = vmul.f32 %v695_v58, %v690_v56 }
 0x1fb   :  { %699 = vrot.lane.b32.xlu1 %v697_v59, %s5523_s2 }
 0x26d   :  { %v700_v23 = vpop.permute.xlu1 %699 }
 0x26e   :  { %v5949_v29 = vadd.f32 %v700_v23, %v692_v17 }
 0x270   :  { %5112 = vtanh.f32 %v5949_v29  ;;  %v776_v23 = vrot.slane %v5949_v29, 6 }
 0x276   :  { %v5113_v30 = vpop.eup %5112 }
 0x277   :  { %705 = vrot.lane.b32.xlu2 %v5113_v30, %s5523_s2 }
 0x2d1   :  { %v706_v33 = vpop.permute.xlu2 %705 }
 0x2d2   :  { %v5994_v34 = vmul.f32 %v706_v33, %v5884_v48 }
 0x2d4   :  { %4977 = vmatmul.msk.f32.vlgmr.msrb.gmra.mxu1 %vm70_vm0, %v5994_v34  ;;  %4978 = vmatmul.msk.f32.vlgmr.msrb.gmra.mxu2 %vm70_vm0, %v5994_v34  ;;  %710 = vst.msk [vmem:[#allocation4] sm:$0x3] %vm709_vm13, %v5994_v34 }
 0x2d5   :  { %990 = vmatpush.msrb.mxu1 %v5894_v62  ;;  %1010 = vmatpush.msrb.mxu2 %v5892_v61 }
 0x2d7   :  { %991 = vmatpush.msrb.mxu1 %v5900_v1  ;;  %1011 = vmatpush.msrb.mxu2 %v5898_v0 }
 0x2d9   :  { %992 = vmatpush.msrb.mxu1 %v5903_v2  ;;  %1012 = vmatpush.msrb.mxu2 %v5907_v3 }
 0x2db   :  { %993 = vmatpush.msrb.mxu1 %v5911_v4  ;;  %1013 = vmatpush.msrb.mxu2 %v5915_v5 }
 0x2dd   :  { %994 = vmatpush.msrb.mxu1 %v5919_v6  ;;  %1014 = vmatpush.msrb.mxu2 %v5923_v7 }
 0x2df   :  { %995 = vmatpush.msrb.mxu1 %v5927_v9  ;;  %1015 = vmatpush.msrb.mxu2 %v5931_v10 }
 0x2e1   :  { %996 = vmatpush.msrb.mxu1 %v5935_v15  ;;  %1016 = vmatpush.msrb.mxu2 %v5939_v16 }
 0x2e3   :  { %997 = vmatpush.msrb.mxu1 %v5955_v32  ;;  %1017 = vmatpush.msrb.mxu2 %v5953_v31 }
 0x351   :  { %v738_v48 = vpop.f32.mrf.mxu1 }
 0x352   :  { %v763_v49 = vrot.slane %v738_v48, 6 }
 0x354   :  { %v767_v55 = vadd.f32 %v763_v49, %v717_v51 }
 0x357   :  { %v758_v36 = vpop.f32.mrf.mxu2 }
 0x358   :  { %v764_v37 = vrot.slane %v758_v36, 6 }
 0x35a   :  { %v768_v39 = vadd.f32 %v764_v37, %v718_v38 }
 0x35c   :  { %5114 = vtanh.f32 %v768_v39 }
 0x35d   :  { %5116 = vtanh.f32 %v767_v55 }
 0x362   :  { %v5115_v40 = vpop.eup %5114 }
 0x363   :  { %v772_v42 = vmul.f32 %v5115_v40, %v5877_v41  ;;  %v5117_v56 = vpop.eup %5116 }
 0x364   :  { %v771_v58 = vmul.f32 0.5, %v5117_v56 }
 0x365   :  { %v774_v47 = vadd.f32 %v772_v42, %v5880_v46  ;;  %v804_v42 = vld [vmem:[#allocation3] sm:$0x30] }
 0x366   :  { %v773_v59 = vadd.f32 0.5, %v771_v58  ;;  %v803_v58 = vld [vmem:[#allocation3 + $0x30] sm:$0x30] }
 0x367   :  { %780 = vrot.lane.b32.xlu2 %v774_v47, %s5523_s2 }
 0x368   :  { %v778_v30 = vmul.f32 %v776_v23, %v773_v59 }
 0x3c1   :  { %v781_v60 = vpop.permute.xlu2 %780 }
 0x3c2   :  { %v783_v17 = vmul.f32 %v781_v60, %v773_v59 }
 0x3c4   :  { %785 = vrot.lane.b32.xlu0 %v783_v17, %s5523_s2 }
 0x436   :  { %v786_v33 = vpop.permute.xlu0 %785 }
 0x437   :  { %v788_v35 = vadd.f32 %v786_v33, %v778_v30 }
 0x439   :  { %5118 = vtanh.f32 %v788_v35 }
 0x43f   :  { %v5119_v36 = vpop.eup %5118 }
 0x440   :  { %791 = vrot.lane.b32.xlu1 %v5119_v36, %s5523_s2  ;;  %v863_v36 = vrot.slane %v788_v35, 6 }
 0x4b2   :  { %v792_v37 = vpop.permute.xlu1 %791 }
 0x4b3   :  { %v6025_v38 = vmul.f32 %v792_v37, %v774_v47 }
 0x4b5   :  { %796 = vst.msk [vmem:[#allocation4] sm:$0xc] %vm795_vm14, %v6025_v38  ;;  %v805_v39 = vrot.slane %v6025_v38, 2 }
 0x4b7   :  { %4979 = vmatmul.msk.f32.vlgmr.msra.gmra.mxu3 %vm70_vm0, %v805_v39  ;;  %4980 = vmatmul.msk.f32.vlgmr.msra.gmra.mxu1 %vm70_vm0, %v805_v39 }
 0x4b8   :  { %1068 = vmatpush.msra.mxu3 %v5894_v62  ;;  %1088 = vmatpush.msra.mxu1 %v5892_v61 }
 0x4ba   :  { %1069 = vmatpush.msra.mxu3 %v5900_v1  ;;  %1089 = vmatpush.msra.mxu1 %v5898_v0 }
 0x4bc   :  { %1070 = vmatpush.msra.mxu3 %v5903_v2  ;;  %1090 = vmatpush.msra.mxu1 %v5907_v3 }
 0x4be   :  { %1071 = vmatpush.msra.mxu3 %v5911_v4  ;;  %1091 = vmatpush.msra.mxu1 %v5915_v5 }
 0x4c0   :  { %1072 = vmatpush.msra.mxu3 %v5919_v6  ;;  %1092 = vmatpush.msra.mxu1 %v5923_v7 }
 0x4c2   :  { %1073 = vmatpush.msra.mxu3 %v5927_v9  ;;  %1093 = vmatpush.msra.mxu1 %v5931_v10 }
 0x4c4   :  { %1074 = vmatpush.msra.mxu3 %v5935_v15  ;;  %1094 = vmatpush.msra.mxu1 %v5939_v16 }
 0x4c6   :  { %1075 = vmatpush.msra.mxu3 %v5955_v32  ;;  %1095 = vmatpush.msra.mxu1 %v5953_v31 }
 0x534   :  { %v845_v29 = vpop.f32.mrf.mxu1 }
 0x535   :  { %v851_v40 = vrot.slane %v845_v29, 4 }
 0x537   :  { %v855_v47 = vadd.f32 %v851_v40, %v804_v42 }
 0x539   :  { %5120 = vtanh.f32 %v855_v47 }
 0x53a   :  { %v825_v55 = vpop.f32.mrf.mxu3 }
 0x53b   :  { %v850_v56 = vrot.slane %v825_v55, 4 }
 0x53d   :  { %v854_v59 = vadd.f32 %v850_v56, %v803_v58 }
 0x53f   :  { %v5121_v48 = vpop.eup %5120  ;;  %5122 = vtanh.f32 %v854_v59 }
 0x540   :  { %v859_v49 = vmul.f32 %v5121_v48, %v5877_v41 }
 0x542   :  { %v861_v51 = vadd.f32 %v859_v49, %v5880_v46 }
 0x544   :  { %867 = vrot.lane.b32.xlu2 %v861_v51, %s5523_s2 }
 0x545   :  { %v5123_v60 = vpop.eup %5122 }
 0x546   :  { %v858_v17 = vmul.f32 0.5, %v5123_v60  ;;  %v436_v60 = vsel %vm350_vm8, %v5700_v63, 0.0 }
 0x548   :  { %v860_v23 = vadd.f32 0.5, %v858_v17  ;;  %v442_v17 = vadd.f32 %v436_v60, %v5718_v11  ;;  %v506_v60 = vsel %vm245_vm3, %v5818_v53, 0.0 }
 0x54a   :  { %v865_v37 = vmul.f32 %v863_v36, %v860_v23 }
 0x59e   :  { %v868_v30 = vpop.permute.xlu2 %867 }
 0x59f   :  { %v870_v33 = vmul.f32 %v868_v30, %v860_v23  ;;  %v464_v23 = vsel %vm308_vm9, %v5713_v8, 0.0 }
 0x5a0   :  { %v470_v30 = vadd.f32 %v464_v23, %v442_v17  ;;  %v534_v23 = vsel %vm203_vm2, %v5806_v45, 0.0 }
 0x5a1   :  { %872 = vrot.lane.b32.xlu1 %v870_v33, %s5523_s2  ;;  %v492_v33 = vsel %vm266_vm10, %v5720_v13, 0.0  ;;  %v450_v13 = vsel %vm329_vm5, %v5814_v50, 0.0 }
 0x5a2   :  { %v498_v36 = vadd.f32 %v492_v33, %v470_v30 }
 0x613   :  { %v873_v39 = vpop.permute.xlu1 %872 }
 0x614   :  { %v6052_v29 = vadd.f32 %v873_v39, %v865_v37  ;;  %v520_v37 = vsel %vm224_vm11, %v5729_v19, 0.0  ;;  %v456_v19 = vadd.f32 %v450_v13, %v5816_v52 }
 0x615   :  { %v526_v39 = vadd.f32 %v520_v37, %v498_v36 }
 0x616   :  { %5124 = vtanh.f32 %v6052_v29  ;;  %v950_v50 = vrot.slane %v6052_v29, 6 }
 0x61c   :  { %v5125_v40 = vpop.eup %5124 }
 0x61d   :  { %878 = vrot.lane.b32.xlu2 %v5125_v40, %s5523_s2  ;;  %v548_v40 = vsel %vm184_vm1, %v526_v39, 0.0 }
 0x677   :  { %v879_v42 = vpop.permute.xlu2 %878 }
 0x678   :  { %v6056_v47 = vmul.f32 %v879_v42, %v861_v51  ;;  %v891_v51 = vld [vmem:[#allocation3] sm:$0xc0]  ;;  %v890_v42 = vld [vmem:[#allocation3 + $0x30] sm:$0xc0] }
 0x67a   :  { %7891 = vst [vmem:[#allocation11_spill] sm:$0xff] %v6056_v47  ;;  %v892_v48 = vrot.slane %v6056_v47, 4 }
 0x67b   :  { %883 = vst.msk [vmem:[#allocation4] sm:$0x30] %vm882_vm15, %v6056_v47 }
 0x67c   :  { %4981 = vmatmul.msk.f32.vlgmr.msra.gmra.mxu2 %vm70_vm0, %v892_v48  ;;  %4982 = vmatmul.msk.f32.vlgmr.msrb.gmra.mxu3 %vm70_vm0, %v892_v48 }
 0x67d   :  { %1153 = vmatpush.msra.mxu2 %v5894_v62  ;;  %1173 = vmatpush.msrb.mxu3 %v5892_v61 }
 0x67f   :  { %1154 = vmatpush.msra.mxu2 %v5900_v1  ;;  %1174 = vmatpush.msrb.mxu3 %v5898_v0 }
 0x681   :  { %1155 = vmatpush.msra.mxu2 %v5903_v2  ;;  %1175 = vmatpush.msrb.mxu3 %v5907_v3 }
 0x683   :  { %1156 = vmatpush.msra.mxu2 %v5911_v4  ;;  %1176 = vmatpush.msrb.mxu3 %v5915_v5 }
 0x685   :  { %1157 = vmatpush.msra.mxu2 %v5919_v6  ;;  %1177 = vmatpush.msrb.mxu3 %v5923_v7 }
 0x687   :  { %1158 = vmatpush.msra.mxu2 %v5927_v9  ;;  %1178 = vmatpush.msrb.mxu3 %v5931_v10 }
 0x689   :  { %1159 = vmatpush.msra.mxu2 %v5935_v15  ;;  %1179 = vmatpush.msrb.mxu3 %v5939_v16 }
 0x68b   :  { %1160 = vmatpush.msra.mxu2 %v5955_v32  ;;  %1180 = vmatpush.msrb.mxu3 %v5953_v31 }
 0x6ff   :  { %v932_v35 = vpop.f32.mrf.mxu3  ;;  %v912_v63 = vpop.f32.mrf.mxu2 }
 0x700   :  { %v938_v49 = vrot.slane %v932_v35, 2  ;;  %v937_v11 = vrot.slane %v912_v63, 2 }
 0x702   :  { %v942_v55 = vadd.f32 %v938_v49, %v891_v51  ;;  %v941_v48 = vadd.f32 %v937_v11, %v890_v42 }
 0x704   :  { %5126 = vtanh.f32 %v942_v55 }
 0x705   :  { %5128 = vtanh.f32 %v941_v48 }
 0x70a   :  { %v5127_v56 = vpop.eup %5126 }
 0x70b   :  { %v946_v58 = vmul.f32 %v5127_v56, %v5877_v41  ;;  %v5129_v8 = vpop.eup %5128  ;;  %v478_v56 = vsel %vm287_vm4, %v5820_v54, 0.0 }
 0x70c   :  { %v945_v35 = vmul.f32 0.5, %v5129_v8 }
 0x70d   :  { %v948_v59 = vadd.f32 %v946_v58, %v5880_v46  ;;  %v484_v58 = vadd.f32 %v478_v56, %v456_v19 }
 0x70e   :  { %v947_v49 = vadd.f32 0.5, %v945_v35 }
 0x70f   :  { %954 = vrot.lane.b32.xlu1 %v948_v59, %s5523_s2  ;;  %v512_v17 = vadd.f32 %v506_v60, %v484_v58 }
 0x710   :  { %v952_v52 = vmul.f32 %v950_v50, %v947_v49 }
 0x711   :  { %v540_v30 = vadd.f32 %v534_v23, %v512_v17 }
 0x713   :  { %v567_v33 = vsel %vm184_vm1, %v540_v30, 0.0 }
 0x739   :  { %549 = vadd.xlane.f32.xlu1 %v548_v40 }
 0x781   :  { %v955_v51 = vpop.permute.xlu1 %954 }
 0x782   :  { %v957_v55 = vmul.f32 %v955_v51, %v947_v49 }
 0x784   :  { %959 = vrot.lane.b32.xlu2 %v957_v55, %s5523_s2 }
 0x7ac   :  { %v550_v39 = vpop.xlane.xlu1 %549 }
 0x7ad   :  { %568 = vadd.xlane.f32.xlu2 %v567_v33  ;;  %v590_v40 = vmul.f32 %v5855_v18, %v550_v39  ;;  %v591_v63 = vmul.f32 %v5857_v20, %v550_v39 }
 0x7de   :  { %v960_v36 = vpop.permute.xlu2 %959 }
 0x7df   :  { %v962_v37 = vadd.f32 %v960_v36, %v952_v52 }
 0x7e1   :  { %5130 = vtanh.f32 %v962_v37 }
 0x7e7   :  { %v5131_v54 = vpop.eup %5130 }
 0x7e8   :  { %965 = vrot.lane.b32.xlu0 %v5131_v54, %s5523_s2  ;;  %v1031_v54 = vrot.slane %v962_v37, 6 }
 0x820   :  { %v569_v53 = vpop.xlane.xlu2 %568 }
 0x821   :  { %v609_v45 = vmul.f32 %v5859_v21, %v569_v53  ;;  %v610_v11 = vmul.f32 %v5861_v22, %v569_v53 }
 0x823   :  { %v621_v42 = vadd.f32 %v609_v45, %v590_v40  ;;  %v622_v48 = vadd.f32 %v610_v11, %v591_v63 }
 0x825   :  { %v639_v29 = vadd.f32 %v5866_v25, %v621_v42  ;;  %v640_v8 = vadd.f32 %v5868_v27, %v622_v48 }
 0x827   :  { %651 = vst [vmem:[#allocation3 + $0x58] sm:$0xff] %v639_v29 }
 0x828   :  { %652 = vst [vmem:[#allocation3 + $0x18] sm:$0xff] %v640_v8 }
 0x82e   :  { %v977_v17 = vld [vmem:[#allocation3 + $0x58] sm:$0x3] }
 0x82f   :  { %v1057_v48 = vld [vmem:[#allocation3 + $0x18] sm:$0xc] }
 0x85a   :  { %v966_v35 = vpop.permute.xlu0 %965 }
 0x85b   :  { %v6119_v49 = vmul.f32 %v966_v35, %v948_v59  ;;  %v978_v59 = vld [vmem:[#allocation3 + $0x18] sm:$0x3] }
 0x85d   :  { %970 = vst.msk [vmem:[#allocation4] sm:$0xc0] %vm969_vm12, %v6119_v49  ;;  %v979_v51 = vrot.slane %v6119_v49, 6 }
 0x85f   :  { %4983 = vmatmul.msk.f32.vlgmr.msrb.gmra.mxu1 %vm70_vm0, %v979_v51  ;;  %4984 = vmatmul.msk.f32.vlgmr.msrb.gmra.mxu2 %vm70_vm0, %v979_v51 }
 0x860   :  { %1238 = vmatpush.msrb.mxu1 %v5894_v62  ;;  %1258 = vmatpush.msrb.mxu2 %v5892_v61 }
 0x862   :  { %1239 = vmatpush.msrb.mxu1 %v5900_v1  ;;  %1259 = vmatpush.msrb.mxu2 %v5898_v0 }
 0x864   :  { %1240 = vmatpush.msrb.mxu1 %v5903_v2  ;;  %1260 = vmatpush.msrb.mxu2 %v5907_v3 }
 0x866   :  { %1241 = vmatpush.msrb.mxu1 %v5911_v4  ;;  %1261 = vmatpush.msrb.mxu2 %v5915_v5 }
 0x868   :  { %1242 = vmatpush.msrb.mxu1 %v5919_v6  ;;  %1262 = vmatpush.msrb.mxu2 %v5923_v7 }
 0x86a   :  { %1243 = vmatpush.msrb.mxu1 %v5927_v9  ;;  %1263 = vmatpush.msrb.mxu2 %v5931_v10 }
 0x86c   :  { %1244 = vmatpush.msrb.mxu1 %v5935_v15  ;;  %1264 = vmatpush.msrb.mxu2 %v5939_v16 }
 0x86e   :  { %1245 = vmatpush.msrb.mxu1 %v5955_v32  ;;  %1265 = vmatpush.msrb.mxu2 %v5953_v31 }
 0x8dc   :  { %v999_v60 = vpop.f32.mrf.mxu1 }
 0x8dd   :  { %v1022_v23 = vadd.f32 %v999_v60, %v977_v17 }
 0x8e2   :  { %v1019_v55 = vpop.f32.mrf.mxu2 }
 0x8e3   :  { %v1023_v13 = vadd.f32 %v1019_v55, %v978_v59 }
 0x8e5   :  { %5132 = vtanh.f32 %v1023_v13  ;;  %v1056_v13 = vld [vmem:[#allocation3 + $0x58] sm:$0xc] }
 0x8e6   :  { %5134 = vtanh.f32 %v1022_v23 }
 0x8eb   :  { %v5133_v19 = vpop.eup %5132 }
 0x8ec   :  { %v1027_v56 = vmul.f32 %v5133_v19, %v5877_v41  ;;  %v5135_v30 = vpop.eup %5134 }
 0x8ed   :  { %v1026_v33 = vmul.f32 0.5, %v5135_v30 }
 0x8ee   :  { %v1029_v58 = vadd.f32 %v1027_v56, %v5880_v46 }
 0x8ef   :  { %v1028_v50 = vadd.f32 0.5, %v1026_v33 }
 0x8f0   :  { %1035 = vrot.lane.b32.xlu0 %v1029_v58, %s5523_s2 }
 0x8f1   :  { %v1033_v39 = vmul.f32 %v1031_v54, %v1028_v50 }
 0x962   :  { %v1036_v52 = vpop.permute.xlu0 %1035 }
 0x963   :  { %v1038_v36 = vmul.f32 %v1036_v52, %v1028_v50 }
 0x965   :  { %1040 = vrot.lane.b32.xlu0 %v1038_v36, %s5523_s2 }
 0x9d7   :  { %v1041_v53 = vpop.permute.xlu0 %1040 }
 0x9d8   :  { %v1043_v40 = vadd.f32 %v1041_v53, %v1033_v39 }
 0x9da   :  { %5136 = vtanh.f32 %v1043_v40  ;;  %v1115_v30 = vrot.slane %v1043_v40, 6 }
 0x9e0   :  { %v5137_v63 = vpop.eup %5136 }
 0x9e1   :  { %1046 = vrot.lane.b32.xlu0 %v5137_v63, %s5523_s2 }
 0xa53   :  { %v1047_v45 = vpop.permute.xlu0 %1046 }
 0xa54   :  { %v6147_v11 = vmul.f32 %v1047_v45, %v1029_v58  ;;  %v1141_v45 = vld [vmem:[#allocation3 + $0x18] sm:$0x30] }
 0xa56   :  { %4985 = vmatmul.msk.f32.vlgmr.msra.gmra.mxu3 %vm70_vm0, %v6147_v11  ;;  %4986 = vmatmul.msk.f32.vlgmr.msra.gmra.mxu1 %vm70_vm0, %v6147_v11  ;;  %1050 = vst.msk [vmem:[#allocation4 + $0x8] sm:$0x3] %vm709_vm13, %v6147_v11 }
 0xa57   :  { %1323 = vmatpush.msra.mxu3 %v5894_v62  ;;  %1343 = vmatpush.msra.mxu1 %v5892_v61 }
 0xa59   :  { %1324 = vmatpush.msra.mxu3 %v5900_v1  ;;  %1344 = vmatpush.msra.mxu1 %v5898_v0 }
 0xa5b   :  { %1325 = vmatpush.msra.mxu3 %v5903_v2  ;;  %1345 = vmatpush.msra.mxu1 %v5907_v3 }
 0xa5d   :  { %1326 = vmatpush.msra.mxu3 %v5911_v4  ;;  %1346 = vmatpush.msra.mxu1 %v5915_v5 }
 0xa5f   :  { %1327 = vmatpush.msra.mxu3 %v5919_v6  ;;  %1347 = vmatpush.msra.mxu1 %v5923_v7 }
 0xa61   :  { %1328 = vmatpush.msra.mxu3 %v5927_v9  ;;  %1348 = vmatpush.msra.mxu1 %v5931_v10 }
 0xa63   :  { %1329 = vmatpush.msra.mxu3 %v5935_v15  ;;  %1349 = vmatpush.msra.mxu1 %v5939_v16 }
 0xa65   :  { %1330 = vmatpush.msra.mxu3 %v5955_v32  ;;  %1350 = vmatpush.msra.mxu1 %v5953_v31 }
 0xad3   :  { %v1097_v37 = vpop.f32.mrf.mxu1 }
 0xad4   :  { %v1103_v42 = vrot.slane %v1097_v37, 6 }
 0xad6   :  { %v1107_v29 = vadd.f32 %v1103_v42, %v1057_v48 }
 0xad8   :  { %5138 = vtanh.f32 %v1107_v29 }
 0xad9   :  { %v1077_v59 = vpop.f32.mrf.mxu3 }
 0xada   :  { %v1102_v55 = vrot.slane %v1077_v59, 6 }
 0xadc   :  { %v1106_v19 = vadd.f32 %v1102_v55, %v1056_v13 }
 0xade   :  { %v5139_v8 = vpop.eup %5138  ;;  %5140 = vtanh.f32 %v1106_v19 }
 0xadf   :  { %v1111_v35 = vmul.f32 %v5139_v8, %v5877_v41 }
 0xae1   :  { %v1113_v51 = vadd.f32 %v1111_v35, %v5880_v46 }
 0xae3   :  { %1119 = vrot.lane.b32.xlu0 %v1113_v51, %s5523_s2 }
 0xae4   :  { %v5141_v56 = vpop.eup %5140 }
 0xae5   :  { %v1110_v58 = vmul.f32 0.5, %v5141_v56 }
 0xae7   :  { %v1112_v60 = vadd.f32 0.5, %v1110_v58 }
 0xae9   :  { %v1117_v33 = vmul.f32 %v1115_v30, %v1112_v60 }
 0xb55   :  { %v1120_v17 = vpop.permute.xlu0 %1119 }
 0xb56   :  { %v1122_v23 = vmul.f32 %v1120_v17, %v1112_v60 }
 0xb58   :  { %1124 = vrot.lane.b32.xlu0 %v1122_v23, %s5523_s2 }
 0xbca   :  { %v1125_v50 = vpop.permute.xlu0 %1124 }
 0xbcb   :  { %v1127_v52 = vadd.f32 %v1125_v50, %v1117_v33 }
 0xbcd   :  { %5142 = vtanh.f32 %v1127_v52  ;;  %v1200_v60 = vrot.slane %v1127_v52, 6 }
 0xbd3   :  { %v5143_v36 = vpop.eup %5142 }
 0xbd4   :  { %1130 = vrot.lane.b32.xlu2 %v5143_v36, %s5523_s2 }
 0xc2e   :  { %v1131_v54 = vpop.permute.xlu2 %1130 }
 0xc2f   :  { %v6176_v39 = vmul.f32 %v1131_v54, %v1113_v51  ;;  %v1140_v51 = vld [vmem:[#allocation3 + $0x58] sm:$0x30] }
 0xc31   :  { %1134 = vst.msk [vmem:[#allocation4 + $0x8] sm:$0xc] %vm795_vm14, %v6176_v39  ;;  %v1142_v53 = vrot.slane %v6176_v39, 2 }
 0xc33   :  { %4987 = vmatmul.msk.f32.vlgmr.msra.gmra.mxu2 %vm70_vm0, %v1142_v53  ;;  %4988 = vmatmul.msk.f32.vlgmr.msrb.gmra.mxu3 %vm70_vm0, %v1142_v53 }
 0xc34   :  { %1401 = vmatpush.msra.mxu2 %v5894_v62  ;;  %1421 = vmatpush.msrb.mxu3 %v5892_v61 }
 0xc36   :  { %1402 = vmatpush.msra.mxu2 %v5900_v1  ;;  %1422 = vmatpush.msrb.mxu3 %v5898_v0 }
 0xc38   :  { %1403 = vmatpush.msra.mxu2 %v5903_v2  ;;  %1423 = vmatpush.msrb.mxu3 %v5907_v3 }
 0xc3a   :  { %1404 = vmatpush.msra.mxu2 %v5911_v4  ;;  %1424 = vmatpush.msrb.mxu3 %v5915_v5 }
 0xc3c   :  { %1405 = vmatpush.msra.mxu2 %v5919_v6  ;;  %1425 = vmatpush.msrb.mxu3 %v5923_v7 }
 0xc3e   :  { %1406 = vmatpush.msra.mxu2 %v5927_v9  ;;  %1426 = vmatpush.msrb.mxu3 %v5931_v10 }
 0xc40   :  { %1407 = vmatpush.msra.mxu2 %v5935_v15  ;;  %1427 = vmatpush.msrb.mxu3 %v5939_v16 }
 0xc42   :  { %1408 = vmatpush.msra.mxu2 %v5955_v32  ;;  %1428 = vmatpush.msrb.mxu3 %v5953_v31 }
 0xcb6   :  { %v1182_v40 = vpop.f32.mrf.mxu3  ;;  %v1162_v8 = vpop.f32.mrf.mxu2 }
 0xcb7   :  { %v1188_v63 = vrot.slane %v1182_v40, 4  ;;  %v1187_v35 = vrot.slane %v1162_v8, 4  ;;  %v1226_v40 = vld [vmem:[#allocation3 + $0x18] sm:$0xc0] }
 0xcb9   :  { %v1192_v37 = vadd.f32 %v1188_v63, %v1141_v45  ;;  %v1191_v59 = vadd.f32 %v1187_v35, %v1140_v51  ;;  %v5409_v35 = vld [vmem:[#allocation2 + $0x1e] sm:$0xff] }
 0xcba   :  { %v465_v51 = vsel %vm308_vm9, %v5409_v35, 0.0  ;;  %v6249_v35 = vld [vmem:[#allocation2 + $0x60] sm:$0xff] }
 0xcbb   :  { %5144 = vtanh.f32 %v1192_v37 }
 0xcbc   :  { %5146 = vtanh.f32 %v1191_v59 }
 0xcc1   :  { %v5145_v42 = vpop.eup %5144 }
 0xcc2   :  { %v1196_v48 = vmul.f32 %v5145_v42, %v5877_v41  ;;  %v5147_v55 = vpop.eup %5146 }
 0xcc3   :  { %v1195_v13 = vmul.f32 0.5, %v5147_v55  ;;  %v5410_v55 = vld [vmem:[#allocation2 + $0x20] sm:$0xff] }
 0xcc4   :  { %v1198_v29 = vadd.f32 %v1196_v48, %v5880_v46  ;;  %v5408_v48 = vld [vmem:[#allocation2 + $0x1c] sm:$0xff] }
 0xcc5   :  { %v1197_v19 = vadd.f32 0.5, %v1195_v13  ;;  %v493_v13 = vsel %vm266_vm10, %v5410_v55, 0.0  ;;  %v6254_v55 = vld [vmem:[#allocation2 + $0x62] sm:$0xff] }
 0xcc6   :  { %1204 = vrot.lane.b32.xlu1 %v1198_v29, %s5523_s2 }
 0xcc7   :  { %v1202_v17 = vmul.f32 %v1200_v60, %v1197_v19 }
 0xd38   :  { %v1205_v56 = vpop.permute.xlu1 %1204 }
 0xd39   :  { %v1207_v58 = vmul.f32 %v1205_v56, %v1197_v19  ;;  %v5411_v56 = vld [vmem:[#allocation2 + $0x22] sm:$0xff] }
 0xd3b   :  { %1209 = vrot.lane.b32.xlu0 %v1207_v58, %s5523_s2  ;;  %v521_v58 = vsel %vm224_vm11, %v5411_v56, 0.0 }
 0xdad   :  { %v1210_v23 = vpop.permute.xlu0 %1209 }
 0xdae   :  { %v6203_v30 = vadd.f32 %v1210_v23, %v1202_v17 }
 0xdb0   :  { %5148 = vtanh.f32 %v6203_v30 }
 0xdb6   :  { %v5149_v33 = vpop.eup %5148 }
 0xdb7   :  { %1215 = vrot.lane.b32.xlu0 %v5149_v33, %s5523_s2  ;;  %v1225_v33 = vld [vmem:[#allocation3 + $0x58] sm:$0xc0] }
 0xe29   :  { %v1216_v50 = vpop.permute.xlu0 %1215 }
 0xe2a   :  { %v6207_v36 = vmul.f32 %v1216_v50, %v1198_v29  ;;  %v437_v29 = vsel %vm350_vm8, %v5408_v48, 0.0 }
 0xe2b   :  { %v443_v8 = vadd.f32 %v437_v29, %v5741_v28  ;;  %v5413_v29 = vld [vmem:[#allocation2 + $0x5e] sm:$0xff] }
 0xe2c   :  { %1219 = vst.msk [vmem:[#allocation4 + $0x8] sm:$0x30] %vm882_vm15, %v6207_v36  ;;  %v1227_v54 = vrot.slane %v6207_v36, 4 }
 0xe2d   :  { %v471_v59 = vadd.f32 %v465_v51, %v443_v8  ;;  %v479_v8 = vsel %vm287_vm4, %v5413_v29, 0.0 }
 0xe2e   :  { %4989 = vmatmul.msk.f32.vlgmr.msrb.gmra.mxu1 %vm70_vm0, %v1227_v54  ;;  %4990 = vmatmul.msk.f32.vlgmr.msrb.gmra.mxu2 %vm70_vm0, %v1227_v54 }
 0xe2f   :  { %1486 = vmatpush.msrb.mxu1 %v5894_v62  ;;  %1506 = vmatpush.msrb.mxu2 %v5892_v61  ;;  %v499_v19 = vadd.f32 %v493_v13, %v471_v59  ;;  %v507_v59 = vsel %vm245_vm3, %v6249_v35, 0.0 }
 0xe31   :  { %1487 = vmatpush.msrb.mxu1 %v5900_v1  ;;  %1507 = vmatpush.msrb.mxu2 %v5898_v0  ;;  %v527_v60 = vadd.f32 %v521_v58, %v499_v19  ;;  %v535_v19 = vsel %vm203_vm2, %v6254_v55, 0.0  ;;  %v1285_v58 = vrot.slane %v6203_v30, 6 }
 0xe33   :  { %1488 = vmatpush.msrb.mxu1 %v5903_v2  ;;  %1508 = vmatpush.msrb.mxu2 %v5907_v3  ;;  %v551_v17 = vsel %vm184_vm1, %v527_v60, 0.0 }
 0xe35   :  { %1489 = vmatpush.msrb.mxu1 %v5911_v4  ;;  %1509 = vmatpush.msrb.mxu2 %v5915_v5 }
 0xe37   :  { %1490 = vmatpush.msrb.mxu1 %v5919_v6  ;;  %1510 = vmatpush.msrb.mxu2 %v5923_v7 }
 0xe39   :  { %1491 = vmatpush.msrb.mxu1 %v5927_v9  ;;  %1511 = vmatpush.msrb.mxu2 %v5931_v10 }
 0xe3b   :  { %1492 = vmatpush.msrb.mxu1 %v5935_v15  ;;  %1512 = vmatpush.msrb.mxu2 %v5939_v16 }
 0xe3d   :  { %1493 = vmatpush.msrb.mxu1 %v5955_v32  ;;  %1513 = vmatpush.msrb.mxu2 %v5953_v31 }
 0xeab   :  { %v1247_v23 = vpop.f32.mrf.mxu1 }
 0xeac   :  { %v1272_v28 = vrot.slane %v1247_v23, 2 }
 0xeae   :  { %v1276_v50 = vadd.f32 %v1272_v28, %v1225_v33 }
 0xeb1   :  { %v1267_v52 = vpop.f32.mrf.mxu2 }
 0xeb2   :  { %v1273_v53 = vrot.slane %v1267_v52, 2 }
 0xeb4   :  { %v1277_v63 = vadd.f32 %v1273_v53, %v1226_v40 }
 0xeb6   :  { %5150 = vtanh.f32 %v1277_v63 }
 0xeb7   :  { %5152 = vtanh.f32 %v1276_v50 }
 0xebc   :  { %v5151_v45 = vpop.eup %5150 }
 0xebd   :  { %v1281_v37 = vmul.f32 %v5151_v45, %v5877_v41  ;;  %v5153_v54 = vpop.eup %5152  ;;  %v5412_v45 = vld [vmem:[#allocation2 + $0x5c] sm:$0xff] }
 0xebe   :  { %v1280_v52 = vmul.f32 0.5, %v5153_v54 }
 0xebf   :  { %v1283_v42 = vadd.f32 %v1281_v37, %v5880_v46  ;;  %v451_v37 = vsel %vm329_vm5, %v5412_v45, 0.0 }
 0xec0   :  { %v1282_v53 = vadd.f32 0.5, %v1280_v52  ;;  %v457_v48 = vadd.f32 %v451_v37, %v5845_v12 }
 0xec1   :  { %1289 = vrot.lane.b32.xlu0 %v1283_v42, %s5523_s2 }
 0xec2   :  { %v485_v51 = vadd.f32 %v479_v8, %v457_v48  ;;  %v1287_v60 = vmul.f32 %v1285_v58, %v1282_v53  ;;  %v6313_v58 = vld [vmem:[#allocation5 + $0x60] sm:$0xff] }
 0xec4   :  { %v513_v13 = vadd.f32 %v507_v59, %v485_v51 }
 0xec6   :  { %v541_v56 = vadd.f32 %v535_v19, %v513_v13 }
 0xec8   :  { %v570_v12 = vsel %vm184_vm1, %v541_v56, 0.0  ;;  %v6307_v56 = vld [vmem:[#allocation5 + $0x70] sm:$0xff] }
 0xeeb   :  { %552 = vadd.xlane.f32.xlu0 %v551_v17 }
 0xf33   :  { %v1290_v40 = vpop.permute.xlu0 %1289 }
 0xf34   :  { %v1292_v63 = vmul.f32 %v1290_v40, %v1282_v53 }
 0xf36   :  { %1294 = vrot.lane.b32.xlu2 %v1292_v63, %s5523_s2 }
 0xf5e   :  { %v553_v33 = vpop.xlane.xlu0 %552 }
 0xf5f   :  { %571 = vadd.xlane.f32.xlu2 %v570_v12  ;;  %v592_v54 = vmul.f32 %v5855_v18, %v553_v33  ;;  %v593_v52 = vmul.f32 %v5857_v20, %v553_v33  ;;  %v6310_v12 = vld [vmem:[#allocation5 + $0x78] sm:$0xff]  ;;  %v6328_v33 = vld [vmem:[#allocation5 + $0x48] sm:$0xff] }
 0xf90   :  { %v1295_v17 = vpop.permute.xlu2 %1294 }
 0xf91   :  { %v1297_v23 = vadd.f32 %v1295_v17, %v1287_v60  ;;  %v6316_v60 = vld [vmem:[#allocation5 + $0x68] sm:$0xff]  ;;  %v6319_v17 = vld [vmem:[#allocation5 + $0x50] sm:$0xff] }
 0xf93   :  { %5154 = vtanh.f32 %v1297_v23 }
 0xf99   :  { %v5155_v28 = vpop.eup %5154 }
 0xf9a   :  { %1300 = vrot.lane.b32.xlu1 %v5155_v28, %s5523_s2  ;;  %v6325_v28 = vld [vmem:[#allocation5 + $0x40] sm:$0xff] }
 0xfd2   :  { %v572_v50 = vpop.xlane.xlu2 %571 }
 0xfd3   :  { %v611_v40 = vmul.f32 %v5859_v21, %v572_v50  ;;  %v612_v63 = vmul.f32 %v5861_v22, %v572_v50  ;;  %v6331_v50 = vld [vmem:[#allocation5 + $0x30] sm:$0xff] }
 0xfd5   :  { %v623_v45 = vadd.f32 %v611_v40, %v592_v54  ;;  %v624_v37 = vadd.f32 %v612_v63, %v593_v52  ;;  %v6334_v54 = vld [vmem:[#allocation5 + $0x38] sm:$0xff]  ;;  %v6337_v52 = vld [vmem:[#allocation5 + $0x20] sm:$0xff]  ;;  %v6340_v40 = vld [vmem:[#allocation5 + $0x28] sm:$0xff] }
 0xfd6   :  { %v6343_v63 = vld [vmem:[#allocation5 + $0x10] sm:$0xff] }
 0xfd7   :  { %v641_v30 = vadd.f32 %v5866_v25, %v623_v45  ;;  %v642_v53 = vadd.f32 %v5868_v27, %v624_v37  ;;  %v6346_v45 = vld [vmem:[#allocation5 + $0x18] sm:$0xff]  ;;  %v6349_v37 = vld [vmem:[#allocation5] sm:$0xff] }
 0xfd9   :  { %653 = vst [vmem:[#allocation3 + $0x50] sm:$0xff] %v641_v30  ;;  %v6352_v30 = vld [vmem:[#allocation5 + $0x8] sm:$0xff] }
 0xfda   :  { %654 = vst [vmem:[#allocation3 + $0x20] sm:$0xff] %v642_v53 }
0x100c   :  { %v1301_v48 = vpop.permute.xlu1 %1300 }
0x100d   :  { %v6268_v29 = vmul.f32 %v1301_v48, %v1283_v42 }
0x100f   :  { %1304 = vst.msk [vmem:[#allocation4 + $0x8] sm:$0xc0] %vm969_vm12, %v6268_v29  ;;  %v1312_v8 = vrot.slane %v6268_v29, 6 }
0x1011   :  { %4991 = vmatmul.msk.f32.vlgmr.msra.gmra.mxu3 %vm70_vm0, %v1312_v8  ;;  %4992 = vmatmul.msk.f32.vlgmr.msra.gmra.mxu1 %vm70_vm0, %v1312_v8  ;;  %v1390_v8 = vld [vmem:[#allocation3 + $0x20] sm:$0xc] }
0x1012   :  { %1571 = vmatpush.msra.mxu3 %v5894_v62  ;;  %1591 = vmatpush.msra.mxu1 %v5892_v61  ;;  %v1311_v61 = vld [vmem:[#allocation3 + $0x20] sm:$0x3] }
0x1014   :  { %1572 = vmatpush.msra.mxu3 %v5900_v1  ;;  %1592 = vmatpush.msra.mxu1 %v5898_v0 }
0x1016   :  { %1573 = vmatpush.msra.mxu3 %v5903_v2  ;;  %1593 = vmatpush.msra.mxu1 %v5907_v3 }
0x1018   :  { %1574 = vmatpush.msra.mxu3 %v5911_v4  ;;  %1594 = vmatpush.msra.mxu1 %v5915_v5  ;;  %v1310_v5 = vld [vmem:[#allocation3 + $0x50] sm:$0x3] }
0x101a   :  { %1575 = vmatpush.msra.mxu3 %v5919_v6  ;;  %1595 = vmatpush.msra.mxu1 %v5923_v7 }
0x101c   :  { %1576 = vmatpush.msra.mxu3 %v5927_v9  ;;  %1596 = vmatpush.msra.mxu1 %v5931_v10 }
0x101e   :  { %1577 = vmatpush.msra.mxu3 %v5935_v15  ;;  %1597 = vmatpush.msra.mxu1 %v5939_v16 }
0x1020   :  { %1578 = vmatpush.msra.mxu3 %v5955_v32  ;;  %1598 = vmatpush.msra.mxu1 %v5953_v31  ;;  %v1364_v31 = vrot.slane %v1297_v23, 6  ;;  %v6322_v23 = vld [vmem:[#allocation5 + $0x58] sm:$0xff] }
0x108e   :  { %v1352_v62 = vpop.f32.mrf.mxu1 }
0x108f   :  { %v1356_v0 = vadd.f32 %v1352_v62, %v1311_v61 }
0x1091   :  { %5156 = vtanh.f32 %v1356_v0 }
0x1094   :  { %v1332_v4 = vpop.f32.mrf.mxu3 }
0x1095   :  { %v1355_v6 = vadd.f32 %v1332_v4, %v1310_v5  ;;  %v1389_v4 = vld [vmem:[#allocation3 + $0x50] sm:$0xc] }
0x1097   :  { %v5157_v1 = vpop.eup %5156  ;;  %5158 = vtanh.f32 %v1355_v6 }
0x1098   :  { %v1360_v2 = vmul.f32 %v5157_v1, %v5877_v41 }
0x109a   :  { %v1362_v3 = vadd.f32 %v1360_v2, %v5880_v46 }
0x109c   :  { %1368 = vrot.lane.b32.xlu1 %v1362_v3, %s5523_s2 }
0x109d   :  { %v5159_v7 = vpop.eup %5158 }
0x109e   :  { %v1359_v9 = vmul.f32 0.5, %v5159_v7 }
0x10a0   :  { %v1361_v10 = vadd.f32 0.5, %v1359_v9 }
0x10a2   :  { %v1366_v32 = vmul.f32 %v1364_v31, %v1361_v10 }
0x110e   :  { %v1369_v15 = vpop.permute.xlu1 %1368 }
0x110f   :  { %v1371_v16 = vmul.f32 %v1369_v15, %v1361_v10 }
0x1111   :  { %1373 = vrot.lane.b32.xlu1 %v1371_v16, %s5523_s2 }
0x1183   :  { %v1374_v42 = vpop.permute.xlu1 %1373 }
0x1184   :  { %v6295_v51 = vadd.f32 %v1374_v42, %v1366_v32 }
0x1186   :  { %5160 = vtanh.f32 %v6295_v51  ;;  %v1448_v16 = vrot.slane %v6295_v51, 6 }
0x118c   :  { %v5161_v59 = vpop.eup %5160 }
0x118d   :  { %1379 = vrot.lane.b32.xlu1 %v5161_v59, %s5523_s2 }
0x11ff   :  { %v1380_v13 = vpop.permute.xlu1 %1379 }
0x1200   :  { %v6299_v19 = vmul.f32 %v1380_v13, %v1362_v3 }
0x1202   :  { %4993 = vmatmul.msk.f32.vlgmr.msra.gmra.mxu2 %vm70_vm0, %v6299_v19  ;;  %4994 = vmatmul.msk.f32.vlgmr.msrb.gmra.mxu3 %vm70_vm0, %v6299_v19  ;;  %1383 = vst.msk [vmem:[#allocation4 + $0x10] sm:$0x3] %vm709_vm13, %v6299_v19 }
0x1203   :  { %1656 = vmatpush.msra.mxu2 %v6307_v56  ;;  %1676 = vmatpush.msrb.mxu3 %v6310_v12 }
0x1205   :  { %1657 = vmatpush.msra.mxu2 %v6313_v58  ;;  %1677 = vmatpush.msrb.mxu3 %v6316_v60 }
0x1207   :  { %1658 = vmatpush.msra.mxu2 %v6319_v17  ;;  %1678 = vmatpush.msrb.mxu3 %v6322_v23 }
0x1209   :  { %1659 = vmatpush.msra.mxu2 %v6325_v28  ;;  %1679 = vmatpush.msrb.mxu3 %v6328_v33 }
0x120b   :  { %1660 = vmatpush.msra.mxu2 %v6331_v50  ;;  %1680 = vmatpush.msrb.mxu3 %v6334_v54 }
0x120d   :  { %1661 = vmatpush.msra.mxu2 %v6337_v52  ;;  %1681 = vmatpush.msrb.mxu3 %v6340_v40 }
0x120f   :  { %1662 = vmatpush.msra.mxu2 %v6343_v63  ;;  %1682 = vmatpush.msrb.mxu3 %v6346_v45 }
0x1211   :  { %1663 = vmatpush.msra.mxu2 %v6349_v37  ;;  %1683 = vmatpush.msrb.mxu3 %v6352_v30 }
0x1285   :  { %v1430_v53 = vpop.f32.mrf.mxu3  ;;  %v1410_v2 = vpop.f32.mrf.mxu2 }
0x1286   :  { %v1436_v48 = vrot.slane %v1430_v53, 6  ;;  %v1435_v3 = vrot.slane %v1410_v2, 6 }
0x1288   :  { %v1440_v61 = vadd.f32 %v1436_v48, %v1390_v8  ;;  %v1439_v5 = vadd.f32 %v1435_v3, %v1389_v4  ;;  %v5430_v3 = vld [vmem:[#allocation2 + $0x24] sm:$0xff] }
0x1289   :  { %v438_v4 = vsel %vm350_vm8, %v5430_v3, 0.0 }
0x128a   :  { %5162 = vtanh.f32 %v1440_v61  ;;  %v1474_v61 = vld [vmem:[#allocation3 + $0x20] sm:$0x30] }
0x128b   :  { %5164 = vtanh.f32 %v1439_v5  ;;  %v444_v5 = vadd.f32 %v438_v4, %v5756_v44 }
0x1290   :  { %v5163_v62 = vpop.eup %5162 }
0x1291   :  { %v1444_v0 = vmul.f32 %v5163_v62, %v5877_v41  ;;  %v5165_v6 = vpop.eup %5164 }
0x1292   :  { %v1443_v7 = vmul.f32 0.5, %v5165_v6  ;;  %v5431_v6 = vld [vmem:[#allocation2 + $0x26] sm:$0xff] }
0x1293   :  { %v1446_v1 = vadd.f32 %v1444_v0, %v5880_v46 }
0x1294   :  { %v1445_v9 = vadd.f32 0.5, %v1443_v7  ;;  %v466_v7 = vsel %vm308_vm9, %v5431_v6, 0.0 }
0x1295   :  { %1452 = vrot.lane.b32.xlu1 %v1446_v1, %s5523_s2 }
0x1296   :  { %v1450_v31 = vmul.f32 %v1448_v16, %v1445_v9 }
0x1307   :  { %v1453_v10 = vpop.permute.xlu1 %1452 }
0x1308   :  { %v1455_v15 = vmul.f32 %v1453_v10, %v1445_v9  ;;  %v472_v9 = vadd.f32 %v466_v7, %v444_v5  ;;  %v5432_v10 = vld [vmem:[#allocation2 + $0x28] sm:$0xff] }
0x130a   :  { %1457 = vrot.lane.b32.xlu1 %v1455_v15, %s5523_s2  ;;  %v494_v15 = vsel %vm266_vm10, %v5432_v10, 0.0 }
0x130b   :  { %v500_v16 = vadd.f32 %v494_v15, %v472_v9 }
0x137c   :  { %v1458_v32 = vpop.permute.xlu1 %1457 }
0x137d   :  { %v1460_v42 = vadd.f32 %v1458_v32, %v1450_v31  ;;  %v5433_v31 = vld [vmem:[#allocation2 + $0x2a] sm:$0xff] }
0x137e   :  { %v522_v32 = vsel %vm224_vm11, %v5433_v31, 0.0  ;;  %v1559_v31 = vld [vmem:[#allocation3 + $0x20] sm:$0xc0] }
0x137f   :  { %5166 = vtanh.f32 %v1460_v42  ;;  %v1533_v4 = vrot.slane %v1460_v42, 6 }
0x1385   :  { %v5167_v59 = vpop.eup %5166 }
0x1386   :  { %1463 = vrot.lane.b32.xlu0 %v5167_v59, %s5523_s2  ;;  %v528_v59 = vadd.f32 %v522_v32, %v500_v16 }
0x13f8   :  { %v1464_v13 = vpop.permute.xlu0 %1463 }
0x13f9   :  { %v6361_v53 = vmul.f32 %v1464_v13, %v1446_v1  ;;  %v554_v13 = vsel %vm184_vm1, %v528_v59, 0.0 }
0x13fb   :  { %1467 = vst.msk [vmem:[#allocation4 + $0x10] sm:$0xc] %vm795_vm14, %v6361_v53  ;;  %v1475_v48 = vrot.slane %v6361_v53, 2 }
0x13fd   :  { %4995 = vmatmul.msk.f32.vlgmr.msrb.gmra.mxu1 %vm70_vm0, %v1475_v48  ;;  %4996 = vmatmul.msk.f32.vlgmr.msrb.gmra.mxu2 %vm70_vm0, %v1475_v48 }
0x13fe   :  { %1754 = vmatpush.msrb.mxu1 %v6310_v12  ;;  %1819 = vmatpush.msrb.mxu2 %v6307_v56 }
0x1400   :  { %1755 = vmatpush.msrb.mxu1 %v6316_v60  ;;  %1820 = vmatpush.msrb.mxu2 %v6313_v58 }
0x1402   :  { %1756 = vmatpush.msrb.mxu1 %v6322_v23  ;;  %1821 = vmatpush.msrb.mxu2 %v6319_v17 }
0x1404   :  { %1757 = vmatpush.msrb.mxu1 %v6328_v33  ;;  %1822 = vmatpush.msrb.mxu2 %v6325_v28 }
0x1406   :  { %1758 = vmatpush.msrb.mxu1 %v6334_v54  ;;  %1823 = vmatpush.msrb.mxu2 %v6331_v50 }
0x1408   :  { %1759 = vmatpush.msrb.mxu1 %v6340_v40  ;;  %1824 = vmatpush.msrb.mxu2 %v6337_v52 }
0x140a   :  { %1760 = vmatpush.msrb.mxu1 %v6346_v45  ;;  %1825 = vmatpush.msrb.mxu2 %v6343_v63 }
0x140c   :  { %1761 = vmatpush.msrb.mxu1 %v6352_v30  ;;  %1826 = vmatpush.msrb.mxu2 %v6349_v37 }
0x147a   :  { %v1495_v48 = vpop.f32.mrf.mxu1 }
0x147b   :  { %v1520_v44 = vrot.slane %v1495_v48, 4 }
0x1480   :  { %v1515_v51 = vpop.f32.mrf.mxu2 }
0x1481   :  { %v1521_v8 = vrot.slane %v1515_v51, 4  ;;  %v1473_v51 = vld [vmem:[#allocation3 + $0x50] sm:$0x30] }
0x1483   :  { %v1525_v62 = vadd.f32 %v1521_v8, %v1474_v61  ;;  %v1524_v8 = vadd.f32 %v1520_v44, %v1473_v51 }
0x1485   :  { %5168 = vtanh.f32 %v1525_v62 }
0x1486   :  { %5170 = vtanh.f32 %v1524_v8  ;;  %v1558_v8 = vld [vmem:[#allocation3 + $0x50] sm:$0xc0] }
0x148b   :  { %v5169_v0 = vpop.eup %5168 }
0x148c   :  { %v1529_v1 = vmul.f32 %v5169_v0, %v5877_v41  ;;  %v5171_v61 = vpop.eup %5170 }
0x148d   :  { %v1528_v62 = vmul.f32 0.5, %v5171_v61 }
0x148e   :  { %v1531_v2 = vadd.f32 %v1529_v1, %v5880_v46 }
0x148f   :  { %v1530_v0 = vadd.f32 0.5, %v1528_v62 }
0x1490   :  { %1537 = vrot.lane.b32.xlu2 %v1531_v2, %s5523_s2 }
0x1491   :  { %v1535_v5 = vmul.f32 %v1533_v4, %v1530_v0 }
0x14b9   :  { %555 = vadd.xlane.f32.xlu2 %v554_v13 }
0x14ea   :  { %v1538_v1 = vpop.permute.xlu2 %1537 }
0x14eb   :  { %v1540_v3 = vmul.f32 %v1538_v1, %v1530_v0 }
0x14ed   :  { %1542 = vrot.lane.b32.xlu1 %v1540_v3, %s5523_s2 }
0x155f   :  { %v1543_v6 = vpop.permute.xlu1 %1542 }
0x1560   :  { %v6398_v7 = vadd.f32 %v1543_v6, %v1535_v5  ;;  %v396_v5 = vsel %vm388_vm7, %v6249_v35, 0.0 }
0x1561   :  { %v402_v6 = vadd.f32 %v396_v5, %v5847_v14 }
0x1562   :  { %5172 = vtanh.f32 %v6398_v7 }
0x1568   :  { %v5173_v9 = vpop.eup %5172 }
0x1569   :  { %1548 = vrot.lane.b32.xlu1 %v5173_v9, %s5523_s2  ;;  %v424_v9 = vsel %vm371_vm6, %v6254_v55, 0.0 }
0x15db   :  { %v1549_v10 = vpop.permute.xlu1 %1548 }
0x15dc   :  { %v6402_v15 = vmul.f32 %v1549_v10, %v1531_v2  ;;  %v6436_v10 = vld [vmem:[#allocation2 + $0x64] sm:$0xff] }
0x15de   :  { %1552 = vst.msk [vmem:[#allocation4 + $0x10] sm:$0x30] %vm882_vm15, %v6402_v15  ;;  %v1560_v16 = vrot.slane %v6402_v15, 4 }
0x15e0   :  { %4997 = vmatmul.msk.f32.vlgmr.msra.gmra.mxu3 %vm70_vm0, %v1560_v16  ;;  %4998 = vmatmul.msk.f32.vlgmr.msra.gmra.mxu1 %vm70_vm0, %v1560_v16  ;;  %v430_v16 = vadd.f32 %v424_v9, %v402_v6  ;;  %v556_v9 = vpop.xlane.xlu2 %555 }
0x15e1   :  { %1839 = vmatpush.msra.mxu3 %v6310_v12  ;;  %1924 = vmatpush.msra.mxu1 %v6310_v12 }
0x15e3   :  { %1840 = vmatpush.msra.mxu3 %v6316_v60  ;;  %1925 = vmatpush.msra.mxu1 %v6316_v60 }
0x15e5   :  { %1841 = vmatpush.msra.mxu3 %v6322_v23  ;;  %1926 = vmatpush.msra.mxu1 %v6322_v23 }
0x15e7   :  { %1842 = vmatpush.msra.mxu3 %v6328_v33  ;;  %1927 = vmatpush.msra.mxu1 %v6328_v33 }
0x15e9   :  { %1843 = vmatpush.msra.mxu3 %v6334_v54  ;;  %1928 = vmatpush.msra.mxu1 %v6334_v54 }
0x15eb   :  { %1844 = vmatpush.msra.mxu3 %v6340_v40  ;;  %1929 = vmatpush.msra.mxu1 %v6340_v40 }
0x15ed   :  { %1845 = vmatpush.msra.mxu3 %v6346_v45  ;;  %1930 = vmatpush.msra.mxu1 %v6346_v45 }
0x15ef   :  { %1846 = vmatpush.msra.mxu3 %v6352_v30  ;;  %1931 = vmatpush.msra.mxu1 %v6352_v30 }
0x165d   :  { %v1600_v42 = vpop.f32.mrf.mxu1 }
0x165e   :  { %v1606_v2 = vrot.slane %v1600_v42, 2  ;;  %v452_v42 = vsel %vm329_vm5, %v6436_v10, 0.0 }
0x1660   :  { %v1610_v32 = vadd.f32 %v1606_v2, %v1559_v31  ;;  %v6441_v2 = vld [vmem:[#allocation2 + $0x66] sm:$0xff]  ;;  %v458_v31 = vadd.f32 %v452_v42, %v430_v16  ;;  %v594_v42 = vmul.f32 %v5855_v18, %v556_v9 }
0x1662   :  { %5174 = vtanh.f32 %v1610_v32  ;;  %v480_v32 = vsel %vm287_vm4, %v6441_v2, 0.0 }
0x1663   :  { %v1580_v44 = vpop.f32.mrf.mxu3  ;;  %v486_v14 = vadd.f32 %v480_v32, %v458_v31  ;;  %v595_v31 = vmul.f32 %v5857_v20, %v556_v9 }
0x1664   :  { %v1605_v51 = vrot.slane %v1580_v44, 2  ;;  %v6451_v44 = vld [vmem:[#allocation2 + $0x6a] sm:$0xff] }
0x1666   :  { %v1609_v61 = vadd.f32 %v1605_v51, %v1558_v8  ;;  %v536_v8 = vsel %vm203_vm2, %v6451_v44, 0.0 }
0x1668   :  { %v5175_v59 = vpop.eup %5174  ;;  %5176 = vtanh.f32 %v1609_v61 }
0x1669   :  { %v1614_v13 = vmul.f32 %v5175_v59, %v5877_v41  ;;  %v6446_v59 = vld [vmem:[#allocation2 + $0x68] sm:$0xff] }
0x166b   :  { %v1616_v48 = vadd.f32 %v1614_v13, %v5880_v46  ;;  %v508_v13 = vsel %vm245_vm3, %v6446_v59, 0.0 }
0x166c   :  { %v514_v51 = vadd.f32 %v508_v13, %v486_v14 }
0x166d   :  { %1622 = vrot.lane.b32.xlu0 %v1616_v48, %s5523_s2 }
0x166e   :  { %v5177_v62 = vpop.eup %5176  ;;  %v542_v61 = vadd.f32 %v536_v8, %v514_v51 }
0x166f   :  { %v1613_v0 = vmul.f32 0.5, %v5177_v62 }
0x1670   :  { %v573_v62 = vsel %vm184_vm1, %v542_v61, 0.0 }
0x1671   :  { %v1615_v1 = vadd.f32 0.5, %v1613_v0  ;;  %v1618_v0 = vrot.slane %v6398_v7, 6 }
0x16df   :  { %v1623_v3 = vpop.permute.xlu0 %1622 }
0x16e0   :  { %v1625_v4 = vmul.f32 %v1623_v3, %v1615_v1  ;;  %v1620_v3 = vmul.f32 %v1618_v0, %v1615_v1 }
0x16e2   :  { %1627 = vrot.lane.b32.xlu1 %v1625_v4, %s5523_s2 }
0x170c   :  { %574 = vadd.xlane.f32.xlu1 %v573_v62 }
0x1754   :  { %v1628_v4 = vpop.permute.xlu1 %1627 }
0x1755   :  { %v1630_v5 = vadd.f32 %v1628_v4, %v1620_v3 }
0x1757   :  { %5178 = vtanh.f32 %v1630_v5 }
0x175d   :  { %v5179_v6 = vpop.eup %5178 }
0x175e   :  { %1633 = vrot.lane.b32.xlu0 %v5179_v6, %s5523_s2 }
0x177f   :  { %v575_v16 = vpop.xlane.xlu1 %574 }
0x1780   :  { %v613_v32 = vmul.f32 %v5859_v21, %v575_v16  ;;  %v614_v14 = vmul.f32 %v5861_v22, %v575_v16 }
0x1782   :  { %v625_v13 = vadd.f32 %v613_v32, %v594_v42  ;;  %v626_v51 = vadd.f32 %v614_v14, %v595_v31 }
0x1784   :  { %v643_v7 = vadd.f32 %v5866_v25, %v625_v13  ;;  %v644_v1 = vadd.f32 %v5868_v27, %v626_v51 }
0x1786   :  { %655 = vst [vmem:[#allocation3 + $0x8] sm:$0xff] %v643_v7 }
0x1787   :  { %656 = vst [vmem:[#allocation3 + $0x38] sm:$0xff] %v644_v1  ;;  %v1697_v1 = vrot.slane %v1630_v5, 6 }
0x178d   :  { %v1643_v42 = vld [vmem:[#allocation3 + $0x8] sm:$0x3] }
0x17d0   :  { %v1634_v8 = vpop.permute.xlu0 %1633 }
0x17d1   :  { %v6465_v61 = vmul.f32 %v1634_v8, %v1616_v48  ;;  %v1644_v48 = vld [vmem:[#allocation3 + $0x38] sm:$0x3] }
0x17d3   :  { %1637 = vst.msk [vmem:[#allocation4 + $0x10] sm:$0xc0] %vm969_vm12, %v6465_v61  ;;  %v1645_v62 = vrot.slane %v6465_v61, 6 }
0x17d5   :  { %4999 = vmatmul.msk.f32.vlgmr.msra.gmra.mxu2 %vm70_vm0, %v1645_v62  ;;  %5000 = vmatmul.msk.f32.vlgmr.msrb.gmra.mxu3 %vm70_vm0, %v1645_v62 }
0x17d6   :  { %1989 = vmatpush.msra.mxu2 %v6307_v56  ;;  %2009 = vmatpush.msrb.mxu3 %v6310_v12 }
0x17d8   :  { %1990 = vmatpush.msra.mxu2 %v6313_v58  ;;  %2010 = vmatpush.msrb.mxu3 %v6316_v60 }
0x17da   :  { %1991 = vmatpush.msra.mxu2 %v6319_v17  ;;  %2011 = vmatpush.msrb.mxu3 %v6322_v23 }
0x17dc   :  { %1992 = vmatpush.msra.mxu2 %v6325_v28  ;;  %2012 = vmatpush.msrb.mxu3 %v6328_v33 }
0x17de   :  { %1993 = vmatpush.msra.mxu2 %v6331_v50  ;;  %2013 = vmatpush.msrb.mxu3 %v6334_v54 }
0x17e0   :  { %1994 = vmatpush.msra.mxu2 %v6337_v52  ;;  %2014 = vmatpush.msrb.mxu3 %v6340_v40 }
0x17e2   :  { %1995 = vmatpush.msra.mxu2 %v6343_v63  ;;  %2015 = vmatpush.msrb.mxu3 %v6346_v45 }
0x17e4   :  { %1996 = vmatpush.msra.mxu2 %v6349_v37  ;;  %2016 = vmatpush.msrb.mxu3 %v6352_v30 }
0x1858   :  { %v1685_v0 = vpop.f32.mrf.mxu3  ;;  %v1665_v16 = vpop.f32.mrf.mxu2 }
0x1859   :  { %v1689_v3 = vadd.f32 %v1685_v0, %v1644_v48  ;;  %v1688_v31 = vadd.f32 %v1665_v16, %v1643_v42 }
0x185b   :  { %5180 = vtanh.f32 %v1689_v3 }
0x185c   :  { %5182 = vtanh.f32 %v1688_v31 }
0x1861   :  { %v5181_v4 = vpop.eup %5180 }
0x1862   :  { %v1693_v6 = vmul.f32 %v5181_v4, %v5877_v41  ;;  %v5183_v32 = vpop.eup %5182 }
0x1863   :  { %v1692_v14 = vmul.f32 0.5, %v5183_v32 }
0x1864   :  { %v1695_v9 = vadd.f32 %v1693_v6, %v5880_v46 }
0x1865   :  { %v1694_v13 = vadd.f32 0.5, %v1692_v14 }
0x1866   :  { %1701 = vrot.lane.b32.xlu0 %v1695_v9, %s5523_s2 }
0x1867   :  { %v1699_v8 = vmul.f32 %v1697_v1, %v1694_v13 }
0x18d8   :  { %v1702_v51 = vpop.permute.xlu0 %1701 }
0x18d9   :  { %v1704_v7 = vmul.f32 %v1702_v51, %v1694_v13  ;;  %v1722_v51 = vld [vmem:[#allocation3 + $0x8] sm:$0xc] }
0x18db   :  { %1706 = vrot.lane.b32.xlu0 %v1704_v7, %s5523_s2 }
0x194d   :  { %v1707_v62 = vpop.permute.xlu0 %1706 }
0x194e   :  { %v1709_v48 = vadd.f32 %v1707_v62, %v1699_v8 }
0x1950   :  { %5184 = vtanh.f32 %v1709_v48 }
0x1956   :  { %v5185_v0 = vpop.eup %5184 }
0x1957   :  { %1712 = vrot.lane.b32.xlu0 %v5185_v0, %s5523_s2 }
0x19c9   :  { %v1713_v3 = vpop.permute.xlu0 %1712 }
0x19ca   :  { %v6493_v4 = vmul.f32 %v1713_v3, %v1695_v9  ;;  %v1723_v9 = vld [vmem:[#allocation3 + $0x38] sm:$0xc] }
0x19cc   :  { %5001 = vmatmul.msk.f32.vlgmr.msrb.gmra.mxu0 %vm70_vm0, %v6493_v4  ;;  %5002 = vmatmul.msk.f32.vlgmr.msrb.gmra.mxu1 %vm70_vm0, %v6493_v4 }
0x19cd   :  { %2067 = vmatpush.msrb.mxu0 %v6307_v56  ;;  %2087 = vmatpush.msrb.mxu1 %v6310_v12 }
0x19cf   :  { %2068 = vmatpush.msrb.mxu0 %v6313_v58  ;;  %2088 = vmatpush.msrb.mxu1 %v6316_v60 }
0x19d1   :  { %2069 = vmatpush.msrb.mxu0 %v6319_v17  ;;  %2089 = vmatpush.msrb.mxu1 %v6322_v23 }
0x19d3   :  { %2070 = vmatpush.msrb.mxu0 %v6325_v28  ;;  %2090 = vmatpush.msrb.mxu1 %v6328_v33 }
0x19d5   :  { %2071 = vmatpush.msrb.mxu0 %v6331_v50  ;;  %2091 = vmatpush.msrb.mxu1 %v6334_v54 }
0x19d7   :  { %2072 = vmatpush.msrb.mxu0 %v6337_v52  ;;  %2092 = vmatpush.msrb.mxu1 %v6340_v40 }
0x19d9   :  { %2073 = vmatpush.msrb.mxu0 %v6343_v63  ;;  %2093 = vmatpush.msrb.mxu1 %v6346_v45 }
0x19db   :  { %2074 = vmatpush.msrb.mxu0 %v6349_v37  ;;  %2094 = vmatpush.msrb.mxu1 %v6352_v30 }
0x1a49   :  { %v1763_v5 = vpop.f32.mrf.mxu1  ;;  %v1743_v14 = vpop.f32.mrf.mxu0 }
0x1a4a   :  { %v1769_v6 = vrot.slane %v1763_v5, 6  ;;  %v1768_v13 = vrot.slane %v1743_v14, 6  ;;  %v1781_v5 = vrot.slane %v1709_v48, 6 }
0x1a4c   :  { %v1773_v16 = vadd.f32 %v1769_v6, %v1723_v9  ;;  %v1772_v7 = vadd.f32 %v1768_v13, %v1722_v51  ;;  %v1807_v51 = vld [vmem:[#allocation3 + $0x38] sm:$0x30] }
0x1a4e   :  { %5186 = vtanh.f32 %v1773_v16 }
0x1a4f   :  { %5188 = vtanh.f32 %v1772_v7 }
0x1a54   :  { %v5187_v42 = vpop.eup %5186 }
0x1a55   :  { %v1777_v31 = vmul.f32 %v5187_v42, %v5877_v41  ;;  %v5189_v1 = vpop.eup %5188 }
0x1a56   :  { %v1776_v8 = vmul.f32 0.5, %v5189_v1 }
0x1a57   :  { %v1779_v32 = vadd.f32 %v1777_v31, %v5880_v46 }
0x1a58   :  { %v1778_v62 = vadd.f32 0.5, %v1776_v8 }
0x1a59   :  { %1785 = vrot.lane.b32.xlu0 %v1779_v32, %s5523_s2 }
0x1a5a   :  { %v1783_v6 = vmul.f32 %v1781_v5, %v1778_v62  ;;  %v1806_v5 = vld [vmem:[#allocation3 + $0x8] sm:$0x30] }
0x1acb   :  { %v1786_v0 = vpop.permute.xlu0 %1785 }
0x1acc   :  { %v1788_v3 = vmul.f32 %v1786_v0, %v1778_v62 }
0x1ace   :  { %1790 = vrot.lane.b32.xlu0 %v1788_v3, %s5523_s2 }
0x1b40   :  { %v1791_v9 = vpop.permute.xlu0 %1790 }
0x1b41   :  { %v1793_v16 = vadd.f32 %v1791_v9, %v1783_v6 }
0x1b43   :  { %5190 = vtanh.f32 %v1793_v16 }
0x1b49   :  { %v5191_v42 = vpop.eup %5190 }
0x1b4a   :  { %1796 = vrot.lane.b32.xlu2 %v5191_v42, %s5523_s2 }
0x1ba4   :  { %v1797_v31 = vpop.permute.xlu2 %1796 }
0x1ba5   :  { %v6520_v14 = vmul.f32 %v1797_v31, %v1779_v32 }
0x1ba7   :  { %v1808_v13 = vrot.slane %v6520_v14, 2 }
0x1ba9   :  { %5003 = vmatmul.msk.f32.vlgmr.msrb.gmra.mxu2 %vm70_vm0, %v1808_v13  ;;  %5004 = vmatmul.msk.f32.vlgmr.msra.gmra.mxu3 %vm70_vm0, %v1808_v13 }
0x1baa   :  { %2152 = vmatpush.msrb.mxu2 %v6307_v56  ;;  %2172 = vmatpush.msra.mxu3 %v6310_v12 }
0x1bac   :  { %2153 = vmatpush.msrb.mxu2 %v6313_v58  ;;  %2173 = vmatpush.msra.mxu3 %v6316_v60 }
0x1bae   :  { %2154 = vmatpush.msrb.mxu2 %v6319_v17  ;;  %2174 = vmatpush.msra.mxu3 %v6322_v23 }
0x1bb0   :  { %2155 = vmatpush.msrb.mxu2 %v6325_v28  ;;  %2175 = vmatpush.msra.mxu3 %v6328_v33 }
0x1bb2   :  { %2156 = vmatpush.msrb.mxu2 %v6331_v50  ;;  %2176 = vmatpush.msra.mxu3 %v6334_v54 }
0x1bb4   :  { %2157 = vmatpush.msrb.mxu2 %v6337_v52  ;;  %2177 = vmatpush.msra.mxu3 %v6340_v40 }
0x1bb6   :  { %2158 = vmatpush.msrb.mxu2 %v6343_v63  ;;  %2178 = vmatpush.msra.mxu3 %v6346_v45 }
0x1bb8   :  { %2159 = vmatpush.msrb.mxu2 %v6349_v37  ;;  %2179 = vmatpush.msra.mxu3 %v6352_v30 }
0x1c2c   :  { %v1848_v48 = vpop.f32.mrf.mxu3  ;;  %v1828_v0 = vpop.f32.mrf.mxu2 }
0x1c2d   :  { %v1854_v32 = vrot.slane %v1848_v48, 4  ;;  %v1853_v3 = vrot.slane %v1828_v0, 4 }
0x1c2f   :  { %v1858_v7 = vadd.f32 %v1854_v32, %v1807_v51  ;;  %v1857_v6 = vadd.f32 %v1853_v3, %v1806_v5  ;;  %v1866_v32 = vrot.slane %v1793_v16, 6 }
0x1c31   :  { %5192 = vtanh.f32 %v1858_v7 }
0x1c32   :  { %5194 = vtanh.f32 %v1857_v6  ;;  %v1892_v6 = vld [vmem:[#allocation3 + $0x38] sm:$0xc0] }
0x1c37   :  { %v5193_v1 = vpop.eup %5192 }
0x1c38   :  { %v1862_v8 = vmul.f32 %v5193_v1, %v5877_v41  ;;  %v5195_v9 = vpop.eup %5194 }
0x1c39   :  { %v1861_v42 = vmul.f32 0.5, %v5195_v9 }
0x1c3a   :  { %v1864_v62 = vadd.f32 %v1862_v8, %v5880_v46 }
0x1c3b   :  { %v1863_v31 = vadd.f32 0.5, %v1861_v42 }
0x1c3c   :  { %1870 = vrot.lane.b32.xlu1 %v1864_v62, %s5523_s2 }
0x1c3d   :  { %v1868_v51 = vmul.f32 %v1866_v32, %v1863_v31 }
0x1cae   :  { %v1871_v13 = vpop.permute.xlu1 %1870 }
0x1caf   :  { %v1873_v48 = vmul.f32 %v1871_v13, %v1863_v31 }
0x1cb1   :  { %1875 = vrot.lane.b32.xlu0 %v1873_v48, %s5523_s2  ;;  %v433_v48 = vld [vmem:[#allocation2 + $0x2c] sm:$0xff] }
0x1cb2   :  { %v439_v32 = vsel %vm350_vm8, %v433_v48, 0.0 }
0x1d23   :  { %v1876_v7 = vpop.permute.xlu0 %1875 }
0x1d24   :  { %v6545_v1 = vadd.f32 %v1876_v7, %v1868_v51  ;;  %v445_v51 = vadd.f32 %v439_v32, %v5768_v57  ;;  %v461_v7 = vld [vmem:[#allocation2 + $0x2e] sm:$0xff] }
0x1d25   :  { %v1891_v32 = vld [vmem:[#allocation3 + $0x8] sm:$0xc0] }
0x1d26   :  { %5196 = vtanh.f32 %v6545_v1 }
0x1d2c   :  { %v5197_v8 = vpop.eup %5196 }
0x1d2d   :  { %1881 = vrot.lane.b32.xlu0 %v5197_v8, %s5523_s2  ;;  %v467_v8 = vsel %vm308_vm9, %v461_v7, 0.0 }
0x1d9f   :  { %v1882_v0 = vpop.permute.xlu0 %1881 }
0x1da0   :  { %v6549_v3 = vmul.f32 %v1882_v0, %v1864_v62  ;;  %v473_v0 = vadd.f32 %v467_v8, %v445_v51 }
0x1da2   :  { %v1893_v5 = vrot.slane %v6549_v3, 4 }
0x1da4   :  { %5005 = vmatmul.msk.f32.vlgmr.msra.gmra.mxu0 %vm70_vm0, %v1893_v5  ;;  %5006 = vmatmul.msk.f32.vlgmr.msra.gmra.mxu1 %vm70_vm0, %v1893_v5  ;;  %v489_v5 = vld [vmem:[#allocation2 + $0x30] sm:$0xff] }
0x1da5   :  { %2237 = vmatpush.msra.mxu0 %v6307_v56  ;;  %2257 = vmatpush.msra.mxu1 %v6310_v12 }
0x1da7   :  { %2238 = vmatpush.msra.mxu0 %v6313_v58  ;;  %2258 = vmatpush.msra.mxu1 %v6316_v60 }
0x1da9   :  { %2239 = vmatpush.msra.mxu0 %v6319_v17  ;;  %2259 = vmatpush.msra.mxu1 %v6322_v23 }
0x1dab   :  { %2240 = vmatpush.msra.mxu0 %v6325_v28  ;;  %2260 = vmatpush.msra.mxu1 %v6328_v33 }
0x1dad   :  { %2241 = vmatpush.msra.mxu0 %v6331_v50  ;;  %2261 = vmatpush.msra.mxu1 %v6334_v54 }
0x1daf   :  { %2242 = vmatpush.msra.mxu0 %v6337_v52  ;;  %2262 = vmatpush.msra.mxu1 %v6340_v40 }
0x1db1   :  { %2243 = vmatpush.msra.mxu0 %v6343_v63  ;;  %2263 = vmatpush.msra.mxu1 %v6346_v45 }
0x1db3   :  { %2244 = vmatpush.msra.mxu0 %v6349_v37  ;;  %2264 = vmatpush.msra.mxu1 %v6352_v30 }
0x1e21   :  { %v1933_v16 = vpop.f32.mrf.mxu1  ;;  %v1913_v48 = vpop.f32.mrf.mxu0 }
0x1e22   :  { %v1939_v62 = vrot.slane %v1933_v16, 2  ;;  %v517_v16 = vld [vmem:[#allocation2 + $0x32] sm:$0xff]  ;;  %v1938_v57 = vrot.slane %v1913_v48, 2 }
0x1e24   :  { %v1943_v9 = vadd.f32 %v1939_v62, %v1892_v6  ;;  %v495_v62 = vsel %vm266_vm10, %v489_v5, 0.0  ;;  %v1942_v43 = vadd.f32 %v1938_v57, %v1891_v32  ;;  %v279_v5 = vsel %vm266_vm10, %v6254_v55, 0.0  ;;  %v503_v57 = vld [vmem:[#allocation2 + $0x70] sm:$0xff] }
0x1e25   :  { %v501_v6 = vadd.f32 %v495_v62, %v473_v0  ;;  %v237_v0 = vsel %vm224_vm11, %v6249_v35, 0.0  ;;  %v425_v55 = vsel %vm371_vm6, %v6451_v44, 0.0 }
0x1e26   :  { %5198 = vtanh.f32 %v1943_v9  ;;  %v523_v9 = vsel %vm224_vm11, %v517_v16, 0.0  ;;  %v285_v16 = vadd.f32 %v279_v5, %v237_v0 }
0x1e27   :  { %5200 = vtanh.f32 %v1942_v43  ;;  %v321_v43 = vsel %vm308_vm9, %v6436_v10, 0.0 }
0x1e28   :  { %v327_v62 = vadd.f32 %v321_v43, %v285_v16  ;;  %v1951_v16 = vrot.slane %v6545_v1, 6 }
0x1e2c   :  { %v5199_v42 = vpop.eup %5198 }
0x1e2d   :  { %v1947_v31 = vmul.f32 %v5199_v42, %v5877_v41  ;;  %v529_v42 = vadd.f32 %v523_v9, %v501_v6  ;;  %v5201_v7 = vpop.eup %5200  ;;  %v447_v9 = vld [vmem:[#allocation2 + $0x6c] sm:$0xff] }
0x1e2e   :  { %v1946_v51 = vmul.f32 0.5, %v5201_v7  ;;  %v453_v10 = vsel %vm329_vm5, %v447_v9, 0.0  ;;  %v531_v7 = vld [vmem:[#allocation2 + $0x72] sm:$0xff] }
0x1e2f   :  { %v6572_v13 = vadd.f32 %v1947_v31, %v5880_v46  ;;  %v557_v31 = vsel %vm184_vm1, %v529_v42, 0.0  ;;  %v537_v44 = vsel %vm203_vm2, %v531_v7, 0.0 }
0x1e30   :  { %v1948_v8 = vadd.f32 0.5, %v1946_v51 }
0x1e31   :  { %1955 = vrot.lane.b32.xlu0 %v6572_v13, %s5523_s2 }
0x1e32   :  { %v1953_v43 = vmul.f32 %v1951_v16, %v1948_v8 }
0x1e5b   :  { %558 = vadd.xlane.f32.xlu0 %v557_v31  ;;  %v475_v31 = vld [vmem:[#allocation2 + $0x6e] sm:$0xff] }
0x1ea3   :  { %v1956_v24 = vpop.permute.xlu0 %1955 }
0x1ea4   :  { %v1958_v47 = vmul.f32 %v1956_v24, %v1948_v8  ;;  %v363_v24 = vsel %vm350_vm8, %v6441_v2, 0.0  ;;  %v481_v2 = vsel %vm287_vm4, %v475_v31, 0.0 }
0x1ea5   :  { %v369_v6 = vadd.f32 %v363_v24, %v327_v62 }
0x1ea6   :  { %1960 = vrot.lane.b32.xlu2 %v1958_v47, %s5523_s2  ;;  %v397_v47 = vsel %vm388_vm7, %v6446_v59, 0.0  ;;  %v509_v59 = vsel %vm245_vm3, %v503_v57, 0.0 }
0x1ea7   :  { %v403_v35 = vadd.f32 %v397_v47, %v369_v6 }
0x1ea9   :  { %v431_v42 = vadd.f32 %v425_v55, %v403_v35 }
0x1eab   :  { %v459_v48 = vadd.f32 %v453_v10, %v431_v42 }
0x1ead   :  { %v487_v32 = vadd.f32 %v481_v2, %v459_v48 }
0x1eaf   :  { %v515_v51 = vadd.f32 %v509_v59, %v487_v32 }
0x1eb1   :  { %v543_v0 = vadd.f32 %v537_v44, %v515_v51 }
0x1eb3   :  { %v576_v5 = vsel %vm184_vm1, %v543_v0, 0.0  ;;  %vm560_vm1 = vcmask 78848  }
0x1ece   :  { %v559_v47 = vpop.xlane.xlu0 %558 }
0x1ecf   :  { %577 = vadd.xlane.f32.xlu2 %v576_v5  ;;  %v596_v55 = vmul.f32 %v5855_v18, %v559_v47  ;;  %v597_v9 = vmul.f32 %v5857_v20, %v559_v47 }
0x1f00   :  { %v1961_v62 = vpop.permute.xlu2 %1960 }
0x1f01   :  { %v1963_v24 = vadd.f32 %v1961_v62, %v1953_v43 }
0x1f03   :  { %5202 = vtanh.f32 %v1963_v24 }
0x1f09   :  { %v5203_v6 = vpop.eup %5202 }
0x1f0a   :  { %1966 = vrot.lane.b32.xlu1 %v5203_v6, %s5523_s2 }
0x1f42   :  { %v578_v35 = vpop.xlane.xlu2 %577 }
0x1f43   :  { %v615_v42 = vmul.f32 %v5859_v21, %v578_v35  ;;  %v616_v10 = vmul.f32 %v5861_v22, %v578_v35 }
0x1f45   :  { %v627_v31 = vadd.f32 %v615_v42, %v596_v55  ;;  %v628_v48 = vadd.f32 %v616_v10, %v597_v9  ;;  %v2030_v9 = vrot.slane %v1963_v24, 6 }
0x1f47   :  { %v645_v1 = vadd.f32 %v5866_v25, %v627_v31  ;;  %v646_v8 = vadd.f32 %v5868_v27, %v628_v48 }
0x1f49   :  { %657 = vst [vmem:[#allocation3 + $0x28] sm:$0xff] %v645_v1 }
0x1f4a   :  { %658 = vst [vmem:[#allocation3 + $0x48] sm:$0xff] %v646_v8 }
0x1f50   :  { %v1976_v16 = vld [vmem:[#allocation3 + $0x28] sm:$0x3] }
0x1f7c   :  { %v1967_v2 = vpop.permute.xlu1 %1966 }
0x1f7d   :  { %v6623_v57 = vmul.f32 %v1967_v2, %v6572_v13  ;;  %v1977_v13 = vld [vmem:[#allocation3 + $0x48] sm:$0x3] }
0x1f7f   :  { %v1978_v32 = vrot.slane %v6623_v57, 6 }
0x1f81   :  { %5007 = vmatmul.msk.f32.vlgmr.msra.gmra.mxu2 %vm70_vm0, %v1978_v32  ;;  %5008 = vmatmul.msk.f32.vlgmr.msrb.gmra.mxu3 %vm70_vm0, %v1978_v32 }
0x1f82   :  { %2322 = vmatpush.msra.mxu2 %v6307_v56  ;;  %2342 = vmatpush.msrb.mxu3 %v6310_v12 }
0x1f84   :  { %2323 = vmatpush.msra.mxu2 %v6313_v58  ;;  %2343 = vmatpush.msrb.mxu3 %v6316_v60 }
0x1f86   :  { %2324 = vmatpush.msra.mxu2 %v6319_v17  ;;  %2344 = vmatpush.msrb.mxu3 %v6322_v23 }
0x1f88   :  { %2325 = vmatpush.msra.mxu2 %v6325_v28  ;;  %2345 = vmatpush.msrb.mxu3 %v6328_v33 }
0x1f8a   :  { %2326 = vmatpush.msra.mxu2 %v6331_v50  ;;  %2346 = vmatpush.msrb.mxu3 %v6334_v54 }
0x1f8c   :  { %2327 = vmatpush.msra.mxu2 %v6337_v52  ;;  %2347 = vmatpush.msrb.mxu3 %v6340_v40 }
0x1f8e   :  { %2328 = vmatpush.msra.mxu2 %v6343_v63  ;;  %2348 = vmatpush.msrb.mxu3 %v6346_v45 }
0x1f90   :  { %2329 = vmatpush.msra.mxu2 %v6349_v37  ;;  %2349 = vmatpush.msrb.mxu3 %v6352_v30 }
0x2004   :  { %v2018_v59 = vpop.f32.mrf.mxu3  ;;  %v1998_v5 = vpop.f32.mrf.mxu2 }
0x2005   :  { %v2022_v7 = vadd.f32 %v2018_v59, %v1977_v13  ;;  %v2021_v43 = vadd.f32 %v1998_v5, %v1976_v16  ;;  %v5435_v5 = vld [vmem:[#allocation5 + $0x78] sm:$0xff]  ;;  %v5436_v16 = vld [vmem:[#allocation5 + $0x60] sm:$0xff] }
0x2007   :  { %5204 = vtanh.f32 %v2022_v7 }
0x2008   :  { %5206 = vtanh.f32 %v2021_v43  ;;  %v5437_v43 = vld [vmem:[#allocation5 + $0x68] sm:$0xff] }
0x200d   :  { %v5205_v51 = vpop.eup %5204 }
0x200e   :  { %v2026_v44 = vmul.f32 %v5205_v51, %v5877_v41  ;;  %v5207_v62 = vpop.eup %5206 }
0x200f   :  { %v2025_v6 = vmul.f32 0.5, %v5207_v62  ;;  %v5438_v62 = vld [vmem:[#allocation5 + $0x50] sm:$0xff] }
0x2010   :  { %v2028_v0 = vadd.f32 %v2026_v44, %v5880_v46 }
0x2011   :  { %v2027_v47 = vadd.f32 0.5, %v2025_v6  ;;  %v5439_v6 = vld [vmem:[#allocation5 + $0x58] sm:$0xff] }
0x2012   :  { %2034 = vrot.lane.b32.xlu1 %v2028_v0, %s5523_s2 }
0x2013   :  { %v2032_v42 = vmul.f32 %v2030_v9, %v2027_v47  ;;  %v5443_v9 = vld [vmem:[#allocation5 + $0x38] sm:$0xff] }
0x2084   :  { %v2035_v35 = vpop.permute.xlu1 %2034 }
0x2085   :  { %v2037_v55 = vmul.f32 %v2035_v35, %v2027_v47  ;;  %v5440_v47 = vld [vmem:[#allocation5 + $0x40] sm:$0xff]  ;;  %v5441_v35 = vld [vmem:[#allocation5 + $0x48] sm:$0xff] }
0x2087   :  { %2039 = vrot.lane.b32.xlu1 %v2037_v55, %s5523_s2  ;;  %v5442_v55 = vld [vmem:[#allocation5 + $0x30] sm:$0xff] }
0x20f9   :  { %v2040_v10 = vpop.permute.xlu1 %2039 }
0x20fa   :  { %v2042_v31 = vadd.f32 %v2040_v10, %v2032_v42  ;;  %v5444_v42 = vld [vmem:[#allocation5 + $0x20] sm:$0xff]  ;;  %v5445_v10 = vld [vmem:[#allocation5 + $0x28] sm:$0xff] }
0x20fc   :  { %5208 = vtanh.f32 %v2042_v31  ;;  %v2114_v24 = vrot.slane %v2042_v31, 6  ;;  %v5446_v31 = vld [vmem:[#allocation5 + $0x10] sm:$0xff] }
0x2102   :  { %v5209_v48 = vpop.eup %5208 }
0x2103   :  { %2045 = vrot.lane.b32.xlu1 %v5209_v48, %s5523_s2  ;;  %v5447_v48 = vld [vmem:[#allocation5 + $0x18] sm:$0xff] }
0x2175   :  { %v2046_v1 = vpop.permute.xlu1 %2045 }
0x2176   :  { %v6649_v8 = vmul.f32 %v2046_v1, %v2028_v0  ;;  %v5434_v0 = vld [vmem:[#allocation5 + $0x70] sm:$0xff]  ;;  %v5448_v1 = vld [vmem:[#allocation5] sm:$0xff] }
0x2178   :  { %5009 = vmatmul.msk.f32.vlgmr.msrb.gmra.mxu0 %vm70_vm0, %v6649_v8  ;;  %5010 = vmatmul.msk.f32.vlgmr.msrb.gmra.mxu1 %vm70_vm0, %v6649_v8 }
0x2179   :  { %2400 = vmatpush.msrb.mxu0 %v6307_v56  ;;  %2420 = vmatpush.msrb.mxu1 %v6310_v12 }
0x217b   :  { %2401 = vmatpush.msrb.mxu0 %v6313_v58  ;;  %2421 = vmatpush.msrb.mxu1 %v6316_v60  ;;  %v2056_v58 = vld [vmem:[#allocation3 + $0x48] sm:$0xc] }
0x217d   :  { %2402 = vmatpush.msrb.mxu0 %v6319_v17  ;;  %2422 = vmatpush.msrb.mxu1 %v6322_v23 }
0x217f   :  { %2403 = vmatpush.msrb.mxu0 %v6325_v28  ;;  %2423 = vmatpush.msrb.mxu1 %v6328_v33 }
0x2181   :  { %2404 = vmatpush.msrb.mxu0 %v6331_v50  ;;  %2424 = vmatpush.msrb.mxu1 %v6334_v54  ;;  %v2055_v54 = vld [vmem:[#allocation3 + $0x28] sm:$0xc] }
0x2183   :  { %2405 = vmatpush.msrb.mxu0 %v6337_v52  ;;  %2425 = vmatpush.msrb.mxu1 %v6340_v40 }
0x2185   :  { %2406 = vmatpush.msrb.mxu0 %v6343_v63  ;;  %2426 = vmatpush.msrb.mxu1 %v6346_v45 }
0x2187   :  { %2407 = vmatpush.msrb.mxu0 %v6349_v37  ;;  %2427 = vmatpush.msrb.mxu1 %v6352_v30 }
0x21f5   :  { %v2096_v56 = vpop.f32.mrf.mxu1  ;;  %v2076_v33 = vpop.f32.mrf.mxu0 }
0x21f6   :  { %v2102_v12 = vrot.slane %v2096_v56, 6  ;;  %v2101_v50 = vrot.slane %v2076_v33, 6  ;;  %v5449_v56 = vld [vmem:[#allocation5 + $0x8] sm:$0xff] }
0x21f8   :  { %v2106_v60 = vadd.f32 %v2102_v12, %v2056_v58  ;;  %v2105_v52 = vadd.f32 %v2101_v50, %v2055_v54 }
0x21fa   :  { %5210 = vtanh.f32 %v2106_v60  ;;  %v2140_v60 = vld [vmem:[#allocation3 + $0x48] sm:$0x30] }
0x21fb   :  { %5212 = vtanh.f32 %v2105_v52  ;;  %v2139_v52 = vld [vmem:[#allocation3 + $0x28] sm:$0x30] }
0x2200   :  { %v5211_v17 = vpop.eup %5210 }
0x2201   :  { %v2110_v23 = vmul.f32 %v5211_v17, %v5877_v41  ;;  %v5213_v40 = vpop.eup %5212 }
0x2202   :  { %v2109_v63 = vmul.f32 0.5, %v5213_v40 }
0x2203   :  { %v2112_v28 = vadd.f32 %v2110_v23, %v5880_v46 }
0x2204   :  { %v2111_v45 = vadd.f32 0.5, %v2109_v63 }
0x2205   :  { %2118 = vrot.lane.b32.xlu1 %v2112_v28, %s5523_s2 }
0x2206   :  { %v2116_v2 = vmul.f32 %v2114_v24, %v2111_v45 }
0x2277   :  { %v2119_v37 = vpop.permute.xlu1 %2118 }
0x2278   :  { %v2121_v30 = vmul.f32 %v2119_v37, %v2111_v45 }
0x227a   :  { %2123 = vrot.lane.b32.xlu1 %v2121_v30, %s5523_s2 }
0x22ec   :  { %v2124_v32 = vpop.permute.xlu1 %2123 }
0x22ed   :  { %v6675_v13 = vadd.f32 %v2124_v32, %v2116_v2 }
0x22ef   :  { %5214 = vtanh.f32 %v6675_v13  ;;  %v2199_v2 = vrot.slane %v6675_v13, 6 }
0x22f5   :  { %v5215_v59 = vpop.eup %5214 }
0x22f6   :  { %2129 = vrot.lane.b32.xlu0 %v5215_v59, %s5523_s2 }
0x2368   :  { %v2130_v7 = vpop.permute.xlu0 %2129 }
0x2369   :  { %v6679_v51 = vmul.f32 %v2130_v7, %v2112_v28 }
0x236b   :  { %v2141_v44 = vrot.slane %v6679_v51, 2 }
0x236d   :  { %5011 = vmatmul.msk.f32.vlgmr.msrb.gmra.mxu2 %vm70_vm0, %v2141_v44  ;;  %5012 = vmatmul.msk.f32.vlgmr.msra.gmra.mxu3 %vm70_vm0, %v2141_v44 }
0x236e   :  { %2485 = vmatpush.msrb.mxu2 %v5434_v0  ;;  %2505 = vmatpush.msra.mxu3 %v5435_v5 }
0x2370   :  { %2486 = vmatpush.msrb.mxu2 %v5436_v16  ;;  %2506 = vmatpush.msra.mxu3 %v5437_v43 }
0x2372   :  { %2487 = vmatpush.msrb.mxu2 %v5438_v62  ;;  %2507 = vmatpush.msra.mxu3 %v5439_v6  ;;  %v2225_v62 = vld [vmem:[#allocation3 + $0x48] sm:$0xc0] }
0x2374   :  { %2488 = vmatpush.msrb.mxu2 %v5440_v47  ;;  %2508 = vmatpush.msra.mxu3 %v5441_v35 }
0x2376   :  { %2489 = vmatpush.msrb.mxu2 %v5442_v55  ;;  %2509 = vmatpush.msra.mxu3 %v5443_v9  ;;  %v209_v9 = vld [vmem:[#allocation2 + $0x28] sm:$0x3f] }
0x2378   :  { %2490 = vmatpush.msrb.mxu2 %v5444_v42  ;;  %2510 = vmatpush.msra.mxu3 %v5445_v10  ;;  %v251_v42 = vld [vmem:[#allocation2 + $0x2a] sm:$0x3f] }
0x2379   :  { %v293_v10 = vld [vmem:[#allocation2 + $0x2c] sm:$0x3f] }
0x237a   :  { %2491 = vmatpush.msrb.mxu2 %v5446_v31  ;;  %2511 = vmatpush.msra.mxu3 %v5447_v48  ;;  %v217_v31 = vsel %vm203_vm2, %v209_v9, 0.0  ;;  %v259_v48 = vsel %vm245_vm3, %v251_v42, 0.0 }
0x237c   :  { %2492 = vmatpush.msrb.mxu2 %v5448_v1  ;;  %2512 = vmatpush.msra.mxu3 %v5449_v56  ;;  %v301_v1 = vsel %vm287_vm4, %v293_v10, 0.0  ;;  %v265_v56 = vadd.f32 %v259_v48, %v217_v31  ;;  %v230_v48 = vld [vmem:[#allocation2 + $0x68] sm:$0x3f] }
0x23f0   :  { %v2181_v12 = vpop.f32.mrf.mxu3  ;;  %v2161_v50 = vpop.f32.mrf.mxu2 }
0x23f1   :  { %v2187_v58 = vrot.slane %v2181_v12, 4  ;;  %v2186_v54 = vrot.slane %v2161_v50, 4  ;;  %v307_v12 = vadd.f32 %v301_v1, %v265_v56  ;;  %v406_v50 = vld [vmem:[#allocation2 + $0x32] sm:$0x3f]  ;;  %v272_v1 = vld [vmem:[#allocation2 + $0x6a] sm:$0x3f] }
0x23f2   :  { %v238_v56 = vsel %vm224_vm11, %v230_v48, 0.0 }
0x23f3   :  { %v2191_v17 = vadd.f32 %v2187_v58, %v2140_v60  ;;  %v2190_v40 = vadd.f32 %v2186_v54, %v2139_v52  ;;  %v335_v58 = vld [vmem:[#allocation2 + $0x2e] sm:$0x3f]  ;;  %v434_v54 = vld [vmem:[#allocation2 + $0x34] sm:$0x3f]  ;;  %v412_v52 = vsel %vm388_vm7, %v406_v50, 0.0 }
0x23f4   :  { %v343_v60 = vsel %vm329_vm5, %v335_v58, 0.0  ;;  %v314_v58 = vld [vmem:[#allocation2 + $0x6c] sm:$0x3f] }
0x23f5   :  { %5216 = vtanh.f32 %v2191_v17  ;;  %v349_v17 = vadd.f32 %v343_v60, %v307_v12  ;;  %v280_v12 = vsel %vm266_vm10, %v272_v1, 0.0  ;;  %v390_v50 = vld [vmem:[#allocation2 + $0x70] sm:$0x3f] }
0x23f6   :  { %5218 = vtanh.f32 %v2190_v40  ;;  %v286_v60 = vadd.f32 %v280_v12, %v238_v56 }
0x23fb   :  { %v5217_v23 = vpop.eup %5216 }
0x23fc   :  { %v2195_v28 = vmul.f32 %v5217_v23, %v5877_v41  ;;  %v5219_v63 = vpop.eup %5218  ;;  %v373_v23 = vld [vmem:[#allocation2 + $0x30] sm:$0x3f] }
0x23fd   :  { %v2194_v45 = vmul.f32 0.5, %v5219_v63  ;;  %v440_v63 = vsel %vm350_vm8, %v434_v54, 0.0 }
0x23fe   :  { %v2197_v33 = vadd.f32 %v2195_v28, %v5880_v46  ;;  %v381_v28 = vsel %vm371_vm6, %v373_v23, 0.0  ;;  %v356_v23 = vld [vmem:[#allocation2 + $0x6e] sm:$0x3f] }
0x23ff   :  { %v2196_v37 = vadd.f32 0.5, %v2194_v45 }
0x2400   :  { %2203 = vrot.lane.b32.xlu2 %v2197_v33, %s5523_s2 }
0x2401   :  { %v2201_v32 = vmul.f32 %v2199_v2, %v2196_v37  ;;  %v490_v2 = vld [vmem:[#allocation2 + $0x38] sm:$0x3f] }
0x245a   :  { %v2204_v30 = vpop.permute.xlu2 %2203 }
0x245b   :  { %v2206_v24 = vmul.f32 %v2204_v30, %v2196_v37  ;;  %v462_v37 = vld [vmem:[#allocation2 + $0x36] sm:$0x3f] }
0x245c   :  { %v468_v30 = vsel %vm308_vm9, %v462_v37, 0.0  ;;  %v448_v37 = vld [vmem:[#allocation2 + $0x74] sm:$0x3f] }
0x245d   :  { %2208 = vrot.lane.b32.xlu1 %v2206_v24, %s5523_s2 }
0x24cf   :  { %v2209_v59 = vpop.permute.xlu1 %2208 }
0x24d0   :  { %v6689_v7 = vadd.f32 %v2209_v59, %v2201_v32  ;;  %v496_v32 = vsel %vm266_vm10, %v490_v2, 0.0  ;;  %v476_v2 = vld [vmem:[#allocation2 + $0x76] sm:$0x3f] }
0x24d2   :  { %5220 = vtanh.f32 %v6689_v7 }
0x24d8   :  { %v5221_v44 = vpop.eup %5220 }
0x24d9   :  { %2214 = vrot.lane.b32.xlu1 %v5221_v44, %s5523_s2  ;;  %v518_v44 = vld [vmem:[#allocation2 + $0x3a] sm:$0x3f] }
0x254b   :  { %v2215_v0 = vpop.permute.xlu1 %2214 }
0x254c   :  { %v6693_v5 = vmul.f32 %v2215_v0, %v2197_v33  ;;  %v387_v33 = vadd.f32 %v381_v28, %v349_v17  ;;  %v524_v0 = vsel %vm224_vm11, %v518_v44, 0.0  ;;  %v322_v17 = vsel %vm308_vm9, %v314_v58, 0.0  ;;  %v504_v44 = vld [vmem:[#allocation2 + $0x78] sm:$0x3f] }
0x254d   :  { %v328_v28 = vadd.f32 %v322_v17, %v286_v60  ;;  %vm4783_vm9 = vcmask 375808  }
0x254e   :  { %v2226_v16 = vrot.slane %v6693_v5, 4  ;;  %v418_v40 = vadd.f32 %v412_v52, %v387_v33  ;;  %v364_v33 = vsel %vm350_vm8, %v356_v23, 0.0  ;;  %v398_v52 = vsel %vm388_vm7, %v390_v50, 0.0 }
0x254f   :  { %v370_v54 = vadd.f32 %v364_v33, %v328_v28  ;;  %vm4596_vm7 = vcmask 261120  }
0x2550   :  { %5013 = vmatmul.msk.f32.vlgmr.msra.gmra.mxu0 %vm70_vm0, %v2226_v16  ;;  %5014 = vmatmul.msk.f32.vlgmr.msra.gmra.mxu1 %vm70_vm0, %v2226_v16  ;;  %v446_v45 = vadd.f32 %v440_v63, %v418_v40  ;;  %v420_v40 = vld [vmem:[#allocation2 + $0x72] sm:$0x3f] }
0x2551   :  { %v404_v63 = vadd.f32 %v398_v52, %v370_v54 }
0x2552   :  { %v474_v24 = vadd.f32 %v468_v30, %v446_v45  ;;  %v426_v45 = vsel %vm371_vm6, %v420_v40, 0.0  ;;  %vm4857_vm6 = vcmask 1045504  }
0x2553   :  { %v432_v30 = vadd.f32 %v426_v45, %v404_v63 }
0x2554   :  { %v502_v59 = vadd.f32 %v496_v32, %v474_v24  ;;  %v454_v24 = vsel %vm329_vm5, %v448_v37, 0.0  ;;  %vm888_vm5 = vcmask 1046020  }
0x2555   :  { %v460_v32 = vadd.f32 %v454_v24, %v432_v30 }
0x2556   :  { %v530_v16 = vadd.f32 %v524_v0, %v502_v59  ;;  %v482_v59 = vsel %vm287_vm4, %v476_v2, 0.0  ;;  %vm975_vm4 = vcmask 1048070  }
0x2557   :  { %v488_v0 = vadd.f32 %v482_v59, %v460_v32 }
0x25cd   :  { %v2266_v43 = vpop.f32.mrf.mxu1 }
0x25ce   :  { %v2272_v13 = vrot.slane %v2266_v43, 2  ;;  %v561_v43 = vsel %vm560_vm1, %v530_v16, 0.0  ;;  %v510_v16 = vsel %vm245_vm3, %v504_v44, 0.0  ;;  %vm715_vm3 = vcmask 1041920  }
0x25d0   :  { %v2276_v6 = vadd.f32 %v2272_v13, %v2225_v62  ;;  %v2246_v13 = vpop.f32.mrf.mxu0 }
0x25d1   :  { %v2271_v62 = vrot.slane %v2246_v13, 2  ;;  %v516_v13 = vadd.f32 %v510_v16, %v488_v0 }
0x25d2   :  { %5222 = vtanh.f32 %v2276_v6  ;;  %v2224_v6 = vld [vmem:[#allocation3 + $0x28] sm:$0xc0] }
0x25d8   :  { %v5223_v47 = vpop.eup %5222 }
0x25d9   :  { %v2280_v35 = vmul.f32 %v5223_v47, %v5877_v41  ;;  %v2275_v47 = vadd.f32 %v2271_v62, %v2224_v6 }
0x25db   :  { %v6700_v55 = vadd.f32 %v2280_v35, %v5880_v46  ;;  %5224 = vtanh.f32 %v2275_v47 }
0x25dd   :  { %2288 = vrot.lane.b32.xlu1 %v6700_v55, %s5523_s2 }
0x25e1   :  { %v5225_v35 = vpop.eup %5224 }
0x25e2   :  { %v2279_v9 = vmul.f32 0.5, %v5225_v35  ;;  %v2284_v35 = vrot.slane %v6689_v7, 6 }
0x25e4   :  { %v2281_v42 = vadd.f32 0.5, %v2279_v9 }
0x25e6   :  { %v2286_v9 = vmul.f32 %v2284_v35, %v2281_v42 }
0x2607   :  { %562 = vadd.xlane.f32.xlu1 %v561_v43  ;;  %v532_v43 = vld [vmem:[#allocation2 + $0x7a] sm:$0x3f] }
0x2608   :  { %v538_v62 = vsel %vm203_vm2, %v532_v43, 0.0  ;;  %vm801_vm2 = vcmask 1043970  }
0x2609   :  { %v544_v6 = vadd.f32 %v538_v62, %v516_v13 }
0x260b   :  { %v579_v47 = vsel %vm560_vm1, %v544_v6, 0.0 }
0x264f   :  { %v2289_v10 = vpop.permute.xlu1 %2288 }
0x2650   :  { %v2291_v31 = vmul.f32 %v2289_v10, %v2281_v42 }
0x2652   :  { %2293 = vrot.lane.b32.xlu0 %v2291_v31, %s5523_s2 }
0x267a   :  { %v563_v1 = vpop.xlane.xlu1 %562 }
0x267b   :  { %v598_v12 = vmul.f32 %v5855_v18, %v563_v1  ;;  %v599_v58 = vmul.f32 %v5857_v20, %v563_v1 }
0x267c   :  { %580 = vadd.xlane.f32.xlu0 %v579_v47 }
0x26c4   :  { %v2294_v10 = vpop.permute.xlu0 %2293 }
0x26c5   :  { %v2296_v31 = vadd.f32 %v2294_v10, %v2286_v9 }
0x26c7   :  { %5226 = vtanh.f32 %v2296_v31  ;;  %v2363_v2 = vrot.slane %v2296_v31, 6 }
0x26cd   :  { %v5227_v48 = vpop.eup %5226 }
0x26ce   :  { %2299 = vrot.lane.b32.xlu2 %v5227_v48, %s5523_s2 }
0x26ef   :  { %v581_v56 = vpop.xlane.xlu0 %580 }
0x26f0   :  { %v617_v60 = vmul.f32 %v5859_v21, %v581_v56  ;;  %v618_v17 = vmul.f32 %v5861_v22, %v581_v56 }
0x26f2   :  { %v629_v23 = vadd.f32 %v617_v60, %v598_v12  ;;  %v630_v28 = vadd.f32 %v618_v17, %v599_v58 }
0x26f4   :  { %v647_v7 = vadd.f32 %v5866_v25, %v629_v23  ;;  %v648_v42 = vadd.f32 %v5868_v27, %v630_v28 }
0x26f6   :  { %659 = vst [vmem:[#allocation3 + $0x10] sm:$0x3f] %v647_v7 }
0x26f7   :  { %660 = vst [vmem:[#allocation3 + $0x40] sm:$0x3f] %v648_v42 }
0x26fd   :  { %v2388_v1 = vld [vmem:[#allocation3 + $0x10] sm:$0xc] }
0x26fe   :  { %v2310_v20 = vld [vmem:[#allocation3 + $0x40] sm:$0x3]  ;;  %v2389_v6 = vld [vmem:[#allocation3 + $0x40] sm:$0xc] }
0x2728   :  { %v2300_v33 = vpop.permute.xlu2 %2299 }
0x2729   :  { %v6756_v50 = vmul.f32 %v2300_v33, %v6700_v55  ;;  %v2309_v55 = vld [vmem:[#allocation3 + $0x10] sm:$0x3] }
0x272b   :  { %v2311_v18 = vrot.slane %v6756_v50, 6 }
0x272d   :  { %5015 = vmatmul.msk.f32.vlgmr.msra.gmra.mxu2 %vm70_vm0, %v2311_v18  ;;  %5016 = vmatmul.msk.f32.vlgmr.msrb.gmra.mxu3 %vm70_vm0, %v2311_v18 }
0x27b0   :  { %v2351_v21 = vpop.f32.mrf.mxu3  ;;  %v2331_v52 = vpop.f32.mrf.mxu2 }
0x27b1   :  { %v2355_v22 = vadd.f32 %v2351_v21, %v2310_v20  ;;  %v2354_v40 = vadd.f32 %v2331_v52, %v2309_v55  ;;  %v2473_v52 = vld [vmem:[#allocation3 + $0x40] sm:$0x30] }
0x27b3   :  { %5228 = vtanh.f32 %v2355_v22 }
0x27b4   :  { %5230 = vtanh.f32 %v2354_v40 }
0x27b9   :  { %v5229_v54 = vpop.eup %5228 }
0x27ba   :  { %v2359_v25 = vmul.f32 %v5229_v54, %v5877_v41  ;;  %v5231_v63 = vpop.eup %5230 }
0x27bb   :  { %v2358_v45 = vmul.f32 0.5, %v5231_v63 }
0x27bc   :  { %v2361_v27 = vadd.f32 %v2359_v25, %v5880_v46 }
0x27bd   :  { %v2360_v37 = vadd.f32 0.5, %v2358_v45 }
0x27be   :  { %2367 = vrot.lane.b32.xlu2 %v2361_v27, %s5523_s2 }
0x27bf   :  { %v2365_v32 = vmul.f32 %v2363_v2, %v2360_v37 }
0x2818   :  { %v2368_v30 = vpop.permute.xlu2 %2367 }
0x2819   :  { %v2370_v24 = vmul.f32 %v2368_v30, %v2360_v37 }
0x281b   :  { %2372 = vrot.lane.b32.xlu2 %v2370_v24, %s5523_s2  ;;  %v2472_v24 = vld [vmem:[#allocation3 + $0x10] sm:$0x30] }
0x2875   :  { %v2373_v59 = vpop.permute.xlu2 %2372 }
0x2876   :  { %v2375_v44 = vadd.f32 %v2373_v59, %v2365_v32 }
0x2878   :  { %5232 = vtanh.f32 %v2375_v44  ;;  %v2447_v28 = vrot.slane %v2375_v44, 6 }
0x287e   :  { %v5233_v0 = vpop.eup %5232 }
0x287f   :  { %2378 = vrot.lane.b32.xlu2 %v5233_v0, %s5523_s2 }
0x28d9   :  { %v2379_v16 = vpop.permute.xlu2 %2378 }
0x28da   :  { %v6766_v43 = vmul.f32 %v2379_v16, %v2361_v27 }
0x28dc   :  { %5017 = vmatmul.msk.f32.vlgmr.msrb.gmra.mxu0 %vm70_vm0, %v6766_v43  ;;  %5018 = vmatmul.msk.f32.vlgmr.msrb.gmra.mxu1 %vm70_vm0, %v6766_v43 }
0x2959   :  { %v2429_v13 = vpop.f32.mrf.mxu1  ;;  %v2409_v31 = vpop.f32.mrf.mxu0 }
0x295a   :  { %v2435_v62 = vrot.slane %v2429_v13, 6  ;;  %v2434_v48 = vrot.slane %v2409_v31, 6  ;;  %v2594_v31 = vld [vmem:[%s7882_s3 + $0xf8] sm:$0xff] }
0x295b   :  { %2637 = vmatpush.msra.mxu1 %v2594_v31 }
0x295c   :  { %v2439_v47 = vadd.f32 %v2435_v62, %v2389_v6  ;;  %v2438_v56 = vadd.f32 %v2434_v48, %v2388_v1  ;;  %v2591_v48 = vld [vmem:[%s7882_s3 + $0xe0] sm:$0xff]  ;;  %v2592_v1 = vld [vmem:[%s7882_s3 + $0xe8] sm:$0xff] }
0x295d   :  { %2638 = vmatpush.msra.mxu1 %v2592_v1 }
0x295e   :  { %5234 = vtanh.f32 %v2439_v47 }
0x295f   :  { %5236 = vtanh.f32 %v2438_v56  ;;  %v2589_v56 = vld [vmem:[%s7882_s3 + $0xd0] sm:$0xff] }
0x2964   :  { %v5235_v35 = vpop.eup %5234 }
0x2965   :  { %v2443_v9 = vmul.f32 %v5235_v35, %v5877_v41  ;;  %v5237_v12 = vpop.eup %5236 }
0x2966   :  { %v2442_v58 = vmul.f32 0.5, %v5237_v12  ;;  %v2590_v12 = vld [vmem:[%s7882_s3 + $0xd8] sm:$0xff] }
0x2967   :  { %v2445_v10 = vadd.f32 %v2443_v9, %v5880_v46  ;;  %2639 = vmatpush.msra.mxu1 %v2590_v12 }
0x2968   :  { %v2444_v60 = vadd.f32 0.5, %v2442_v58  ;;  %v2587_v58 = vld [vmem:[%s7882_s3 + $0xc0] sm:$0xff] }
0x2969   :  { %2451 = vrot.lane.b32.xlu2 %v2445_v10, %s5523_s2 }
0x296a   :  { %v2449_v7 = vmul.f32 %v2447_v28, %v2444_v60  ;;  %v2583_v28 = vld [vmem:[%s7882_s3 + $0xa0] sm:$0xff] }
0x29c3   :  { %v2452_v17 = vpop.permute.xlu2 %2451 }
0x29c4   :  { %v2454_v23 = vmul.f32 %v2452_v17, %v2444_v60  ;;  %v2588_v60 = vld [vmem:[%s7882_s3 + $0xc8] sm:$0xff]  ;;  %v2585_v17 = vld [vmem:[%s7882_s3 + $0xb0] sm:$0xff] }
0x29c5   :  { %2640 = vmatpush.msra.mxu1 %v2588_v60 }
0x29c6   :  { %2456 = vrot.lane.b32.xlu2 %v2454_v23, %s5523_s2  ;;  %v2586_v23 = vld [vmem:[%s7882_s3 + $0xb8] sm:$0xff] }
0x29c7   :  { %2641 = vmatpush.msra.mxu1 %v2586_v23 }
0x2a20   :  { %v2457_v42 = vpop.permute.xlu2 %2456 }
0x2a21   :  { %v2459_v33 = vadd.f32 %v2457_v42, %v2449_v7  ;;  %v2584_v7 = vld [vmem:[%s7882_s3 + $0xa8] sm:$0xff]  ;;  %v2581_v42 = vld [vmem:[%s7882_s3 + $0x90] sm:$0xff] }
0x2a22   :  { %2642 = vmatpush.msra.mxu1 %v2584_v7 }
0x2a23   :  { %5238 = vtanh.f32 %v2459_v33  ;;  %v2532_v62 = vrot.slane %v2459_v33, 6  ;;  %v2582_v33 = vld [vmem:[%s7882_s3 + $0x98] sm:$0xff] }
0x2a24   :  { %2643 = vmatpush.msra.mxu1 %v2582_v33 }
0x2a29   :  { %v5239_v18 = vpop.eup %5238 }
0x2a2a   :  { %2462 = vrot.lane.b32.xlu1 %v5239_v18, %s5523_s2  ;;  %v2579_v18 = vld [vmem:[%s7882_s3 + $0x80] sm:$0xff] }
0x2a9c   :  { %v2463_v20 = vpop.permute.xlu1 %2462 }
0x2a9d   :  { %v6777_v21 = vmul.f32 %v2463_v20, %v2445_v10  ;;  %v2593_v10 = vld [vmem:[%s7882_s3 + $0xf0] sm:$0xff]  ;;  %v2580_v20 = vld [vmem:[%s7882_s3 + $0x88] sm:$0xff] }
0x2a9e   :  { %2602 = vmatpush.msra.mxu0 %v2593_v10  ;;  %2644 = vmatpush.msra.mxu1 %v2580_v20  ;;  %v6919_v20 = vld [vmem:[#allocation5 + $0xf8] sm:$0xff] }
0x2a9f   :  { %v2474_v22 = vrot.slane %v6777_v21, 2  ;;  %2468 = vrot.lane.b32.xlu1 %v6777_v21, %s5523_s2  ;;  %2764 = vmatpush.msrb.mxu3 %v6919_v20 }
0x2aa0   :  { %2603 = vmatpush.msra.mxu0 %v2591_v48 }
0x2aa1   :  { %5019 = vmatmul.msk.f32.vlgmr.msrb.gmra.mxu2 %vm70_vm0, %v2474_v22  ;;  %5020 = vmatmul.msk.f32.vlgmr.msra.gmra.mxu3 %vm70_vm0, %v2474_v22  ;;  %v2577_v22 = vld [vmem:[%s7882_s3 + $0x70] sm:$0xff] }
0x2aa2   :  { %2604 = vmatpush.msra.mxu0 %v2589_v56 }
0x2aa4   :  { %2605 = vmatpush.msra.mxu0 %v2587_v58 }
0x2aa6   :  { %2606 = vmatpush.msra.mxu0 %v2585_v17 }
0x2aa8   :  { %2607 = vmatpush.msra.mxu0 %v2583_v28 }
0x2aaa   :  { %2608 = vmatpush.msra.mxu0 %v2581_v42 }
0x2aac   :  { %2609 = vmatpush.msra.mxu0 %v2579_v18  ;;  %v6917_v18 = vld [vmem:[#allocation5 + $0xf0] sm:$0xff] }
0x2aad   :  { %2744 = vmatpush.msra.mxu2 %v6917_v18 }
0x2aae   :  { %2610 = vmatpush.msra.mxu0 %v2577_v22  ;;  %v6921_v22 = vld [vmem:[#allocation5 + $0xe0] sm:$0xff] }
0x2aaf   :  { %2745 = vmatpush.msra.mxu2 %v6921_v22 }
0x2b11   :  { %v2469_v54 = vpop.permute.xlu1 %2468 }
0x2b12   :  { %2471 = vst.msk [vmem:[#allocation4] sm:$0xc] %vm801_vm2, %v2469_v54  ;;  %v2578_v54 = vld [vmem:[%s7882_s3 + $0x78] sm:$0xff] }
0x2b13   :  { %2645 = vmatpush.msra.mxu1 %v2578_v54  ;;  %v6925_v54 = vld [vmem:[#allocation5 + $0xe8] sm:$0xff] }
0x2b14   :  { %2765 = vmatpush.msrb.mxu3 %v6925_v54 }
0x2b24   :  { %v2514_v25 = vpop.f32.mrf.mxu3  ;;  %v2494_v37 = vpop.f32.mrf.mxu2 }
0x2b25   :  { %v2520_v27 = vrot.slane %v2514_v25, 4  ;;  %v2519_v30 = vrot.slane %v2494_v37, 4  ;;  %v2575_v25 = vld [vmem:[%s7882_s3 + $0x60] sm:$0xff] }
0x2b26   :  { %2611 = vmatpush.msra.mxu0 %v2575_v25  ;;  %v6927_v25 = vld [vmem:[#allocation5 + $0xd0] sm:$0xff] }
0x2b27   :  { %v2524_v55 = vadd.f32 %v2520_v27, %v2473_v52  ;;  %v2523_v2 = vadd.f32 %v2519_v30, %v2472_v24  ;;  %v2576_v27 = vld [vmem:[%s7882_s3 + $0x68] sm:$0xff]  ;;  %v2573_v52 = vld [vmem:[%s7882_s3 + $0x50] sm:$0xff]  ;;  %2746 = vmatpush.msra.mxu2 %v6927_v25 }
0x2b28   :  { %2646 = vmatpush.msra.mxu1 %v2576_v27  ;;  %2612 = vmatpush.msra.mxu0 %v2573_v52  ;;  %v6929_v27 = vld [vmem:[#allocation5 + $0xd8] sm:$0xff]  ;;  %v6935_v52 = vld [vmem:[#allocation5 + $0xc0] sm:$0xff] }
0x2b29   :  { %5240 = vtanh.f32 %v2524_v55  ;;  %v2574_v55 = vld [vmem:[%s7882_s3 + $0x58] sm:$0xff]  ;;  %2766 = vmatpush.msrb.mxu3 %v6929_v27  ;;  %2747 = vmatpush.msra.mxu2 %v6935_v52 }
0x2b2a   :  { %5242 = vtanh.f32 %v2523_v2  ;;  %2647 = vmatpush.msra.mxu1 %v2574_v55  ;;  %v2569_v2 = vld [vmem:[%s7882_s3 + $0x30] sm:$0xff]  ;;  %v6937_v55 = vld [vmem:[#allocation5 + $0xc8] sm:$0xff] }
0x2b2b   :  { %2767 = vmatpush.msrb.mxu3 %v6937_v55 }
0x2b2f   :  { %v5241_v40 = vpop.eup %5240 }
0x2b30   :  { %v2528_v63 = vmul.f32 %v5241_v40, %v5877_v41  ;;  %v5243_v32 = vpop.eup %5242  ;;  %v2571_v40 = vld [vmem:[%s7882_s3 + $0x40] sm:$0xff] }
0x2b31   :  { %v2527_v59 = vmul.f32 0.5, %v5243_v32  ;;  %2613 = vmatpush.msra.mxu0 %v2571_v40  ;;  %v2570_v32 = vld [vmem:[%s7882_s3 + $0x38] sm:$0xff]  ;;  %v6943_v40 = vld [vmem:[#allocation5 + $0xb0] sm:$0xff] }
0x2b32   :  { %v6787_v45 = vadd.f32 %v2528_v63, %v5880_v46  ;;  %v2572_v63 = vld [vmem:[%s7882_s3 + $0x48] sm:$0xff]  ;;  %2748 = vmatpush.msra.mxu2 %v6943_v40 }
0x2b33   :  { %v2529_v44 = vadd.f32 0.5, %v2527_v59  ;;  %2648 = vmatpush.msra.mxu1 %v2572_v63  ;;  %2614 = vmatpush.msra.mxu0 %v2569_v2  ;;  %v2568_v59 = vld [vmem:[%s7882_s3 + $0x28] sm:$0xff]  ;;  %v6959_v2 = vld [vmem:[#allocation5 + $0x90] sm:$0xff] }
0x2b34   :  { %2536 = vrot.lane.b32.xlu0 %v6787_v45, %s5523_s2  ;;  %v6945_v63 = vld [vmem:[#allocation5 + $0xb8] sm:$0xff] }
0x2b35   :  { %v2534_v6 = vmul.f32 %v2532_v62, %v2529_v44  ;;  %2649 = vmatpush.msra.mxu1 %v2570_v32  ;;  %2768 = vmatpush.msrb.mxu3 %v6945_v63  ;;  %v6961_v32 = vld [vmem:[#allocation5 + $0x98] sm:$0xff] }
0x2b37   :  { %2650 = vmatpush.msra.mxu1 %v2568_v59 }
0x2b3c   :  { %2384 = vrot.lane.b32.xlu0 %v6766_v43, %s5523_s2 }
0x2ba6   :  { %v2537_v0 = vpop.permute.xlu0 %2536 }
0x2ba7   :  { %v2539_v16 = vmul.f32 %v2537_v0, %v2529_v44  ;;  %v2565_v44 = vld [vmem:[%s7882_s3 + $0x10] sm:$0xff]  ;;  %v2566_v0 = vld [vmem:[%s7882_s3 + $0x18] sm:$0xff] }
0x2ba8   :  { %2651 = vmatpush.msra.mxu1 %v2566_v0 }
0x2ba9   :  { %2541 = vrot.lane.b32.xlu2 %v2539_v16, %s5523_s2  ;;  %v2563_v16 = vld [vmem:[%s7882_s3] sm:$0xff] }
0x2bae   :  { %v2385_v13 = vpop.permute.xlu0 %2384 }
0x2baf   :  { %2387 = vst.msk [vmem:[#allocation4 + $0x4] sm:$0x3] %vm715_vm3, %v2385_v13  ;;  %v2564_v13 = vld [vmem:[%s7882_s3 + $0x8] sm:$0xff] }
0x2bb0   :  { %2652 = vmatpush.msra.mxu1 %v2564_v13  ;;  %v6979_v13 = vld [vmem:[#allocation5 + $0x88] sm:$0xff] }
0x2bb2   :  { %3097 = vmatpush.msrb.mxu1 %v6919_v20 }
0x2bb4   :  { %3098 = vmatpush.msrb.mxu1 %v6925_v54 }
0x2bb6   :  { %3099 = vmatpush.msrb.mxu1 %v6929_v27 }
0x2bb8   :  { %3100 = vmatpush.msrb.mxu1 %v6937_v55 }
0x2bba   :  { %3101 = vmatpush.msrb.mxu1 %v6945_v63 }
0x2c03   :  { %v2542_v47 = vpop.permute.xlu2 %2541 }
0x2c04   :  { %v2544_v35 = vadd.f32 %v2542_v47, %v2534_v6  ;;  %v5021_v47 = vld [vmem:[%s7884_s5 + $0x1] ss:$2 sm:$0x3] }
0x2c06   :  { %5244 = vtanh.f32 %v2544_v35  ;;  %v6904_v35 = vperm.slane %v5021_v47, 0 }
0x2c0c   :  { %v5245_v9 = vpop.eup %5244 }
0x2c0d   :  { %2547 = vrot.lane.b32.xlu2 %v5245_v9, %s5523_s2  ;;  %v6906_v9 = vperm.slane %v5021_v47, 1 }
0x2c15   :  { %2305 = vrot.lane.b32.xlu2 %v6756_v50, %s5523_s2 }
0x2c67   :  { %v2548_v37 = vpop.permute.xlu2 %2547 }
0x2c68   :  { %v6871_v30 = vmul.f32 %v2548_v37, %v6787_v45  ;;  %v2567_v45 = vld [vmem:[%s7882_s3 + $0x20] sm:$0xff]  ;;  %v6951_v37 = vld [vmem:[#allocation5 + $0xa0] sm:$0xff] }
0x2c69   :  { %2615 = vmatpush.msra.mxu0 %v2567_v45  ;;  %2749 = vmatpush.msra.mxu2 %v6951_v37 }
0x2c6a   :  { %2553 = vrot.lane.b32.xlu2 %v6871_v30, %s5523_s2 }
0x2c6b   :  { %2616 = vmatpush.msra.mxu0 %v2565_v44  ;;  %2750 = vmatpush.msra.mxu2 %v6959_v2 }
0x2c6d   :  { %2617 = vmatpush.msra.mxu0 %v2563_v16  ;;  %v6977_v16 = vld [vmem:[#allocation5 + $0x80] sm:$0xff] }
0x2c6e   :  { %2751 = vmatpush.msra.mxu2 %v6977_v16 }
0x2c6f   :  { %v2306_v24 = vpop.permute.xlu2 %2305  ;;  %3077 = vmatpush.msrb.mxu0 %v6917_v18 }
0x2c70   :  { %2308 = vst.msk [vmem:[#allocation4] sm:$0xc0] %vm975_vm4, %v2306_v24  ;;  %v6953_v24 = vld [vmem:[#allocation5 + $0xa8] sm:$0xff]  ;;  %2829 = vmatpush.msrb.mxu2 %v6917_v18 }
0x2c71   :  { %3078 = vmatpush.msrb.mxu0 %v6921_v22  ;;  %2769 = vmatpush.msrb.mxu3 %v6953_v24 }
0x2c72   :  { %3102 = vmatpush.msrb.mxu1 %v6953_v24  ;;  %2830 = vmatpush.msrb.mxu2 %v6921_v22 }
0x2c73   :  { %3079 = vmatpush.msrb.mxu0 %v6927_v25  ;;  %2770 = vmatpush.msrb.mxu3 %v6961_v32 }
0x2c74   :  { %3103 = vmatpush.msrb.mxu1 %v6961_v32  ;;  %2831 = vmatpush.msrb.mxu2 %v6927_v25 }
0x2c75   :  { %3080 = vmatpush.msrb.mxu0 %v6935_v52  ;;  %2771 = vmatpush.msrb.mxu3 %v6979_v13 }
0x2c76   :  { %3104 = vmatpush.msrb.mxu1 %v6979_v13  ;;  %2832 = vmatpush.msrb.mxu2 %v6935_v52 }
0x2c77   :  { %3081 = vmatpush.msrb.mxu0 %v6943_v40  ;;  %2849 = vmatpush.msra.mxu3 %v6919_v20 }
0x2c78   :  { %2833 = vmatpush.msrb.mxu2 %v6943_v40 }
0x2c79   :  { %3082 = vmatpush.msrb.mxu0 %v6951_v37  ;;  %2850 = vmatpush.msra.mxu3 %v6925_v54 }
0x2c7a   :  { %2834 = vmatpush.msrb.mxu2 %v6951_v37 }
0x2c7b   :  { %3083 = vmatpush.msrb.mxu0 %v6959_v2  ;;  %2851 = vmatpush.msra.mxu3 %v6929_v27 }
0x2c7c   :  { %2835 = vmatpush.msrb.mxu2 %v6959_v2 }
0x2c7d   :  { %3084 = vmatpush.msrb.mxu0 %v6977_v16  ;;  %2852 = vmatpush.msra.mxu3 %v6937_v55 }
0x2c7e   :  { %2836 = vmatpush.msrb.mxu2 %v6977_v16 }
0x2c7f   :  { %2853 = vmatpush.msra.mxu3 %v6945_v63 }
0x2c81   :  { %2854 = vmatpush.msra.mxu3 %v6953_v24 }
0x2c83   :  { %2855 = vmatpush.msra.mxu3 %v6961_v32 }
0x2c85   :  { %2856 = vmatpush.msra.mxu3 %v6979_v13 }
0x2cc4   :  { %v2554_v62 = vpop.permute.xlu2 %2553 }
0x2cc5   :  { %2556 = vst.msk [vmem:[#allocation4 - $0x4] sm:$0x30] %vm888_vm5, %v2554_v62 }
0x2ccc   :  { %v2557_v6 = vld [vmem:[#allocation4] sm:$0xff] }
0x2ccd   :  { %2618 = vmatmul.f32.vlgmr.msra.gmra.mxu0 %v2557_v6  ;;  %2653 = vmatmul.f32.vlgmr.msra.gmra.mxu1 %v2557_v6 }
0x2cce   :  { %3247 = vmatpush.msra.mxu0 %v6917_v18  ;;  %3267 = vmatpush.msra.mxu1 %v6919_v20 }
0x2cd0   :  { %3248 = vmatpush.msra.mxu0 %v6921_v22  ;;  %3268 = vmatpush.msra.mxu1 %v6925_v54 }
0x2cd2   :  { %3249 = vmatpush.msra.mxu0 %v6927_v25  ;;  %3269 = vmatpush.msra.mxu1 %v6929_v27 }
0x2cd4   :  { %3250 = vmatpush.msra.mxu0 %v6935_v52  ;;  %3270 = vmatpush.msra.mxu1 %v6937_v55 }
0x2cd6   :  { %3251 = vmatpush.msra.mxu0 %v6943_v40  ;;  %3271 = vmatpush.msra.mxu1 %v6945_v63 }
0x2cd8   :  { %3252 = vmatpush.msra.mxu0 %v6951_v37  ;;  %3272 = vmatpush.msra.mxu1 %v6953_v24 }
0x2cda   :  { %3253 = vmatpush.msra.mxu0 %v6959_v2  ;;  %3273 = vmatpush.msra.mxu1 %v6961_v32 }
0x2cdc   :  { %3254 = vmatpush.msra.mxu0 %v6977_v16  ;;  %3274 = vmatpush.msra.mxu1 %v6979_v13 }
0x2d4a   :  { %v2619_v10 = vpop.f32.mrf.mxu0  ;;  %v2654_v31 = vpop.f32.mrf.mxu1 }
0x2d4b   :  { %v2620_v48 = vadd.f32 %v2619_v10, %v6904_v35  ;;  %v2655_v1 = vadd.f32 %v2654_v31, %v6906_v9 }
0x2d4d   :  { %2672 = vst [vmem:[#allocation3 + $0x30] sm:$0xff] %v2620_v48 }
0x2d4e   :  { %2673 = vst [vmem:[#allocation3] sm:$0xff] %v2655_v1 }
0x2d54   :  { %v2701_v17 = vld [vmem:[#allocation3 + $0x30] sm:$0x3] }
0x2d55   :  { %v2702_v56 = vld [vmem:[#allocation3] sm:$0x3]  ;;  %v2733_v31 = vld [vmem:[#allocation3] sm:$0xc] }
0x2d56   :  { %5246 = vtanh.f32 %v2702_v56 }
0x2d57   :  { %5248 = vtanh.f32 %v2701_v17  ;;  %v2732_v17 = vld [vmem:[#allocation3 + $0x30] sm:$0xc] }
0x2d5c   :  { %v5247_v12 = vpop.eup %5246 }
0x2d5d   :  { %v2706_v58 = vmul.f32 %v5247_v12, %v5877_v41  ;;  %v5249_v23 = vpop.eup %5248 }
0x2d5e   :  { %v2705_v28 = vmul.f32 0.5, %v5249_v23 }
0x2d5f   :  { %v6912_v60 = vadd.f32 %v2706_v58, %v5880_v46 }
0x2d60   :  { %v2707_v7 = vadd.f32 0.5, %v2705_v28 }
0x2d61   :  { %2711 = vrot.lane.b32.xlu0 %v6912_v60, %s5523_s2 }
0x2d62   :  { %v2709_v45 = vmul.f32 0.0, %v2707_v7 }
0x2dd3   :  { %v2712_v42 = vpop.permute.xlu0 %2711 }
0x2dd4   :  { %v2714_v33 = vmul.f32 %v2712_v42, %v2707_v7 }
0x2dd6   :  { %2716 = vrot.lane.b32.xlu1 %v2714_v33, %s5523_s2 }
0x2e48   :  { %v2717_v59 = vpop.permute.xlu1 %2716 }
0x2e49   :  { %v6973_v44 = vadd.f32 %v2717_v59, %v2709_v45 }
0x2e4b   :  { %5250 = vtanh.f32 %v6973_v44  ;;  %v2791_v59 = vrot.slane %v6973_v44, 6 }
0x2e51   :  { %v5251_v0 = vpop.eup %5250 }
0x2e52   :  { %2722 = vrot.lane.b32.xlu2 %v5251_v0, %s5523_s2 }
0x2eac   :  { %v2723_v62 = vpop.permute.xlu2 %2722 }
0x2ead   :  { %v7018_v6 = vmul.f32 %v2723_v62, %v6912_v60 }
0x2eaf   :  { %2726 = vst.msk [vmem:[#allocation4] sm:$0x3] %vm709_vm13, %v7018_v6  ;;  %5022 = vmatmul.msk.f32.vlgmr.msra.gmra.mxu2 %vm70_vm0, %v7018_v6  ;;  %5023 = vmatmul.msk.f32.vlgmr.msrb.gmra.mxu3 %vm70_vm0, %v7018_v6 }
0x2eb0   :  { %2914 = vmatpush.msra.mxu2 %v6917_v18  ;;  %2934 = vmatpush.msrb.mxu3 %v6919_v20 }
0x2eb2   :  { %2915 = vmatpush.msra.mxu2 %v6921_v22  ;;  %2935 = vmatpush.msrb.mxu3 %v6925_v54 }
0x2eb4   :  { %2916 = vmatpush.msra.mxu2 %v6927_v25  ;;  %2936 = vmatpush.msrb.mxu3 %v6929_v27 }
0x2eb6   :  { %2917 = vmatpush.msra.mxu2 %v6935_v52  ;;  %2937 = vmatpush.msrb.mxu3 %v6937_v55 }
0x2eb8   :  { %2918 = vmatpush.msra.mxu2 %v6943_v40  ;;  %2938 = vmatpush.msrb.mxu3 %v6945_v63 }
0x2eba   :  { %2919 = vmatpush.msra.mxu2 %v6951_v37  ;;  %2939 = vmatpush.msrb.mxu3 %v6953_v24 }
0x2ebc   :  { %2920 = vmatpush.msra.mxu2 %v6959_v2  ;;  %2940 = vmatpush.msrb.mxu3 %v6961_v32 }
0x2ebe   :  { %2921 = vmatpush.msra.mxu2 %v6977_v16  ;;  %2941 = vmatpush.msrb.mxu3 %v6979_v13 }
0x2f32   :  { %v2773_v47 = vpop.f32.mrf.mxu3  ;;  %v2753_v58 = vpop.f32.mrf.mxu2 }
0x2f33   :  { %v2779_v10 = vrot.slane %v2773_v47, 6  ;;  %v2778_v60 = vrot.slane %v2753_v58, 6 }
0x2f35   :  { %v2783_v48 = vadd.f32 %v2779_v10, %v2733_v31  ;;  %v2782_v23 = vadd.f32 %v2778_v60, %v2732_v17 }
0x2f37   :  { %5252 = vtanh.f32 %v2783_v48 }
0x2f38   :  { %5254 = vtanh.f32 %v2782_v23 }
0x2f3d   :  { %v5253_v1 = vpop.eup %5252 }
0x2f3e   :  { %v2787_v56 = vmul.f32 %v5253_v1, %v5877_v41  ;;  %v5255_v28 = vpop.eup %5254 }
0x2f3f   :  { %v2786_v7 = vmul.f32 0.5, %v5255_v28 }
0x2f40   :  { %v2789_v12 = vadd.f32 %v2787_v56, %v5880_v46 }
0x2f41   :  { %v2788_v42 = vadd.f32 0.5, %v2786_v7 }
0x2f42   :  { %2795 = vrot.lane.b32.xlu0 %v2789_v12, %s5523_s2 }
0x2f43   :  { %v2793_v0 = vmul.f32 %v2791_v59, %v2788_v42 }
0x2fb4   :  { %v2796_v33 = vpop.permute.xlu0 %2795 }
0x2fb5   :  { %v2798_v45 = vmul.f32 %v2796_v33, %v2788_v42  ;;  %v2816_v42 = vld [vmem:[#allocation3 + $0x30] sm:$0x30] }
0x2fb7   :  { %2800 = vrot.lane.b32.xlu1 %v2798_v45, %s5523_s2 }
0x3029   :  { %v2801_v62 = vpop.permute.xlu1 %2800 }
0x302a   :  { %v2803_v47 = vadd.f32 %v2801_v62, %v2793_v0 }
0x302c   :  { %5256 = vtanh.f32 %v2803_v47 }
0x3032   :  { %v5257_v10 = vpop.eup %5256 }
0x3033   :  { %2806 = vrot.lane.b32.xlu2 %v5257_v10, %s5523_s2 }
0x308d   :  { %v2807_v31 = vpop.permute.xlu2 %2806 }
0x308e   :  { %v7048_v48 = vmul.f32 %v2807_v31, %v2789_v12  ;;  %v2817_v12 = vld [vmem:[#allocation3] sm:$0x30]  ;;  %v2876_v31 = vrot.slane %v2803_v47, 6 }
0x3090   :  { %v2818_v1 = vrot.slane %v7048_v48, 2  ;;  %2810 = vst.msk [vmem:[#allocation4] sm:$0xc] %vm795_vm14, %v7048_v48 }
0x3092   :  { %5024 = vmatmul.msk.f32.vlgmr.msrb.gmra.mxu2 %vm70_vm0, %v2818_v1  ;;  %5025 = vmatmul.msk.f32.vlgmr.msra.gmra.mxu3 %vm70_vm0, %v2818_v1 }
0x3093   :  { %2999 = vmatpush.msrb.mxu2 %v6917_v18  ;;  %3019 = vmatpush.msra.mxu3 %v6919_v20 }
0x3095   :  { %3000 = vmatpush.msrb.mxu2 %v6921_v22  ;;  %3020 = vmatpush.msra.mxu3 %v6925_v54 }
0x3097   :  { %3001 = vmatpush.msrb.mxu2 %v6927_v25  ;;  %3021 = vmatpush.msra.mxu3 %v6929_v27 }
0x3099   :  { %3002 = vmatpush.msrb.mxu2 %v6935_v52  ;;  %3022 = vmatpush.msra.mxu3 %v6937_v55 }
0x309b   :  { %3003 = vmatpush.msrb.mxu2 %v6943_v40  ;;  %3023 = vmatpush.msra.mxu3 %v6945_v63 }
0x309d   :  { %3004 = vmatpush.msrb.mxu2 %v6951_v37  ;;  %3024 = vmatpush.msra.mxu3 %v6953_v24 }
0x309f   :  { %3005 = vmatpush.msrb.mxu2 %v6959_v2  ;;  %3025 = vmatpush.msra.mxu3 %v6961_v32 }
0x30a1   :  { %3006 = vmatpush.msrb.mxu2 %v6977_v16  ;;  %3026 = vmatpush.msra.mxu3 %v6979_v13 }
0x3115   :  { %v2858_v44 = vpop.f32.mrf.mxu3  ;;  %v2838_v28 = vpop.f32.mrf.mxu2 }
0x3116   :  { %v2864_v56 = vrot.slane %v2858_v44, 4  ;;  %v2863_v7 = vrot.slane %v2838_v28, 4 }
0x3118   :  { %v2868_v58 = vadd.f32 %v2864_v56, %v2817_v12  ;;  %v2867_v33 = vadd.f32 %v2863_v7, %v2816_v42  ;;  %v2902_v42 = vld [vmem:[#allocation3] sm:$0xc0] }
0x311a   :  { %5258 = vtanh.f32 %v2868_v58 }
0x311b   :  { %5260 = vtanh.f32 %v2867_v33 }
0x3120   :  { %v5259_v60 = vpop.eup %5258 }
0x3121   :  { %v2872_v17 = vmul.f32 %v5259_v60, %v5877_v41  ;;  %v5261_v45 = vpop.eup %5260 }
0x3122   :  { %v2871_v59 = vmul.f32 0.5, %v5261_v45 }
0x3123   :  { %v2874_v23 = vadd.f32 %v2872_v17, %v5880_v46 }
0x3124   :  { %v2873_v0 = vadd.f32 0.5, %v2871_v59 }
0x3125   :  { %2880 = vrot.lane.b32.xlu0 %v2874_v23, %s5523_s2 }
0x3126   :  { %v2878_v1 = vmul.f32 %v2876_v31, %v2873_v0  ;;  %v2901_v31 = vld [vmem:[#allocation3 + $0x30] sm:$0xc0] }
0x3197   :  { %v2881_v62 = vpop.permute.xlu0 %2880 }
0x3198   :  { %v2883_v10 = vmul.f32 %v2881_v62, %v2873_v0 }
0x319a   :  { %2885 = vrot.lane.b32.xlu1 %v2883_v10, %s5523_s2 }
0x320c   :  { %v2886_v44 = vpop.permute.xlu1 %2885 }
0x320d   :  { %v2888_v56 = vadd.f32 %v2886_v44, %v2878_v1 }
0x320f   :  { %5262 = vtanh.f32 %v2888_v56 }
0x3215   :  { %v5263_v12 = vpop.eup %5262 }
0x3216   :  { %2891 = vrot.lane.b32.xlu2 %v5263_v12, %s5523_s2 }
0x321e   :  { %1972 = vrot.lane.b32.xlu2 %v6623_v57, %s5523_s2 }
0x3226   :  { %2220 = vrot.lane.b32.xlu2 %v6693_v5, %s5523_s2 }
0x3270   :  { %v2892_v58 = vpop.permute.xlu2 %2891 }
0x3271   :  { %v7080_v60 = vmul.f32 %v2892_v58, %v2874_v23 }
0x3273   :  { %v2903_v17 = vrot.slane %v7080_v60, 4  ;;  %2895 = vst.msk [vmem:[#allocation4] sm:$0x30] %vm882_vm15, %v7080_v60 }
0x3275   :  { %5026 = vmatmul.msk.f32.vlgmr.msra.gmra.mxu2 %vm70_vm0, %v2903_v17  ;;  %5027 = vmatmul.msk.f32.vlgmr.msrb.gmra.mxu3 %vm70_vm0, %v2903_v17 }
0x3276   :  { %3162 = vmatpush.msra.mxu2 %v6917_v18  ;;  %3182 = vmatpush.msrb.mxu3 %v6919_v20 }
0x3278   :  { %v1973_v47 = vpop.permute.xlu2 %1972  ;;  %3163 = vmatpush.msra.mxu2 %v6921_v22  ;;  %3183 = vmatpush.msrb.mxu3 %v6925_v54 }
0x3279   :  { %1975 = vst.msk [vmem:[#allocation4 + $0x8] sm:$0xc0] %vm975_vm4, %v1973_v47 }
0x327a   :  { %3164 = vmatpush.msra.mxu2 %v6927_v25  ;;  %3184 = vmatpush.msrb.mxu3 %v6929_v27 }
0x327c   :  { %3165 = vmatpush.msra.mxu2 %v6935_v52  ;;  %3185 = vmatpush.msrb.mxu3 %v6937_v55 }
0x327e   :  { %3166 = vmatpush.msra.mxu2 %v6943_v40  ;;  %3186 = vmatpush.msrb.mxu3 %v6945_v63 }
0x3280   :  { %v2221_v23 = vpop.permute.xlu2 %2220  ;;  %3167 = vmatpush.msra.mxu2 %v6951_v37  ;;  %3187 = vmatpush.msrb.mxu3 %v6953_v24 }
0x3281   :  { %2223 = vst.msk [vmem:[#allocation4 + $0x4] sm:$0x30] %vm888_vm5, %v2221_v23 }
0x3282   :  { %3168 = vmatpush.msra.mxu2 %v6959_v2  ;;  %3188 = vmatpush.msrb.mxu3 %v6961_v32 }
0x3284   :  { %3169 = vmatpush.msra.mxu2 %v6977_v16  ;;  %3189 = vmatpush.msrb.mxu3 %v6979_v13 }
0x32f8   :  { %v2943_v28 = vpop.f32.mrf.mxu3  ;;  %v2923_v62 = vpop.f32.mrf.mxu2 }
0x32f9   :  { %v2949_v7 = vrot.slane %v2943_v28, 2  ;;  %v2948_v10 = vrot.slane %v2923_v62, 2  ;;  %v2961_v28 = vrot.slane %v2888_v56, 6 }
0x32fb   :  { %v2953_v33 = vadd.f32 %v2949_v7, %v2902_v42  ;;  %v2952_v1 = vadd.f32 %v2948_v10, %v2901_v31 }
0x32fd   :  { %5264 = vtanh.f32 %v2953_v33 }
0x32fe   :  { %5266 = vtanh.f32 %v2952_v1 }
0x3303   :  { %v5265_v45 = vpop.eup %5264 }
0x3304   :  { %v2957_v59 = vmul.f32 %v5265_v45, %v5877_v41  ;;  %v5267_v44 = vpop.eup %5266 }
0x3305   :  { %v2956_v12 = vmul.f32 0.5, %v5267_v44 }
0x3306   :  { %v2959_v0 = vadd.f32 %v2957_v59, %v5880_v46 }
0x3307   :  { %v2958_v58 = vadd.f32 0.5, %v2956_v12 }
0x3308   :  { %2965 = vrot.lane.b32.xlu0 %v2959_v0, %s5523_s2 }
0x3309   :  { %v2963_v7 = vmul.f32 %v2961_v28, %v2958_v58 }
0x3310   :  { %2051 = vrot.lane.b32.xlu0 %v6649_v8, %s5523_s2 }
0x337a   :  { %v2966_v17 = vpop.permute.xlu0 %2965 }
0x337b   :  { %v2968_v47 = vmul.f32 %v2966_v17, %v2958_v58 }
0x337d   :  { %2970 = vrot.lane.b32.xlu1 %v2968_v47, %s5523_s2 }
0x3382   :  { %v2052_v23 = vpop.permute.xlu0 %2051 }
0x3383   :  { %2054 = vst.msk [vmem:[#allocation4 + $0xc] sm:$0x3] %vm715_vm3, %v2052_v23 }
0x3385   :  { %2135 = vrot.lane.b32.xlu1 %v6679_v51, %s5523_s2 }
0x33ef   :  { %v2971_v42 = vpop.permute.xlu1 %2970 }
0x33f0   :  { %v7114_v33 = vadd.f32 %v2971_v42, %v2963_v7 }
0x33f2   :  { %5268 = vtanh.f32 %v7114_v33 }
0x33f7   :  { %v2136_v45 = vpop.permute.xlu1 %2135 }
0x33f8   :  { %v5269_v59 = vpop.eup %5268  ;;  %2138 = vst.msk [vmem:[#allocation4 + $0x8] sm:$0xc] %vm801_vm2, %v2136_v45 }
0x33f9   :  { %2976 = vrot.lane.b32.xlu0 %v5269_v59, %s5523_s2 }
0x33ff   :  { %v2558_v62 = vld [vmem:[#allocation4 + $0x8] sm:$0xff] }
0x3400   :  { %2621 = vmatmul.f32.gmra.mxu0 %v2558_v62  ;;  %2656 = vmatmul.f32.gmra.mxu1 %v2558_v62 }
0x3401   :  { %1639 = vrot.lane.b32.xlu0 %v6465_v61, %s5523_s2 }
0x3409   :  { %1887 = vrot.lane.b32.xlu0 %v6549_v3, %s5523_s2 }
0x3411   :  { %1469 = vrot.lane.b32.xlu0 %v6361_v53, %s5523_s2 }
0x3419   :  { %1052 = vrot.lane.b32.xlu0 %v6147_v11, %s5523_s2 }
0x3421   :  { %712 = vrot.lane.b32.xlu0 %v5994_v34, %s5523_s2 }
0x346b   :  { %v2977_v56 = vpop.permute.xlu0 %2976 }
0x346c   :  { %v7129_v10 = vmul.f32 %v2977_v56, %v2959_v0 }
0x346e   :  { %v2988_v31 = vrot.slane %v7129_v10, 6  ;;  %2980 = vst.msk [vmem:[#allocation4] sm:$0xc0] %vm969_vm12, %v7129_v10 }
0x3470   :  { %5028 = vmatmul.msk.f32.vlgmr.msrb.gmra.mxu2 %vm70_vm0, %v2988_v31  ;;  %5029 = vmatmul.msk.f32.vlgmr.msra.gmra.mxu3 %vm70_vm0, %v2988_v31 }
0x3471   :  { %3332 = vmatpush.msrb.mxu2 %v6917_v18  ;;  %3352 = vmatpush.msra.mxu3 %v6919_v20 }
0x3473   :  { %v1640_v11 = vpop.permute.xlu0 %1639  ;;  %3333 = vmatpush.msrb.mxu2 %v6921_v22  ;;  %3353 = vmatpush.msra.mxu3 %v6925_v54 }
0x3474   :  { %1642 = vst.msk [vmem:[#allocation4 + $0x10] sm:$0xc0] %vm975_vm4, %v1640_v11 }
0x3475   :  { %3334 = vmatpush.msrb.mxu2 %v6927_v25  ;;  %3354 = vmatpush.msra.mxu3 %v6929_v27 }
0x3477   :  { %3335 = vmatpush.msrb.mxu2 %v6935_v52  ;;  %3355 = vmatpush.msra.mxu3 %v6937_v55 }
0x3479   :  { %3336 = vmatpush.msrb.mxu2 %v6943_v40  ;;  %3356 = vmatpush.msra.mxu3 %v6945_v63 }
0x347b   :  { %v1888_v34 = vpop.permute.xlu0 %1887  ;;  %3337 = vmatpush.msrb.mxu2 %v6951_v37  ;;  %3357 = vmatpush.msra.mxu3 %v6953_v24 }
0x347c   :  { %1890 = vst.msk [vmem:[#allocation4 + $0xc] sm:$0x30] %vm888_vm5, %v1888_v34 }
0x347d   :  { %v2622_v53 = vpop.f32.mrf.mxu0  ;;  %v2657_v61 = vpop.f32.mrf.mxu1  ;;  %3338 = vmatpush.msrb.mxu2 %v6959_v2  ;;  %3358 = vmatpush.msra.mxu3 %v6961_v32 }
0x347e   :  { %v2623_v0 = vadd.f32 %v2622_v53, %v6904_v35  ;;  %v2658_v1 = vadd.f32 %v2657_v61, %v6906_v9 }
0x347f   :  { %3339 = vmatpush.msrb.mxu2 %v6977_v16  ;;  %3359 = vmatpush.msra.mxu3 %v6979_v13 }
0x3480   :  { %2674 = vst [vmem:[#allocation3 + $0x58] sm:$0xff] %v2623_v0 }
0x3481   :  { %2675 = vst [vmem:[#allocation3 + $0x18] sm:$0xff] %v2658_v1 }
0x3483   :  { %v1470_v44 = vpop.permute.xlu0 %1469 }
0x3484   :  { %1472 = vst.msk [vmem:[#allocation4 + $0x18] sm:$0xc] %vm801_vm2, %v1470_v44 }
0x3485   :  { %1800 = vst.msk [vmem:[#allocation4 + $0x18] sm:$0xc] %vm795_vm14, %v6520_v14 }
0x3488   :  { %v2987_v17 = vld [vmem:[#allocation3 + $0x18] sm:$0x3] }
0x348b   :  { %v1053_v12 = vpop.permute.xlu0 %1052 }
0x348c   :  { %1055 = vst.msk [vmem:[#allocation4 + $0x24] sm:$0x3] %vm715_vm3, %v1053_v12 }
0x348d   :  { %2218 = vst.msk [vmem:[#allocation4 + $0x20] sm:$0x30] %vm882_vm15, %v6693_v5 }
0x3493   :  { %v713_v58 = vpop.permute.xlu0 %712 }
0x3494   :  { %716 = vst.msk [vmem:[#allocation4 + $0x2c] sm:$0x3] %vm715_vm3, %v713_v58 }
0x3495   :  { %2551 = vst.msk [vmem:[#allocation4 + $0x28] sm:$0x30] %vm882_vm15, %v6871_v30  ;;  %v2986_v30 = vld [vmem:[#allocation3 + $0x58] sm:$0x3] }
0x34f3   :  { %v3028_v47 = vpop.f32.mrf.mxu3  ;;  %v3008_v5 = vpop.f32.mrf.mxu2 }
0x34f4   :  { %v3032_v23 = vadd.f32 %v3028_v47, %v2987_v17  ;;  %v3031_v45 = vadd.f32 %v3008_v5, %v2986_v30 }
0x34f6   :  { %5270 = vtanh.f32 %v3032_v23 }
0x34f7   :  { %5272 = vtanh.f32 %v3031_v45 }
0x34fc   :  { %v5271_v28 = vpop.eup %5270 }
0x34fd   :  { %v3036_v7 = vmul.f32 %v5271_v28, %v5877_v41  ;;  %v5273_v59 = vpop.eup %5272 }
0x34fe   :  { %v3035_v62 = vmul.f32 0.5, %v5273_v59 }
0x34ff   :  { %v7167_v42 = vadd.f32 %v3036_v7, %v5880_v46 }
0x3500   :  { %v3037_v56 = vadd.f32 0.5, %v3035_v62 }
0x3501   :  { %3044 = vrot.lane.b32.xlu1 %v7167_v42, %s5523_s2 }
0x3509   :  { %1718 = vrot.lane.b32.xlu1 %v6493_v4, %s5523_s2 }
0x3511   :  { %1306 = vrot.lane.b32.xlu1 %v6268_v29, %s5523_s2 }
0x3519   :  { %1554 = vrot.lane.b32.xlu1 %v6402_v15, %s5523_s2 }
0x3521   :  { %1136 = vrot.lane.b32.xlu1 %v6176_v39, %s5523_s2 }
0x3529   :  { %798 = vrot.lane.b32.xlu1 %v6025_v38, %s5523_s2 }
0x3573   :  { %v3045_v31 = vpop.permute.xlu1 %3044 }
0x3574   :  { %v3047_v11 = vmul.f32 %v3045_v31, %v3037_v56 }
0x3576   :  { %3049 = vrot.lane.b32.xlu2 %v3047_v11, %s5523_s2 }
0x357b   :  { %v1719_v29 = vpop.permute.xlu1 %1718 }
0x357c   :  { %1721 = vst.msk [vmem:[#allocation4 + $0x14] sm:$0x3] %vm715_vm3, %v1719_v29 }
0x357e   :  { %1802 = vrot.lane.b32.xlu2 %v6520_v14, %s5523_s2 }
0x3583   :  { %v1307_v39 = vpop.permute.xlu1 %1306 }
0x3584   :  { %1309 = vst.msk [vmem:[#allocation4 + $0x18] sm:$0xc0] %vm975_vm4, %v1307_v39  ;;  %v3066_v39 = vld [vmem:[#allocation3 + $0x18] sm:$0xc] }
0x3585   :  { %1970 = vst.msk [vmem:[#allocation4 + $0x18] sm:$0xc0] %vm969_vm12, %v6623_v57 }
0x3586   :  { %1385 = vrot.lane.b32.xlu2 %v6299_v19, %s5523_s2  ;;  %v7892_v19 = vld [vmem:[#allocation11_spill] sm:$0xff] }
0x358b   :  { %v1555_v38 = vpop.permute.xlu1 %1554 }
0x358c   :  { %1557 = vst.msk [vmem:[#allocation4 + $0x14] sm:$0x30] %vm888_vm5, %v1555_v38 }
0x358d   :  { %1716 = vst.msk [vmem:[#allocation4 + $0x18] sm:$0x3] %vm709_vm13, %v6493_v4 }
0x358e   :  { %972 = vrot.lane.b32.xlu2 %v6119_v49, %s5523_s2  ;;  %v3040_v49 = vrot.slane %v7114_v33, 6 }
0x3590   :  { %v3042_v4 = vmul.f32 %v3040_v49, %v3037_v56 }
0x3593   :  { %v1137_v15 = vpop.permute.xlu1 %1136 }
0x3594   :  { %1139 = vst.msk [vmem:[#allocation4 + $0x20] sm:$0xc] %vm801_vm2, %v1137_v15 }
0x3595   :  { %2133 = vst.msk [vmem:[#allocation4 + $0x20] sm:$0xc] %vm795_vm14, %v6679_v51 }
0x3596   :  { %1221 = vrot.lane.b32.xlu2 %v6207_v36, %s5523_s2 }
0x359b   :  { %v799_v14 = vpop.permute.xlu1 %798 }
0x359c   :  { %802 = vst.msk [vmem:[#allocation4 + $0x28] sm:$0xc] %vm801_vm2, %v799_v14 }
0x359d   :  { %2466 = vst.msk [vmem:[#allocation4 + $0x28] sm:$0xc] %vm795_vm14, %v6777_v21 }
0x359e   :  { %885 = vrot.lane.b32.xlu2 %v7892_v19, %s5523_s2 }
0x35d0   :  { %v3050_v57 = vpop.permute.xlu2 %3049 }
0x35d1   :  { %v7206_v34 = vadd.f32 %v3050_v57, %v3042_v4  ;;  %v3065_v57 = vld [vmem:[#allocation3 + $0x58] sm:$0xc] }
0x35d3   :  { %5274 = vtanh.f32 %v7206_v34 }
0x35d8   :  { %v1803_v51 = vpop.permute.xlu2 %1802 }
0x35d9   :  { %v5275_v53 = vpop.eup %5274  ;;  %1805 = vst.msk [vmem:[#allocation4 + $0x10] sm:$0xc] %vm801_vm2, %v1803_v51 }
0x35da   :  { %3055 = vrot.lane.b32.xlu0 %v5275_v53, %s5523_s2 }
0x35e0   :  { %v1386_v36 = vpop.permute.xlu2 %1385  ;;  %v2559_v61 = vld [vmem:[#allocation4 + $0x10] sm:$0xff] }
0x35e1   :  { %1388 = vst.msk [vmem:[#allocation4 + $0x1c] sm:$0x3] %vm715_vm3, %v1386_v36  ;;  %2624 = vmatmul.f32.gmra.mxu0 %v2559_v61  ;;  %2659 = vmatmul.f32.gmra.mxu1 %v2559_v61 }
0x35e2   :  { %1885 = vst.msk [vmem:[#allocation4 + $0x18] sm:$0x30] %vm882_vm15, %v6549_v3 }
0x35e8   :  { %v973_v21 = vpop.permute.xlu2 %972 }
0x35e9   :  { %976 = vst.msk [vmem:[#allocation4 + $0x20] sm:$0xc0] %vm975_vm4, %v973_v21  ;;  %v2560_v33 = vld [vmem:[#allocation4 + $0x18] sm:$0xff]  ;;  %v3124_v21 = vrot.slane %v7206_v34, 6 }
0x35ea   :  { %2303 = vst.msk [vmem:[#allocation4 + $0x20] sm:$0xc0] %vm969_vm12, %v6756_v50  ;;  %2627 = vmatmul.f32.gmra.mxu0 %v2560_v33  ;;  %2662 = vmatmul.f32.gmra.mxu1 %v2560_v33 }
0x35f0   :  { %v1222_v0 = vpop.permute.xlu2 %1221 }
0x35f1   :  { %1224 = vst.msk [vmem:[#allocation4 + $0x1c] sm:$0x30] %vm888_vm5, %v1222_v0 }
0x35f2   :  { %2049 = vst.msk [vmem:[#allocation4 + $0x20] sm:$0x3] %vm709_vm13, %v6649_v8 }
0x35f8   :  { %v886_v1 = vpop.permute.xlu2 %885 }
0x35f9   :  { %889 = vst.msk [vmem:[#allocation4 + $0x24] sm:$0x30] %vm888_vm5, %v886_v1  ;;  %v2561_v44 = vld [vmem:[#allocation4 + $0x20] sm:$0xff] }
0x35fa   :  { %2382 = vst.msk [vmem:[#allocation4 + $0x28] sm:$0x3] %vm709_vm13, %v6766_v43  ;;  %2630 = vmatmul.f32.gmra.mxu0 %v2561_v44  ;;  %2665 = vmatmul.f32.gmra.mxu1 %v2561_v44 }
0x3601   :  { %v2562_v3 = vld [vmem:[#allocation4 + $0x28] sm:$0x3f] }
0x3602   :  { %2633 = vmatmul.f32.gmra.mxu0 %v2562_v3  ;;  %2668 = vmatmul.f32.gmra.mxu1 %v2562_v3 }
0x364c   :  { %v3056_v50 = vpop.permute.xlu0 %3055 }
0x364d   :  { %v7224_v12 = vmul.f32 %v3056_v50, %v7167_v42 }
0x364f   :  { %3059 = vst.msk [vmem:[#allocation4 + $0x8] sm:$0x3] %vm709_vm13, %v7224_v12  ;;  %5030 = vmatmul.msk.f32.vlgmr.msrb.gmra.mxu0 %vm70_vm0, %v7224_v12  ;;  %5031 = vmatmul.msk.f32.vlgmr.msrb.gmra.mxu1 %vm70_vm0, %v7224_v12 }
0x3650   :  { %3410 = vmatpush.msrb.mxu0 %v6917_v18  ;;  %3430 = vmatpush.msrb.mxu1 %v6919_v20 }
0x3652   :  { %3411 = vmatpush.msrb.mxu0 %v6921_v22  ;;  %3431 = vmatpush.msrb.mxu1 %v6925_v54 }
0x3654   :  { %3412 = vmatpush.msrb.mxu0 %v6927_v25  ;;  %3432 = vmatpush.msrb.mxu1 %v6929_v27 }
0x3656   :  { %3413 = vmatpush.msrb.mxu0 %v6935_v52  ;;  %3433 = vmatpush.msrb.mxu1 %v6937_v55 }
0x3658   :  { %3414 = vmatpush.msrb.mxu0 %v6943_v40  ;;  %3434 = vmatpush.msrb.mxu1 %v6945_v63 }
0x365a   :  { %3415 = vmatpush.msrb.mxu0 %v6951_v37  ;;  %3435 = vmatpush.msrb.mxu1 %v6953_v24 }
0x365c   :  { %3416 = vmatpush.msrb.mxu0 %v6959_v2  ;;  %3436 = vmatpush.msrb.mxu1 %v6961_v32 }
0x365e   :  { %v2625_v8 = vpop.f32.mrf.mxu0  ;;  %v2660_v43 = vpop.f32.mrf.mxu1  ;;  %3417 = vmatpush.msrb.mxu0 %v6977_v16  ;;  %3437 = vmatpush.msrb.mxu1 %v6979_v13 }
0x365f   :  { %v2626_v58 = vadd.f32 %v2625_v8, %v6904_v35  ;;  %v2661_v17 = vadd.f32 %v2660_v43, %v6906_v9 }
0x3661   :  { %2676 = vst [vmem:[#allocation3 + $0x50] sm:$0xff] %v2626_v58  ;;  %v3150_v58 = vld [vmem:[#allocation3 + $0x18] sm:$0x30] }
0x3662   :  { %2677 = vst [vmem:[#allocation3 + $0x20] sm:$0xff] %v2661_v17 }
0x3667   :  { %v2628_v47 = vpop.f32.mrf.mxu0  ;;  %v2663_v23 = vpop.f32.mrf.mxu1 }
0x3668   :  { %v2629_v28 = vadd.f32 %v2628_v47, %v6904_v35  ;;  %v2664_v7 = vadd.f32 %v2663_v23, %v6906_v9 }
0x366a   :  { %2678 = vst [vmem:[#allocation3 + $0x8] sm:$0xff] %v2629_v28 }
0x366b   :  { %2679 = vst [vmem:[#allocation3 + $0x38] sm:$0xff] %v2664_v7 }
0x3677   :  { %v2631_v42 = vpop.f32.mrf.mxu0  ;;  %v2666_v5 = vpop.f32.mrf.mxu1 }
0x3678   :  { %v2632_v30 = vadd.f32 %v2631_v42, %v6904_v35  ;;  %v2667_v45 = vadd.f32 %v2666_v5, %v6906_v9  ;;  %v3149_v5 = vld [vmem:[#allocation3 + $0x58] sm:$0x30] }
0x367a   :  { %2680 = vst [vmem:[#allocation3 + $0x28] sm:$0xff] %v2632_v30 }
0x367b   :  { %2681 = vst [vmem:[#allocation3 + $0x48] sm:$0xff] %v2667_v45 }
0x367f   :  { %v2634_v59 = vpop.f32.mrf.mxu0  ;;  %v2669_v62 = vpop.f32.mrf.mxu1 }
0x3680   :  { %v2635_v56 = vadd.f32 %v2634_v59, %v6904_v35  ;;  %v2670_v31 = vadd.f32 %v2669_v62, %v6906_v9 }
0x3682   :  { %2682 = vst [vmem:[#allocation3 + $0x10] sm:$0x3f] %v2635_v56 }
0x3683   :  { %2683 = vst [vmem:[#allocation3 + $0x40] sm:$0x3f] %v2670_v31 }
0x36cc   :  { %v3106_v11 = vpop.f32.mrf.mxu1  ;;  %v3086_v49 = vpop.f32.mrf.mxu0 }
0x36cd   :  { %v3112_v29 = vrot.slane %v3106_v11, 6  ;;  %v3111_v4 = vrot.slane %v3086_v49, 6 }
0x36cf   :  { %v3116_v38 = vadd.f32 %v3112_v29, %v3066_v39  ;;  %v3115_v35 = vadd.f32 %v3111_v4, %v3065_v57 }
0x36d1   :  { %5276 = vtanh.f32 %v3116_v38 }
0x36d2   :  { %5278 = vtanh.f32 %v3115_v35 }
0x36d7   :  { %v5277_v15 = vpop.eup %5276 }
0x36d8   :  { %v3120_v14 = vmul.f32 %v5277_v15, %v5877_v41  ;;  %v5279_v9 = vpop.eup %5278 }
0x36d9   :  { %v3119_v51 = vmul.f32 0.5, %v5279_v9 }
0x36da   :  { %v3122_v19 = vadd.f32 %v3120_v14, %v5880_v46 }
0x36db   :  { %v3121_v53 = vadd.f32 0.5, %v3119_v51 }
0x36dc   :  { %3128 = vrot.lane.b32.xlu1 %v3122_v19, %s5523_s2 }
0x36dd   :  { %v3126_v33 = vmul.f32 %v3124_v21, %v3121_v53 }
0x374e   :  { %v3129_v36 = vpop.permute.xlu1 %3128 }
0x374f   :  { %v3131_v61 = vmul.f32 %v3129_v36, %v3121_v53 }
0x3751   :  { %3133 = vrot.lane.b32.xlu2 %v3131_v61, %s5523_s2 }
0x37ab   :  { %v3134_v0 = vpop.permute.xlu2 %3133 }
0x37ac   :  { %v3136_v1 = vadd.f32 %v3134_v0, %v3126_v33  ;;  %v7325_v0 = vld [vmem:[#allocation5 + $0xf0] sm:$0xff] }
0x37ae   :  { %5280 = vtanh.f32 %v3136_v1  ;;  %v3209_v11 = vrot.slane %v3136_v1, 6  ;;  %v7328_v1 = vld [vmem:[#allocation5 + $0xf8] sm:$0xff] }
0x37b4   :  { %v5281_v44 = vpop.eup %5280 }
0x37b5   :  { %3139 = vrot.lane.b32.xlu0 %v5281_v44, %s5523_s2  ;;  %v7331_v44 = vld [vmem:[#allocation5 + $0xe0] sm:$0xff] }
0x3827   :  { %v3140_v3 = vpop.permute.xlu0 %3139 }
0x3828   :  { %v7262_v50 = vmul.f32 %v3140_v3, %v3122_v19  ;;  %v7334_v3 = vld [vmem:[#allocation5 + $0xe8] sm:$0xff] }
0x382a   :  { %v3151_v8 = vrot.slane %v7262_v50, 2  ;;  %3143 = vst.msk [vmem:[#allocation4 + $0x8] sm:$0xc] %vm795_vm14, %v7262_v50 }
0x382c   :  { %5032 = vmatmul.msk.f32.vlgmr.msra.gmra.mxu2 %vm70_vm0, %v3151_v8  ;;  %5033 = vmatmul.msk.f32.vlgmr.msrb.gmra.mxu3 %vm70_vm0, %v3151_v8  ;;  %v7337_v8 = vld [vmem:[#allocation5 + $0xd0] sm:$0xff] }
0x382d   :  { %3495 = vmatpush.msra.mxu2 %v6917_v18  ;;  %3515 = vmatpush.msrb.mxu3 %v6919_v20 }
0x382f   :  { %3496 = vmatpush.msra.mxu2 %v6921_v22  ;;  %3516 = vmatpush.msrb.mxu3 %v6925_v54 }
0x3831   :  { %3497 = vmatpush.msra.mxu2 %v6927_v25  ;;  %3517 = vmatpush.msrb.mxu3 %v6929_v27 }
0x3833   :  { %3498 = vmatpush.msra.mxu2 %v6935_v52  ;;  %3518 = vmatpush.msrb.mxu3 %v6937_v55 }
0x3835   :  { %3499 = vmatpush.msra.mxu2 %v6943_v40  ;;  %3519 = vmatpush.msrb.mxu3 %v6945_v63 }
0x3837   :  { %3500 = vmatpush.msra.mxu2 %v6951_v37  ;;  %3520 = vmatpush.msrb.mxu3 %v6953_v24 }
0x3839   :  { %3501 = vmatpush.msra.mxu2 %v6959_v2  ;;  %3521 = vmatpush.msrb.mxu3 %v6961_v32 }
0x383b   :  { %3502 = vmatpush.msra.mxu2 %v6977_v16  ;;  %3522 = vmatpush.msrb.mxu3 %v6979_v13 }
0x38af   :  { %v3191_v34 = vpop.f32.mrf.mxu3  ;;  %v3171_v7 = vpop.f32.mrf.mxu2 }
0x38b0   :  { %v3197_v43 = vrot.slane %v3191_v34, 4  ;;  %v3196_v42 = vrot.slane %v3171_v7, 4  ;;  %v7340_v34 = vld [vmem:[#allocation5 + $0xd8] sm:$0xff]  ;;  %v7361_v7 = vld [vmem:[#allocation5 + $0x90] sm:$0xff] }
0x38b2   :  { %v3201_v17 = vadd.f32 %v3197_v43, %v3150_v58  ;;  %v3200_v30 = vadd.f32 %v3196_v42, %v3149_v5  ;;  %v7343_v43 = vld [vmem:[#allocation5 + $0xc0] sm:$0xff]  ;;  %v7346_v58 = vld [vmem:[#allocation5 + $0xc8] sm:$0xff]  ;;  %v7364_v42 = vld [vmem:[#allocation5 + $0x98] sm:$0xff] }
0x38b3   :  { %v3320_v5 = vld [vmem:[#allocation3 + $0x20] sm:$0x3] }
0x38b4   :  { %5282 = vtanh.f32 %v3201_v17  ;;  %v7349_v17 = vld [vmem:[#allocation5 + $0xb0] sm:$0xff] }
0x38b5   :  { %5284 = vtanh.f32 %v3200_v30 }
0x38ba   :  { %v5283_v47 = vpop.eup %5282 }
0x38bb   :  { %v3205_v23 = vmul.f32 %v5283_v47, %v5877_v41  ;;  %v5285_v45 = vpop.eup %5284  ;;  %v7352_v47 = vld [vmem:[#allocation5 + $0xb8] sm:$0xff] }
0x38bc   :  { %v3204_v59 = vmul.f32 0.5, %v5285_v45 }
0x38bd   :  { %v3207_v28 = vadd.f32 %v3205_v23, %v5880_v46  ;;  %v7355_v23 = vld [vmem:[#allocation5 + $0xa0] sm:$0xff] }
0x38be   :  { %v3206_v62 = vadd.f32 0.5, %v3204_v59 }
0x38bf   :  { %3213 = vrot.lane.b32.xlu1 %v3207_v28, %s5523_s2 }
0x38c0   :  { %v3211_v29 = vmul.f32 %v3209_v11, %v3206_v62  ;;  %v3319_v11 = vld [vmem:[#allocation3 + $0x50] sm:$0x3] }
0x3931   :  { %v3214_v56 = vpop.permute.xlu1 %3213 }
0x3932   :  { %v3216_v31 = vmul.f32 %v3214_v56, %v3206_v62 }
0x3934   :  { %3218 = vrot.lane.b32.xlu2 %v3216_v31, %s5523_s2 }
0x398e   :  { %v3219_v39 = vpop.permute.xlu2 %3218 }
0x398f   :  { %v3221_v38 = vadd.f32 %v3219_v39, %v3211_v29 }
0x3991   :  { %5286 = vtanh.f32 %v3221_v38  ;;  %v3294_v35 = vrot.slane %v3221_v38, 6 }
0x3997   :  { %v5287_v15 = vpop.eup %5286 }
0x3998   :  { %3224 = vrot.lane.b32.xlu0 %v5287_v15, %s5523_s2 }
0x3a0a   :  { %v3225_v14 = vpop.permute.xlu0 %3224 }
0x3a0b   :  { %v7290_v19 = vmul.f32 %v3225_v14, %v3207_v28  ;;  %v7358_v28 = vld [vmem:[#allocation5 + $0xa8] sm:$0xff] }
0x3a0d   :  { %v3236_v49 = vrot.slane %v7290_v19, 4  ;;  %3228 = vst.msk [vmem:[#allocation4 + $0x8] sm:$0x30] %vm882_vm15, %v7290_v19 }
0x3a0f   :  { %5034 = vmatmul.msk.f32.vlgmr.msra.gmra.mxu0 %vm70_vm0, %v3236_v49  ;;  %5035 = vmatmul.msk.f32.vlgmr.msra.gmra.mxu1 %vm70_vm0, %v3236_v49 }
0x3a10   :  { %3580 = vmatpush.msra.mxu0 %v6917_v18  ;;  %3600 = vmatpush.msra.mxu1 %v6919_v20 }
0x3a12   :  { %3581 = vmatpush.msra.mxu0 %v6921_v22  ;;  %3601 = vmatpush.msra.mxu1 %v6925_v54  ;;  %v3235_v22 = vld [vmem:[#allocation3 + $0x18] sm:$0xc0] }
0x3a14   :  { %3582 = vmatpush.msra.mxu0 %v6927_v25  ;;  %3602 = vmatpush.msra.mxu1 %v6929_v27 }
0x3a16   :  { %3583 = vmatpush.msra.mxu0 %v6935_v52  ;;  %3603 = vmatpush.msra.mxu1 %v6937_v55 }
0x3a18   :  { %3584 = vmatpush.msra.mxu0 %v6943_v40  ;;  %3604 = vmatpush.msra.mxu1 %v6945_v63  ;;  %v3234_v63 = vld [vmem:[#allocation3 + $0x58] sm:$0xc0] }
0x3a1a   :  { %3585 = vmatpush.msra.mxu0 %v6951_v37  ;;  %3605 = vmatpush.msra.mxu1 %v6953_v24 }
0x3a1c   :  { %3586 = vmatpush.msra.mxu0 %v6959_v2  ;;  %3606 = vmatpush.msra.mxu1 %v6961_v32 }
0x3a1e   :  { %3587 = vmatpush.msra.mxu0 %v6977_v16  ;;  %3607 = vmatpush.msra.mxu1 %v6979_v13 }
0x3a8c   :  { %v3276_v18 = vpop.f32.mrf.mxu1  ;;  %v3256_v55 = vpop.f32.mrf.mxu0 }
0x3a8d   :  { %v3282_v20 = vrot.slane %v3276_v18, 2  ;;  %v3281_v40 = vrot.slane %v3256_v55, 2 }
0x3a8f   :  { %v3286_v54 = vadd.f32 %v3282_v20, %v3235_v22  ;;  %v3285_v37 = vadd.f32 %v3281_v40, %v3234_v63  ;;  %v3399_v63 = vld [vmem:[#allocation3 + $0x20] sm:$0xc] }
0x3a91   :  { %5288 = vtanh.f32 %v3286_v54 }
0x3a92   :  { %5290 = vtanh.f32 %v3285_v37 }
0x3a97   :  { %v5289_v25 = vpop.eup %5288 }
0x3a98   :  { %v3290_v27 = vmul.f32 %v5289_v25, %v5877_v41  ;;  %v5291_v24 = vpop.eup %5290 }
0x3a99   :  { %v3289_v2 = vmul.f32 0.5, %v5291_v24 }
0x3a9a   :  { %v3292_v52 = vadd.f32 %v3290_v27, %v5880_v46  ;;  %v7396_v27 = vld [vmem:[#allocation5 + $0x80] sm:$0xff] }
0x3a9b   :  { %v3291_v32 = vadd.f32 0.5, %v3289_v2 }
0x3a9c   :  { %3298 = vrot.lane.b32.xlu1 %v3292_v52, %s5523_s2 }
0x3a9d   :  { %v3296_v9 = vmul.f32 %v3294_v35, %v3291_v32  ;;  %v3398_v35 = vld [vmem:[#allocation3 + $0x50] sm:$0xc] }
0x3b0e   :  { %v3299_v4 = vpop.permute.xlu1 %3298 }
0x3b0f   :  { %v3301_v57 = vmul.f32 %v3299_v4, %v3291_v32 }
0x3b11   :  { %3303 = vrot.lane.b32.xlu2 %v3301_v57, %s5523_s2 }
0x3b6b   :  { %v3304_v51 = vpop.permute.xlu2 %3303 }
0x3b6c   :  { %v3306_v53 = vadd.f32 %v3304_v51, %v3296_v9 }
0x3b6e   :  { %5292 = vtanh.f32 %v3306_v53  ;;  %v3373_v14 = vrot.slane %v3306_v53, 6 }
0x3b74   :  { %v5293_v36 = vpop.eup %5292 }
0x3b75   :  { %3309 = vrot.lane.b32.xlu0 %v5293_v36, %s5523_s2 }
0x3be7   :  { %v3310_v61 = vpop.permute.xlu0 %3309 }
0x3be8   :  { %v7318_v21 = vmul.f32 %v3310_v61, %v3292_v52  ;;  %v7399_v52 = vld [vmem:[#allocation5 + $0x88] sm:$0xff] }
0x3bea   :  { %v3321_v33 = vrot.slane %v7318_v21, 6  ;;  %3313 = vst.msk [vmem:[#allocation4 + $0x8] sm:$0xc0] %vm969_vm12, %v7318_v21 }
0x3bec   :  { %5036 = vmatmul.msk.f32.vlgmr.msrb.gmra.mxu2 %vm70_vm0, %v3321_v33  ;;  %5037 = vmatmul.msk.f32.vlgmr.msra.gmra.mxu3 %vm70_vm0, %v3321_v33 }
0x3bed   :  { %3665 = vmatpush.msrb.mxu2 %v7325_v0  ;;  %3685 = vmatpush.msra.mxu3 %v7328_v1 }
0x3bef   :  { %3666 = vmatpush.msrb.mxu2 %v7331_v44  ;;  %3686 = vmatpush.msra.mxu3 %v7334_v3 }
0x3bf1   :  { %3667 = vmatpush.msrb.mxu2 %v7337_v8  ;;  %3687 = vmatpush.msra.mxu3 %v7340_v34 }
0x3bf3   :  { %3668 = vmatpush.msrb.mxu2 %v7343_v43  ;;  %3688 = vmatpush.msra.mxu3 %v7346_v58 }
0x3bf5   :  { %3669 = vmatpush.msrb.mxu2 %v7349_v17  ;;  %3689 = vmatpush.msra.mxu3 %v7352_v47 }
0x3bf7   :  { %3670 = vmatpush.msrb.mxu2 %v7355_v23  ;;  %3690 = vmatpush.msra.mxu3 %v7358_v28 }
0x3bf9   :  { %3671 = vmatpush.msrb.mxu2 %v7361_v7  ;;  %3691 = vmatpush.msra.mxu3 %v7364_v42 }
0x3bfb   :  { %3672 = vmatpush.msrb.mxu2 %v6977_v16  ;;  %3692 = vmatpush.msra.mxu3 %v6979_v13 }
0x3c6f   :  { %v3361_v30 = vpop.f32.mrf.mxu3  ;;  %v3341_v31 = vpop.f32.mrf.mxu2 }
0x3c70   :  { %v3365_v45 = vadd.f32 %v3361_v30, %v3320_v5  ;;  %v3364_v29 = vadd.f32 %v3341_v31, %v3319_v11 }
0x3c72   :  { %5294 = vtanh.f32 %v3365_v45 }
0x3c73   :  { %5296 = vtanh.f32 %v3364_v29 }
0x3c78   :  { %v5295_v59 = vpop.eup %5294 }
0x3c79   :  { %v3369_v62 = vmul.f32 %v5295_v59, %v5877_v41  ;;  %v5297_v39 = vpop.eup %5296 }
0x3c7a   :  { %v3368_v38 = vmul.f32 0.5, %v5297_v39 }
0x3c7b   :  { %v3371_v56 = vadd.f32 %v3369_v62, %v5880_v46 }
0x3c7c   :  { %v3370_v16 = vadd.f32 0.5, %v3368_v38  ;;  %v3483_v38 = vld [vmem:[#allocation3 + $0x20] sm:$0x30] }
0x3c7d   :  { %3377 = vrot.lane.b32.xlu1 %v3371_v56, %s5523_s2 }
0x3c7e   :  { %v3375_v49 = vmul.f32 %v3373_v14, %v3370_v16 }
0x3cef   :  { %v3378_v15 = vpop.permute.xlu1 %3377 }
0x3cf0   :  { %v3380_v13 = vmul.f32 %v3378_v15, %v3370_v16 }
0x3cf2   :  { %3382 = vrot.lane.b32.xlu2 %v3380_v13, %s5523_s2 }
0x3d4c   :  { %v3383_v18 = vpop.permute.xlu2 %3382 }
0x3d4d   :  { %v3385_v20 = vadd.f32 %v3383_v18, %v3375_v49 }
0x3d4f   :  { %5298 = vtanh.f32 %v3385_v20  ;;  %v3457_v5 = vrot.slane %v3385_v20, 6  ;;  %v3482_v20 = vld [vmem:[#allocation3 + $0x50] sm:$0x30] }
0x3d55   :  { %v5299_v22 = vpop.eup %5298 }
0x3d56   :  { %3388 = vrot.lane.b32.xlu0 %v5299_v22, %s5523_s2 }
0x3dc8   :  { %v3389_v54 = vpop.permute.xlu0 %3388 }
0x3dc9   :  { %v7374_v25 = vmul.f32 %v3389_v54, %v3371_v56 }
0x3dcb   :  { %3392 = vst.msk [vmem:[#allocation4 + $0x10] sm:$0x3] %vm709_vm13, %v7374_v25  ;;  %5038 = vmatmul.msk.f32.vlgmr.msrb.gmra.mxu0 %vm70_vm0, %v7374_v25  ;;  %5039 = vmatmul.msk.f32.vlgmr.msrb.gmra.mxu1 %vm70_vm0, %v7374_v25 }
0x3dcc   :  { %3743 = vmatpush.msrb.mxu0 %v7325_v0  ;;  %3763 = vmatpush.msrb.mxu1 %v7328_v1 }
0x3dce   :  { %3744 = vmatpush.msrb.mxu0 %v7331_v44  ;;  %3764 = vmatpush.msrb.mxu1 %v7334_v3 }
0x3dd0   :  { %3745 = vmatpush.msrb.mxu0 %v7337_v8  ;;  %3765 = vmatpush.msrb.mxu1 %v7340_v34 }
0x3dd2   :  { %3746 = vmatpush.msrb.mxu0 %v7343_v43  ;;  %3766 = vmatpush.msrb.mxu1 %v7346_v58 }
0x3dd4   :  { %3747 = vmatpush.msrb.mxu0 %v7349_v17  ;;  %3767 = vmatpush.msrb.mxu1 %v7352_v47 }
0x3dd6   :  { %3748 = vmatpush.msrb.mxu0 %v7355_v23  ;;  %3768 = vmatpush.msrb.mxu1 %v7358_v28 }
0x3dd8   :  { %3749 = vmatpush.msrb.mxu0 %v7361_v7  ;;  %3769 = vmatpush.msrb.mxu1 %v7364_v42 }
0x3dda   :  { %3750 = vmatpush.msrb.mxu0 %v7396_v27  ;;  %3770 = vmatpush.msrb.mxu1 %v7399_v52 }
0x3e48   :  { %v3439_v55 = vpop.f32.mrf.mxu1  ;;  %v3419_v4 = vpop.f32.mrf.mxu0 }
0x3e49   :  { %v3445_v40 = vrot.slane %v3439_v55, 6  ;;  %v3444_v57 = vrot.slane %v3419_v4, 6 }
0x3e4b   :  { %v3449_v37 = vadd.f32 %v3445_v40, %v3399_v63  ;;  %v3448_v9 = vadd.f32 %v3444_v57, %v3398_v35 }
0x3e4d   :  { %5300 = vtanh.f32 %v3449_v37 }
0x3e4e   :  { %5302 = vtanh.f32 %v3448_v9 }
0x3e53   :  { %v5301_v24 = vpop.eup %5300 }
0x3e54   :  { %v3453_v2 = vmul.f32 %v5301_v24, %v5877_v41  ;;  %v5303_v51 = vpop.eup %5302 }
0x3e55   :  { %v3452_v53 = vmul.f32 0.5, %v5303_v51 }
0x3e56   :  { %v3455_v32 = vadd.f32 %v3453_v2, %v5880_v46 }
0x3e57   :  { %v3454_v36 = vadd.f32 0.5, %v3452_v53 }
0x3e58   :  { %3461 = vrot.lane.b32.xlu1 %v3455_v32, %s5523_s2 }
0x3e59   :  { %v3459_v30 = vmul.f32 %v3457_v5, %v3454_v36 }
0x3eca   :  { %v3462_v61 = vpop.permute.xlu1 %3461 }
0x3ecb   :  { %v3464_v33 = vmul.f32 %v3462_v61, %v3454_v36  ;;  %v3568_v61 = vld [vmem:[#allocation3 + $0x20] sm:$0xc0] }
0x3ecd   :  { %3466 = vrot.lane.b32.xlu2 %v3464_v33, %s5523_s2 }
0x3f27   :  { %v3467_v45 = vpop.permute.xlu2 %3466 }
0x3f28   :  { %v3469_v59 = vadd.f32 %v3467_v45, %v3459_v30 }
0x3f2a   :  { %5304 = vtanh.f32 %v3469_v59  ;;  %v3542_v24 = vrot.slane %v3469_v59, 6 }
0x3f30   :  { %v5305_v62 = vpop.eup %5304 }
0x3f31   :  { %3472 = vrot.lane.b32.xlu0 %v5305_v62, %s5523_s2 }
0x3fa3   :  { %v3473_v56 = vpop.permute.xlu0 %3472 }
0x3fa4   :  { %v7407_v31 = vmul.f32 %v3473_v56, %v3455_v32  ;;  %v3567_v56 = vld [vmem:[#allocation3 + $0x50] sm:$0xc0] }
0x3fa6   :  { %v3484_v11 = vrot.slane %v7407_v31, 2  ;;  %3476 = vst.msk [vmem:[#allocation4 + $0x10] sm:$0xc] %vm795_vm14, %v7407_v31 }
0x3fa8   :  { %5040 = vmatmul.msk.f32.vlgmr.msra.gmra.mxu2 %vm70_vm0, %v3484_v11  ;;  %5041 = vmatmul.msk.f32.vlgmr.msrb.gmra.mxu3 %vm70_vm0, %v3484_v11 }
0x3fa9   :  { %3828 = vmatpush.msra.mxu2 %v7325_v0  ;;  %3848 = vmatpush.msrb.mxu3 %v7328_v1 }
0x3fab   :  { %3829 = vmatpush.msra.mxu2 %v7331_v44  ;;  %3849 = vmatpush.msrb.mxu3 %v7334_v3 }
0x3fad   :  { %3830 = vmatpush.msra.mxu2 %v7337_v8  ;;  %3850 = vmatpush.msrb.mxu3 %v7340_v34 }
0x3faf   :  { %3831 = vmatpush.msra.mxu2 %v7343_v43  ;;  %3851 = vmatpush.msrb.mxu3 %v7346_v58 }
0x3fb1   :  { %3832 = vmatpush.msra.mxu2 %v7349_v17  ;;  %3852 = vmatpush.msrb.mxu3 %v7352_v47 }
0x3fb3   :  { %3833 = vmatpush.msra.mxu2 %v7355_v23  ;;  %3853 = vmatpush.msrb.mxu3 %v7358_v28 }
0x3fb5   :  { %3834 = vmatpush.msra.mxu2 %v7361_v7  ;;  %3854 = vmatpush.msrb.mxu3 %v7364_v42 }
0x3fb7   :  { %3835 = vmatpush.msra.mxu2 %v7396_v27  ;;  %3855 = vmatpush.msrb.mxu3 %v7399_v52 }
0x402b   :  { %v3524_v29 = vpop.f32.mrf.mxu3  ;;  %v3504_v49 = vpop.f32.mrf.mxu2 }
0x402c   :  { %v3530_v39 = vrot.slane %v3524_v29, 4  ;;  %v3529_v18 = vrot.slane %v3504_v49, 4 }
0x402e   :  { %v3534_v16 = vadd.f32 %v3530_v39, %v3483_v38  ;;  %v3533_v22 = vadd.f32 %v3529_v18, %v3482_v20 }
0x4030   :  { %5306 = vtanh.f32 %v3534_v16 }
0x4031   :  { %5308 = vtanh.f32 %v3533_v22 }
0x4036   :  { %v5307_v15 = vpop.eup %5306 }
0x4037   :  { %v3538_v13 = vmul.f32 %v5307_v15, %v5877_v41  ;;  %v5309_v54 = vpop.eup %5308 }
0x4038   :  { %v3537_v55 = vmul.f32 0.5, %v5309_v54 }
0x4039   :  { %v3540_v14 = vadd.f32 %v3538_v13, %v5880_v46 }
0x403a   :  { %v3539_v40 = vadd.f32 0.5, %v3537_v55 }
0x403b   :  { %3546 = vrot.lane.b32.xlu1 %v3540_v14, %s5523_s2 }
0x403c   :  { %v3544_v2 = vmul.f32 %v3542_v24, %v3539_v40 }
0x40ad   :  { %v3547_v63 = vpop.permute.xlu1 %3546 }
0x40ae   :  { %v3549_v37 = vmul.f32 %v3547_v63, %v3539_v40  ;;  %v3653_v40 = vld [vmem:[#allocation3 + $0x38] sm:$0x3] }
0x40b0   :  { %3551 = vrot.lane.b32.xlu2 %v3549_v37, %s5523_s2 }
0x410a   :  { %v3552_v32 = vpop.permute.xlu2 %3551 }
0x410b   :  { %v3554_v4 = vadd.f32 %v3552_v32, %v3544_v2 }
0x410d   :  { %5310 = vtanh.f32 %v3554_v4  ;;  %v3627_v13 = vrot.slane %v3554_v4, 6 }
0x4113   :  { %v5311_v57 = vpop.eup %5310 }
0x4114   :  { %3557 = vrot.lane.b32.xlu0 %v5311_v57, %s5523_s2  ;;  %v3652_v57 = vld [vmem:[#allocation3 + $0x8] sm:$0x3] }
0x4186   :  { %v3558_v35 = vpop.permute.xlu0 %3557 }
0x4187   :  { %v7435_v9 = vmul.f32 %v3558_v35, %v3540_v14 }
0x4189   :  { %v3569_v51 = vrot.slane %v7435_v9, 4  ;;  %3561 = vst.msk [vmem:[#allocation4 + $0x10] sm:$0x30] %vm882_vm15, %v7435_v9 }
0x418b   :  { %5042 = vmatmul.msk.f32.vlgmr.msra.gmra.mxu0 %vm70_vm0, %v3569_v51  ;;  %5043 = vmatmul.msk.f32.vlgmr.msra.gmra.mxu1 %vm70_vm0, %v3569_v51 }
0x418c   :  { %3913 = vmatpush.msra.mxu0 %v7325_v0  ;;  %3933 = vmatpush.msra.mxu1 %v7328_v1 }
0x418e   :  { %3914 = vmatpush.msra.mxu0 %v7331_v44  ;;  %3934 = vmatpush.msra.mxu1 %v7334_v3 }
0x4190   :  { %3915 = vmatpush.msra.mxu0 %v7337_v8  ;;  %3935 = vmatpush.msra.mxu1 %v7340_v34 }
0x4192   :  { %3916 = vmatpush.msra.mxu0 %v7343_v43  ;;  %3936 = vmatpush.msra.mxu1 %v7346_v58 }
0x4194   :  { %3917 = vmatpush.msra.mxu0 %v7349_v17  ;;  %3937 = vmatpush.msra.mxu1 %v7352_v47 }
0x4196   :  { %3918 = vmatpush.msra.mxu0 %v7355_v23  ;;  %3938 = vmatpush.msra.mxu1 %v7358_v28 }
0x4198   :  { %3919 = vmatpush.msra.mxu0 %v7361_v7  ;;  %3939 = vmatpush.msra.mxu1 %v7364_v42 }
0x419a   :  { %3920 = vmatpush.msra.mxu0 %v7396_v27  ;;  %3940 = vmatpush.msra.mxu1 %v7399_v52 }
0x4208   :  { %v3609_v53 = vpop.f32.mrf.mxu1  ;;  %v3589_v59 = vpop.f32.mrf.mxu0 }
0x4209   :  { %v3615_v36 = vrot.slane %v3609_v53, 2  ;;  %v3614_v62 = vrot.slane %v3589_v59, 2 }
0x420b   :  { %v3619_v33 = vadd.f32 %v3615_v36, %v3568_v61  ;;  %v3618_v11 = vadd.f32 %v3614_v62, %v3567_v56 }
0x420d   :  { %5312 = vtanh.f32 %v3619_v33 }
0x420e   :  { %5314 = vtanh.f32 %v3618_v11 }
0x4213   :  { %v5313_v5 = vpop.eup %5312 }
0x4214   :  { %v3623_v30 = vmul.f32 %v5313_v5, %v5877_v41  ;;  %v5315_v29 = vpop.eup %5314 }
0x4215   :  { %v3622_v39 = vmul.f32 0.5, %v5315_v29 }
0x4216   :  { %v3625_v45 = vadd.f32 %v3623_v30, %v5880_v46 }
0x4217   :  { %v3624_v38 = vadd.f32 0.5, %v3622_v39 }
0x4218   :  { %3631 = vrot.lane.b32.xlu1 %v3625_v45, %s5523_s2 }
0x4219   :  { %v3629_v14 = vmul.f32 %v3627_v13, %v3624_v38 }
0x428a   :  { %v3632_v16 = vpop.permute.xlu1 %3631 }
0x428b   :  { %v3634_v15 = vmul.f32 %v3632_v16, %v3624_v38  ;;  %v3732_v38 = vld [vmem:[#allocation3 + $0x38] sm:$0xc] }
0x428d   :  { %3636 = vrot.lane.b32.xlu2 %v3634_v15, %s5523_s2 }
0x42e7   :  { %v3637_v49 = vpop.permute.xlu2 %3636 }
0x42e8   :  { %v3639_v18 = vadd.f32 %v3637_v49, %v3629_v14 }
0x42ea   :  { %5316 = vtanh.f32 %v3639_v18  ;;  %v3706_v5 = vrot.slane %v3639_v18, 6 }
0x42f0   :  { %v5317_v20 = vpop.eup %5316 }
0x42f1   :  { %3642 = vrot.lane.b32.xlu0 %v5317_v20, %s5523_s2  ;;  %v3731_v20 = vld [vmem:[#allocation3 + $0x8] sm:$0xc] }
0x4363   :  { %v3643_v22 = vpop.permute.xlu0 %3642 }
0x4364   :  { %v7463_v54 = vmul.f32 %v3643_v22, %v3625_v45 }
0x4366   :  { %v3654_v55 = vrot.slane %v7463_v54, 6  ;;  %3646 = vst.msk [vmem:[#allocation4 + $0x10] sm:$0xc0] %vm969_vm12, %v7463_v54 }
0x4368   :  { %5044 = vmatmul.msk.f32.vlgmr.msrb.gmra.mxu2 %vm70_vm0, %v3654_v55  ;;  %5045 = vmatmul.msk.f32.vlgmr.msra.gmra.mxu3 %vm70_vm0, %v3654_v55 }
0x4369   :  { %3998 = vmatpush.msrb.mxu2 %v7325_v0  ;;  %4018 = vmatpush.msra.mxu3 %v7328_v1 }
0x436b   :  { %3999 = vmatpush.msrb.mxu2 %v7331_v44  ;;  %4019 = vmatpush.msra.mxu3 %v7334_v3 }
0x436d   :  { %4000 = vmatpush.msrb.mxu2 %v7337_v8  ;;  %4020 = vmatpush.msra.mxu3 %v7340_v34 }
0x436f   :  { %4001 = vmatpush.msrb.mxu2 %v7343_v43  ;;  %4021 = vmatpush.msra.mxu3 %v7346_v58 }
0x4371   :  { %4002 = vmatpush.msrb.mxu2 %v7349_v17  ;;  %4022 = vmatpush.msra.mxu3 %v7352_v47 }
0x4373   :  { %4003 = vmatpush.msrb.mxu2 %v7355_v23  ;;  %4023 = vmatpush.msra.mxu3 %v7358_v28 }
0x4375   :  { %4004 = vmatpush.msrb.mxu2 %v7361_v7  ;;  %4024 = vmatpush.msra.mxu3 %v7364_v42 }
0x4377   :  { %4005 = vmatpush.msrb.mxu2 %v7396_v27  ;;  %4025 = vmatpush.msra.mxu3 %v7399_v52 }
0x43eb   :  { %v3694_v63 = vpop.f32.mrf.mxu3  ;;  %v3674_v4 = vpop.f32.mrf.mxu2 }
0x43ec   :  { %v3698_v37 = vadd.f32 %v3694_v63, %v3653_v40  ;;  %v3697_v35 = vadd.f32 %v3674_v4, %v3652_v57 }
0x43ee   :  { %5318 = vtanh.f32 %v3698_v37 }
0x43ef   :  { %5320 = vtanh.f32 %v3697_v35 }
0x43f4   :  { %v5319_v24 = vpop.eup %5318 }
0x43f5   :  { %v3702_v2 = vmul.f32 %v5319_v24, %v5877_v41  ;;  %v5321_v51 = vpop.eup %5320 }
0x43f6   :  { %v3701_v53 = vmul.f32 0.5, %v5321_v51 }
0x43f7   :  { %v3704_v32 = vadd.f32 %v3702_v2, %v5880_v46 }
0x43f8   :  { %v3703_v36 = vadd.f32 0.5, %v3701_v53 }
0x43f9   :  { %3710 = vrot.lane.b32.xlu1 %v3704_v32, %s5523_s2 }
0x43fa   :  { %v3708_v30 = vmul.f32 %v3706_v5, %v3703_v36  ;;  %v3816_v5 = vld [vmem:[#allocation3 + $0x38] sm:$0x30] }
0x446b   :  { %v3711_v61 = vpop.permute.xlu1 %3710 }
0x446c   :  { %v3713_v33 = vmul.f32 %v3711_v61, %v3703_v36 }
0x446e   :  { %3715 = vrot.lane.b32.xlu2 %v3713_v33, %s5523_s2 }
0x44c8   :  { %v3716_v45 = vpop.permute.xlu2 %3715 }
0x44c9   :  { %v3718_v59 = vadd.f32 %v3716_v45, %v3708_v30 }
0x44cb   :  { %5322 = vtanh.f32 %v3718_v59  ;;  %v3790_v2 = vrot.slane %v3718_v59, 6 }
0x44d1   :  { %v5323_v62 = vpop.eup %5322 }
0x44d2   :  { %3721 = vrot.lane.b32.xlu0 %v5323_v62, %s5523_s2 }
0x4544   :  { %v3722_v56 = vpop.permute.xlu0 %3721 }
0x4545   :  { %v7491_v11 = vmul.f32 %v3722_v56, %v3704_v32 }
0x4547   :  { %5046 = vmatmul.msk.f32.vlgmr.msrb.gmra.mxu0 %vm70_vm0, %v7491_v11  ;;  %5047 = vmatmul.msk.f32.vlgmr.msrb.gmra.mxu1 %vm70_vm0, %v7491_v11 }
0x4548   :  { %4076 = vmatpush.msrb.mxu0 %v7325_v0  ;;  %4096 = vmatpush.msrb.mxu1 %v7328_v1 }
0x454a   :  { %4077 = vmatpush.msrb.mxu0 %v7331_v44  ;;  %4097 = vmatpush.msrb.mxu1 %v7334_v3 }
0x454c   :  { %4078 = vmatpush.msrb.mxu0 %v7337_v8  ;;  %4098 = vmatpush.msrb.mxu1 %v7340_v34 }
0x454e   :  { %4079 = vmatpush.msrb.mxu0 %v7343_v43  ;;  %4099 = vmatpush.msrb.mxu1 %v7346_v58 }
0x4550   :  { %4080 = vmatpush.msrb.mxu0 %v7349_v17  ;;  %4100 = vmatpush.msrb.mxu1 %v7352_v47 }
0x4552   :  { %4081 = vmatpush.msrb.mxu0 %v7355_v23  ;;  %4101 = vmatpush.msrb.mxu1 %v7358_v28 }
0x4554   :  { %4082 = vmatpush.msrb.mxu0 %v7361_v7  ;;  %4102 = vmatpush.msrb.mxu1 %v7364_v42 }
0x4556   :  { %4083 = vmatpush.msrb.mxu0 %v7396_v27  ;;  %4103 = vmatpush.msrb.mxu1 %v7399_v52 }
0x45c4   :  { %v3772_v29 = vpop.f32.mrf.mxu1  ;;  %v3752_v49 = vpop.f32.mrf.mxu0 }
0x45c5   :  { %v3778_v39 = vrot.slane %v3772_v29, 6  ;;  %v3777_v18 = vrot.slane %v3752_v49, 6 }
0x45c7   :  { %v3782_v16 = vadd.f32 %v3778_v39, %v3732_v38  ;;  %v3781_v22 = vadd.f32 %v3777_v18, %v3731_v20  ;;  %v3815_v39 = vld [vmem:[#allocation3 + $0x8] sm:$0x30] }
0x45c9   :  { %5324 = vtanh.f32 %v3782_v16 }
0x45ca   :  { %5326 = vtanh.f32 %v3781_v22 }
0x45cf   :  { %v5325_v15 = vpop.eup %5324 }
0x45d0   :  { %v3786_v13 = vmul.f32 %v5325_v15, %v5877_v41  ;;  %v5327_v55 = vpop.eup %5326 }
0x45d1   :  { %v3785_v40 = vmul.f32 0.5, %v5327_v55 }
0x45d2   :  { %v3788_v14 = vadd.f32 %v3786_v13, %v5880_v46 }
0x45d3   :  { %v3787_v63 = vadd.f32 0.5, %v3785_v40 }
0x45d4   :  { %3794 = vrot.lane.b32.xlu1 %v3788_v14, %s5523_s2 }
0x45d5   :  { %v3792_v32 = vmul.f32 %v3790_v2, %v3787_v63 }
0x4646   :  { %v3795_v37 = vpop.permute.xlu1 %3794 }
0x4647   :  { %v3797_v24 = vmul.f32 %v3795_v37, %v3787_v63 }
0x4649   :  { %3799 = vrot.lane.b32.xlu2 %v3797_v24, %s5523_s2 }
0x46a3   :  { %v3800_v4 = vpop.permute.xlu2 %3799 }
0x46a4   :  { %v3802_v57 = vadd.f32 %v3800_v4, %v3792_v32  ;;  %v3901_v4 = vld [vmem:[#allocation3 + $0x38] sm:$0xc0] }
0x46a6   :  { %5328 = vtanh.f32 %v3802_v57  ;;  %v3875_v18 = vrot.slane %v3802_v57, 6 }
0x46ac   :  { %v5329_v35 = vpop.eup %5328 }
0x46ad   :  { %3805 = vrot.lane.b32.xlu0 %v5329_v35, %s5523_s2 }
0x471f   :  { %v3806_v51 = vpop.permute.xlu0 %3805 }
0x4720   :  { %v7518_v53 = vmul.f32 %v3806_v51, %v3788_v14 }
0x4722   :  { %v3817_v36 = vrot.slane %v7518_v53, 2 }
0x4724   :  { %5048 = vmatmul.msk.f32.vlgmr.msra.gmra.mxu2 %vm70_vm0, %v3817_v36  ;;  %5049 = vmatmul.msk.f32.vlgmr.msrb.gmra.mxu3 %vm70_vm0, %v3817_v36 }
0x4725   :  { %4161 = vmatpush.msra.mxu2 %v7325_v0  ;;  %4181 = vmatpush.msrb.mxu3 %v7328_v1 }
0x4727   :  { %4162 = vmatpush.msra.mxu2 %v7331_v44  ;;  %4182 = vmatpush.msrb.mxu3 %v7334_v3 }
0x4729   :  { %4163 = vmatpush.msra.mxu2 %v7337_v8  ;;  %4183 = vmatpush.msrb.mxu3 %v7340_v34 }
0x472b   :  { %4164 = vmatpush.msra.mxu2 %v7343_v43  ;;  %4184 = vmatpush.msrb.mxu3 %v7346_v58 }
0x472d   :  { %4165 = vmatpush.msra.mxu2 %v7349_v17  ;;  %4185 = vmatpush.msrb.mxu3 %v7352_v47 }
0x472f   :  { %4166 = vmatpush.msra.mxu2 %v7355_v23  ;;  %4186 = vmatpush.msrb.mxu3 %v7358_v28 }
0x4731   :  { %4167 = vmatpush.msra.mxu2 %v7361_v7  ;;  %4187 = vmatpush.msrb.mxu3 %v7364_v42 }
0x4733   :  { %4168 = vmatpush.msra.mxu2 %v7396_v27  ;;  %4188 = vmatpush.msrb.mxu3 %v7399_v52 }
0x47a7   :  { %v3857_v61 = vpop.f32.mrf.mxu3  ;;  %v3837_v56 = vpop.f32.mrf.mxu2 }
0x47a8   :  { %v3863_v33 = vrot.slane %v3857_v61, 4  ;;  %v3862_v29 = vrot.slane %v3837_v56, 4 }
0x47aa   :  { %v3867_v30 = vadd.f32 %v3863_v33, %v3816_v5  ;;  %v3866_v38 = vadd.f32 %v3862_v29, %v3815_v39  ;;  %v3900_v5 = vld [vmem:[#allocation3 + $0x8] sm:$0xc0] }
0x47ac   :  { %5330 = vtanh.f32 %v3867_v30 }
0x47ad   :  { %5332 = vtanh.f32 %v3866_v38 }
0x47b2   :  { %v5331_v45 = vpop.eup %5330 }
0x47b3   :  { %v3871_v59 = vmul.f32 %v5331_v45, %v5877_v41  ;;  %v5333_v16 = vpop.eup %5332 }
0x47b4   :  { %v3870_v15 = vmul.f32 0.5, %v5333_v16 }
0x47b5   :  { %v3873_v62 = vadd.f32 %v3871_v59, %v5880_v46 }
0x47b6   :  { %v3872_v13 = vadd.f32 0.5, %v3870_v15 }
0x47b7   :  { %3879 = vrot.lane.b32.xlu1 %v3873_v62, %s5523_s2 }
0x47b8   :  { %v3877_v20 = vmul.f32 %v3875_v18, %v3872_v13 }
0x4829   :  { %v3880_v14 = vpop.permute.xlu1 %3879 }
0x482a   :  { %v3882_v49 = vmul.f32 %v3880_v14, %v3872_v13 }
0x482c   :  { %3884 = vrot.lane.b32.xlu2 %v3882_v49, %s5523_s2 }
0x4886   :  { %v3885_v22 = vpop.permute.xlu2 %3884 }
0x4887   :  { %v3887_v55 = vadd.f32 %v3885_v22, %v3877_v20  ;;  %v3986_v20 = vld [vmem:[#allocation3 + $0x48] sm:$0x3] }
0x4889   :  { %5334 = vtanh.f32 %v3887_v55  ;;  %v3960_v39 = vrot.slane %v3887_v55, 6 }
0x488f   :  { %v5335_v40 = vpop.eup %5334 }
0x4890   :  { %3890 = vrot.lane.b32.xlu0 %v5335_v40, %s5523_s2 }
0x4902   :  { %v3891_v63 = vpop.permute.xlu0 %3890 }
0x4903   :  { %v7544_v37 = vmul.f32 %v3891_v63, %v3873_v62 }
0x4905   :  { %v3902_v24 = vrot.slane %v7544_v37, 4 }
0x4907   :  { %5050 = vmatmul.msk.f32.vlgmr.msra.gmra.mxu0 %vm70_vm0, %v3902_v24  ;;  %5051 = vmatmul.msk.f32.vlgmr.msra.gmra.mxu1 %vm70_vm0, %v3902_v24 }
0x4908   :  { %4246 = vmatpush.msra.mxu0 %v7325_v0  ;;  %4266 = vmatpush.msra.mxu1 %v7328_v1 }
0x490a   :  { %4247 = vmatpush.msra.mxu0 %v7331_v44  ;;  %4267 = vmatpush.msra.mxu1 %v7334_v3 }
0x490c   :  { %4248 = vmatpush.msra.mxu0 %v7337_v8  ;;  %4268 = vmatpush.msra.mxu1 %v7340_v34 }
0x490e   :  { %4249 = vmatpush.msra.mxu0 %v7343_v43  ;;  %4269 = vmatpush.msra.mxu1 %v7346_v58 }
0x4910   :  { %4250 = vmatpush.msra.mxu0 %v7349_v17  ;;  %4270 = vmatpush.msra.mxu1 %v7352_v47 }
0x4912   :  { %4251 = vmatpush.msra.mxu0 %v7355_v23  ;;  %4271 = vmatpush.msra.mxu1 %v7358_v28 }
0x4914   :  { %4252 = vmatpush.msra.mxu0 %v7361_v7  ;;  %4272 = vmatpush.msra.mxu1 %v7364_v42 }
0x4916   :  { %4253 = vmatpush.msra.mxu0 %v7396_v27  ;;  %4273 = vmatpush.msra.mxu1 %v7399_v52 }
0x4984   :  { %v3942_v2 = vpop.f32.mrf.mxu1  ;;  %v3922_v61 = vpop.f32.mrf.mxu0 }
0x4985   :  { %v3948_v32 = vrot.slane %v3942_v2, 2  ;;  %v3947_v33 = vrot.slane %v3922_v61, 2 }
0x4987   :  { %v3952_v57 = vadd.f32 %v3948_v32, %v3901_v4  ;;  %v3951_v30 = vadd.f32 %v3947_v33, %v3900_v5  ;;  %v3985_v32 = vld [vmem:[#allocation3 + $0x28] sm:$0x3] }
0x4989   :  { %5336 = vtanh.f32 %v3952_v57 }
0x498a   :  { %5338 = vtanh.f32 %v3951_v30 }
0x498f   :  { %v5337_v35 = vpop.eup %5336 }
0x4990   :  { %v3956_v51 = vmul.f32 %v5337_v35, %v5877_v41  ;;  %v5339_v45 = vpop.eup %5338 }
0x4991   :  { %v3955_v59 = vmul.f32 0.5, %v5339_v45 }
0x4992   :  { %v3958_v36 = vadd.f32 %v3956_v51, %v5880_v46 }
0x4993   :  { %v3957_v62 = vadd.f32 0.5, %v3955_v59 }
0x4994   :  { %3964 = vrot.lane.b32.xlu1 %v3958_v36, %s5523_s2 }
0x4995   :  { %v3962_v38 = vmul.f32 %v3960_v39, %v3957_v62 }
0x4a06   :  { %v3965_v56 = vpop.permute.xlu1 %3964 }
0x4a07   :  { %v3967_v29 = vmul.f32 %v3965_v56, %v3957_v62 }
0x4a09   :  { %3969 = vrot.lane.b32.xlu2 %v3967_v29, %s5523_s2 }
0x4a63   :  { %v3970_v16 = vpop.permute.xlu2 %3969 }
0x4a64   :  { %v3972_v15 = vadd.f32 %v3970_v16, %v3962_v38  ;;  %v4065_v38 = vld [vmem:[#allocation3 + $0x48] sm:$0xc] }
0x4a66   :  { %5340 = vtanh.f32 %v3972_v15  ;;  %v4039_v33 = vrot.slane %v3972_v15, 6 }
0x4a6c   :  { %v5341_v13 = vpop.eup %5340 }
0x4a6d   :  { %3975 = vrot.lane.b32.xlu0 %v5341_v13, %s5523_s2 }
0x4adf   :  { %v3976_v14 = vpop.permute.xlu0 %3975 }
0x4ae0   :  { %v7570_v49 = vmul.f32 %v3976_v14, %v3958_v36 }
0x4ae2   :  { %v3987_v18 = vrot.slane %v7570_v49, 6 }
0x4ae4   :  { %5052 = vmatmul.msk.f32.vlgmr.msrb.gmra.mxu2 %vm70_vm0, %v3987_v18  ;;  %5053 = vmatmul.msk.f32.vlgmr.msra.gmra.mxu3 %vm70_vm0, %v3987_v18 }
0x4ae5   :  { %4331 = vmatpush.msrb.mxu2 %v7325_v0  ;;  %4351 = vmatpush.msra.mxu3 %v7328_v1 }
0x4ae7   :  { %4332 = vmatpush.msrb.mxu2 %v7331_v44  ;;  %4352 = vmatpush.msra.mxu3 %v7334_v3 }
0x4ae9   :  { %4333 = vmatpush.msrb.mxu2 %v7337_v8  ;;  %4353 = vmatpush.msra.mxu3 %v7340_v34 }
0x4aeb   :  { %4334 = vmatpush.msrb.mxu2 %v7343_v43  ;;  %4354 = vmatpush.msra.mxu3 %v7346_v58 }
0x4aed   :  { %4335 = vmatpush.msrb.mxu2 %v7349_v17  ;;  %4355 = vmatpush.msra.mxu3 %v7352_v47 }
0x4aef   :  { %4336 = vmatpush.msrb.mxu2 %v7355_v23  ;;  %4356 = vmatpush.msra.mxu3 %v7358_v28 }
0x4af1   :  { %4337 = vmatpush.msrb.mxu2 %v7361_v7  ;;  %4357 = vmatpush.msra.mxu3 %v7364_v42 }
0x4af3   :  { %4338 = vmatpush.msrb.mxu2 %v7396_v27  ;;  %4358 = vmatpush.msra.mxu3 %v7399_v52 }
0x4b67   :  { %v4027_v22 = vpop.f32.mrf.mxu3  ;;  %v4007_v2 = vpop.f32.mrf.mxu2 }
0x4b68   :  { %v4031_v55 = vadd.f32 %v4027_v22, %v3986_v20  ;;  %v4030_v4 = vadd.f32 %v4007_v2, %v3985_v32  ;;  %v4064_v22 = vld [vmem:[#allocation3 + $0x28] sm:$0xc] }
0x4b6a   :  { %5342 = vtanh.f32 %v4031_v55 }
0x4b6b   :  { %5344 = vtanh.f32 %v4030_v4 }
0x4b70   :  { %v5343_v40 = vpop.eup %5342 }
0x4b71   :  { %v4035_v63 = vmul.f32 %v5343_v40, %v5877_v41  ;;  %v5345_v57 = vpop.eup %5344 }
0x4b72   :  { %v4034_v35 = vmul.f32 0.5, %v5345_v57 }
0x4b73   :  { %v4037_v24 = vadd.f32 %v4035_v63, %v5880_v46 }
0x4b74   :  { %v4036_v51 = vadd.f32 0.5, %v4034_v35 }
0x4b75   :  { %4043 = vrot.lane.b32.xlu1 %v4037_v24, %s5523_s2 }
0x4b76   :  { %v4041_v5 = vmul.f32 %v4039_v33, %v4036_v51 }
0x4be7   :  { %v4044_v36 = vpop.permute.xlu1 %4043 }
0x4be8   :  { %v4046_v61 = vmul.f32 %v4044_v36, %v4036_v51 }
0x4bea   :  { %4048 = vrot.lane.b32.xlu2 %v4046_v61, %s5523_s2 }
0x4c44   :  { %v4049_v30 = vpop.permute.xlu2 %4048 }
0x4c45   :  { %v4051_v45 = vadd.f32 %v4049_v30, %v4041_v5 }
0x4c47   :  { %5346 = vtanh.f32 %v4051_v45  ;;  %v4123_v4 = vrot.slane %v4051_v45, 6 }
0x4c4d   :  { %v5347_v59 = vpop.eup %5346 }
0x4c4e   :  { %4054 = vrot.lane.b32.xlu0 %v5347_v59, %s5523_s2 }
0x4cc0   :  { %v4055_v62 = vpop.permute.xlu0 %4054 }
0x4cc1   :  { %v7596_v56 = vmul.f32 %v4055_v62, %v4037_v24 }
0x4cc3   :  { %5054 = vmatmul.msk.f32.vlgmr.msrb.gmra.mxu0 %vm70_vm0, %v7596_v56  ;;  %5055 = vmatmul.msk.f32.vlgmr.msrb.gmra.mxu1 %vm70_vm0, %v7596_v56 }
0x4cc4   :  { %4409 = vmatpush.msrb.mxu0 %v7325_v0  ;;  %4429 = vmatpush.msrb.mxu1 %v7328_v1 }
0x4cc6   :  { %4410 = vmatpush.msrb.mxu0 %v7331_v44  ;;  %4430 = vmatpush.msrb.mxu1 %v7334_v3 }
0x4cc8   :  { %4411 = vmatpush.msrb.mxu0 %v7337_v8  ;;  %4431 = vmatpush.msrb.mxu1 %v7340_v34 }
0x4cca   :  { %4412 = vmatpush.msrb.mxu0 %v7343_v43  ;;  %4432 = vmatpush.msrb.mxu1 %v7346_v58 }
0x4ccc   :  { %4413 = vmatpush.msrb.mxu0 %v7349_v17  ;;  %4433 = vmatpush.msrb.mxu1 %v7352_v47 }
0x4cce   :  { %4414 = vmatpush.msrb.mxu0 %v7355_v23  ;;  %4434 = vmatpush.msrb.mxu1 %v7358_v28 }
0x4cd0   :  { %4415 = vmatpush.msrb.mxu0 %v7361_v7  ;;  %4435 = vmatpush.msrb.mxu1 %v7364_v42 }
0x4cd2   :  { %4416 = vmatpush.msrb.mxu0 %v7396_v27  ;;  %4436 = vmatpush.msrb.mxu1 %v7399_v52 }
0x4d40   :  { %v4105_v29 = vpop.f32.mrf.mxu1  ;;  %v4085_v18 = vpop.f32.mrf.mxu0 }
0x4d41   :  { %v4111_v39 = vrot.slane %v4105_v29, 6  ;;  %v4110_v20 = vrot.slane %v4085_v18, 6 }
0x4d43   :  { %v4115_v16 = vadd.f32 %v4111_v39, %v4065_v38  ;;  %v4114_v55 = vadd.f32 %v4110_v20, %v4064_v22 }
0x4d45   :  { %5348 = vtanh.f32 %v4115_v16 }
0x4d46   :  { %5350 = vtanh.f32 %v4114_v55 }
0x4d4b   :  { %v5349_v15 = vpop.eup %5348 }
0x4d4c   :  { %v4119_v13 = vmul.f32 %v5349_v15, %v5877_v41  ;;  %v5351_v40 = vpop.eup %5350 }
0x4d4d   :  { %v4118_v63 = vmul.f32 0.5, %v5351_v40 }
0x4d4e   :  { %v4121_v14 = vadd.f32 %v4119_v13, %v5880_v46 }
0x4d4f   :  { %v4120_v24 = vadd.f32 0.5, %v4118_v63 }
0x4d50   :  { %4127 = vrot.lane.b32.xlu1 %v4121_v14, %s5523_s2 }
0x4d51   :  { %v4125_v57 = vmul.f32 %v4123_v4, %v4120_v24 }
0x4dc2   :  { %v4128_v2 = vpop.permute.xlu1 %4127 }
0x4dc3   :  { %v4130_v32 = vmul.f32 %v4128_v2, %v4120_v24  ;;  %v4233_v24 = vld [vmem:[#allocation3 + $0x28] sm:$0xc0] }
0x4dc5   :  { %4132 = vrot.lane.b32.xlu2 %v4130_v32, %s5523_s2 }
0x4e1f   :  { %v4133_v35 = vpop.permute.xlu2 %4132 }
0x4e20   :  { %v4135_v51 = vadd.f32 %v4133_v35, %v4125_v57 }
0x4e22   :  { %5352 = vtanh.f32 %v4135_v51  ;;  %v4208_v30 = vrot.slane %v4135_v51, 6 }
0x4e28   :  { %v5353_v36 = vpop.eup %5352 }
0x4e29   :  { %4138 = vrot.lane.b32.xlu0 %v5353_v36, %s5523_s2 }
0x4e9b   :  { %v4139_v61 = vpop.permute.xlu0 %4138 }
0x4e9c   :  { %v7623_v33 = vmul.f32 %v4139_v61, %v4121_v14  ;;  %v4234_v14 = vld [vmem:[#allocation3 + $0x48] sm:$0xc0] }
0x4e9e   :  { %v4150_v5 = vrot.slane %v7623_v33, 2 }
0x4ea0   :  { %5056 = vmatmul.msk.f32.vlgmr.msra.gmra.mxu2 %vm70_vm0, %v4150_v5  ;;  %5057 = vmatmul.msk.f32.vlgmr.msrb.gmra.mxu3 %vm70_vm0, %v4150_v5 }
0x4ea1   :  { %4494 = vmatpush.msra.mxu2 %v7325_v0  ;;  %4514 = vmatpush.msrb.mxu3 %v7328_v1 }
0x4ea3   :  { %4495 = vmatpush.msra.mxu2 %v7331_v44  ;;  %4515 = vmatpush.msrb.mxu3 %v7334_v3  ;;  %v4149_v44 = vld [vmem:[#allocation3 + $0x48] sm:$0x30] }
0x4ea5   :  { %4496 = vmatpush.msra.mxu2 %v7337_v8  ;;  %4516 = vmatpush.msrb.mxu3 %v7340_v34 }
0x4ea7   :  { %4497 = vmatpush.msra.mxu2 %v7343_v43  ;;  %4517 = vmatpush.msrb.mxu3 %v7346_v58 }
0x4ea9   :  { %4498 = vmatpush.msra.mxu2 %v7349_v17  ;;  %4518 = vmatpush.msrb.mxu3 %v7352_v47  ;;  %v4148_v47 = vld [vmem:[#allocation3 + $0x28] sm:$0x30] }
0x4eab   :  { %4499 = vmatpush.msra.mxu2 %v7355_v23  ;;  %4519 = vmatpush.msrb.mxu3 %v7358_v28 }
0x4ead   :  { %4500 = vmatpush.msra.mxu2 %v7361_v7  ;;  %4520 = vmatpush.msrb.mxu3 %v7364_v42 }
0x4eaf   :  { %4501 = vmatpush.msra.mxu2 %v7396_v27  ;;  %4521 = vmatpush.msrb.mxu3 %v7399_v52 }
0x4f23   :  { %v4190_v0 = vpop.f32.mrf.mxu3  ;;  %v4170_v58 = vpop.f32.mrf.mxu2 }
0x4f24   :  { %v4196_v1 = vrot.slane %v4190_v0, 4  ;;  %v4195_v17 = vrot.slane %v4170_v58, 4 }
0x4f26   :  { %v4200_v3 = vadd.f32 %v4196_v1, %v4149_v44  ;;  %v4199_v23 = vadd.f32 %v4195_v17, %v4148_v47 }
0x4f28   :  { %5354 = vtanh.f32 %v4200_v3 }
0x4f29   :  { %5356 = vtanh.f32 %v4199_v23 }
0x4f2e   :  { %v5355_v8 = vpop.eup %5354 }
0x4f2f   :  { %v4204_v34 = vmul.f32 %v5355_v8, %v5877_v41  ;;  %v5357_v28 = vpop.eup %5356 }
0x4f30   :  { %v4203_v7 = vmul.f32 0.5, %v5357_v28 }
0x4f31   :  { %v4206_v43 = vadd.f32 %v4204_v34, %v5880_v46  ;;  %v4319_v34 = vld [vmem:[#allocation3 + $0x40] sm:$0x3] }
0x4f32   :  { %v4205_v42 = vadd.f32 0.5, %v4203_v7  ;;  %v4318_v7 = vld [vmem:[#allocation3 + $0x10] sm:$0x3] }
0x4f33   :  { %4212 = vrot.lane.b32.xlu1 %v4206_v43, %s5523_s2 }
0x4f34   :  { %v4210_v45 = vmul.f32 %v4208_v30, %v4205_v42 }
0x4fa5   :  { %v4213_v27 = vpop.permute.xlu1 %4212 }
0x4fa6   :  { %v4215_v52 = vmul.f32 %v4213_v27, %v4205_v42 }
0x4fa8   :  { %4217 = vrot.lane.b32.xlu2 %v4215_v52, %s5523_s2 }
0x5002   :  { %v4218_v59 = vpop.permute.xlu2 %4217 }
0x5003   :  { %v4220_v62 = vadd.f32 %v4218_v59, %v4210_v45 }
0x5005   :  { %5358 = vtanh.f32 %v4220_v62  ;;  %v4293_v36 = vrot.slane %v4220_v62, 6 }
0x500b   :  { %v5359_v29 = vpop.eup %5358 }
0x500c   :  { %4223 = vrot.lane.b32.xlu0 %v5359_v29, %s5523_s2 }
0x507e   :  { %v4224_v39 = vpop.permute.xlu0 %4223 }
0x507f   :  { %v7649_v38 = vmul.f32 %v4224_v39, %v4206_v43 }
0x5081   :  { %v4235_v16 = vrot.slane %v7649_v38, 4 }
0x5083   :  { %5058 = vmatmul.msk.f32.vlgmr.msra.gmra.mxu0 %vm70_vm0, %v4235_v16  ;;  %5059 = vmatmul.msk.f32.vlgmr.msra.gmra.mxu1 %vm70_vm0, %v4235_v16 }
0x5100   :  { %v4275_v15 = vpop.f32.mrf.mxu1  ;;  %v4255_v40 = vpop.f32.mrf.mxu0 }
0x5101   :  { %v4281_v13 = vrot.slane %v4275_v15, 2  ;;  %v4280_v63 = vrot.slane %v4255_v40, 2 }
0x5103   :  { %v4285_v18 = vadd.f32 %v4281_v13, %v4234_v14  ;;  %v4284_v2 = vadd.f32 %v4280_v63, %v4233_v24 }
0x5105   :  { %5360 = vtanh.f32 %v4285_v18 }
0x5106   :  { %5362 = vtanh.f32 %v4284_v2 }
0x510b   :  { %v5361_v20 = vpop.eup %5360 }
0x510c   :  { %v4289_v22 = vmul.f32 %v5361_v20, %v5877_v41  ;;  %v5363_v32 = vpop.eup %5362 }
0x510d   :  { %v4288_v4 = vmul.f32 0.5, %v5363_v32 }
0x510e   :  { %v4291_v55 = vadd.f32 %v4289_v22, %v5880_v46  ;;  %v4398_v22 = vld [vmem:[#allocation3 + $0x40] sm:$0xc] }
0x510f   :  { %v4290_v57 = vadd.f32 0.5, %v4288_v4  ;;  %v4397_v4 = vld [vmem:[#allocation3 + $0x10] sm:$0xc] }
0x5110   :  { %4297 = vrot.lane.b32.xlu1 %v4291_v55, %s5523_s2 }
0x5111   :  { %v4295_v61 = vmul.f32 %v4293_v36, %v4290_v57 }
0x5182   :  { %v4298_v35 = vpop.permute.xlu1 %4297 }
0x5183   :  { %v4300_v51 = vmul.f32 %v4298_v35, %v4290_v57 }
0x5185   :  { %4302 = vrot.lane.b32.xlu2 %v4300_v51, %s5523_s2 }
0x51df   :  { %v4303_v5 = vpop.permute.xlu2 %4302 }
0x51e0   :  { %v4305_v0 = vadd.f32 %v4303_v5, %v4295_v61 }
0x51e2   :  { %5364 = vtanh.f32 %v4305_v0  ;;  %v4372_v62 = vrot.slane %v4305_v0, 6 }
0x51e8   :  { %v5365_v1 = vpop.eup %5364 }
0x51e9   :  { %4308 = vrot.lane.b32.xlu0 %v5365_v1, %s5523_s2 }
0x525b   :  { %v4309_v44 = vpop.permute.xlu0 %4308 }
0x525c   :  { %v7659_v3 = vmul.f32 %v4309_v44, %v4291_v55 }
0x525e   :  { %v4320_v8 = vrot.slane %v7659_v3, 6 }
0x5260   :  { %5060 = vmatmul.msk.f32.vlgmr.msrb.gmra.mxu2 %vm70_vm0, %v4320_v8  ;;  %5061 = vmatmul.msk.f32.vlgmr.msra.gmra.mxu3 %vm70_vm0, %v4320_v8 }
0x52e3   :  { %v4360_v43 = vpop.f32.mrf.mxu3  ;;  %v4340_v28 = vpop.f32.mrf.mxu2 }
0x52e4   :  { %v4364_v58 = vadd.f32 %v4360_v43, %v4319_v34  ;;  %v4363_v42 = vadd.f32 %v4340_v28, %v4318_v7  ;;  %v4482_v7 = vld [vmem:[#allocation3 + $0x40] sm:$0x30] }
0x52e6   :  { %5366 = vtanh.f32 %v4364_v58 }
0x52e7   :  { %5368 = vtanh.f32 %v4363_v42 }
0x52ec   :  { %v5367_v17 = vpop.eup %5366 }
0x52ed   :  { %v4368_v47 = vmul.f32 %v5367_v17, %v5877_v41  ;;  %v5369_v27 = vpop.eup %5368 }
0x52ee   :  { %v4367_v52 = vmul.f32 0.5, %v5369_v27 }
0x52ef   :  { %v4370_v23 = vadd.f32 %v4368_v47, %v5880_v46 }
0x52f0   :  { %v4369_v30 = vadd.f32 0.5, %v4367_v52 }
0x52f1   :  { %4376 = vrot.lane.b32.xlu1 %v4370_v23, %s5523_s2 }
0x52f2   :  { %v4374_v29 = vmul.f32 %v4372_v62, %v4369_v30 }
0x5363   :  { %v4377_v45 = vpop.permute.xlu1 %4376 }
0x5364   :  { %v4379_v59 = vmul.f32 %v4377_v45, %v4369_v30 }
0x5366   :  { %4381 = vrot.lane.b32.xlu2 %v4379_v59, %s5523_s2 }
0x53c0   :  { %v4382_v39 = vpop.permute.xlu2 %4381 }
0x53c1   :  { %v4384_v16 = vadd.f32 %v4382_v39, %v4374_v29 }
0x53c3   :  { %5370 = vtanh.f32 %v4384_v16  ;;  %v4456_v0 = vrot.slane %v4384_v16, 6 }
0x53c9   :  { %v5371_v15 = vpop.eup %5370 }
0x53ca   :  { %4387 = vrot.lane.b32.xlu0 %v5371_v15, %s5523_s2 }
0x543c   :  { %v4388_v13 = vpop.permute.xlu0 %4387 }
0x543d   :  { %v7669_v14 = vmul.f32 %v4388_v13, %v4370_v23 }
0x543f   :  { %5062 = vmatmul.msk.f32.vlgmr.msrb.gmra.mxu0 %vm70_vm0, %v7669_v14  ;;  %5063 = vmatmul.msk.f32.vlgmr.msrb.gmra.mxu1 %vm70_vm0, %v7669_v14 }
0x54bc   :  { %v4438_v18 = vpop.f32.mrf.mxu1  ;;  %v4418_v2 = vpop.f32.mrf.mxu0 }
0x54bd   :  { %v4444_v20 = vrot.slane %v4438_v18, 6  ;;  %v4443_v32 = vrot.slane %v4418_v2, 6 }
0x54bf   :  { %v4448_v55 = vadd.f32 %v4444_v20, %v4398_v22  ;;  %v4447_v57 = vadd.f32 %v4443_v32, %v4397_v4 }
0x54c1   :  { %5372 = vtanh.f32 %v4448_v55 }
0x54c2   :  { %5374 = vtanh.f32 %v4447_v57 }
0x54c7   :  { %v5373_v40 = vpop.eup %5372 }
0x54c8   :  { %v4452_v63 = vmul.f32 %v5373_v40, %v5877_v41  ;;  %v5375_v35 = vpop.eup %5374 }
0x54c9   :  { %v4451_v51 = vmul.f32 0.5, %v5375_v35 }
0x54ca   :  { %v4454_v24 = vadd.f32 %v4452_v63, %v5880_v46 }
0x54cb   :  { %v4453_v36 = vadd.f32 0.5, %v4451_v51 }
0x54cc   :  { %4460 = vrot.lane.b32.xlu1 %v4454_v24, %s5523_s2 }
0x54cd   :  { %v4458_v1 = vmul.f32 %v4456_v0, %v4453_v36 }
0x553e   :  { %v4461_v61 = vpop.permute.xlu1 %4460 }
0x553f   :  { %v4463_v5 = vmul.f32 %v4461_v61, %v4453_v36 }
0x5541   :  { %4465 = vrot.lane.b32.xlu2 %v4463_v5, %s5523_s2 }
0x559b   :  { %v4466_v44 = vpop.permute.xlu2 %4465 }
0x559c   :  { %v7679_v8 = vadd.f32 %v4466_v44, %v4458_v1 }
0x559e   :  { %5376 = vtanh.f32 %v7679_v8 }
0x55a4   :  { %v5377_v34 = vpop.eup %5376 }
0x55a5   :  { %4471 = vrot.lane.b32.xlu0 %v5377_v34, %s5523_s2 }
0x55ad   :  { %2897 = vrot.lane.b32.xlu0 %v7080_v60, %s5523_s2 }
0x5617   :  { %v4472_v43 = vpop.permute.xlu0 %4471 }
0x5618   :  { %v7685_v58 = vmul.f32 %v4472_v43, %v4454_v24 }
0x561a   :  { %v4483_v17 = vrot.slane %v7685_v58, 2 }
0x561c   :  { %5064 = vmatmul.msk.f32.vlgmr.msra.gmra.mxu2 %vm70_vm0, %v4483_v17  ;;  %5065 = vmatmul.msk.f32.vlgmr.msrb.gmra.mxu3 %vm70_vm0, %v4483_v17 }
0x561f   :  { %v2898_v47 = vpop.permute.xlu0 %2897 }
0x5620   :  { %2900 = vst.msk [vmem:[#allocation4 + $0x24] sm:$0x30] %vm888_vm5, %v2898_v47 }
0x5621   :  { %4391 = vst.msk [vmem:[#allocation4 + $0x28] sm:$0x3] %vm709_vm13, %v7669_v14 }
0x569f   :  { %v4523_v23 = vpop.f32.mrf.mxu3 }
0x56a0   :  { %v4529_v28 = vrot.slane %v4523_v23, 4 }
0x56a2   :  { %v4533_v42 = vadd.f32 %v4529_v28, %v4482_v7 }
0x56a4   :  { %5378 = vtanh.f32 %v4533_v42 }
0x56aa   :  { %v5379_v60 = vpop.eup %5378 }
0x56ab   :  { %v4537_v27 = vmul.f32 %v5379_v60, %v5877_v41  ;;  %v4503_v41 = vpop.f32.mrf.mxu2 }
0x56ad   :  { %v7695_v52 = vadd.f32 %v4537_v27, %v5880_v46  ;;  %v4528_v46 = vrot.slane %v4503_v41, 4 }
0x56af   :  { %4545 = vrot.lane.b32.xlu1 %v7695_v52, %s5523_s2 }
0x56b7   :  { %2728 = vrot.lane.b32.xlu1 %v7018_v6, %s5523_s2  ;;  %v4481_v6 = vld [vmem:[#allocation3 + $0x10] sm:$0x30] }
0x56bf   :  { %2982 = vrot.lane.b32.xlu1 %v7129_v10, %s5523_s2  ;;  %v4532_v10 = vadd.f32 %v4528_v46, %v4481_v6  ;;  %v7893_v46 = vlaneseq }
0x56c1   :  { %5380 = vtanh.f32 %v4532_v10  ;;  %v7813_v6 = vshrl.u32 %v7893_v46, 7 }
0x56c3   :  { %v4684_v10 = vadd.s32 24, %v7813_v6 }
0x56c7   :  { %3230 = vrot.lane.b32.xlu1 %v7290_v19, %s5523_s2  ;;  %v5381_v19 = vpop.eup %5380 }
0x56c8   :  { %v4536_v30 = vmul.f32 0.5, %v5381_v19 }
0x56cf   :  { %3478 = vrot.lane.b32.xlu1 %v7407_v31, %s5523_s2  ;;  %v4538_v31 = vadd.f32 0.5, %v4536_v30  ;;  %v4712_v30 = vand.u32 1, %v4684_v10 }
0x56d7   :  { %3727 = vrot.lane.b32.xlu1 %v7491_v11, %s5523_s2 }
0x56df   :  { %3981 = vrot.lane.b32.xlu1 %v7570_v49, %s5523_s2 }
0x56e7   :  { %4229 = vrot.lane.b32.xlu1 %v7649_v38, %s5523_s2 }
0x56ef   :  { %4477 = vrot.lane.b32.xlu1 %v7685_v58, %s5523_s2 }
0x5721   :  { %v4546_v45 = vpop.permute.xlu1 %4545 }
0x5722   :  { %v4548_v59 = vmul.f32 %v4546_v45, %v4538_v31  ;;  %v4685_v45 = vadd.s32 32, %v7813_v6 }
0x5724   :  { %4550 = vrot.lane.b32.xlu2 %v4548_v59, %s5523_s2  ;;  %v4691_v59 = vand.u32 1, %v7813_v6 }
0x5729   :  { %v2729_v62 = vpop.permute.xlu1 %2728 }
0x572a   :  { %2731 = vst.msk [vmem:[#allocation4 + $0x2c] sm:$0x3] %vm715_vm3, %v2729_v62 }
0x572c   :  { %2812 = vrot.lane.b32.xlu2 %v7048_v48, %s5523_s2 }
0x5731   :  { %v2983_v29 = vpop.permute.xlu1 %2982 }
0x5732   :  { %2985 = vst.msk [vmem:[#allocation4 + $0x20] sm:$0xc0] %vm975_vm4, %v2983_v29 }
0x5733   :  { %4312 = vst.msk [vmem:[#allocation4 + $0x20] sm:$0xc0] %vm969_vm12, %v7659_v3 }
0x5734   :  { %3061 = vrot.lane.b32.xlu2 %v7224_v12, %s5523_s2 }
0x5739   :  { %v3231_v39 = vpop.permute.xlu1 %3230 }
0x573a   :  { %3233 = vst.msk [vmem:[#allocation4 + $0x1c] sm:$0x30] %vm888_vm5, %v3231_v39 }
0x573b   :  { %4058 = vst.msk [vmem:[#allocation4 + $0x20] sm:$0x3] %vm709_vm13, %v7596_v56 }
0x573c   :  { %3315 = vrot.lane.b32.xlu2 %v7318_v21, %s5523_s2 }
0x5741   :  { %v3479_v16 = vpop.permute.xlu1 %3478 }
0x5742   :  { %3481 = vst.msk [vmem:[#allocation4 + $0x18] sm:$0xc] %vm801_vm2, %v3479_v16  ;;  %v4719_v16 = vand.u32 1, %v4685_v45 }
0x5743   :  { %3809 = vst.msk [vmem:[#allocation4 + $0x18] sm:$0xc] %vm795_vm14, %v7518_v53 }
0x5744   :  { %3563 = vrot.lane.b32.xlu2 %v7435_v9, %s5523_s2  ;;  %v4541_v9 = vrot.slane %v7679_v8, 6 }
0x5746   :  { %v4543_v13 = vmul.f32 %v4541_v9, %v4538_v31  ;;  %v7817_v31 = vand.u32 1, %v5660_v26  ;;  %v4686_v26 = vadd.s32 40, %v7813_v6 }
0x5748   :  { %vm4774_vm8 = vcmp.eq.s32.totalorder %v4712_v30, %v7817_v31  ;;  %vm4771_vm10 = vcmp.eq.s32.totalorder %v4691_v59, %v7817_v31  ;;  %vm4775_vm11 = vcmp.eq.s32.totalorder %v4719_v16, %v7817_v31  ;;  %vm4851_vm1 = vcmp.eq.s32.totalorder %v7817_v31, %v7813_v6 }
0x5749   :  { %v3728_v48 = vpop.permute.xlu1 %3727 }
0x574a   :  { %3730 = vst.msk [vmem:[#allocation4 + $0x14] sm:$0x3] %vm715_vm3, %v3728_v48  ;;  %v4682_v48 = vadd.s32 8, %v7813_v6 }
0x574c   :  { %3811 = vrot.lane.b32.xlu2 %v7518_v53, %s5523_s2 }
0x5751   :  { %v3982_v12 = vpop.permute.xlu1 %3981 }
0x5752   :  { %3984 = vst.msk [vmem:[#allocation4 + $0x8] sm:$0xc0] %vm975_vm4, %v3982_v12 }
0x5754   :  { %4060 = vrot.lane.b32.xlu2 %v7596_v56, %s5523_s2 }
0x5759   :  { %v4230_v21 = vpop.permute.xlu1 %4229 }
0x575a   :  { %4232 = vst.msk [vmem:[#allocation4 + $0x4] sm:$0x30] %vm888_vm5, %v4230_v21  ;;  %v4698_v21 = vand.u32 1, %v4682_v48 }
0x575c   :  { %4314 = vrot.lane.b32.xlu2 %v7659_v3, %s5523_s2 }
0x5761   :  { %v4478_v15 = vpop.permute.xlu1 %4477 }
0x5762   :  { %4480 = vst.msk [vmem:[#allocation4] sm:$0xc] %vm801_vm2, %v4478_v15 }
0x577e   :  { %v4551_v18 = vpop.permute.xlu2 %4550 }
0x577f   :  { %v4553_v53 = vadd.f32 %v4551_v18, %v4543_v13 }
0x5781   :  { %5382 = vtanh.f32 %v4553_v53  ;;  %v4726_v53 = vand.u32 1, %v4686_v26 }
0x5786   :  { %v2813_v20 = vpop.permute.xlu2 %2812 }
0x5787   :  { %v5383_v22 = vpop.eup %5382  ;;  %2815 = vst.msk [vmem:[#allocation4 + $0x28] sm:$0xc] %vm801_vm2, %v2813_v20  ;;  %v4683_v20 = vadd.s32 16, %v7813_v6  ;;  %v4911_v6 = vld [vmem:[%s7885_s6 + $0x28] sm:$0xff] }
0x5788   :  { %4475 = vst.msk [vmem:[#allocation4 + $0x28] sm:$0xc] %vm795_vm14, %v7685_v58  ;;  %4556 = vrot.lane.b32.xlu0 %v5383_v22, %s5523_s2 }
0x578e   :  { %v3062_v56 = vpop.permute.xlu2 %3061 }
0x578f   :  { %3064 = vst.msk [vmem:[#allocation4 + $0x24] sm:$0x3] %vm715_vm3, %v3062_v56  ;;  %v4705_v56 = vand.u32 1, %v4683_v20  ;;  %v4908_v20 = vld [vmem:[%s7885_s6 + $0x10] sm:$0xff] }
0x5790   :  { %4227 = vst.msk [vmem:[#allocation4 + $0x20] sm:$0x30] %vm882_vm15, %v7649_v38  ;;  %3145 = vrot.lane.b32.xlu0 %v7262_v50, %s5523_s2 }
0x5796   :  { %v3316_v3 = vpop.permute.xlu2 %3315 }
0x5797   :  { %3318 = vst.msk [vmem:[#allocation4 + $0x18] sm:$0xc0] %vm975_vm4, %v3316_v3 }
0x5798   :  { %3979 = vst.msk [vmem:[#allocation4 + $0x18] sm:$0xc0] %vm969_vm12, %v7570_v49  ;;  %3394 = vrot.lane.b32.xlu0 %v7374_v25, %s5523_s2  ;;  %vm4773_vm12 = vcmp.eq.s32.totalorder %v4705_v56, %v7817_v31 }
0x579e   :  { %v3564_v55 = vpop.permute.xlu2 %3563 }
0x579f   :  { %3566 = vst.msk [vmem:[#allocation4 + $0x14] sm:$0x30] %vm888_vm5, %v3564_v55 }
0x57a0   :  { %3725 = vst.msk [vmem:[#allocation4 + $0x18] sm:$0x3] %vm709_vm13, %v7491_v11  ;;  %3648 = vrot.lane.b32.xlu0 %v7463_v54, %s5523_s2  ;;  %vm4772_vm13 = vcmp.eq.s32.totalorder %v4698_v21, %v7817_v31 }
0x57a6   :  { %v3812_v38 = vpop.permute.xlu2 %3811 }
0x57a7   :  { %3814 = vst.msk [vmem:[#allocation4 + $0x10] sm:$0xc] %vm801_vm2, %v3812_v38 }
0x57a8   :  { %3896 = vrot.lane.b32.xlu0 %v7544_v37, %s5523_s2 }
0x57ae   :  { %v4061_v50 = vpop.permute.xlu2 %4060 }
0x57af   :  { %4063 = vst.msk [vmem:[#allocation4 + $0xc] sm:$0x3] %vm715_vm3, %v4061_v50 }
0x57b0   :  { %4144 = vrot.lane.b32.xlu0 %v7623_v33, %s5523_s2 }
0x57b6   :  { %v4315_v25 = vpop.permute.xlu2 %4314 }
0x57b7   :  { %4317 = vst.msk [vmem:[#allocation4] sm:$0xc0] %vm975_vm4, %v4315_v25 }
0x57b8   :  { %4393 = vrot.lane.b32.xlu0 %v7669_v14, %s5523_s2 }
0x57fa   :  { %v4557_v11 = vpop.permute.xlu0 %4556 }
0x57fb   :  { %v4559_v54 = vmul.f32 %v4557_v11, %v7695_v52 }
0x57fd   :  { %4560 = vst.msk [vmem:[#allocation4 + $0x28] sm:$0x30] %vm882_vm15, %v4559_v54  ;;  %4562 = vrot.lane.b32.xlu2 %v4559_v54, %s5523_s2 }
0x5802   :  { %v3146_v49 = vpop.permute.xlu0 %3145 }
0x5803   :  { %3148 = vst.msk [vmem:[#allocation4 + $0x20] sm:$0xc] %vm801_vm2, %v3146_v49 }
0x5804   :  { %4142 = vst.msk [vmem:[#allocation4 + $0x20] sm:$0xc] %vm795_vm14, %v7623_v33  ;;  %v4571_v40 = vld [vmem:[#allocation4 + $0x28] sm:$0x3f]  ;;  %vm4776_vm14 = vcmp.eq.s32.totalorder %v4726_v53, %v7817_v31  ;;  %v4910_v31 = vld [vmem:[%s7885_s6 + $0x20] sm:$0xff]  ;;  %v4909_v53 = vld [vmem:[%s7885_s6 + $0x18] sm:$0xff] }
0x5805   :  { %4588 = vrot.lane.b32.xlu0 %v4571_v40, %s5523_s2 }
0x580a   :  { %v3395_v63 = vpop.permute.xlu0 %3394 }
0x580b   :  { %3397 = vst.msk [vmem:[#allocation4 + $0x1c] sm:$0x3] %vm715_vm3, %v3395_v63  ;;  %v4570_v14 = vld [vmem:[#allocation4 + $0x20] sm:$0xff] }
0x580c   :  { %3894 = vst.msk [vmem:[#allocation4 + $0x18] sm:$0x30] %vm882_vm15, %v7544_v37  ;;  %4586 = vrot.lane.b32.xlu1 %v4570_v14, %s5523_s2  ;;  %vm4799_vm15 = vcmask 373760  }
0x5812   :  { %v3649_v24 = vpop.permute.xlu0 %3648 }
0x5813   :  { %3651 = vst.msk [vmem:[#allocation4 + $0x10] sm:$0xc0] %vm975_vm4, %v3649_v24  ;;  %v4569_v2 = vld [vmem:[#allocation4 + $0x18] sm:$0xff] }
0x5814   :  { %4584 = vrot.lane.b32.xlu2 %v4569_v2, %s5523_s2 }
0x581a   :  { %v3897_v32 = vpop.permute.xlu0 %3896 }
0x581b   :  { %3899 = vst.msk [vmem:[#allocation4 + $0xc] sm:$0x30] %vm888_vm5, %v3897_v32 }
0x5822   :  { %v4145_v33 = vpop.permute.xlu0 %4144  ;;  %v4568_v4 = vld [vmem:[#allocation4 + $0x10] sm:$0xff] }
0x5823   :  { %4147 = vst.msk [vmem:[#allocation4 + $0x8] sm:$0xc] %vm801_vm2, %v4145_v33  ;;  %4582 = vrot.lane.b32.xlu0 %v4568_v4, %s5523_s2  ;;  %vm4941_vm2 = vcmask 9216  }
0x582a   :  { %v4394_v57 = vpop.permute.xlu0 %4393  ;;  %v4567_v35 = vld [vmem:[#allocation4 + $0x8] sm:$0xff] }
0x582b   :  { %4396 = vst.msk [vmem:[#allocation4 + $0x4] sm:$0x3] %vm715_vm3, %v4394_v57  ;;  %4580 = vrot.lane.b32.xlu1 %v4567_v35, %s5523_s2 }
0x5857   :  { %v4563_v37 = vpop.permute.xlu2 %4562 }
0x5858   :  { %4565 = vst.msk [vmem:[#allocation4 - $0x4] sm:$0x30] %vm888_vm5, %v4563_v37 }
0x585f   :  { %v4566_v51 = vld [vmem:[#allocation4] sm:$0xff] }
0x5860   :  { %4578 = vrot.lane.b32.xlu2 %v4566_v51, %s5523_s2 }
0x586e   :  { %v4585_v5 = vpop.permute.xlu2 %4584 }
0x586f   :  { %v4600_v44 = vsel %vm4596_vm7, %v4569_v2, %v4585_v5 }
0x5870   :  { %v4606_v42 = vmul.f32 0.15811388, %v4600_v44 }
0x5877   :  { %v4589_v36 = vpop.permute.xlu0 %4588 }
0x5878   :  { %v4602_v61 = vsel %vm4596_vm7, %v4571_v40, %v4589_v36 }
0x5879   :  { %5066 = vmatpush.xpose.msk.msra.mxu0 %vm70_vm0, %v4602_v61  ;;  %5081 = vmatpush.msk.msrb.mxu2 %vm4857_vm6, %v4602_v61  ;;  %v4608_v27 = vmul.f32 0.15811388, %v4602_v61 }
0x587e   :  { %v4587_v0 = vpop.permute.xlu1 %4586 }
0x587f   :  { %v4601_v1 = vsel %vm4596_vm7, %v4570_v14, %v4587_v0 }
0x5880   :  { %5067 = vmatpush.xpose.msk.msra.mxu0 %vm70_vm0, %v4601_v1  ;;  %4897 = vmatpush.msrb.mxu2 %v4601_v1  ;;  %v4607_v60 = vmul.f32 0.15811388, %v4601_v1 }
0x5882   :  { %4898 = vmatpush.msrb.mxu2 %v4600_v44 }
0x5884   :  { %5068 = vmatpush.xpose.msk.msra.mxu0 %vm70_vm0, %v4600_v44 }
0x5895   :  { %v4583_v8 = vpop.permute.xlu0 %4582 }
0x5896   :  { %v4599_v34 = vsel %vm4596_vm7, %v4568_v4, %v4583_v8 }
0x5897   :  { %5069 = vmatpush.xpose.msk.msra.mxu0 %vm70_vm0, %v4599_v34  ;;  %4899 = vmatpush.msrb.mxu2 %v4599_v34  ;;  %v4605_v7 = vmul.f32 0.15811388, %v4599_v34 }
0x589d   :  { %v4581_v43 = vpop.permute.xlu1 %4580 }
0x589e   :  { %v4598_v58 = vsel %vm4596_vm7, %v4567_v35, %v4581_v43 }
0x589f   :  { %5070 = vmatpush.xpose.msk.msra.mxu0 %vm70_vm0, %v4598_v58  ;;  %4900 = vmatpush.msrb.mxu2 %v4598_v58  ;;  %v4604_v28 = vmul.f32 0.15811388, %v4598_v58 }
0x58ba   :  { %v4579_v17 = vpop.permute.xlu2 %4578 }
0x58bb   :  { %v4597_v47 = vsel %vm4596_vm7, %v4566_v51, %v4579_v17 }
0x58bc   :  { %v4603_v23 = vmul.f32 0.15811388, %v4597_v47  ;;  %5071 = vmatpush.xpose.msk.msra.mxu0 %vm70_vm0, %v4597_v47  ;;  %4901 = vmatpush.msrb.mxu2 %v4597_v47 }
0x58bf   :  { %5072 = vmatmul.msk.f32.vlgmr.msra.gmra.mxu0 %vm70_vm0, %v4603_v23 }
0x58c7   :  { %5073 = vmatmul.msk.f32.gmra.mxu0 %vm70_vm0, %v4604_v28 }
0x58cf   :  { %5074 = vmatmul.msk.f32.gmra.mxu0 %vm70_vm0, %v4605_v7 }
0x58d7   :  { %5075 = vmatmul.msk.f32.gmra.mxu0 %vm70_vm0, %v4606_v42 }
0x58df   :  { %5076 = vmatmul.msk.f32.gmra.mxu0 %vm70_vm0, %v4607_v60 }
0x58e7   :  { %5077 = vmatmul.msk.f32.gmra.mxu0 %vm70_vm0, %v4608_v27 }
0x593c   :  { %v4662_v52 = vpop.f32.mrf.mxu0 }
0x593d   :  { %v4777_v12 = vsel %vm4771_vm10, %v4662_v52, -1e+30 }
0x593e   :  { %v4784_v13 = vsel %vm4783_vm9, %v4777_v12, -inf }
0x5944   :  { %v4665_v41 = vpop.f32.mrf.mxu0 }
0x5945   :  { %v4778_v22 = vsel %vm4772_vm13, %v4665_v41, -1e+30 }
0x5946   :  { %v4787_v38 = vsel %vm4783_vm9, %v4778_v22, -inf }
0x594c   :  { %v4668_v19 = vpop.f32.mrf.mxu0 }
0x594d   :  { %v4779_v25 = vsel %vm4773_vm12, %v4668_v19, -1e+30 }
0x594e   :  { %v4790_v11 = vsel %vm4783_vm9, %v4779_v25, -inf }
0x5954   :  { %v4671_v62 = vpop.f32.mrf.mxu0 }
0x5955   :  { %v4780_v29 = vsel %vm4774_vm8, %v4671_v62, -1e+30 }
0x5956   :  { %v4793_v39 = vsel %vm4783_vm9, %v4780_v29, -inf }
0x5957   :  { %4794 = vmax.xlane.f32.xlu2 %v4793_v39 }
0x595c   :  { %v4674_v15 = vpop.f32.mrf.mxu0 }
0x595d   :  { %v4781_v9 = vsel %vm4775_vm11, %v4674_v15, -1e+30  ;;  %v7894_v15 = vmov 0.0  }
0x595e   :  { %v4796_v18 = vsel %vm4783_vm9, %v4781_v9, -inf }
0x595f   :  { %4785 = vmax.xlane.f32.xlu2 %v4784_v13  ;;  %4797 = vmax.xlane.f32.xlu1 %v4796_v18  ;;  %v4913_v13 = vld [vmem:[%s7885_s6 + $0x38] sm:$0xff]  ;;  %v4912_v18 = vld [vmem:[%s7885_s6 + $0x30] sm:$0xff] }
0x5960   :  { %4929 = vmatpush.msra.mxu3 %v4913_v13 }
0x5962   :  { %4930 = vmatpush.msra.mxu3 %v4912_v18 }
0x5964   :  { %v4677_v3 = vpop.f32.mrf.mxu0  ;;  %4931 = vmatpush.msra.mxu3 %v4911_v6 }
0x5965   :  { %v4782_v55 = vsel %vm4776_vm14, %v4677_v3, -1e+30  ;;  %v4906_v3 = vld [vmem:[%s7885_s6] sm:$0xff] }
0x5966   :  { %v4800_v50 = vsel %vm4799_vm15, %v4782_v55, -inf  ;;  %4932 = vmatpush.msra.mxu3 %v4910_v31 }
0x5967   :  { %4788 = vmax.xlane.f32.xlu1 %v4787_v38  ;;  %4801 = vmax.xlane.f32.xlu0 %v4800_v50  ;;  %v5107_v38 = vld [vmem:[%s7886_s7] ss:$0 sm:$0xff] }
0x5968   :  { %4933 = vmatpush.msra.mxu3 %v4909_v53 }
0x596a   :  { %4934 = vmatpush.msra.mxu3 %v4908_v20 }
0x596f   :  { %4791 = vmax.xlane.f32.xlu0 %v4790_v11 }
0x59ca   :  { %v4795_v54 = vpop.xlane.xlu2 %4794 }
0x59cb   :  { %v4806_v49 = vsub.f32 %v4780_v29, %v4795_v54 }
0x59cd   :  { %v4815_v40 = vmul.f32 1.442695, %v4806_v49 }
0x59cf   :  { %5384 = vpow2.f32 %v4815_v40 }
0x59d2   :  { %v4786_v63 = vpop.xlane.xlu2 %4785  ;;  %v4798_v14 = vpop.xlane.xlu1 %4797 }
0x59d3   :  { %v4803_v24 = vsub.f32 %v4777_v12, %v4786_v63  ;;  %v4807_v2 = vsub.f32 %v4781_v9, %v4798_v14  ;;  %v5078_v9 = vsel %vm4851_vm1, 1.0, %v7894_v15 }
0x59d5   :  { %v5385_v32 = vpop.eup %5384  ;;  %v4809_v33 = vmul.f32 1.442695, %v4803_v24  ;;  %v4817_v4 = vmul.f32 1.442695, %v4807_v2 }
0x59d6   :  { %v4830_v57 = vsel %vm4783_vm9, %v5385_v32, 0.0 }
0x59d7   :  { %5386 = vpow2.f32 %v4809_v33  ;;  %4831 = vadd.xlane.f32.xlu2 %v4830_v57 }
0x59d8   :  { %5388 = vpow2.f32 %v4817_v4 }
0x59da   :  { %v4789_v35 = vpop.xlane.xlu1 %4788  ;;  %v4802_v37 = vpop.xlane.xlu0 %4801 }
0x59db   :  { %v4804_v51 = vsub.f32 %v4778_v22, %v4789_v35  ;;  %v4808_v36 = vsub.f32 %v4782_v55, %v4802_v37  ;;  %v4907_v22 = vld [vmem:[%s7885_s6 + $0x8] sm:$0xff] }
0x59dc   :  { %4935 = vmatpush.msra.mxu3 %v4907_v22 }
0x59dd   :  { %v5387_v61 = vpop.eup %5386  ;;  %v4811_v5 = vmul.f32 1.442695, %v4804_v51  ;;  %v4819_v0 = vmul.f32 1.442695, %v4808_v36 }
0x59de   :  { %v5389_v1 = vpop.eup %5388  ;;  %v4821_v44 = vsel %vm4783_vm9, %v5387_v61, 0.0  ;;  %4936 = vmatpush.msra.mxu3 %v4906_v3 }
0x59df   :  { %5390 = vpow2.f32 %v4811_v5  ;;  %4822 = vadd.xlane.f32.xlu2 %v4821_v44  ;;  %v4833_v8 = vsel %vm4783_vm9, %v5389_v1, 0.0 }
0x59e0   :  { %5392 = vpow2.f32 %v4819_v0  ;;  %4834 = vadd.xlane.f32.xlu1 %v4833_v8 }
0x59e2   :  { %v4792_v34 = vpop.xlane.xlu0 %4791 }
0x59e3   :  { %v4805_v43 = vsub.f32 %v4779_v25, %v4792_v34 }
0x59e5   :  { %v5391_v58 = vpop.eup %5390  ;;  %v4813_v17 = vmul.f32 1.442695, %v4805_v43 }
0x59e6   :  { %v5393_v47 = vpop.eup %5392  ;;  %v4824_v23 = vsel %vm4783_vm9, %v5391_v58, 0.0 }
0x59e7   :  { %5394 = vpow2.f32 %v4813_v17  ;;  %v4836_v28 = vsel %vm4799_vm15, %v5393_v47, 0.0 }
0x59e8   :  { %4825 = vadd.xlane.f32.xlu1 %v4824_v23  ;;  %4837 = vadd.xlane.f32.xlu0 %v4836_v28 }
0x59ed   :  { %v5395_v7 = vpop.eup %5394 }
0x59ee   :  { %v4827_v42 = vsel %vm4783_vm9, %v5395_v7, 0.0 }
0x59f0   :  { %4828 = vadd.xlane.f32.xlu0 %v4827_v42 }
0x5a4a   :  { %v4832_v27 = vpop.xlane.xlu2 %4831 }
0x5a52   :  { %v4823_v19 = vpop.xlane.xlu2 %4822 }
0x5a53   :  { %v4835_v60 = vpop.xlane.xlu1 %4834 }
0x5a54   :  { %5396 = vrcp.f32 %v4835_v60 }
0x5a5a   :  { %v5397_v46 = vpop.eup %5396 }
0x5a5b   :  { %v4838_v52 = vpop.xlane.xlu0 %4837  ;;  %v4826_v41 = vpop.xlane.xlu1 %4825  ;;  %v4849_v62 = vmul.f32 %v5397_v46, %v5389_v1 }
0x5a5c   :  { %5398 = vrcp.f32 %v4838_v52 }
0x5a5d   :  { %5400 = vrcp.f32 %v4832_v27 }
0x5a5e   :  { %5402 = vrcp.f32 %v4826_v41 }
0x5a62   :  { %v5399_v10 = vpop.eup %5398 }
0x5a63   :  { %v4829_v30 = vpop.xlane.xlu0 %4828  ;;  %v4850_v45 = vmul.f32 %v5399_v10, %v5393_v47  ;;  %v5401_v59 = vpop.eup %5400 }
0x5a64   :  { %5404 = vrcp.f32 %v4829_v30  ;;  %v4848_v29 = vmul.f32 %v5401_v59, %v5385_v32  ;;  %v5403_v39 = vpop.eup %5402 }
0x5a65   :  { %5406 = vrcp.f32 %v4823_v19  ;;  %5079 = vmatpush.msk.msra.mxu1 %vm4857_vm6, %v4850_v45  ;;  %v4846_v12 = vmul.f32 %v5403_v39, %v5391_v58 }
0x5a67   :  { %4872 = vmatpush.msra.mxu1 %v4849_v62 }
0x5a69   :  { %4873 = vmatpush.msra.mxu1 %v4848_v29 }
0x5a6a   :  { %v5405_v16 = vpop.eup %5404 }
0x5a6b   :  { %v4847_v48 = vmul.f32 %v5405_v16, %v5395_v7  ;;  %v5407_v26 = vpop.eup %5406 }
0x5a6c   :  { %v4845_v21 = vmul.f32 %v5407_v26, %v5387_v61 }
0x5a6d   :  { %4874 = vmatpush.msra.mxu1 %v4847_v48 }
0x5a6f   :  { %4875 = vmatpush.msra.mxu1 %v4846_v12 }
0x5a71   :  { %4876 = vmatpush.msra.mxu1 %v4845_v21 }
0x5a72   :  { %5080 = vmatmul.msk.f32.vlgmr.msra.gmra.mxu1 %vm4783_vm9, %v5078_v9 }
0x5aef   :  { %v4878_v56 = vpop.f32.mrf.mxu1 }
0x5af0   :  { %5082 = vmatmul.msk.f32.vlgmr.msrb.gmra.mxu2 %vm4783_vm9, %v4878_v56 }
0x5b73   :  { %v4903_v55 = vpop.f32.mrf.mxu2 }
0x5b74   :  { %5083 = vmatmul.msk.f32.vlgmr.msra.gmra.mxu3 %vm70_vm0, %v4903_v55 }
0x5bf7   :  { %v4938_v50 = vpop.f32.mrf.mxu3 }
0x5bf8   :  { %v4939_v25 = vadd.f32 %v5107_v38, %v4938_v50 }
0x5bfa   :  { %4942 = vst.msk [vmem:[#allocation8] sm:$0x3] %vm4941_vm2, %v4939_v25 }
0x5bfb   :  { %4953 = dma.vmem_to_hbm [thread:$0]  %s4949_s23, 32, %s4951_s26, [#allocation7]  }
0x5bfc   :  { %5516 = dma.done.wait [#allocation7], 32  }
0x5bfd   :  { %5517 = vsyncadd [#allocation7], 4294967264 }
0x5bfe   :  { %4958 = vsyncpa [#allocation6], 1 }
0x5bff   :  { %4959 = vsyncpa [#allocation7], 1 }

</bundles_post_ra>
